<compile_context>
chip_gen: v6e
topology: v6e:2x2x1
jax: 0.10.0
libtpu: 0.0.40
codegen_flags: <defaults>
</compile_context>

<pallas_src>
import jax
import jax.numpy as jnp
from jax.experimental import pallas as pl
from jax.experimental.pallas import tpu as pltpu


def _round_up(x, m):
    return ((x + m - 1) // m) * m


def _pick_time_block(T, max_block=32):
    """Largest divisor of T that is <= max_block (timesteps per grid step)."""
    # TODO(synk): for prime/odd T this degrades to t_block=1 (one grid step per
    # timestep); a masked tail block would fix the ~0.35us/step overhead there.
    for tt in range(min(T, max_block), 0, -1):
        if T % tt == 0:
            return tt
    return 1


# --------------------------- input-projection kernel --------------------------
#
# gi_d = sum_c x_c @ W_ih[d, c] + b_gi[d]  for d in {fwd, bwd}, computed for a
# whole (t_block * B_pad)-row slab in one MXU matmul per direction/chunk.
# Chunks: layer 0 has one chunk (raw input); deeper layers have two chunks
# (forward / backward streams of the previous layer) — this replaces the
# per-layer concatenate.

def _make_gi_kernel(C):
    def kernel(*args):
        x_refs = args[:C]
        w_ih_ref = args[C]          # (2, C, D, G)
        b_ref = args[C + 1]         # (2, 1, G)
        gi_out = (args[C + 2], args[C + 3])   # fwd, bwd  (rows, G)
        for d in range(2):
            acc = b_ref[d].astype(jnp.float32)            # (1, G), broadcasts
            for c in range(C):
                acc = acc + jnp.dot(x_refs[c][...], w_ih_ref[d, c],
                                    preferred_element_type=jnp.float32)
            gi_out[d][...] = acc.astype(gi_out[d].dtype)
    return kernel


def gru_input_projection(x_chunks, w_ih, b_gi, t_block, Bp):
    """x_chunks: list of (T*Bp, D); w_ih: (2, C, D, G); b_gi: (2, 1, G)
       -> gi_fwd, gi_bwd: each (T*Bp, G)."""
    C = len(x_chunks)
    N, D = x_chunks[0].shape
    G = w_ih.shape[-1]
    rows = t_block * Bp
    nb_t = N // rows
    dtype = x_chunks[0].dtype

    in_specs = [pl.BlockSpec((rows, D), lambda t: (t, 0)) for _ in range(C)]
    in_specs += [
        pl.BlockSpec(w_ih.shape, lambda t: (0, 0, 0, 0)),
        pl.BlockSpec(b_gi.shape, lambda t: (0, 0, 0)),
    ]
    return pl.pallas_call(
        _make_gi_kernel(C),
        out_shape=(jax.ShapeDtypeStruct((N, G), dtype),
                   jax.ShapeDtypeStruct((N, G), dtype)),
        grid_spec=pltpu.PrefetchScalarGridSpec(
            num_scalar_prefetch=0,
            grid=(nb_t,),
            in_specs=in_specs,
            out_specs=[pl.BlockSpec((rows, G), lambda t: (t, 0)),
                       pl.BlockSpec((rows, G), lambda t: (t, 0))],
        ),
        compiler_params=pltpu.CompilerParams(dimension_semantics=("parallel",)),
    )(*x_chunks, w_ih, b_gi)


# ------------------------------ recurrence kernel -----------------------------
#
# One program per time block; both direction chains carried in scratch and
# interleaved per step (two independent (Bp,Hp)@(Hp,3Hp) matmuls + gate math),
# so the MXU/EUP latency bubbles of one chain are filled by the other on
# single-TensorCore chips.  The backward chain's gi/y blocks are selected with a
# reversed index_map; in-block indices are static (Python unroll).

def _gru_recurrence_kernel(gi_f_ref, gi_b_ref, w_hh_ref, b_hn_ref,
                           y_f_ref, y_b_ref, hT_ref, hf_scr, hb_scr):
    tb = pl.program_id(0)
    nb_t = pl.num_programs(0)
    Bp, Hp = hf_scr.shape
    Tt = gi_f_ref.shape[0] // Bp

    @pl.when(tb == 0)
    def _():
        hf_scr[...] = jnp.zeros_like(hf_scr)
        hb_scr[...] = jnp.zeros_like(hb_scr)

    w_f = w_hh_ref[0]                                 # (Hp, 3Hp)
    w_b = w_hh_ref[1]
    bn_f = b_hn_ref[0].astype(jnp.float32)            # (1, Hp)
    bn_b = b_hn_ref[1].astype(jnp.float32)

    h_f = hf_scr[...]
    h_b = hb_scr[...]

    def gate(gi, gh, bn, h):
        # gate slices are full 128-lane slabs (Hp is a multiple of 128)
        r = jax.nn.sigmoid(gi[:, :Hp] + gh[:, :Hp])
        z = jax.nn.sigmoid(gi[:, Hp:2 * Hp] + gh[:, Hp:2 * Hp])
        n = jnp.tanh(gi[:, 2 * Hp:] + r * (gh[:, 2 * Hp:] + bn))
        return n + z * (h - n)                        # == (1 - z) * n + z * h

    # TODO(synk): pltpu.matmul_push_rhs could stage W_hh in the MXU once per
    # block instead of re-issuing it with every jnp.dot.
    for i in range(Tt):                               # static unroll, static offsets
        j = Tt - 1 - i                                # backward chain walks its block reversed
        gif = gi_f_ref[pl.ds(i * Bp, Bp), :].astype(jnp.float32)
        gib = gi_b_ref[pl.ds(j * Bp, Bp), :].astype(jnp.float32)
        ghf = jnp.dot(h_f.astype(w_f.dtype), w_f, preferred_element_type=jnp.float32)
        ghb = jnp.dot(h_b.astype(w_b.dtype), w_b, preferred_element_type=jnp.float32)
        h_f = gate(gif, ghf, bn_f, h_f)
        h_b = gate(gib, ghb, bn_b, h_b)
        y_f_ref[pl.ds(i * Bp, Bp), :] = h_f.astype(y_f_ref.dtype)
        y_b_ref[pl.ds(j * Bp, Bp), :] = h_b.astype(y_b_ref.dtype)

    hf_scr[...] = h_f
    hb_scr[...] = h_b

    @pl.when(tb == nb_t - 1)                          # both chains finish on the last block
    def _():
        hT_ref[0] = h_f.astype(hT_ref.dtype)
        hT_ref[1] = h_b.astype(hT_ref.dtype)


def gru_recurrence(gi_f, gi_b, w_hh, b_hn, t_block, Bp):
    """gi_f/gi_b: (T*Bp, G); w_hh: (2, Hp, G); b_hn: (2, 1, Hp)
       -> y_f, y_b: (T*Bp, Hp) in forward-time order, hT: (2, Bp, Hp) f32."""
    N, G = gi_f.shape
    Hp = w_hh.shape[1]
    rows = t_block * Bp
    nb_t = N // rows
    dtype = gi_f.dtype

    return pl.pallas_call(
        _gru_recurrence_kernel,
        out_shape=(jax.ShapeDtypeStruct((N, Hp), dtype),
                   jax.ShapeDtypeStruct((N, Hp), dtype),
                   jax.ShapeDtypeStruct((2, Bp, Hp), jnp.float32)),
        grid_spec=pltpu.PrefetchScalarGridSpec(
            num_scalar_prefetch=0,
            grid=(nb_t,),
            in_specs=[
                pl.BlockSpec((rows, G), lambda t: (t, 0)),                 # fwd gi
                pl.BlockSpec((rows, G), lambda t: (nb_t - 1 - t, 0)),      # bwd gi (time-reversed)
                pl.BlockSpec(w_hh.shape, lambda t: (0, 0, 0)),
                pl.BlockSpec(b_hn.shape, lambda t: (0, 0, 0)),
            ],
            out_specs=[
                pl.BlockSpec((rows, Hp), lambda t: (t, 0)),                # y fwd
                pl.BlockSpec((rows, Hp), lambda t: (nb_t - 1 - t, 0)),     # y bwd
                pl.BlockSpec((2, Bp, Hp), lambda t: (0, 0, 0)),            # hT (final step only)
            ],
            scratch_shapes=[pltpu.VMEM((Bp, Hp), jnp.float32),
                            pltpu.VMEM((Bp, Hp), jnp.float32)],
        ),
        # The single grid axis carries the recurrence -> must stay sequential.
        compiler_params=pltpu.CompilerParams(dimension_semantics=("arbitrary",)),
    )(gi_f, gi_b, w_hh, b_hn)


# -------------------------------- MLP head kernel ------------------------------

def _mlp_head_kernel(x_ref, w1_ref, b1_ref, w2_ref, b2_ref, o_ref):
    h = jnp.dot(x_ref[...], w1_ref[...], preferred_element_type=jnp.float32) + b1_ref[...]
    h = jnp.where(h > 0, h, 0.01 * h)                 # LeakyReLU(negative_slope=0.01)
    o = jnp.dot(h, w2_ref[...], preferred_element_type=jnp.float32) + b2_ref[...]
    o_ref[...] = o.astype(o_ref.dtype)


def mlp_head(x, w1, b1, w2, b2):
    # TODO(synk): could be folded into the recurrence's final pl.when block to
    # save one tiny kernel launch; kept separate for clarity.
    return pl.pallas_call(
        _mlp_head_kernel,
        out_shape=jax.ShapeDtypeStruct((x.shape[0], w2.shape[1]), jnp.float32),
    )(x, w1, b1, w2, b2)


# --------------------------------- parameters ----------------------------------

def _embed_gates(raw, Hp):
    """raw: (..., 3H) gate order (r,z,n) -> (..., 3Hp), each gate zero-padded to Hp lanes."""
    H = raw.shape[-1] // 3
    out = jnp.zeros(raw.shape[:-1] + (3 * Hp,), raw.dtype)
    for g in range(3):
        out = out.at[..., g * Hp:g * Hp + H].set(raw[..., g * H:(g + 1) * H])
    return out


def init_params(key, d_in, d_hidden, nb_layers, d_out, dtype=jnp.float32):
    """Synthetic PyTorch-like U(-1/sqrt(H), 1/sqrt(H)) init in kernel layout:
      w_ih: (2, C, D_pad, 3*H_pad)   C=1 (layer 0) or 2 (deeper layers)
      w_hh: (2, H_pad, 3*H_pad)
      b_gi: (2, 1, 3*H_pad)          b_ih with b_hh's r/z columns folded in
      b_hn: (2, 1, H_pad)            b_hh's n column
    Padding rows/cols/lanes are zero so padded hidden lanes stay exactly zero.
    Pass dtype=jnp.bfloat16 for bf16 weight/activation streams (f32 accumulation)."""
    H = d_hidden
    Hp = _round_up(H, 128)
    G = 3 * Hp
    bound = 1.0 / (H ** 0.5)

    keys = list(jax.random.split(key, nb_layers * 8 + 4))
    ki = 0

    def u(shape, b):
        nonlocal ki
        k = keys[ki]
        ki += 1
        return jax.random.uniform(k, shape, jnp.float32, -b, b)

    layers = []
    for layer in range(nb_layers):
        C = 1 if layer == 0 else 2
        D_real = d_in if layer == 0 else H
        Dp = _round_up(d_in, 128) if layer == 0 else Hp

        w_ih = jnp.zeros((2, C, Dp, G), jnp.float32)
        w_hh = jnp.zeros((2, Hp, G), jnp.float32)
        b_gi = jnp.zeros((2, 1, G), jnp.float32)
        b_hn = jnp.zeros((2, 1, Hp), jnp.float32)
        for d in range(2):
            w_ih_raw = u((C, D_real, 3 * H), bound)
            w_hh_raw = u((H, 3 * H), bound)
            b_ih_raw = u((1, 3 * H), bound)
            b_hh_raw = u((1, 3 * H), bound)

            w_ih = w_ih.at[d, :, :D_real, :].set(_embed_gates(w_ih_raw, Hp))
            w_hh = w_hh.at[d, :H, :].set(_embed_gates(w_hh_raw, Hp))
            # Fold b_ih (all gates) + b_hh (r, z gates) into the projection bias;
            # the n-gate b_hh column stays separate (used inside r * (gh_n + b_hn)).
            b_fold = (b_ih_raw + b_hh_raw).at[:, 2 * H:].set(b_ih_raw[:, 2 * H:])
            b_gi = b_gi.at[d].set(_embed_gates(b_fold, Hp))
            b_hn = b_hn.at[d, :, :H].set(b_hh_raw[:, 2 * H:])

        layers.append(dict(
            w_ih=w_ih.astype(dtype),
            w_hh=w_hh.astype(dtype),
            b_gi=b_gi,                       # biases stay f32
            b_hn=b_hn,
        ))

    d_pred_in = d_in * d_hidden              # head shapes only match the GRU when d_in == 2
    d_pred_mid = d_pred_in // 2
    b1b = 1.0 / (d_pred_in ** 0.5)
    b2b = 1.0 / (d_pred_mid ** 0.5)
    return dict(
        layers=layers,
        w1=u((d_pred_in, d_pred_mid), b1b),
        b1=u((1, d_pred_mid), b1b),
        w2=u((d_pred_mid, d_out), b2b),
        b2=u((1, d_out), b2b),
    )


# ----------------------------------- forward -----------------------------------

def gru_model_forward(params, X, d_hidden, nb_layers):
    """X: (B, d_in, T) -- same input convention as the PyTorch module's forward()."""
    assert len(params["layers"]) == nb_layers
    H = d_hidden
    Hp = params["layers"][0]["w_hh"].shape[1]
    dtype = params["layers"][0]["w_ih"].dtype
    B, d_in, T = X.shape
    Bp = _round_up(B, 8)                      # sublane-pad the batch (padded rows are zero)
    t_block = _pick_time_block(T)

    # torch does X.transpose(2, 1) -> (B, T, d_in); kernels run on flattened,
    # padded (T*Bp, D_pad) row slabs (lane-dense last dim).
    Dp0 = params["layers"][0]["w_ih"].shape[2]
    x0 = jnp.transpose(X, (2, 0, 1)).astype(dtype)          # (T, B, d_in)
    x0 = jnp.pad(x0, ((0, 0), (0, Bp - B), (0, Dp0 - d_in)))
    x_chunks = [x0.reshape(T * Bp, Dp0)]

    hT = None
    for lp in params["layers"]:
        gi_f, gi_b = gru_input_projection(x_chunks, lp["w_ih"], lp["b_gi"], t_block, Bp)
        y_f, y_b, hT = gru_recurrence(gi_f, gi_b, lp["w_hh"], lp["b_hn"], t_block, Bp)
        x_chunks = [y_f, y_b]                 # next layer consumes the two streams as chunks
        # TODO(synk): nn.GRU dropout=0.5 only applies between layers in train mode;
        # eval-mode (no dropout) semantics are implemented here.

    # Last layer's h_n is (2, B, H) = [fwd_final, bwd_final]; the module then does
    # h_n.reshape(-1, 2H) -- reproduce that exact row-major reshape (it interleaves
    # batch rows for B > 1, faithfully matching the original PyTorch module).
    hT_real = hT[:, :B, :H]                   # strip batch / lane padding
    feats = hT_real.reshape(-1, 2 * H).astype(jnp.float32)
    return mlp_head(feats, params["w1"], params["b1"], params["w2"], params["b2"])


# ------------------------------------- main -------------------------------------

if __name__ == "__main__":
    # The module's pred head takes d_in * d_hidden features but is fed 2 * d_hidden,
    # so (as in PyTorch) the forward only shape-checks when d_in == 2.
    d_in, d_hidden, nb_layers, T, d_out = 2, 32, 2, 8, 4
    B = 2
    assert d_in == 2, "module's pred head shape only matches when d_in == 2"

    key = jax.random.PRNGKey(0)
    pkey, xkey = jax.random.split(key)
    params = init_params(pkey, d_in, d_hidden, nb_layers, d_out)
    X = jax.random.normal(xkey, (B, d_in, T), dtype=jnp.float32)

    fwd = jax.jit(lambda p, x: gru_model_forward(p, x, d_hidden, nb_layers))
    out = jax.block_until_ready(fwd(params, X))
    assert out.shape == (B, d_out)
    print("KERNEL_OK")
</pallas_src>

<mosaic_0001>
module attributes {stable_mosaic.version = 11 : i64} {
  func.func @kernel(%arg0: i32, %arg1: memref<64x128xf32, #tpu.memory_space<vmem>>, %arg2: memref<2x1x128x384xf32, #tpu.memory_space<vmem>>, %arg3: memref<2x1x384xf32, #tpu.memory_space<vmem>>, %arg4: memref<64x384xf32, #tpu.memory_space<vmem>>, %arg5: memref<64x384xf32, #tpu.memory_space<vmem>>) attributes {dimension_semantics = [#tpu.dimension_semantics<parallel>], iteration_bounds = array<i64: 1>, scalar_prefetch = 0 : i64, scratch_operands = 0 : i64, tpu.core_type = #tpu.core_type<tc>, window_params = [{transform_indices = @transform_0, window_bounds = array<i64: 64, 128>}, {pipeline_mode = #tpu.pipeline_mode<synchronous>, transform_indices = @transform_1, window_bounds = array<i64: 2, 1, 128, 384>}, {pipeline_mode = #tpu.pipeline_mode<synchronous>, transform_indices = @transform_2, window_bounds = array<i64: 2, 1, 384>}, {transform_indices = @transform_3, window_bounds = array<i64: 64, 384>}, {transform_indices = @transform_4, window_bounds = array<i64: 64, 384>}]} {
    %c0 = arith.constant 0 : index
    %c0_0 = arith.constant 0 : index
    %c0_1 = arith.constant 0 : index
    %0 = vector.load %arg3[%c0, %c0_0, %c0_1] : memref<2x1x384xf32, #tpu.memory_space<vmem>>, vector<1x1x384xf32>
    %1 = vector.shape_cast %0 : vector<1x1x384xf32> to vector<1x384xf32>
    %c0_2 = arith.constant 0 : index
    %c0_3 = arith.constant 0 : index
    %2 = vector.load %arg1[%c0_2, %c0_3] : memref<64x128xf32, #tpu.memory_space<vmem>>, vector<64x128xf32>
    %c0_4 = arith.constant 0 : index
    %c0_5 = arith.constant 0 : index
    %c0_6 = arith.constant 0 : index
    %c0_7 = arith.constant 0 : index
    %3 = vector.load %arg2[%c0_4, %c0_5, %c0_6, %c0_7] : memref<2x1x128x384xf32, #tpu.memory_space<vmem>>, vector<1x1x128x384xf32>
    %4 = vector.shape_cast %3 : vector<1x1x128x384xf32> to vector<128x384xf32>
    %cst = arith.constant dense<0.000000e+00> : vector<64x384xf32>
    %5 = tpu.matmul %2, %4, %cst {dimension_numbers = #tpu.dot_dimension_numbers<[1], [0], [0], [1], [0, 0, 1, 1], [], []>} : vector<64x128xf32>, vector<128x384xf32>, vector<64x384xf32> -> vector<64x384xf32>
    %6 = vector.broadcast %1 : vector<1x384xf32> to vector<64x384xf32>
    %7 = arith.addf %6, %5 : vector<64x384xf32>
    %c0_8 = arith.constant 0 : index
    %c0_9 = arith.constant 0 : index
    %8 = vector.load %arg4[%c0_8, %c0_9] : memref<64x384xf32, #tpu.memory_space<vmem>>, vector<64x384xf32>
    tpu.vector_store %arg4[%c0_8, %c0_9], %7 {strides = array<i32>} : memref<64x384xf32, #tpu.memory_space<vmem>>, vector<64x384xf32>,
    %c1 = arith.constant 1 : index
    %c0_10 = arith.constant 0 : index
    %c0_11 = arith.constant 0 : index
    %9 = vector.load %arg3[%c1, %c0_10, %c0_11] : memref<2x1x384xf32, #tpu.memory_space<vmem>>, vector<1x1x384xf32>
    %10 = vector.shape_cast %9 : vector<1x1x384xf32> to vector<1x384xf32>
    %c0_12 = arith.constant 0 : index
    %c0_13 = arith.constant 0 : index
    %11 = vector.load %arg1[%c0_12, %c0_13] : memref<64x128xf32, #tpu.memory_space<vmem>>, vector<64x128xf32>
    %c1_14 = arith.constant 1 : index
    %c0_15 = arith.constant 0 : index
    %c0_16 = arith.constant 0 : index
    %c0_17 = arith.constant 0 : index
    %12 = vector.load %arg2[%c1_14, %c0_15, %c0_16, %c0_17] : memref<2x1x128x384xf32, #tpu.memory_space<vmem>>, vector<1x1x128x384xf32>
    %13 = vector.shape_cast %12 : vector<1x1x128x384xf32> to vector<128x384xf32>
    %cst_18 = arith.constant dense<0.000000e+00> : vector<64x384xf32>
    %14 = tpu.matmul %11, %13, %cst_18 {dimension_numbers = #tpu.dot_dimension_numbers<[1], [0], [0], [1], [0, 0, 1, 1], [], []>} : vector<64x128xf32>, vector<128x384xf32>, vector<64x384xf32> -> vector<64x384xf32>
    %15 = vector.broadcast %10 : vector<1x384xf32> to vector<64x384xf32>
    %16 = arith.addf %15, %14 : vector<64x384xf32>
    %c0_19 = arith.constant 0 : index
    %c0_20 = arith.constant 0 : index
    %17 = vector.load %arg5[%c0_19, %c0_20] : memref<64x384xf32, #tpu.memory_space<vmem>>, vector<64x384xf32>
    tpu.vector_store %arg5[%c0_19, %c0_20], %16 {strides = array<i32>} : memref<64x384xf32, #tpu.memory_space<vmem>>, vector<64x384xf32>,
    return
  }
  func.func @transform_0(%arg0: i32) -> (i32, i32) {
    %c0_i32 = arith.constant 0 : i32
    %c0_i32_0 = arith.constant 0 : i32
    return %arg0, %c0_i32 : i32, i32
  }
  func.func @transform_1(%arg0: i32) -> (i32, i32, i32, i32) {
    %c0_i32 = arith.constant 0 : i32
    %c0_i32_0 = arith.constant 0 : i32
    %c0_i32_1 = arith.constant 0 : i32
    %c0_i32_2 = arith.constant 0 : i32
    %c0_i32_3 = arith.constant 0 : i32
    return %c0_i32, %c0_i32_0, %c0_i32_1, %c0_i32_2 : i32, i32, i32, i32
  }
  func.func @transform_2(%arg0: i32) -> (i32, i32, i32) {
    %c0_i32 = arith.constant 0 : i32
    %c0_i32_0 = arith.constant 0 : i32
    %c0_i32_1 = arith.constant 0 : i32
    %c0_i32_2 = arith.constant 0 : i32
    return %c0_i32, %c0_i32_0, %c0_i32_1 : i32, i32, i32
  }
  func.func @transform_3(%arg0: i32) -> (i32, i32) {
    %c0_i32 = arith.constant 0 : i32
    %c0_i32_0 = arith.constant 0 : i32
    return %arg0, %c0_i32 : i32, i32
  }
  func.func @transform_4(%arg0: i32) -> (i32, i32) {
    %c0_i32 = arith.constant 0 : i32
    %c0_i32_0 = arith.constant 0 : i32
    return %arg0, %c0_i32 : i32, i32
  }
}

module attributes {stable_mosaic.version = 11 : i64} {
  func.func @_gru_recurrence_kernel(%arg0: i32, %arg1: memref<64x384xf32, #tpu.memory_space<vmem>>, %arg2: memref<64x384xf32, #tpu.memory_space<vmem>>, %arg3: memref<2x128x384xf32, #tpu.memory_space<vmem>>, %arg4: memref<2x1x128xf32, #tpu.memory_space<vmem>>, %arg5: memref<64x128xf32, #tpu.memory_space<vmem>>, %arg6: memref<64x128xf32, #tpu.memory_space<vmem>>, %arg7: memref<2x8x128xf32, #tpu.memory_space<vmem>>, %arg8: memref<8x128xf32, #tpu.memory_space<vmem>>, %arg9: memref<8x128xf32, #tpu.memory_space<vmem>>) attributes {dimension_semantics = [#tpu.dimension_semantics<arbitrary>], iteration_bounds = array<i64: 1>, scalar_prefetch = 0 : i64, scratch_operands = 2 : i64, tpu.core_type = #tpu.core_type<tc>, window_params = [{transform_indices = @transform_0, window_bounds = array<i64: 64, 384>}, {transform_indices = @transform_1, window_bounds = array<i64: 64, 384>}, {pipeline_mode = #tpu.pipeline_mode<synchronous>, transform_indices = @transform_2, window_bounds = array<i64: 2, 128, 384>}, {pipeline_mode = #tpu.pipeline_mode<synchronous>, transform_indices = @transform_3, window_bounds = array<i64: 2, 1, 128>}, {transform_indices = @transform_4, window_bounds = array<i64: 64, 128>}, {transform_indices = @transform_5, window_bounds = array<i64: 64, 128>}, {pipeline_mode = #tpu.pipeline_mode<synchronous>, transform_indices = @transform_6, window_bounds = array<i64: 2, 8, 128>}]} {
    %c0_i32 = arith.constant 0 : i32
    %0 = arith.cmpi eq, %arg0, %c0_i32 : i32
    %1 = arith.extui %0 : i1 to i32
    %c0_i32_0 = arith.constant 0 : i32
    %2 = arith.cmpi ne, %1, %c0_i32_0 : i32
    scf.if %2 {
      %cst_125 = arith.constant 0.000000e+00 : f32
      %482 = vector.broadcast %cst_125 : f32 to vector<8x128xf32>
      %c0_126 = arith.constant 0 : index
      %c0_127 = arith.constant 0 : index
      %483 = vector.load %arg8[%c0_126, %c0_127] : memref<8x128xf32, #tpu.memory_space<vmem>>, vector<8x128xf32>
      tpu.vector_store %arg8[%c0_126, %c0_127], %482 {strides = array<i32>} : memref<8x128xf32, #tpu.memory_space<vmem>>, vector<8x128xf32>,
      %cst_128 = arith.constant 0.000000e+00 : f32
      %484 = vector.broadcast %cst_128 : f32 to vector<8x128xf32>
      %c0_129 = arith.constant 0 : index
      %c0_130 = arith.constant 0 : index
      %485 = vector.load %arg9[%c0_129, %c0_130] : memref<8x128xf32, #tpu.memory_space<vmem>>, vector<8x128xf32>
      tpu.vector_store %arg9[%c0_129, %c0_130], %484 {strides = array<i32>} : memref<8x128xf32, #tpu.memory_space<vmem>>, vector<8x128xf32>,
    } else {
    }
    %c0 = arith.constant 0 : index
    %c0_1 = arith.constant 0 : index
    %c0_2 = arith.constant 0 : index
    %3 = vector.load %arg3[%c0, %c0_1, %c0_2] : memref<2x128x384xf32, #tpu.memory_space<vmem>>, vector<1x128x384xf32>
    %4 = vector.shape_cast %3 : vector<1x128x384xf32> to vector<128x384xf32>
    %c1 = arith.constant 1 : index
    %c0_3 = arith.constant 0 : index
    %c0_4 = arith.constant 0 : index
    %5 = vector.load %arg3[%c1, %c0_3, %c0_4] : memref<2x128x384xf32, #tpu.memory_space<vmem>>, vector<1x128x384xf32>
    %6 = vector.shape_cast %5 : vector<1x128x384xf32> to vector<128x384xf32>
    %c0_5 = arith.constant 0 : index
    %c0_6 = arith.constant 0 : index
    %c0_7 = arith.constant 0 : index
    %7 = vector.load %arg4[%c0_5, %c0_6, %c0_7] : memref<2x1x128xf32, #tpu.memory_space<vmem>>, vector<1x1x128xf32>
    %8 = vector.shape_cast %7 : vector<1x1x128xf32> to vector<1x128xf32>
    %c1_8 = arith.constant 1 : index
    %c0_9 = arith.constant 0 : index
    %c0_10 = arith.constant 0 : index
    %9 = vector.load %arg4[%c1_8, %c0_9, %c0_10] : memref<2x1x128xf32, #tpu.memory_space<vmem>>, vector<1x1x128xf32>
    %10 = vector.shape_cast %9 : vector<1x1x128xf32> to vector<1x128xf32>
    %c0_11 = arith.constant 0 : index
    %c0_12 = arith.constant 0 : index
    %11 = vector.load %arg8[%c0_11, %c0_12] : memref<8x128xf32, #tpu.memory_space<vmem>>, vector<8x128xf32>
    %c0_13 = arith.constant 0 : index
    %c0_14 = arith.constant 0 : index
    %12 = vector.load %arg9[%c0_13, %c0_14] : memref<8x128xf32, #tpu.memory_space<vmem>>, vector<8x128xf32>
    %c0_15 = arith.constant 0 : index
    %c0_16 = arith.constant 0 : index
    %13 = vector.load %arg1[%c0_15, %c0_16] : memref<64x384xf32, #tpu.memory_space<vmem>>, vector<8x384xf32>
    %c56 = arith.constant 56 : index
    %c0_17 = arith.constant 0 : index
    %14 = vector.load %arg2[%c56, %c0_17] : memref<64x384xf32, #tpu.memory_space<vmem>>, vector<8x384xf32>
    %cst = arith.constant dense<0.000000e+00> : vector<8x384xf32>
    %15 = tpu.matmul %11, %4, %cst {dimension_numbers = #tpu.dot_dimension_numbers<[1], [0], [0], [1], [0, 0, 1, 1], [], []>} : vector<8x128xf32>, vector<128x384xf32>, vector<8x384xf32> -> vector<8x384xf32>
    %cst_18 = arith.constant dense<0.000000e+00> : vector<8x384xf32>
    %16 = tpu.matmul %12, %6, %cst_18 {dimension_numbers = #tpu.dot_dimension_numbers<[1], [0], [0], [1], [0, 0, 1, 1], [], []>} : vector<8x128xf32>, vector<128x384xf32>, vector<8x384xf32> -> vector<8x384xf32>
    %17 = vector.extract_strided_slice %13 {offsets = [0, 0], sizes = [8, 128], strides = [1, 1]} : vector<8x384xf32> to vector<8x128xf32>
    %18 = vector.extract_strided_slice %15 {offsets = [0, 0], sizes = [8, 128], strides = [1, 1]} : vector<8x384xf32> to vector<8x128xf32>
    %19 = arith.addf %17, %18 : vector<8x128xf32>
    %20 = arith.negf %19 : vector<8x128xf32>
    %21 = math.exp %20 : vector<8x128xf32>
    %cst_19 = arith.constant 1.000000e+00 : f32
    %22 = vector.broadcast %cst_19 : f32 to vector<8x128xf32>
    %23 = arith.addf %22, %21 : vector<8x128xf32>
    %24 = arith.divf %22, %23 : vector<8x128xf32>
    %25 = vector.extract_strided_slice %13 {offsets = [0, 128], sizes = [8, 128], strides = [1, 1]} : vector<8x384xf32> to vector<8x128xf32>
    %26 = vector.extract_strided_slice %15 {offsets = [0, 128], sizes = [8, 128], strides = [1, 1]} : vector<8x384xf32> to vector<8x128xf32>
    %27 = arith.addf %25, %26 : vector<8x128xf32>
    %28 = arith.negf %27 : vector<8x128xf32>
    %29 = math.exp %28 : vector<8x128xf32>
    %cst_20 = arith.constant 1.000000e+00 : f32
    %30 = vector.broadcast %cst_20 : f32 to vector<8x128xf32>
    %31 = arith.addf %30, %29 : vector<8x128xf32>
    %32 = arith.divf %30, %31 : vector<8x128xf32>
    %33 = vector.extract_strided_slice %13 {offsets = [0, 256], sizes = [8, 128], strides = [1, 1]} : vector<8x384xf32> to vector<8x128xf32>
    %34 = vector.extract_strided_slice %15 {offsets = [0, 256], sizes = [8, 128], strides = [1, 1]} : vector<8x384xf32> to vector<8x128xf32>
    %35 = vector.broadcast %8 : vector<1x128xf32> to vector<8x128xf32>
    %36 = arith.addf %34, %35 : vector<8x128xf32>
    %37 = arith.mulf %24, %36 : vector<8x128xf32>
    %38 = arith.addf %33, %37 : vector<8x128xf32>
    %39 = math.tanh %38 : vector<8x128xf32>
    %40 = arith.subf %11, %39 : vector<8x128xf32>
    %41 = arith.mulf %32, %40 : vector<8x128xf32>
    %42 = arith.addf %39, %41 : vector<8x128xf32>
    %43 = vector.extract_strided_slice %14 {offsets = [0, 0], sizes = [8, 128], strides = [1, 1]} : vector<8x384xf32> to vector<8x128xf32>
    %44 = vector.extract_strided_slice %16 {offsets = [0, 0], sizes = [8, 128], strides = [1, 1]} : vector<8x384xf32> to vector<8x128xf32>
    %45 = arith.addf %43, %44 : vector<8x128xf32>
    %46 = arith.negf %45 : vector<8x128xf32>
    %47 = math.exp %46 : vector<8x128xf32>
    %cst_21 = arith.constant 1.000000e+00 : f32
    %48 = vector.broadcast %cst_21 : f32 to vector<8x128xf32>
    %49 = arith.addf %48, %47 : vector<8x128xf32>
    %50 = arith.divf %48, %49 : vector<8x128xf32>
    %51 = vector.extract_strided_slice %14 {offsets = [0, 128], sizes = [8, 128], strides = [1, 1]} : vector<8x384xf32> to vector<8x128xf32>
    %52 = vector.extract_strided_slice %16 {offsets = [0, 128], sizes = [8, 128], strides = [1, 1]} : vector<8x384xf32> to vector<8x128xf32>
    %53 = arith.addf %51, %52 : vector<8x128xf32>
    %54 = arith.negf %53 : vector<8x128xf32>
    %55 = math.exp %54 : vector<8x128xf32>
    %cst_22 = arith.constant 1.000000e+00 : f32
    %56 = vector.broadcast %cst_22 : f32 to vector<8x128xf32>
    %57 = arith.addf %56, %55 : vector<8x128xf32>
    %58 = arith.divf %56, %57 : vector<8x128xf32>
    %59 = vector.extract_strided_slice %14 {offsets = [0, 256], sizes = [8, 128], strides = [1, 1]} : vector<8x384xf32> to vector<8x128xf32>
    %60 = vector.extract_strided_slice %16 {offsets = [0, 256], sizes = [8, 128], strides = [1, 1]} : vector<8x384xf32> to vector<8x128xf32>
    %61 = vector.broadcast %10 : vector<1x128xf32> to vector<8x128xf32>
    %62 = arith.addf %60, %61 : vector<8x128xf32>
    %63 = arith.mulf %50, %62 : vector<8x128xf32>
    %64 = arith.addf %59, %63 : vector<8x128xf32>
    %65 = math.tanh %64 : vector<8x128xf32>
    %66 = arith.subf %12, %65 : vector<8x128xf32>
    %67 = arith.mulf %58, %66 : vector<8x128xf32>
    %68 = arith.addf %65, %67 : vector<8x128xf32>
    %c0_23 = arith.constant 0 : index
    %c0_24 = arith.constant 0 : index
    %69 = vector.load %arg5[%c0_23, %c0_24] : memref<64x128xf32, #tpu.memory_space<vmem>>, vector<8x128xf32>
    tpu.vector_store %arg5[%c0_23, %c0_24], %42 {strides = array<i32>} : memref<64x128xf32, #tpu.memory_space<vmem>>, vector<8x128xf32>,
    %c56_25 = arith.constant 56 : index
    %c0_26 = arith.constant 0 : index
    %70 = vector.load %arg6[%c56_25, %c0_26] : memref<64x128xf32, #tpu.memory_space<vmem>>, vector<8x128xf32>
    tpu.vector_store %arg6[%c56_25, %c0_26], %68 {strides = array<i32>} : memref<64x128xf32, #tpu.memory_space<vmem>>, vector<8x128xf32>,
    %c8 = arith.constant 8 : index
    %c0_27 = arith.constant 0 : index
    %71 = vector.load %arg1[%c8, %c0_27] : memref<64x384xf32, #tpu.memory_space<vmem>>, vector<8x384xf32>
    %c48 = arith.constant 48 : index
    %c0_28 = arith.constant 0 : index
    %72 = vector.load %arg2[%c48, %c0_28] : memref<64x384xf32, #tpu.memory_space<vmem>>, vector<8x384xf32>
    %cst_29 = arith.constant dense<0.000000e+00> : vector<8x384xf32>
    %73 = tpu.matmul %42, %4, %cst_29 {dimension_numbers = #tpu.dot_dimension_numbers<[1], [0], [0], [1], [0, 0, 1, 1], [], []>} : vector<8x128xf32>, vector<128x384xf32>, vector<8x384xf32> -> vector<8x384xf32>
    %cst_30 = arith.constant dense<0.000000e+00> : vector<8x384xf32>
    %74 = tpu.matmul %68, %6, %cst_30 {dimension_numbers = #tpu.dot_dimension_numbers<[1], [0], [0], [1], [0, 0, 1, 1], [], []>} : vector<8x128xf32>, vector<128x384xf32>, vector<8x384xf32> -> vector<8x384xf32>
    %75 = vector.extract_strided_slice %71 {offsets = [0, 0], sizes = [8, 128], strides = [1, 1]} : vector<8x384xf32> to vector<8x128xf32>
    %76 = vector.extract_strided_slice %73 {offsets = [0, 0], sizes = [8, 128], strides = [1, 1]} : vector<8x384xf32> to vector<8x128xf32>
    %77 = arith.addf %75, %76 : vector<8x128xf32>
    %78 = arith.negf %77 : vector<8x128xf32>
    %79 = math.exp %78 : vector<8x128xf32>
    %cst_31 = arith.constant 1.000000e+00 : f32
    %80 = vector.broadcast %cst_31 : f32 to vector<8x128xf32>
    %81 = arith.addf %80, %79 : vector<8x128xf32>
    %82 = arith.divf %80, %81 : vector<8x128xf32>
    %83 = vector.extract_strided_slice %71 {offsets = [0, 128], sizes = [8, 128], strides = [1, 1]} : vector<8x384xf32> to vector<8x128xf32>
    %84 = vector.extract_strided_slice %73 {offsets = [0, 128], sizes = [8, 128], strides = [1, 1]} : vector<8x384xf32> to vector<8x128xf32>
    %85 = arith.addf %83, %84 : vector<8x128xf32>
    %86 = arith.negf %85 : vector<8x128xf32>
    %87 = math.exp %86 : vector<8x128xf32>
    %cst_32 = arith.constant 1.000000e+00 : f32
    %88 = vector.broadcast %cst_32 : f32 to vector<8x128xf32>
    %89 = arith.addf %88, %87 : vector<8x128xf32>
    %90 = arith.divf %88, %89 : vector<8x128xf32>
    %91 = vector.extract_strided_slice %71 {offsets = [0, 256], sizes = [8, 128], strides = [1, 1]} : vector<8x384xf32> to vector<8x128xf32>
    %92 = vector.extract_strided_slice %73 {offsets = [0, 256], sizes = [8, 128], strides = [1, 1]} : vector<8x384xf32> to vector<8x128xf32>
    %93 = vector.broadcast %8 : vector<1x128xf32> to vector<8x128xf32>
    %94 = arith.addf %92, %93 : vector<8x128xf32>
    %95 = arith.mulf %82, %94 : vector<8x128xf32>
    %96 = arith.addf %91, %95 : vector<8x128xf32>
    %97 = math.tanh %96 : vector<8x128xf32>
    %98 = arith.subf %42, %97 : vector<8x128xf32>
    %99 = arith.mulf %90, %98 : vector<8x128xf32>
    %100 = arith.addf %97, %99 : vector<8x128xf32>
    %101 = vector.extract_strided_slice %72 {offsets = [0, 0], sizes = [8, 128], strides = [1, 1]} : vector<8x384xf32> to vector<8x128xf32>
    %102 = vector.extract_strided_slice %74 {offsets = [0, 0], sizes = [8, 128], strides = [1, 1]} : vector<8x384xf32> to vector<8x128xf32>
    %103 = arith.addf %101, %102 : vector<8x128xf32>
    %104 = arith.negf %103 : vector<8x128xf32>
    %105 = math.exp %104 : vector<8x128xf32>
    %cst_33 = arith.constant 1.000000e+00 : f32
    %106 = vector.broadcast %cst_33 : f32 to vector<8x128xf32>
    %107 = arith.addf %106, %105 : vector<8x128xf32>
    %108 = arith.divf %106, %107 : vector<8x128xf32>
    %109 = vector.extract_strided_slice %72 {offsets = [0, 128], sizes = [8, 128], strides = [1, 1]} : vector<8x384xf32> to vector<8x128xf32>
    %110 = vector.extract_strided_slice %74 {offsets = [0, 128], sizes = [8, 128], strides = [1, 1]} : vector<8x384xf32> to vector<8x128xf32>
    %111 = arith.addf %109, %110 : vector<8x128xf32>
    %112 = arith.negf %111 : vector<8x128xf32>
    %113 = math.exp %112 : vector<8x128xf32>
    %cst_34 = arith.constant 1.000000e+00 : f32
    %114 = vector.broadcast %cst_34 : f32 to vector<8x128xf32>
    %115 = arith.addf %114, %113 : vector<8x128xf32>
    %116 = arith.divf %114, %115 : vector<8x128xf32>
    %117 = vector.extract_strided_slice %72 {offsets = [0, 256], sizes = [8, 128], strides = [1, 1]} : vector<8x384xf32> to vector<8x128xf32>
    %118 = vector.extract_strided_slice %74 {offsets = [0, 256], sizes = [8, 128], strides = [1, 1]} : vector<8x384xf32> to vector<8x128xf32>
    %119 = vector.broadcast %10 : vector<1x128xf32> to vector<8x128xf32>
    %120 = arith.addf %118, %119 : vector<8x128xf32>
    %121 = arith.mulf %108, %120 : vector<8x128xf32>
    %122 = arith.addf %117, %121 : vector<8x128xf32>
    %123 = math.tanh %122 : vector<8x128xf32>
    %124 = arith.subf %68, %123 : vector<8x128xf32>
    %125 = arith.mulf %116, %124 : vector<8x128xf32>
    %126 = arith.addf %123, %125 : vector<8x128xf32>
    %c8_35 = arith.constant 8 : index
    %c0_36 = arith.constant 0 : index
    %127 = vector.load %arg5[%c8_35, %c0_36] : memref<64x128xf32, #tpu.memory_space<vmem>>, vector<8x128xf32>
    tpu.vector_store %arg5[%c8_35, %c0_36], %100 {strides = array<i32>} : memref<64x128xf32, #tpu.memory_space<vmem>>, vector<8x128xf32>,
    %c48_37 = arith.constant 48 : index
    %c0_38 = arith.constant 0 : index
    %128 = vector.load %arg6[%c48_37, %c0_38] : memref<64x128xf32, #tpu.memory_space<vmem>>, vector<8x128xf32>
    tpu.vector_store %arg6[%c48_37, %c0_38], %126 {strides = array<i32>} : memref<64x128xf32, #tpu.memory_space<vmem>>, vector<8x128xf32>,
    %c16 = arith.constant 16 : index
    %c0_39 = arith.constant 0 : index
    %129 = vector.load %arg1[%c16, %c0_39] : memref<64x384xf32, #tpu.memory_space<vmem>>, vector<8x384xf32>
    %c40 = arith.constant 40 : index
    %c0_40 = arith.constant 0 : index
    %130 = vector.load %arg2[%c40, %c0_40] : memref<64x384xf32, #tpu.memory_space<vmem>>, vector<8x384xf32>
    %cst_41 = arith.constant dense<0.000000e+00> : vector<8x384xf32>
    %131 = tpu.matmul %100, %4, %cst_41 {dimension_numbers = #tpu.dot_dimension_numbers<[1], [0], [0], [1], [0, 0, 1, 1], [], []>} : vector<8x128xf32>, vector<128x384xf32>, vector<8x384xf32> -> vector<8x384xf32>
    %cst_42 = arith.constant dense<0.000000e+00> : vector<8x384xf32>
    %132 = tpu.matmul %126, %6, %cst_42 {dimension_numbers = #tpu.dot_dimension_numbers<[1], [0], [0], [1], [0, 0, 1, 1], [], []>} : vector<8x128xf32>, vector<128x384xf32>, vector<8x384xf32> -> vector<8x384xf32>
    %133 = vector.extract_strided_slice %129 {offsets = [0, 0], sizes = [8, 128], strides = [1, 1]} : vector<8x384xf32> to vector<8x128xf32>
    %134 = vector.extract_strided_slice %131 {offsets = [0, 0], sizes = [8, 128], strides = [1, 1]} : vector<8x384xf32> to vector<8x128xf32>
    %135 = arith.addf %133, %134 : vector<8x128xf32>
    %136 = arith.negf %135 : vector<8x128xf32>
    %137 = math.exp %136 : vector<8x128xf32>
    %cst_43 = arith.constant 1.000000e+00 : f32
    %138 = vector.broadcast %cst_43 : f32 to vector<8x128xf32>
    %139 = arith.addf %138, %137 : vector<8x128xf32>
    %140 = arith.divf %138, %139 : vector<8x128xf32>
    %141 = vector.extract_strided_slice %129 {offsets = [0, 128], sizes = [8, 128], strides = [1, 1]} : vector<8x384xf32> to vector<8x128xf32>
    %142 = vector.extract_strided_slice %131 {offsets = [0, 128], sizes = [8, 128], strides = [1, 1]} : vector<8x384xf32> to vector<8x128xf32>
    %143 = arith.addf %141, %142 : vector<8x128xf32>
    %144 = arith.negf %143 : vector<8x128xf32>
    %145 = math.exp %144 : vector<8x128xf32>
    %cst_44 = arith.constant 1.000000e+00 : f32
    %146 = vector.broadcast %cst_44 : f32 to vector<8x128xf32>
    %147 = arith.addf %146, %145 : vector<8x128xf32>
    %148 = arith.divf %146, %147 : vector<8x128xf32>
    %149 = vector.extract_strided_slice %129 {offsets = [0, 256], sizes = [8, 128], strides = [1, 1]} : vector<8x384xf32> to vector<8x128xf32>
    %150 = vector.extract_strided_slice %131 {offsets = [0, 256], sizes = [8, 128], strides = [1, 1]} : vector<8x384xf32> to vector<8x128xf32>
    %151 = vector.broadcast %8 : vector<1x128xf32> to vector<8x128xf32>
    %152 = arith.addf %150, %151 : vector<8x128xf32>
    %153 = arith.mulf %140, %152 : vector<8x128xf32>
    %154 = arith.addf %149, %153 : vector<8x128xf32>
    %155 = math.tanh %154 : vector<8x128xf32>
    %156 = arith.subf %100, %155 : vector<8x128xf32>
    %157 = arith.mulf %148, %156 : vector<8x128xf32>
    %158 = arith.addf %155, %157 : vector<8x128xf32>
    %159 = vector.extract_strided_slice %130 {offsets = [0, 0], sizes = [8, 128], strides = [1, 1]} : vector<8x384xf32> to vector<8x128xf32>
    %160 = vector.extract_strided_slice %132 {offsets = [0, 0], sizes = [8, 128], strides = [1, 1]} : vector<8x384xf32> to vector<8x128xf32>
    %161 = arith.addf %159, %160 : vector<8x128xf32>
    %162 = arith.negf %161 : vector<8x128xf32>
    %163 = math.exp %162 : vector<8x128xf32>
    %cst_45 = arith.constant 1.000000e+00 : f32
    %164 = vector.broadcast %cst_45 : f32 to vector<8x128xf32>
    %165 = arith.addf %164, %163 : vector<8x128xf32>
    %166 = arith.divf %164, %165 : vector<8x128xf32>
    %167 = vector.extract_strided_slice %130 {offsets = [0, 128], sizes = [8, 128], strides = [1, 1]} : vector<8x384xf32> to vector<8x128xf32>
    %168 = vector.extract_strided_slice %132 {offsets = [0, 128], sizes = [8, 128], strides = [1, 1]} : vector<8x384xf32> to vector<8x128xf32>
    %169 = arith.addf %167, %168 : vector<8x128xf32>
    %170 = arith.negf %169 : vector<8x128xf32>
    %171 = math.exp %170 : vector<8x128xf32>
    %cst_46 = arith.constant 1.000000e+00 : f32
    %172 = vector.broadcast %cst_46 : f32 to vector<8x128xf32>
    %173 = arith.addf %172, %171 : vector<8x128xf32>
    %174 = arith.divf %172, %173 : vector<8x128xf32>
    %175 = vector.extract_strided_slice %130 {offsets = [0, 256], sizes = [8, 128], strides = [1, 1]} : vector<8x384xf32> to vector<8x128xf32>
    %176 = vector.extract_strided_slice %132 {offsets = [0, 256], sizes = [8, 128], strides = [1, 1]} : vector<8x384xf32> to vector<8x128xf32>
    %177 = vector.broadcast %10 : vector<1x128xf32> to vector<8x128xf32>
    %178 = arith.addf %176, %177 : vector<8x128xf32>
    %179 = arith.mulf %166, %178 : vector<8x128xf32>
    %180 = arith.addf %175, %179 : vector<8x128xf32>
    %181 = math.tanh %180 : vector<8x128xf32>
    %182 = arith.subf %126, %181 : vector<8x128xf32>
    %183 = arith.mulf %174, %182 : vector<8x128xf32>
    %184 = arith.addf %181, %183 : vector<8x128xf32>
    %c16_47 = arith.constant 16 : index
    %c0_48 = arith.constant 0 : index
    %185 = vector.load %arg5[%c16_47, %c0_48] : memref<64x128xf32, #tpu.memory_space<vmem>>, vector<8x128xf32>
    tpu.vector_store %arg5[%c16_47, %c0_48], %158 {strides = array<i32>} : memref<64x128xf32, #tpu.memory_space<vmem>>, vector<8x128xf32>,
    %c40_49 = arith.constant 40 : index
    %c0_50 = arith.constant 0 : index
    %186 = vector.load %arg6[%c40_49, %c0_50] : memref<64x128xf32, #tpu.memory_space<vmem>>, vector<8x128xf32>
    tpu.vector_store %arg6[%c40_49, %c0_50], %184 {strides = array<i32>} : memref<64x128xf32, #tpu.memory_space<vmem>>, vector<8x128xf32>,
    %c24 = arith.constant 24 : index
    %c0_51 = arith.constant 0 : index
    %187 = vector.load %arg1[%c24, %c0_51] : memref<64x384xf32, #tpu.memory_space<vmem>>, vector<8x384xf32>
    %c32 = arith.constant 32 : index
    %c0_52 = arith.constant 0 : index
    %188 = vector.load %arg2[%c32, %c0_52] : memref<64x384xf32, #tpu.memory_space<vmem>>, vector<8x384xf32>
    %cst_53 = arith.constant dense<0.000000e+00> : vector<8x384xf32>
    %189 = tpu.matmul %158, %4, %cst_53 {dimension_numbers = #tpu.dot_dimension_numbers<[1], [0], [0], [1], [0, 0, 1, 1], [], []>} : vector<8x128xf32>, vector<128x384xf32>, vector<8x384xf32> -> vector<8x384xf32>
    %cst_54 = arith.constant dense<0.000000e+00> : vector<8x384xf32>
    %190 = tpu.matmul %184, %6, %cst_54 {dimension_numbers = #tpu.dot_dimension_numbers<[1], [0], [0], [1], [0, 0, 1, 1], [], []>} : vector<8x128xf32>, vector<128x384xf32>, vector<8x384xf32> -> vector<8x384xf32>
    %191 = vector.extract_strided_slice %187 {offsets = [0, 0], sizes = [8, 128], strides = [1, 1]} : vector<8x384xf32> to vector<8x128xf32>
    %192 = vector.extract_strided_slice %189 {offsets = [0, 0], sizes = [8, 128], strides = [1, 1]} : vector<8x384xf32> to vector<8x128xf32>
    %193 = arith.addf %191, %192 : vector<8x128xf32>
    %194 = arith.negf %193 : vector<8x128xf32>
    %195 = math.exp %194 : vector<8x128xf32>
    %cst_55 = arith.constant 1.000000e+00 : f32
    %196 = vector.broadcast %cst_55 : f32 to vector<8x128xf32>
    %197 = arith.addf %196, %195 : vector<8x128xf32>
    %198 = arith.divf %196, %197 : vector<8x128xf32>
    %199 = vector.extract_strided_slice %187 {offsets = [0, 128], sizes = [8, 128], strides = [1, 1]} : vector<8x384xf32> to vector<8x128xf32>
    %200 = vector.extract_strided_slice %189 {offsets = [0, 128], sizes = [8, 128], strides = [1, 1]} : vector<8x384xf32> to vector<8x128xf32>
    %201 = arith.addf %199, %200 : vector<8x128xf32>
    %202 = arith.negf %201 : vector<8x128xf32>
    %203 = math.exp %202 : vector<8x128xf32>
    %cst_56 = arith.constant 1.000000e+00 : f32
    %204 = vector.broadcast %cst_56 : f32 to vector<8x128xf32>
    %205 = arith.addf %204, %203 : vector<8x128xf32>
    %206 = arith.divf %204, %205 : vector<8x128xf32>
    %207 = vector.extract_strided_slice %187 {offsets = [0, 256], sizes = [8, 128], strides = [1, 1]} : vector<8x384xf32> to vector<8x128xf32>
    %208 = vector.extract_strided_slice %189 {offsets = [0, 256], sizes = [8, 128], strides = [1, 1]} : vector<8x384xf32> to vector<8x128xf32>
    %209 = vector.broadcast %8 : vector<1x128xf32> to vector<8x128xf32>
    %210 = arith.addf %208, %209 : vector<8x128xf32>
    %211 = arith.mulf %198, %210 : vector<8x128xf32>
    %212 = arith.addf %207, %211 : vector<8x128xf32>
    %213 = math.tanh %212 : vector<8x128xf32>
    %214 = arith.subf %158, %213 : vector<8x128xf32>
    %215 = arith.mulf %206, %214 : vector<8x128xf32>
    %216 = arith.addf %213, %215 : vector<8x128xf32>
    %217 = vector.extract_strided_slice %188 {offsets = [0, 0], sizes = [8, 128], strides = [1, 1]} : vector<8x384xf32> to vector<8x128xf32>
    %218 = vector.extract_strided_slice %190 {offsets = [0, 0], sizes = [8, 128], strides = [1, 1]} : vector<8x384xf32> to vector<8x128xf32>
    %219 = arith.addf %217, %218 : vector<8x128xf32>
    %220 = arith.negf %219 : vector<8x128xf32>
    %221 = math.exp %220 : vector<8x128xf32>
    %cst_57 = arith.constant 1.000000e+00 : f32
    %222 = vector.broadcast %cst_57 : f32 to vector<8x128xf32>
    %223 = arith.addf %222, %221 : vector<8x128xf32>
    %224 = arith.divf %222, %223 : vector<8x128xf32>
    %225 = vector.extract_strided_slice %188 {offsets = [0, 128], sizes = [8, 128], strides = [1, 1]} : vector<8x384xf32> to vector<8x128xf32>
    %226 = vector.extract_strided_slice %190 {offsets = [0, 128], sizes = [8, 128], strides = [1, 1]} : vector<8x384xf32> to vector<8x128xf32>
    %227 = arith.addf %225, %226 : vector<8x128xf32>
    %228 = arith.negf %227 : vector<8x128xf32>
    %229 = math.exp %228 : vector<8x128xf32>
    %cst_58 = arith.constant 1.000000e+00 : f32
    %230 = vector.broadcast %cst_58 : f32 to vector<8x128xf32>
    %231 = arith.addf %230, %229 : vector<8x128xf32>
    %232 = arith.divf %230, %231 : vector<8x128xf32>
    %233 = vector.extract_strided_slice %188 {offsets = [0, 256], sizes = [8, 128], strides = [1, 1]} : vector<8x384xf32> to vector<8x128xf32>
    %234 = vector.extract_strided_slice %190 {offsets = [0, 256], sizes = [8, 128], strides = [1, 1]} : vector<8x384xf32> to vector<8x128xf32>
    %235 = vector.broadcast %10 : vector<1x128xf32> to vector<8x128xf32>
    %236 = arith.addf %234, %235 : vector<8x128xf32>
    %237 = arith.mulf %224, %236 : vector<8x128xf32>
    %238 = arith.addf %233, %237 : vector<8x128xf32>
    %239 = math.tanh %238 : vector<8x128xf32>
    %240 = arith.subf %184, %239 : vector<8x128xf32>
    %241 = arith.mulf %232, %240 : vector<8x128xf32>
    %242 = arith.addf %239, %241 : vector<8x128xf32>
    %c24_59 = arith.constant 24 : index
    %c0_60 = arith.constant 0 : index
    %243 = vector.load %arg5[%c24_59, %c0_60] : memref<64x128xf32, #tpu.memory_space<vmem>>, vector<8x128xf32>
    tpu.vector_store %arg5[%c24_59, %c0_60], %216 {strides = array<i32>} : memref<64x128xf32, #tpu.memory_space<vmem>>, vector<8x128xf32>,
    %c32_61 = arith.constant 32 : index
    %c0_62 = arith.constant 0 : index
    %244 = vector.load %arg6[%c32_61, %c0_62] : memref<64x128xf32, #tpu.memory_space<vmem>>, vector<8x128xf32>
    tpu.vector_store %arg6[%c32_61, %c0_62], %242 {strides = array<i32>} : memref<64x128xf32, #tpu.memory_space<vmem>>, vector<8x128xf32>,
    %c32_63 = arith.constant 32 : index
    %c0_64 = arith.constant 0 : index
    %245 = vector.load %arg1[%c32_63, %c0_64] : memref<64x384xf32, #tpu.memory_space<vmem>>, vector<8x384xf32>
    %c24_65 = arith.constant 24 : index
    %c0_66 = arith.constant 0 : index
    %246 = vector.load %arg2[%c24_65, %c0_66] : memref<64x384xf32, #tpu.memory_space<vmem>>, vector<8x384xf32>
    %cst_67 = arith.constant dense<0.000000e+00> : vector<8x384xf32>
    %247 = tpu.matmul %216, %4, %cst_67 {dimension_numbers = #tpu.dot_dimension_numbers<[1], [0], [0], [1], [0, 0, 1, 1], [], []>} : vector<8x128xf32>, vector<128x384xf32>, vector<8x384xf32> -> vector<8x384xf32>
    %cst_68 = arith.constant dense<0.000000e+00> : vector<8x384xf32>
    %248 = tpu.matmul %242, %6, %cst_68 {dimension_numbers = #tpu.dot_dimension_numbers<[1], [0], [0], [1], [0, 0, 1, 1], [], []>} : vector<8x128xf32>, vector<128x384xf32>, vector<8x384xf32> -> vector<8x384xf32>
    %249 = vector.extract_strided_slice %245 {offsets = [0, 0], sizes = [8, 128], strides = [1, 1]} : vector<8x384xf32> to vector<8x128xf32>
    %250 = vector.extract_strided_slice %247 {offsets = [0, 0], sizes = [8, 128], strides = [1, 1]} : vector<8x384xf32> to vector<8x128xf32>
    %251 = arith.addf %249, %250 : vector<8x128xf32>
    %252 = arith.negf %251 : vector<8x128xf32>
    %253 = math.exp %252 : vector<8x128xf32>
    %cst_69 = arith.constant 1.000000e+00 : f32
    %254 = vector.broadcast %cst_69 : f32 to vector<8x128xf32>
    %255 = arith.addf %254, %253 : vector<8x128xf32>
    %256 = arith.divf %254, %255 : vector<8x128xf32>
    %257 = vector.extract_strided_slice %245 {offsets = [0, 128], sizes = [8, 128], strides = [1, 1]} : vector<8x384xf32> to vector<8x128xf32>
    %258 = vector.extract_strided_slice %247 {offsets = [0, 128], sizes = [8, 128], strides = [1, 1]} : vector<8x384xf32> to vector<8x128xf32>
    %259 = arith.addf %257, %258 : vector<8x128xf32>
    %260 = arith.negf %259 : vector<8x128xf32>
    %261 = math.exp %260 : vector<8x128xf32>
    %cst_70 = arith.constant 1.000000e+00 : f32
    %262 = vector.broadcast %cst_70 : f32 to vector<8x128xf32>
    %263 = arith.addf %262, %261 : vector<8x128xf32>
    %264 = arith.divf %262, %263 : vector<8x128xf32>
    %265 = vector.extract_strided_slice %245 {offsets = [0, 256], sizes = [8, 128], strides = [1, 1]} : vector<8x384xf32> to vector<8x128xf32>
    %266 = vector.extract_strided_slice %247 {offsets = [0, 256], sizes = [8, 128], strides = [1, 1]} : vector<8x384xf32> to vector<8x128xf32>
    %267 = vector.broadcast %8 : vector<1x128xf32> to vector<8x128xf32>
    %268 = arith.addf %266, %267 : vector<8x128xf32>
    %269 = arith.mulf %256, %268 : vector<8x128xf32>
    %270 = arith.addf %265, %269 : vector<8x128xf32>
    %271 = math.tanh %270 : vector<8x128xf32>
    %272 = arith.subf %216, %271 : vector<8x128xf32>
    %273 = arith.mulf %264, %272 : vector<8x128xf32>
    %274 = arith.addf %271, %273 : vector<8x128xf32>
    %275 = vector.extract_strided_slice %246 {offsets = [0, 0], sizes = [8, 128], strides = [1, 1]} : vector<8x384xf32> to vector<8x128xf32>
    %276 = vector.extract_strided_slice %248 {offsets = [0, 0], sizes = [8, 128], strides = [1, 1]} : vector<8x384xf32> to vector<8x128xf32>
    %277 = arith.addf %275, %276 : vector<8x128xf32>
    %278 = arith.negf %277 : vector<8x128xf32>
    %279 = math.exp %278 : vector<8x128xf32>
    %cst_71 = arith.constant 1.000000e+00 : f32
    %280 = vector.broadcast %cst_71 : f32 to vector<8x128xf32>
    %281 = arith.addf %280, %279 : vector<8x128xf32>
    %282 = arith.divf %280, %281 : vector<8x128xf32>
    %283 = vector.extract_strided_slice %246 {offsets = [0, 128], sizes = [8, 128], strides = [1, 1]} : vector<8x384xf32> to vector<8x128xf32>
    %284 = vector.extract_strided_slice %248 {offsets = [0, 128], sizes = [8, 128], strides = [1, 1]} : vector<8x384xf32> to vector<8x128xf32>
    %285 = arith.addf %283, %284 : vector<8x128xf32>
    %286 = arith.negf %285 : vector<8x128xf32>
    %287 = math.exp %286 : vector<8x128xf32>
    %cst_72 = arith.constant 1.000000e+00 : f32
    %288 = vector.broadcast %cst_72 : f32 to vector<8x128xf32>
    %289 = arith.addf %288, %287 : vector<8x128xf32>
    %290 = arith.divf %288, %289 : vector<8x128xf32>
    %291 = vector.extract_strided_slice %246 {offsets = [0, 256], sizes = [8, 128], strides = [1, 1]} : vector<8x384xf32> to vector<8x128xf32>
    %292 = vector.extract_strided_slice %248 {offsets = [0, 256], sizes = [8, 128], strides = [1, 1]} : vector<8x384xf32> to vector<8x128xf32>
    %293 = vector.broadcast %10 : vector<1x128xf32> to vector<8x128xf32>
    %294 = arith.addf %292, %293 : vector<8x128xf32>
    %295 = arith.mulf %282, %294 : vector<8x128xf32>
    %296 = arith.addf %291, %295 : vector<8x128xf32>
    %297 = math.tanh %296 : vector<8x128xf32>
    %298 = arith.subf %242, %297 : vector<8x128xf32>
    %299 = arith.mulf %290, %298 : vector<8x128xf32>
    %300 = arith.addf %297, %299 : vector<8x128xf32>
    %c32_73 = arith.constant 32 : index
    %c0_74 = arith.constant 0 : index
    %301 = vector.load %arg5[%c32_73, %c0_74] : memref<64x128xf32, #tpu.memory_space<vmem>>, vector<8x128xf32>
    tpu.vector_store %arg5[%c32_73, %c0_74], %274 {strides = array<i32>} : memref<64x128xf32, #tpu.memory_space<vmem>>, vector<8x128xf32>,
    %c24_75 = arith.constant 24 : index
    %c0_76 = arith.constant 0 : index
    %302 = vector.load %arg6[%c24_75, %c0_76] : memref<64x128xf32, #tpu.memory_space<vmem>>, vector<8x128xf32>
    tpu.vector_store %arg6[%c24_75, %c0_76], %300 {strides = array<i32>} : memref<64x128xf32, #tpu.memory_space<vmem>>, vector<8x128xf32>,
    %c40_77 = arith.constant 40 : index
    %c0_78 = arith.constant 0 : index
    %303 = vector.load %arg1[%c40_77, %c0_78] : memref<64x384xf32, #tpu.memory_space<vmem>>, vector<8x384xf32>
    %c16_79 = arith.constant 16 : index
    %c0_80 = arith.constant 0 : index
    %304 = vector.load %arg2[%c16_79, %c0_80] : memref<64x384xf32, #tpu.memory_space<vmem>>, vector<8x384xf32>
    %cst_81 = arith.constant dense<0.000000e+00> : vector<8x384xf32>
    %305 = tpu.matmul %274, %4, %cst_81 {dimension_numbers = #tpu.dot_dimension_numbers<[1], [0], [0], [1], [0, 0, 1, 1], [], []>} : vector<8x128xf32>, vector<128x384xf32>, vector<8x384xf32> -> vector<8x384xf32>
    %cst_82 = arith.constant dense<0.000000e+00> : vector<8x384xf32>
    %306 = tpu.matmul %300, %6, %cst_82 {dimension_numbers = #tpu.dot_dimension_numbers<[1], [0], [0], [1], [0, 0, 1, 1], [], []>} : vector<8x128xf32>, vector<128x384xf32>, vector<8x384xf32> -> vector<8x384xf32>
    %307 = vector.extract_strided_slice %303 {offsets = [0, 0], sizes = [8, 128], strides = [1, 1]} : vector<8x384xf32> to vector<8x128xf32>
    %308 = vector.extract_strided_slice %305 {offsets = [0, 0], sizes = [8, 128], strides = [1, 1]} : vector<8x384xf32> to vector<8x128xf32>
    %309 = arith.addf %307, %308 : vector<8x128xf32>
    %310 = arith.negf %309 : vector<8x128xf32>
    %311 = math.exp %310 : vector<8x128xf32>
    %cst_83 = arith.constant 1.000000e+00 : f32
    %312 = vector.broadcast %cst_83 : f32 to vector<8x128xf32>
    %313 = arith.addf %312, %311 : vector<8x128xf32>
    %314 = arith.divf %312, %313 : vector<8x128xf32>
    %315 = vector.extract_strided_slice %303 {offsets = [0, 128], sizes = [8, 128], strides = [1, 1]} : vector<8x384xf32> to vector<8x128xf32>
    %316 = vector.extract_strided_slice %305 {offsets = [0, 128], sizes = [8, 128], strides = [1, 1]} : vector<8x384xf32> to vector<8x128xf32>
    %317 = arith.addf %315, %316 : vector<8x128xf32>
    %318 = arith.negf %317 : vector<8x128xf32>
    %319 = math.exp %318 : vector<8x128xf32>
    %cst_84 = arith.constant 1.000000e+00 : f32
    %320 = vector.broadcast %cst_84 : f32 to vector<8x128xf32>
    %321 = arith.addf %320, %319 : vector<8x128xf32>
    %322 = arith.divf %320, %321 : vector<8x128xf32>
    %323 = vector.extract_strided_slice %303 {offsets = [0, 256], sizes = [8, 128], strides = [1, 1]} : vector<8x384xf32> to vector<8x128xf32>
    %324 = vector.extract_strided_slice %305 {offsets = [0, 256], sizes = [8, 128], strides = [1, 1]} : vector<8x384xf32> to vector<8x128xf32>
    %325 = vector.broadcast %8 : vector<1x128xf32> to vector<8x128xf32>
    %326 = arith.addf %324, %325 : vector<8x128xf32>
    %327 = arith.mulf %314, %326 : vector<8x128xf32>
    %328 = arith.addf %323, %327 : vector<8x128xf32>
    %329 = math.tanh %328 : vector<8x128xf32>
    %330 = arith.subf %274, %329 : vector<8x128xf32>
    %331 = arith.mulf %322, %330 : vector<8x128xf32>
    %332 = arith.addf %329, %331 : vector<8x128xf32>
    %333 = vector.extract_strided_slice %304 {offsets = [0, 0], sizes = [8, 128], strides = [1, 1]} : vector<8x384xf32> to vector<8x128xf32>
    %334 = vector.extract_strided_slice %306 {offsets = [0, 0], sizes = [8, 128], strides = [1, 1]} : vector<8x384xf32> to vector<8x128xf32>
    %335 = arith.addf %333, %334 : vector<8x128xf32>
    %336 = arith.negf %335 : vector<8x128xf32>
    %337 = math.exp %336 : vector<8x128xf32>
    %cst_85 = arith.constant 1.000000e+00 : f32
    %338 = vector.broadcast %cst_85 : f32 to vector<8x128xf32>
    %339 = arith.addf %338, %337 : vector<8x128xf32>
    %340 = arith.divf %338, %339 : vector<8x128xf32>
    %341 = vector.extract_strided_slice %304 {offsets = [0, 128], sizes = [8, 128], strides = [1, 1]} : vector<8x384xf32> to vector<8x128xf32>
    %342 = vector.extract_strided_slice %306 {offsets = [0, 128], sizes = [8, 128], strides = [1, 1]} : vector<8x384xf32> to vector<8x128xf32>
    %343 = arith.addf %341, %342 : vector<8x128xf32>
    %344 = arith.negf %343 : vector<8x128xf32>
    %345 = math.exp %344 : vector<8x128xf32>
    %cst_86 = arith.constant 1.000000e+00 : f32
    %346 = vector.broadcast %cst_86 : f32 to vector<8x128xf32>
    %347 = arith.addf %346, %345 : vector<8x128xf32>
    %348 = arith.divf %346, %347 : vector<8x128xf32>
    %349 = vector.extract_strided_slice %304 {offsets = [0, 256], sizes = [8, 128], strides = [1, 1]} : vector<8x384xf32> to vector<8x128xf32>
    %350 = vector.extract_strided_slice %306 {offsets = [0, 256], sizes = [8, 128], strides = [1, 1]} : vector<8x384xf32> to vector<8x128xf32>
    %351 = vector.broadcast %10 : vector<1x128xf32> to vector<8x128xf32>
    %352 = arith.addf %350, %351 : vector<8x128xf32>
    %353 = arith.mulf %340, %352 : vector<8x128xf32>
    %354 = arith.addf %349, %353 : vector<8x128xf32>
    %355 = math.tanh %354 : vector<8x128xf32>
    %356 = arith.subf %300, %355 : vector<8x128xf32>
    %357 = arith.mulf %348, %356 : vector<8x128xf32>
    %358 = arith.addf %355, %357 : vector<8x128xf32>
    %c40_87 = arith.constant 40 : index
    %c0_88 = arith.constant 0 : index
    %359 = vector.load %arg5[%c40_87, %c0_88] : memref<64x128xf32, #tpu.memory_space<vmem>>, vector<8x128xf32>
    tpu.vector_store %arg5[%c40_87, %c0_88], %332 {strides = array<i32>} : memref<64x128xf32, #tpu.memory_space<vmem>>, vector<8x128xf32>,
    %c16_89 = arith.constant 16 : index
    %c0_90 = arith.constant 0 : index
    %360 = vector.load %arg6[%c16_89, %c0_90] : memref<64x128xf32, #tpu.memory_space<vmem>>, vector<8x128xf32>
    tpu.vector_store %arg6[%c16_89, %c0_90], %358 {strides = array<i32>} : memref<64x128xf32, #tpu.memory_space<vmem>>, vector<8x128xf32>,
    %c48_91 = arith.constant 48 : index
    %c0_92 = arith.constant 0 : index
    %361 = vector.load %arg1[%c48_91, %c0_92] : memref<64x384xf32, #tpu.memory_space<vmem>>, vector<8x384xf32>
    %c8_93 = arith.constant 8 : index
    %c0_94 = arith.constant 0 : index
    %362 = vector.load %arg2[%c8_93, %c0_94] : memref<64x384xf32, #tpu.memory_space<vmem>>, vector<8x384xf32>
    %cst_95 = arith.constant dense<0.000000e+00> : vector<8x384xf32>
    %363 = tpu.matmul %332, %4, %cst_95 {dimension_numbers = #tpu.dot_dimension_numbers<[1], [0], [0], [1], [0, 0, 1, 1], [], []>} : vector<8x128xf32>, vector<128x384xf32>, vector<8x384xf32> -> vector<8x384xf32>
    %cst_96 = arith.constant dense<0.000000e+00> : vector<8x384xf32>
    %364 = tpu.matmul %358, %6, %cst_96 {dimension_numbers = #tpu.dot_dimension_numbers<[1], [0], [0], [1], [0, 0, 1, 1], [], []>} : vector<8x128xf32>, vector<128x384xf32>, vector<8x384xf32> -> vector<8x384xf32>
    %365 = vector.extract_strided_slice %361 {offsets = [0, 0], sizes = [8, 128], strides = [1, 1]} : vector<8x384xf32> to vector<8x128xf32>
    %366 = vector.extract_strided_slice %363 {offsets = [0, 0], sizes = [8, 128], strides = [1, 1]} : vector<8x384xf32> to vector<8x128xf32>
    %367 = arith.addf %365, %366 : vector<8x128xf32>
    %368 = arith.negf %367 : vector<8x128xf32>
    %369 = math.exp %368 : vector<8x128xf32>
    %cst_97 = arith.constant 1.000000e+00 : f32
    %370 = vector.broadcast %cst_97 : f32 to vector<8x128xf32>
    %371 = arith.addf %370, %369 : vector<8x128xf32>
    %372 = arith.divf %370, %371 : vector<8x128xf32>
    %373 = vector.extract_strided_slice %361 {offsets = [0, 128], sizes = [8, 128], strides = [1, 1]} : vector<8x384xf32> to vector<8x128xf32>
    %374 = vector.extract_strided_slice %363 {offsets = [0, 128], sizes = [8, 128], strides = [1, 1]} : vector<8x384xf32> to vector<8x128xf32>
    %375 = arith.addf %373, %374 : vector<8x128xf32>
    %376 = arith.negf %375 : vector<8x128xf32>
    %377 = math.exp %376 : vector<8x128xf32>
    %cst_98 = arith.constant 1.000000e+00 : f32
    %378 = vector.broadcast %cst_98 : f32 to vector<8x128xf32>
    %379 = arith.addf %378, %377 : vector<8x128xf32>
    %380 = arith.divf %378, %379 : vector<8x128xf32>
    %381 = vector.extract_strided_slice %361 {offsets = [0, 256], sizes = [8, 128], strides = [1, 1]} : vector<8x384xf32> to vector<8x128xf32>
    %382 = vector.extract_strided_slice %363 {offsets = [0, 256], sizes = [8, 128], strides = [1, 1]} : vector<8x384xf32> to vector<8x128xf32>
    %383 = vector.broadcast %8 : vector<1x128xf32> to vector<8x128xf32>
    %384 = arith.addf %382, %383 : vector<8x128xf32>
    %385 = arith.mulf %372, %384 : vector<8x128xf32>
    %386 = arith.addf %381, %385 : vector<8x128xf32>
    %387 = math.tanh %386 : vector<8x128xf32>
    %388 = arith.subf %332, %387 : vector<8x128xf32>
    %389 = arith.mulf %380, %388 : vector<8x128xf32>
    %390 = arith.addf %387, %389 : vector<8x128xf32>
    %391 = vector.extract_strided_slice %362 {offsets = [0, 0], sizes = [8, 128], strides = [1, 1]} : vector<8x384xf32> to vector<8x128xf32>
    %392 = vector.extract_strided_slice %364 {offsets = [0, 0], sizes = [8, 128], strides = [1, 1]} : vector<8x384xf32> to vector<8x128xf32>
    %393 = arith.addf %391, %392 : vector<8x128xf32>
    %394 = arith.negf %393 : vector<8x128xf32>
    %395 = math.exp %394 : vector<8x128xf32>
    %cst_99 = arith.constant 1.000000e+00 : f32
    %396 = vector.broadcast %cst_99 : f32 to vector<8x128xf32>
    %397 = arith.addf %396, %395 : vector<8x128xf32>
    %398 = arith.divf %396, %397 : vector<8x128xf32>
    %399 = vector.extract_strided_slice %362 {offsets = [0, 128], sizes = [8, 128], strides = [1, 1]} : vector<8x384xf32> to vector<8x128xf32>
    %400 = vector.extract_strided_slice %364 {offsets = [0, 128], sizes = [8, 128], strides = [1, 1]} : vector<8x384xf32> to vector<8x128xf32>
    %401 = arith.addf %399, %400 : vector<8x128xf32>
    %402 = arith.negf %401 : vector<8x128xf32>
    %403 = math.exp %402 : vector<8x128xf32>
    %cst_100 = arith.constant 1.000000e+00 : f32
    %404 = vector.broadcast %cst_100 : f32 to vector<8x128xf32>
    %405 = arith.addf %404, %403 : vector<8x128xf32>
    %406 = arith.divf %404, %405 : vector<8x128xf32>
    %407 = vector.extract_strided_slice %362 {offsets = [0, 256], sizes = [8, 128], strides = [1, 1]} : vector<8x384xf32> to vector<8x128xf32>
    %408 = vector.extract_strided_slice %364 {offsets = [0, 256], sizes = [8, 128], strides = [1, 1]} : vector<8x384xf32> to vector<8x128xf32>
    %409 = vector.broadcast %10 : vector<1x128xf32> to vector<8x128xf32>
    %410 = arith.addf %408, %409 : vector<8x128xf32>
    %411 = arith.mulf %398, %410 : vector<8x128xf32>
    %412 = arith.addf %407, %411 : vector<8x128xf32>
    %413 = math.tanh %412 : vector<8x128xf32>
    %414 = arith.subf %358, %413 : vector<8x128xf32>
    %415 = arith.mulf %406, %414 : vector<8x128xf32>
    %416 = arith.addf %413, %415 : vector<8x128xf32>
    %c48_101 = arith.constant 48 : index
    %c0_102 = arith.constant 0 : index
    %417 = vector.load %arg5[%c48_101, %c0_102] : memref<64x128xf32, #tpu.memory_space<vmem>>, vector<8x128xf32>
    tpu.vector_store %arg5[%c48_101, %c0_102], %390 {strides = array<i32>} : memref<64x128xf32, #tpu.memory_space<vmem>>, vector<8x128xf32>,
    %c8_103 = arith.constant 8 : index
    %c0_104 = arith.constant 0 : index
    %418 = vector.load %arg6[%c8_103, %c0_104] : memref<64x128xf32, #tpu.memory_space<vmem>>, vector<8x128xf32>
    tpu.vector_store %arg6[%c8_103, %c0_104], %416 {strides = array<i32>} : memref<64x128xf32, #tpu.memory_space<vmem>>, vector<8x128xf32>,
    %c56_105 = arith.constant 56 : index
    %c0_106 = arith.constant 0 : index
    %419 = vector.load %arg1[%c56_105, %c0_106] : memref<64x384xf32, #tpu.memory_space<vmem>>, vector<8x384xf32>
    %c0_107 = arith.constant 0 : index
    %c0_108 = arith.constant 0 : index
    %420 = vector.load %arg2[%c0_107, %c0_108] : memref<64x384xf32, #tpu.memory_space<vmem>>, vector<8x384xf32>
    %cst_109 = arith.constant dense<0.000000e+00> : vector<8x384xf32>
    %421 = tpu.matmul %390, %4, %cst_109 {dimension_numbers = #tpu.dot_dimension_numbers<[1], [0], [0], [1], [0, 0, 1, 1], [], []>} : vector<8x128xf32>, vector<128x384xf32>, vector<8x384xf32> -> vector<8x384xf32>
    %cst_110 = arith.constant dense<0.000000e+00> : vector<8x384xf32>
    %422 = tpu.matmul %416, %6, %cst_110 {dimension_numbers = #tpu.dot_dimension_numbers<[1], [0], [0], [1], [0, 0, 1, 1], [], []>} : vector<8x128xf32>, vector<128x384xf32>, vector<8x384xf32> -> vector<8x384xf32>
    %423 = vector.extract_strided_slice %419 {offsets = [0, 0], sizes = [8, 128], strides = [1, 1]} : vector<8x384xf32> to vector<8x128xf32>
    %424 = vector.extract_strided_slice %421 {offsets = [0, 0], sizes = [8, 128], strides = [1, 1]} : vector<8x384xf32> to vector<8x128xf32>
    %425 = arith.addf %423, %424 : vector<8x128xf32>
    %426 = arith.negf %425 : vector<8x128xf32>
    %427 = math.exp %426 : vector<8x128xf32>
    %cst_111 = arith.constant 1.000000e+00 : f32
    %428 = vector.broadcast %cst_111 : f32 to vector<8x128xf32>
    %429 = arith.addf %428, %427 : vector<8x128xf32>
    %430 = arith.divf %428, %429 : vector<8x128xf32>
    %431 = vector.extract_strided_slice %419 {offsets = [0, 128], sizes = [8, 128], strides = [1, 1]} : vector<8x384xf32> to vector<8x128xf32>
    %432 = vector.extract_strided_slice %421 {offsets = [0, 128], sizes = [8, 128], strides = [1, 1]} : vector<8x384xf32> to vector<8x128xf32>
    %433 = arith.addf %431, %432 : vector<8x128xf32>
    %434 = arith.negf %433 : vector<8x128xf32>
    %435 = math.exp %434 : vector<8x128xf32>
    %cst_112 = arith.constant 1.000000e+00 : f32
    %436 = vector.broadcast %cst_112 : f32 to vector<8x128xf32>
    %437 = arith.addf %436, %435 : vector<8x128xf32>
    %438 = arith.divf %436, %437 : vector<8x128xf32>
    %439 = vector.extract_strided_slice %419 {offsets = [0, 256], sizes = [8, 128], strides = [1, 1]} : vector<8x384xf32> to vector<8x128xf32>
    %440 = vector.extract_strided_slice %421 {offsets = [0, 256], sizes = [8, 128], strides = [1, 1]} : vector<8x384xf32> to vector<8x128xf32>
    %441 = vector.broadcast %8 : vector<1x128xf32> to vector<8x128xf32>
    %442 = arith.addf %440, %441 : vector<8x128xf32>
    %443 = arith.mulf %430, %442 : vector<8x128xf32>
    %444 = arith.addf %439, %443 : vector<8x128xf32>
    %445 = math.tanh %444 : vector<8x128xf32>
    %446 = arith.subf %390, %445 : vector<8x128xf32>
    %447 = arith.mulf %438, %446 : vector<8x128xf32>
    %448 = arith.addf %445, %447 : vector<8x128xf32>
    %449 = vector.extract_strided_slice %420 {offsets = [0, 0], sizes = [8, 128], strides = [1, 1]} : vector<8x384xf32> to vector<8x128xf32>
    %450 = vector.extract_strided_slice %422 {offsets = [0, 0], sizes = [8, 128], strides = [1, 1]} : vector<8x384xf32> to vector<8x128xf32>
    %451 = arith.addf %449, %450 : vector<8x128xf32>
    %452 = arith.negf %451 : vector<8x128xf32>
    %453 = math.exp %452 : vector<8x128xf32>
    %cst_113 = arith.constant 1.000000e+00 : f32
    %454 = vector.broadcast %cst_113 : f32 to vector<8x128xf32>
    %455 = arith.addf %454, %453 : vector<8x128xf32>
    %456 = arith.divf %454, %455 : vector<8x128xf32>
    %457 = vector.extract_strided_slice %420 {offsets = [0, 128], sizes = [8, 128], strides = [1, 1]} : vector<8x384xf32> to vector<8x128xf32>
    %458 = vector.extract_strided_slice %422 {offsets = [0, 128], sizes = [8, 128], strides = [1, 1]} : vector<8x384xf32> to vector<8x128xf32>
    %459 = arith.addf %457, %458 : vector<8x128xf32>
    %460 = arith.negf %459 : vector<8x128xf32>
    %461 = math.exp %460 : vector<8x128xf32>
    %cst_114 = arith.constant 1.000000e+00 : f32
    %462 = vector.broadcast %cst_114 : f32 to vector<8x128xf32>
    %463 = arith.addf %462, %461 : vector<8x128xf32>
    %464 = arith.divf %462, %463 : vector<8x128xf32>
    %465 = vector.extract_strided_slice %420 {offsets = [0, 256], sizes = [8, 128], strides = [1, 1]} : vector<8x384xf32> to vector<8x128xf32>
    %466 = vector.extract_strided_slice %422 {offsets = [0, 256], sizes = [8, 128], strides = [1, 1]} : vector<8x384xf32> to vector<8x128xf32>
    %467 = vector.broadcast %10 : vector<1x128xf32> to vector<8x128xf32>
    %468 = arith.addf %466, %467 : vector<8x128xf32>
    %469 = arith.mulf %456, %468 : vector<8x128xf32>
    %470 = arith.addf %465, %469 : vector<8x128xf32>
    %471 = math.tanh %470 : vector<8x128xf32>
    %472 = arith.subf %416, %471 : vector<8x128xf32>
    %473 = arith.mulf %464, %472 : vector<8x128xf32>
    %474 = arith.addf %471, %473 : vector<8x128xf32>
    %c56_115 = arith.constant 56 : index
    %c0_116 = arith.constant 0 : index
    %475 = vector.load %arg5[%c56_115, %c0_116] : memref<64x128xf32, #tpu.memory_space<vmem>>, vector<8x128xf32>
    tpu.vector_store %arg5[%c56_115, %c0_116], %448 {strides = array<i32>} : memref<64x128xf32, #tpu.memory_space<vmem>>, vector<8x128xf32>,
    %c0_117 = arith.constant 0 : index
    %c0_118 = arith.constant 0 : index
    %476 = vector.load %arg6[%c0_117, %c0_118] : memref<64x128xf32, #tpu.memory_space<vmem>>, vector<8x128xf32>
    tpu.vector_store %arg6[%c0_117, %c0_118], %474 {strides = array<i32>} : memref<64x128xf32, #tpu.memory_space<vmem>>, vector<8x128xf32>,
    %c0_119 = arith.constant 0 : index
    %c0_120 = arith.constant 0 : index
    %477 = vector.load %arg8[%c0_119, %c0_120] : memref<8x128xf32, #tpu.memory_space<vmem>>, vector<8x128xf32>
    tpu.vector_store %arg8[%c0_119, %c0_120], %448 {strides = array<i32>} : memref<8x128xf32, #tpu.memory_space<vmem>>, vector<8x128xf32>,
    %c0_121 = arith.constant 0 : index
    %c0_122 = arith.constant 0 : index
    %478 = vector.load %arg9[%c0_121, %c0_122] : memref<8x128xf32, #tpu.memory_space<vmem>>, vector<8x128xf32>
    tpu.vector_store %arg9[%c0_121, %c0_122], %474 {strides = array<i32>} : memref<8x128xf32, #tpu.memory_space<vmem>>, vector<8x128xf32>,
    %c0_i32_123 = arith.constant 0 : i32
    %479 = arith.cmpi eq, %arg0, %c0_i32_123 : i32
    %480 = arith.extui %479 : i1 to i32
    %c0_i32_124 = arith.constant 0 : i32
    %481 = arith.cmpi ne, %480, %c0_i32_124 : i32
    scf.if %481 {
      %c0_125 = arith.constant 0 : index
      %c0_126 = arith.constant 0 : index
      %c0_127 = arith.constant 0 : index
      %482 = vector.load %arg7[%c0_125, %c0_126, %c0_127] : memref<2x8x128xf32, #tpu.memory_space<vmem>>, vector<1x8x128xf32>
      %483 = vector.shape_cast %482 : vector<1x8x128xf32> to vector<8x128xf32>
      %484 = vector.shape_cast %448 : vector<8x128xf32> to vector<1x8x128xf32>
      tpu.vector_store %arg7[%c0_125, %c0_126, %c0_127], %484 {strides = array<i32>} : memref<2x8x128xf32, #tpu.memory_space<vmem>>, vector<1x8x128xf32>,
      %c1_128 = arith.constant 1 : index
      %c0_129 = arith.constant 0 : index
      %c0_130 = arith.constant 0 : index
      %485 = vector.load %arg7[%c1_128, %c0_129, %c0_130] : memref<2x8x128xf32, #tpu.memory_space<vmem>>, vector<1x8x128xf32>
      %486 = vector.shape_cast %485 : vector<1x8x128xf32> to vector<8x128xf32>
      %487 = vector.shape_cast %474 : vector<8x128xf32> to vector<1x8x128xf32>
      tpu.vector_store %arg7[%c1_128, %c0_129, %c0_130], %487 {strides = array<i32>} : memref<2x8x128xf32, #tpu.memory_space<vmem>>, vector<1x8x128xf32>,
    } else {
    }
    return
  }
  func.func @transform_0(%arg0: i32) -> (i32, i32) {
    %c0_i32 = arith.constant 0 : i32
    %c0_i32_0 = arith.constant 0 : i32
    return %arg0, %c0_i32 : i32, i32
  }
  func.func @transform_1(%arg0: i32) -> (i32, i32) {
    %c0_i32 = arith.constant 0 : i32
    %0 = arith.subi %c0_i32, %arg0 : i32
    %c0_i32_0 = arith.constant 0 : i32
    %c0_i32_1 = arith.constant 0 : i32
    return %0, %c0_i32_0 : i32, i32
  }
  func.func @transform_2(%arg0: i32) -> (i32, i32, i32) {
    %c0_i32 = arith.constant 0 : i32
    %c0_i32_0 = arith.constant 0 : i32
    %c0_i32_1 = arith.constant 0 : i32
    %c0_i32_2 = arith.constant 0 : i32
    return %c0_i32, %c0_i32_0, %c0_i32_1 : i32, i32, i32
  }
  func.func @transform_3(%arg0: i32) -> (i32, i32, i32) {
    %c0_i32 = arith.constant 0 : i32
    %c0_i32_0 = arith.constant 0 : i32
    %c0_i32_1 = arith.constant 0 : i32
    %c0_i32_2 = arith.constant 0 : i32
    return %c0_i32, %c0_i32_0, %c0_i32_1 : i32, i32, i32
  }
  func.func @transform_4(%arg0: i32) -> (i32, i32) {
    %c0_i32 = arith.constant 0 : i32
    %c0_i32_0 = arith.constant 0 : i32
    return %arg0, %c0_i32 : i32, i32
  }
  func.func @transform_5(%arg0: i32) -> (i32, i32) {
    %c0_i32 = arith.constant 0 : i32
    %0 = arith.subi %c0_i32, %arg0 : i32
    %c0_i32_0 = arith.constant 0 : i32
    %c0_i32_1 = arith.constant 0 : i32
    return %0, %c0_i32_0 : i32, i32
  }
  func.func @transform_6(%arg0: i32) -> (i32, i32, i32) {
    %c0_i32 = arith.constant 0 : i32
    %c0_i32_0 = arith.constant 0 : i32
    %c0_i32_1 = arith.constant 0 : i32
    %c0_i32_2 = arith.constant 0 : i32
    return %c0_i32, %c0_i32_0, %c0_i32_1 : i32, i32, i32
  }
}

module attributes {stable_mosaic.version = 11 : i64} {
  func.func @kernel(%arg0: i32, %arg1: memref<64x128xf32, #tpu.memory_space<vmem>>, %arg2: memref<64x128xf32, #tpu.memory_space<vmem>>, %arg3: memref<2x2x128x384xf32, #tpu.memory_space<vmem>>, %arg4: memref<2x1x384xf32, #tpu.memory_space<vmem>>, %arg5: memref<64x384xf32, #tpu.memory_space<vmem>>, %arg6: memref<64x384xf32, #tpu.memory_space<vmem>>) attributes {dimension_semantics = [#tpu.dimension_semantics<parallel>], iteration_bounds = array<i64: 1>, scalar_prefetch = 0 : i64, scratch_operands = 0 : i64, tpu.core_type = #tpu.core_type<tc>, window_params = [{transform_indices = @transform_0, window_bounds = array<i64: 64, 128>}, {transform_indices = @transform_1, window_bounds = array<i64: 64, 128>}, {pipeline_mode = #tpu.pipeline_mode<synchronous>, transform_indices = @transform_2, window_bounds = array<i64: 2, 2, 128, 384>}, {pipeline_mode = #tpu.pipeline_mode<synchronous>, transform_indices = @transform_3, window_bounds = array<i64: 2, 1, 384>}, {transform_indices = @transform_4, window_bounds = array<i64: 64, 384>}, {transform_indices = @transform_5, window_bounds = array<i64: 64, 384>}]} {
    %c0 = arith.constant 0 : index
    %c0_0 = arith.constant 0 : index
    %c0_1 = arith.constant 0 : index
    %0 = vector.load %arg4[%c0, %c0_0, %c0_1] : memref<2x1x384xf32, #tpu.memory_space<vmem>>, vector<1x1x384xf32>
    %1 = vector.shape_cast %0 : vector<1x1x384xf32> to vector<1x384xf32>
    %c0_2 = arith.constant 0 : index
    %c0_3 = arith.constant 0 : index
    %2 = vector.load %arg1[%c0_2, %c0_3] : memref<64x128xf32, #tpu.memory_space<vmem>>, vector<64x128xf32>
    %c0_4 = arith.constant 0 : index
    %c0_5 = arith.constant 0 : index
    %c0_6 = arith.constant 0 : index
    %c0_7 = arith.constant 0 : index
    %3 = vector.load %arg3[%c0_4, %c0_5, %c0_6, %c0_7] : memref<2x2x128x384xf32, #tpu.memory_space<vmem>>, vector<1x1x128x384xf32>
    %4 = vector.shape_cast %3 : vector<1x1x128x384xf32> to vector<128x384xf32>
    %cst = arith.constant dense<0.000000e+00> : vector<64x384xf32>
    %5 = tpu.matmul %2, %4, %cst {dimension_numbers = #tpu.dot_dimension_numbers<[1], [0], [0], [1], [0, 0, 1, 1], [], []>} : vector<64x128xf32>, vector<128x384xf32>, vector<64x384xf32> -> vector<64x384xf32>
    %6 = vector.broadcast %1 : vector<1x384xf32> to vector<64x384xf32>
    %7 = arith.addf %6, %5 : vector<64x384xf32>
    %c0_8 = arith.constant 0 : index
    %c0_9 = arith.constant 0 : index
    %8 = vector.load %arg2[%c0_8, %c0_9] : memref<64x128xf32, #tpu.memory_space<vmem>>, vector<64x128xf32>
    %c0_10 = arith.constant 0 : index
    %c1 = arith.constant 1 : index
    %c0_11 = arith.constant 0 : index
    %c0_12 = arith.constant 0 : index
    %9 = vector.load %arg3[%c0_10, %c1, %c0_11, %c0_12] : memref<2x2x128x384xf32, #tpu.memory_space<vmem>>, vector<1x1x128x384xf32>
    %10 = vector.shape_cast %9 : vector<1x1x128x384xf32> to vector<128x384xf32>
    %cst_13 = arith.constant dense<0.000000e+00> : vector<64x384xf32>
    %11 = tpu.matmul %8, %10, %cst_13 {dimension_numbers = #tpu.dot_dimension_numbers<[1], [0], [0], [1], [0, 0, 1, 1], [], []>} : vector<64x128xf32>, vector<128x384xf32>, vector<64x384xf32> -> vector<64x384xf32>
    %12 = arith.addf %7, %11 : vector<64x384xf32>
    %c0_14 = arith.constant 0 : index
    %c0_15 = arith.constant 0 : index
    %13 = vector.load %arg5[%c0_14, %c0_15] : memref<64x384xf32, #tpu.memory_space<vmem>>, vector<64x384xf32>
    tpu.vector_store %arg5[%c0_14, %c0_15], %12 {strides = array<i32>} : memref<64x384xf32, #tpu.memory_space<vmem>>, vector<64x384xf32>,
    %c1_16 = arith.constant 1 : index
    %c0_17 = arith.constant 0 : index
    %c0_18 = arith.constant 0 : index
    %14 = vector.load %arg4[%c1_16, %c0_17, %c0_18] : memref<2x1x384xf32, #tpu.memory_space<vmem>>, vector<1x1x384xf32>
    %15 = vector.shape_cast %14 : vector<1x1x384xf32> to vector<1x384xf32>
    %c0_19 = arith.constant 0 : index
    %c0_20 = arith.constant 0 : index
    %16 = vector.load %arg1[%c0_19, %c0_20] : memref<64x128xf32, #tpu.memory_space<vmem>>, vector<64x128xf32>
    %c1_21 = arith.constant 1 : index
    %c0_22 = arith.constant 0 : index
    %c0_23 = arith.constant 0 : index
    %c0_24 = arith.constant 0 : index
    %17 = vector.load %arg3[%c1_21, %c0_22, %c0_23, %c0_24] : memref<2x2x128x384xf32, #tpu.memory_space<vmem>>, vector<1x1x128x384xf32>
    %18 = vector.shape_cast %17 : vector<1x1x128x384xf32> to vector<128x384xf32>
    %cst_25 = arith.constant dense<0.000000e+00> : vector<64x384xf32>
    %19 = tpu.matmul %16, %18, %cst_25 {dimension_numbers = #tpu.dot_dimension_numbers<[1], [0], [0], [1], [0, 0, 1, 1], [], []>} : vector<64x128xf32>, vector<128x384xf32>, vector<64x384xf32> -> vector<64x384xf32>
    %20 = vector.broadcast %15 : vector<1x384xf32> to vector<64x384xf32>
    %21 = arith.addf %20, %19 : vector<64x384xf32>
    %c0_26 = arith.constant 0 : index
    %c0_27 = arith.constant 0 : index
    %22 = vector.load %arg2[%c0_26, %c0_27] : memref<64x128xf32, #tpu.memory_space<vmem>>, vector<64x128xf32>
    %c1_28 = arith.constant 1 : index
    %c1_29 = arith.constant 1 : index
    %c0_30 = arith.constant 0 : index
    %c0_31 = arith.constant 0 : index
    %23 = vector.load %arg3[%c1_28, %c1_29, %c0_30, %c0_31] : memref<2x2x128x384xf32, #tpu.memory_space<vmem>>, vector<1x1x128x384xf32>
    %24 = vector.shape_cast %23 : vector<1x1x128x384xf32> to vector<128x384xf32>
    %cst_32 = arith.constant dense<0.000000e+00> : vector<64x384xf32>
    %25 = tpu.matmul %22, %24, %cst_32 {dimension_numbers = #tpu.dot_dimension_numbers<[1], [0], [0], [1], [0, 0, 1, 1], [], []>} : vector<64x128xf32>, vector<128x384xf32>, vector<64x384xf32> -> vector<64x384xf32>
    %26 = arith.addf %21, %25 : vector<64x384xf32>
    %c0_33 = arith.constant 0 : index
    %c0_34 = arith.constant 0 : index
    %27 = vector.load %arg6[%c0_33, %c0_34] : memref<64x384xf32, #tpu.memory_space<vmem>>, vector<64x384xf32>
    tpu.vector_store %arg6[%c0_33, %c0_34], %26 {strides = array<i32>} : memref<64x384xf32, #tpu.memory_space<vmem>>, vector<64x384xf32>,
    return
  }
  func.func @transform_0(%arg0: i32) -> (i32, i32) {
    %c0_i32 = arith.constant 0 : i32
    %c0_i32_0 = arith.constant 0 : i32
    return %arg0, %c0_i32 : i32, i32
  }
  func.func @transform_1(%arg0: i32) -> (i32, i32) {
    %c0_i32 = arith.constant 0 : i32
    %c0_i32_0 = arith.constant 0 : i32
    return %arg0, %c0_i32 : i32, i32
  }
  func.func @transform_2(%arg0: i32) -> (i32, i32, i32, i32) {
    %c0_i32 = arith.constant 0 : i32
    %c0_i32_0 = arith.constant 0 : i32
    %c0_i32_1 = arith.constant 0 : i32
    %c0_i32_2 = arith.constant 0 : i32
    %c0_i32_3 = arith.constant 0 : i32
    return %c0_i32, %c0_i32_0, %c0_i32_1, %c0_i32_2 : i32, i32, i32, i32
  }
  func.func @transform_3(%arg0: i32) -> (i32, i32, i32) {
    %c0_i32 = arith.constant 0 : i32
    %c0_i32_0 = arith.constant 0 : i32
    %c0_i32_1 = arith.constant 0 : i32
    %c0_i32_2 = arith.constant 0 : i32
    return %c0_i32, %c0_i32_0, %c0_i32_1 : i32, i32, i32
  }
  func.func @transform_4(%arg0: i32) -> (i32, i32) {
    %c0_i32 = arith.constant 0 : i32
    %c0_i32_0 = arith.constant 0 : i32
    return %arg0, %c0_i32 : i32, i32
  }
  func.func @transform_5(%arg0: i32) -> (i32, i32) {
    %c0_i32 = arith.constant 0 : i32
    %c0_i32_0 = arith.constant 0 : i32
    return %arg0, %c0_i32 : i32, i32
  }
}

module attributes {stable_mosaic.version = 11 : i64} {
  func.func @_gru_recurrence_kernel(%arg0: i32, %arg1: memref<64x384xf32, #tpu.memory_space<vmem>>, %arg2: memref<64x384xf32, #tpu.memory_space<vmem>>, %arg3: memref<2x128x384xf32, #tpu.memory_space<vmem>>, %arg4: memref<2x1x128xf32, #tpu.memory_space<vmem>>, %arg5: memref<64x128xf32, #tpu.memory_space<vmem>>, %arg6: memref<64x128xf32, #tpu.memory_space<vmem>>, %arg7: memref<2x8x128xf32, #tpu.memory_space<vmem>>, %arg8: memref<8x128xf32, #tpu.memory_space<vmem>>, %arg9: memref<8x128xf32, #tpu.memory_space<vmem>>) attributes {dimension_semantics = [#tpu.dimension_semantics<arbitrary>], iteration_bounds = array<i64: 1>, scalar_prefetch = 0 : i64, scratch_operands = 2 : i64, tpu.core_type = #tpu.core_type<tc>, window_params = [{transform_indices = @transform_0, window_bounds = array<i64: 64, 384>}, {transform_indices = @transform_1, window_bounds = array<i64: 64, 384>}, {pipeline_mode = #tpu.pipeline_mode<synchronous>, transform_indices = @transform_2, window_bounds = array<i64: 2, 128, 384>}, {pipeline_mode = #tpu.pipeline_mode<synchronous>, transform_indices = @transform_3, window_bounds = array<i64: 2, 1, 128>}, {transform_indices = @transform_4, window_bounds = array<i64: 64, 128>}, {transform_indices = @transform_5, window_bounds = array<i64: 64, 128>}, {pipeline_mode = #tpu.pipeline_mode<synchronous>, transform_indices = @transform_6, window_bounds = array<i64: 2, 8, 128>}]} {
    %c0_i32 = arith.constant 0 : i32
    %0 = arith.cmpi eq, %arg0, %c0_i32 : i32
    %1 = arith.extui %0 : i1 to i32
    %c0_i32_0 = arith.constant 0 : i32
    %2 = arith.cmpi ne, %1, %c0_i32_0 : i32
    scf.if %2 {
      %cst_125 = arith.constant 0.000000e+00 : f32
      %482 = vector.broadcast %cst_125 : f32 to vector<8x128xf32>
      %c0_126 = arith.constant 0 : index
      %c0_127 = arith.constant 0 : index
      %483 = vector.load %arg8[%c0_126, %c0_127] : memref<8x128xf32, #tpu.memory_space<vmem>>, vector<8x128xf32>
      tpu.vector_store %arg8[%c0_126, %c0_127], %482 {strides = array<i32>} : memref<8x128xf32, #tpu.memory_space<vmem>>, vector<8x128xf32>,
      %cst_128 = arith.constant 0.000000e+00 : f32
      %484 = vector.broadcast %cst_128 : f32 to vector<8x128xf32>
      %c0_129 = arith.constant 0 : index
      %c0_130 = arith.constant 0 : index
      %485 = vector.load %arg9[%c0_129, %c0_130] : memref<8x128xf32, #tpu.memory_space<vmem>>, vector<8x128xf32>
      tpu.vector_store %arg9[%c0_129, %c0_130], %484 {strides = array<i32>} : memref<8x128xf32, #tpu.memory_space<vmem>>, vector<8x128xf32>,
    } else {
    }
    %c0 = arith.constant 0 : index
    %c0_1 = arith.constant 0 : index
    %c0_2 = arith.constant 0 : index
    %3 = vector.load %arg3[%c0, %c0_1, %c0_2] : memref<2x128x384xf32, #tpu.memory_space<vmem>>, vector<1x128x384xf32>
    %4 = vector.shape_cast %3 : vector<1x128x384xf32> to vector<128x384xf32>
    %c1 = arith.constant 1 : index
    %c0_3 = arith.constant 0 : index
    %c0_4 = arith.constant 0 : index
    %5 = vector.load %arg3[%c1, %c0_3, %c0_4] : memref<2x128x384xf32, #tpu.memory_space<vmem>>, vector<1x128x384xf32>
    %6 = vector.shape_cast %5 : vector<1x128x384xf32> to vector<128x384xf32>
    %c0_5 = arith.constant 0 : index
    %c0_6 = arith.constant 0 : index
    %c0_7 = arith.constant 0 : index
    %7 = vector.load %arg4[%c0_5, %c0_6, %c0_7] : memref<2x1x128xf32, #tpu.memory_space<vmem>>, vector<1x1x128xf32>
    %8 = vector.shape_cast %7 : vector<1x1x128xf32> to vector<1x128xf32>
    %c1_8 = arith.constant 1 : index
    %c0_9 = arith.constant 0 : index
    %c0_10 = arith.constant 0 : index
    %9 = vector.load %arg4[%c1_8, %c0_9, %c0_10] : memref<2x1x128xf32, #tpu.memory_space<vmem>>, vector<1x1x128xf32>
    %10 = vector.shape_cast %9 : vector<1x1x128xf32> to vector<1x128xf32>
    %c0_11 = arith.constant 0 : index
    %c0_12 = arith.constant 0 : index
    %11 = vector.load %arg8[%c0_11, %c0_12] : memref<8x128xf32, #tpu.memory_space<vmem>>, vector<8x128xf32>
    %c0_13 = arith.constant 0 : index
    %c0_14 = arith.constant 0 : index
    %12 = vector.load %arg9[%c0_13, %c0_14] : memref<8x128xf32, #tpu.memory_space<vmem>>, vector<8x128xf32>
    %c0_15 = arith.constant 0 : index
    %c0_16 = arith.constant 0 : index
    %13 = vector.load %arg1[%c0_15, %c0_16] : memref<64x384xf32, #tpu.memory_space<vmem>>, vector<8x384xf32>
    %c56 = arith.constant 56 : index
    %c0_17 = arith.constant 0 : index
    %14 = vector.load %arg2[%c56, %c0_17] : memref<64x384xf32, #tpu.memory_space<vmem>>, vector<8x384xf32>
    %cst = arith.constant dense<0.000000e+00> : vector<8x384xf32>
    %15 = tpu.matmul %11, %4, %cst {dimension_numbers = #tpu.dot_dimension_numbers<[1], [0], [0], [1], [0, 0, 1, 1], [], []>} : vector<8x128xf32>, vector<128x384xf32>, vector<8x384xf32> -> vector<8x384xf32>
    %cst_18 = arith.constant dense<0.000000e+00> : vector<8x384xf32>
    %16 = tpu.matmul %12, %6, %cst_18 {dimension_numbers = #tpu.dot_dimension_numbers<[1], [0], [0], [1], [0, 0, 1, 1], [], []>} : vector<8x128xf32>, vector<128x384xf32>, vector<8x384xf32> -> vector<8x384xf32>
    %17 = vector.extract_strided_slice %13 {offsets = [0, 0], sizes = [8, 128], strides = [1, 1]} : vector<8x384xf32> to vector<8x128xf32>
    %18 = vector.extract_strided_slice %15 {offsets = [0, 0], sizes = [8, 128], strides = [1, 1]} : vector<8x384xf32> to vector<8x128xf32>
    %19 = arith.addf %17, %18 : vector<8x128xf32>
    %20 = arith.negf %19 : vector<8x128xf32>
    %21 = math.exp %20 : vector<8x128xf32>
    %cst_19 = arith.constant 1.000000e+00 : f32
    %22 = vector.broadcast %cst_19 : f32 to vector<8x128xf32>
    %23 = arith.addf %22, %21 : vector<8x128xf32>
    %24 = arith.divf %22, %23 : vector<8x128xf32>
    %25 = vector.extract_strided_slice %13 {offsets = [0, 128], sizes = [8, 128], strides = [1, 1]} : vector<8x384xf32> to vector<8x128xf32>
    %26 = vector.extract_strided_slice %15 {offsets = [0, 128], sizes = [8, 128], strides = [1, 1]} : vector<8x384xf32> to vector<8x128xf32>
    %27 = arith.addf %25, %26 : vector<8x128xf32>
    %28 = arith.negf %27 : vector<8x128xf32>
    %29 = math.exp %28 : vector<8x128xf32>
    %cst_20 = arith.constant 1.000000e+00 : f32
    %30 = vector.broadcast %cst_20 : f32 to vector<8x128xf32>
    %31 = arith.addf %30, %29 : vector<8x128xf32>
    %32 = arith.divf %30, %31 : vector<8x128xf32>
    %33 = vector.extract_strided_slice %13 {offsets = [0, 256], sizes = [8, 128], strides = [1, 1]} : vector<8x384xf32> to vector<8x128xf32>
    %34 = vector.extract_strided_slice %15 {offsets = [0, 256], sizes = [8, 128], strides = [1, 1]} : vector<8x384xf32> to vector<8x128xf32>
    %35 = vector.broadcast %8 : vector<1x128xf32> to vector<8x128xf32>
    %36 = arith.addf %34, %35 : vector<8x128xf32>
    %37 = arith.mulf %24, %36 : vector<8x128xf32>
    %38 = arith.addf %33, %37 : vector<8x128xf32>
    %39 = math.tanh %38 : vector<8x128xf32>
    %40 = arith.subf %11, %39 : vector<8x128xf32>
    %41 = arith.mulf %32, %40 : vector<8x128xf32>
    %42 = arith.addf %39, %41 : vector<8x128xf32>
    %43 = vector.extract_strided_slice %14 {offsets = [0, 0], sizes = [8, 128], strides = [1, 1]} : vector<8x384xf32> to vector<8x128xf32>
    %44 = vector.extract_strided_slice %16 {offsets = [0, 0], sizes = [8, 128], strides = [1, 1]} : vector<8x384xf32> to vector<8x128xf32>
    %45 = arith.addf %43, %44 : vector<8x128xf32>
    %46 = arith.negf %45 : vector<8x128xf32>
    %47 = math.exp %46 : vector<8x128xf32>
    %cst_21 = arith.constant 1.000000e+00 : f32
    %48 = vector.broadcast %cst_21 : f32 to vector<8x128xf32>
    %49 = arith.addf %48, %47 : vector<8x128xf32>
    %50 = arith.divf %48, %49 : vector<8x128xf32>
    %51 = vector.extract_strided_slice %14 {offsets = [0, 128], sizes = [8, 128], strides = [1, 1]} : vector<8x384xf32> to vector<8x128xf32>
    %52 = vector.extract_strided_slice %16 {offsets = [0, 128], sizes = [8, 128], strides = [1, 1]} : vector<8x384xf32> to vector<8x128xf32>
    %53 = arith.addf %51, %52 : vector<8x128xf32>
    %54 = arith.negf %53 : vector<8x128xf32>
    %55 = math.exp %54 : vector<8x128xf32>
    %cst_22 = arith.constant 1.000000e+00 : f32
    %56 = vector.broadcast %cst_22 : f32 to vector<8x128xf32>
    %57 = arith.addf %56, %55 : vector<8x128xf32>
    %58 = arith.divf %56, %57 : vector<8x128xf32>
    %59 = vector.extract_strided_slice %14 {offsets = [0, 256], sizes = [8, 128], strides = [1, 1]} : vector<8x384xf32> to vector<8x128xf32>
    %60 = vector.extract_strided_slice %16 {offsets = [0, 256], sizes = [8, 128], strides = [1, 1]} : vector<8x384xf32> to vector<8x128xf32>
    %61 = vector.broadcast %10 : vector<1x128xf32> to vector<8x128xf32>
    %62 = arith.addf %60, %61 : vector<8x128xf32>
    %63 = arith.mulf %50, %62 : vector<8x128xf32>
    %64 = arith.addf %59, %63 : vector<8x128xf32>
    %65 = math.tanh %64 : vector<8x128xf32>
    %66 = arith.subf %12, %65 : vector<8x128xf32>
    %67 = arith.mulf %58, %66 : vector<8x128xf32>
    %68 = arith.addf %65, %67 : vector<8x128xf32>
    %c0_23 = arith.constant 0 : index
    %c0_24 = arith.constant 0 : index
    %69 = vector.load %arg5[%c0_23, %c0_24] : memref<64x128xf32, #tpu.memory_space<vmem>>, vector<8x128xf32>
    tpu.vector_store %arg5[%c0_23, %c0_24], %42 {strides = array<i32>} : memref<64x128xf32, #tpu.memory_space<vmem>>, vector<8x128xf32>,
    %c56_25 = arith.constant 56 : index
    %c0_26 = arith.constant 0 : index
    %70 = vector.load %arg6[%c56_25, %c0_26] : memref<64x128xf32, #tpu.memory_space<vmem>>, vector<8x128xf32>
    tpu.vector_store %arg6[%c56_25, %c0_26], %68 {strides = array<i32>} : memref<64x128xf32, #tpu.memory_space<vmem>>, vector<8x128xf32>,
    %c8 = arith.constant 8 : index
    %c0_27 = arith.constant 0 : index
    %71 = vector.load %arg1[%c8, %c0_27] : memref<64x384xf32, #tpu.memory_space<vmem>>, vector<8x384xf32>
    %c48 = arith.constant 48 : index
    %c0_28 = arith.constant 0 : index
    %72 = vector.load %arg2[%c48, %c0_28] : memref<64x384xf32, #tpu.memory_space<vmem>>, vector<8x384xf32>
    %cst_29 = arith.constant dense<0.000000e+00> : vector<8x384xf32>
    %73 = tpu.matmul %42, %4, %cst_29 {dimension_numbers = #tpu.dot_dimension_numbers<[1], [0], [0], [1], [0, 0, 1, 1], [], []>} : vector<8x128xf32>, vector<128x384xf32>, vector<8x384xf32> -> vector<8x384xf32>
    %cst_30 = arith.constant dense<0.000000e+00> : vector<8x384xf32>
    %74 = tpu.matmul %68, %6, %cst_30 {dimension_numbers = #tpu.dot_dimension_numbers<[1], [0], [0], [1], [0, 0, 1, 1], [], []>} : vector<8x128xf32>, vector<128x384xf32>, vector<8x384xf32> -> vector<8x384xf32>
    %75 = vector.extract_strided_slice %71 {offsets = [0, 0], sizes = [8, 128], strides = [1, 1]} : vector<8x384xf32> to vector<8x128xf32>
    %76 = vector.extract_strided_slice %73 {offsets = [0, 0], sizes = [8, 128], strides = [1, 1]} : vector<8x384xf32> to vector<8x128xf32>
    %77 = arith.addf %75, %76 : vector<8x128xf32>
    %78 = arith.negf %77 : vector<8x128xf32>
    %79 = math.exp %78 : vector<8x128xf32>
    %cst_31 = arith.constant 1.000000e+00 : f32
    %80 = vector.broadcast %cst_31 : f32 to vector<8x128xf32>
    %81 = arith.addf %80, %79 : vector<8x128xf32>
    %82 = arith.divf %80, %81 : vector<8x128xf32>
    %83 = vector.extract_strided_slice %71 {offsets = [0, 128], sizes = [8, 128], strides = [1, 1]} : vector<8x384xf32> to vector<8x128xf32>
    %84 = vector.extract_strided_slice %73 {offsets = [0, 128], sizes = [8, 128], strides = [1, 1]} : vector<8x384xf32> to vector<8x128xf32>
    %85 = arith.addf %83, %84 : vector<8x128xf32>
    %86 = arith.negf %85 : vector<8x128xf32>
    %87 = math.exp %86 : vector<8x128xf32>
    %cst_32 = arith.constant 1.000000e+00 : f32
    %88 = vector.broadcast %cst_32 : f32 to vector<8x128xf32>
    %89 = arith.addf %88, %87 : vector<8x128xf32>
    %90 = arith.divf %88, %89 : vector<8x128xf32>
    %91 = vector.extract_strided_slice %71 {offsets = [0, 256], sizes = [8, 128], strides = [1, 1]} : vector<8x384xf32> to vector<8x128xf32>
    %92 = vector.extract_strided_slice %73 {offsets = [0, 256], sizes = [8, 128], strides = [1, 1]} : vector<8x384xf32> to vector<8x128xf32>
    %93 = vector.broadcast %8 : vector<1x128xf32> to vector<8x128xf32>
    %94 = arith.addf %92, %93 : vector<8x128xf32>
    %95 = arith.mulf %82, %94 : vector<8x128xf32>
    %96 = arith.addf %91, %95 : vector<8x128xf32>
    %97 = math.tanh %96 : vector<8x128xf32>
    %98 = arith.subf %42, %97 : vector<8x128xf32>
    %99 = arith.mulf %90, %98 : vector<8x128xf32>
    %100 = arith.addf %97, %99 : vector<8x128xf32>
    %101 = vector.extract_strided_slice %72 {offsets = [0, 0], sizes = [8, 128], strides = [1, 1]} : vector<8x384xf32> to vector<8x128xf32>
    %102 = vector.extract_strided_slice %74 {offsets = [0, 0], sizes = [8, 128], strides = [1, 1]} : vector<8x384xf32> to vector<8x128xf32>
    %103 = arith.addf %101, %102 : vector<8x128xf32>
    %104 = arith.negf %103 : vector<8x128xf32>
    %105 = math.exp %104 : vector<8x128xf32>
    %cst_33 = arith.constant 1.000000e+00 : f32
    %106 = vector.broadcast %cst_33 : f32 to vector<8x128xf32>
    %107 = arith.addf %106, %105 : vector<8x128xf32>
    %108 = arith.divf %106, %107 : vector<8x128xf32>
    %109 = vector.extract_strided_slice %72 {offsets = [0, 128], sizes = [8, 128], strides = [1, 1]} : vector<8x384xf32> to vector<8x128xf32>
    %110 = vector.extract_strided_slice %74 {offsets = [0, 128], sizes = [8, 128], strides = [1, 1]} : vector<8x384xf32> to vector<8x128xf32>
    %111 = arith.addf %109, %110 : vector<8x128xf32>
    %112 = arith.negf %111 : vector<8x128xf32>
    %113 = math.exp %112 : vector<8x128xf32>
    %cst_34 = arith.constant 1.000000e+00 : f32
    %114 = vector.broadcast %cst_34 : f32 to vector<8x128xf32>
    %115 = arith.addf %114, %113 : vector<8x128xf32>
    %116 = arith.divf %114, %115 : vector<8x128xf32>
    %117 = vector.extract_strided_slice %72 {offsets = [0, 256], sizes = [8, 128], strides = [1, 1]} : vector<8x384xf32> to vector<8x128xf32>
    %118 = vector.extract_strided_slice %74 {offsets = [0, 256], sizes = [8, 128], strides = [1, 1]} : vector<8x384xf32> to vector<8x128xf32>
    %119 = vector.broadcast %10 : vector<1x128xf32> to vector<8x128xf32>
    %120 = arith.addf %118, %119 : vector<8x128xf32>
    %121 = arith.mulf %108, %120 : vector<8x128xf32>
    %122 = arith.addf %117, %121 : vector<8x128xf32>
    %123 = math.tanh %122 : vector<8x128xf32>
    %124 = arith.subf %68, %123 : vector<8x128xf32>
    %125 = arith.mulf %116, %124 : vector<8x128xf32>
    %126 = arith.addf %123, %125 : vector<8x128xf32>
    %c8_35 = arith.constant 8 : index
    %c0_36 = arith.constant 0 : index
    %127 = vector.load %arg5[%c8_35, %c0_36] : memref<64x128xf32, #tpu.memory_space<vmem>>, vector<8x128xf32>
    tpu.vector_store %arg5[%c8_35, %c0_36], %100 {strides = array<i32>} : memref<64x128xf32, #tpu.memory_space<vmem>>, vector<8x128xf32>,
    %c48_37 = arith.constant 48 : index
    %c0_38 = arith.constant 0 : index
    %128 = vector.load %arg6[%c48_37, %c0_38] : memref<64x128xf32, #tpu.memory_space<vmem>>, vector<8x128xf32>
    tpu.vector_store %arg6[%c48_37, %c0_38], %126 {strides = array<i32>} : memref<64x128xf32, #tpu.memory_space<vmem>>, vector<8x128xf32>,
    %c16 = arith.constant 16 : index
    %c0_39 = arith.constant 0 : index
    %129 = vector.load %arg1[%c16, %c0_39] : memref<64x384xf32, #tpu.memory_space<vmem>>, vector<8x384xf32>
    %c40 = arith.constant 40 : index
    %c0_40 = arith.constant 0 : index
    %130 = vector.load %arg2[%c40, %c0_40] : memref<64x384xf32, #tpu.memory_space<vmem>>, vector<8x384xf32>
    %cst_41 = arith.constant dense<0.000000e+00> : vector<8x384xf32>
    %131 = tpu.matmul %100, %4, %cst_41 {dimension_numbers = #tpu.dot_dimension_numbers<[1], [0], [0], [1], [0, 0, 1, 1], [], []>} : vector<8x128xf32>, vector<128x384xf32>, vector<8x384xf32> -> vector<8x384xf32>
    %cst_42 = arith.constant dense<0.000000e+00> : vector<8x384xf32>
    %132 = tpu.matmul %126, %6, %cst_42 {dimension_numbers = #tpu.dot_dimension_numbers<[1], [0], [0], [1], [0, 0, 1, 1], [], []>} : vector<8x128xf32>, vector<128x384xf32>, vector<8x384xf32> -> vector<8x384xf32>
    %133 = vector.extract_strided_slice %129 {offsets = [0, 0], sizes = [8, 128], strides = [1, 1]} : vector<8x384xf32> to vector<8x128xf32>
    %134 = vector.extract_strided_slice %131 {offsets = [0, 0], sizes = [8, 128], strides = [1, 1]} : vector<8x384xf32> to vector<8x128xf32>
    %135 = arith.addf %133, %134 : vector<8x128xf32>
    %136 = arith.negf %135 : vector<8x128xf32>
    %137 = math.exp %136 : vector<8x128xf32>
    %cst_43 = arith.constant 1.000000e+00 : f32
    %138 = vector.broadcast %cst_43 : f32 to vector<8x128xf32>
    %139 = arith.addf %138, %137 : vector<8x128xf32>
    %140 = arith.divf %138, %139 : vector<8x128xf32>
    %141 = vector.extract_strided_slice %129 {offsets = [0, 128], sizes = [8, 128], strides = [1, 1]} : vector<8x384xf32> to vector<8x128xf32>
    %142 = vector.extract_strided_slice %131 {offsets = [0, 128], sizes = [8, 128], strides = [1, 1]} : vector<8x384xf32> to vector<8x128xf32>
    %143 = arith.addf %141, %142 : vector<8x128xf32>
    %144 = arith.negf %143 : vector<8x128xf32>
    %145 = math.exp %144 : vector<8x128xf32>
    %cst_44 = arith.constant 1.000000e+00 : f32
    %146 = vector.broadcast %cst_44 : f32 to vector<8x128xf32>
    %147 = arith.addf %146, %145 : vector<8x128xf32>
    %148 = arith.divf %146, %147 : vector<8x128xf32>
    %149 = vector.extract_strided_slice %129 {offsets = [0, 256], sizes = [8, 128], strides = [1, 1]} : vector<8x384xf32> to vector<8x128xf32>
    %150 = vector.extract_strided_slice %131 {offsets = [0, 256], sizes = [8, 128], strides = [1, 1]} : vector<8x384xf32> to vector<8x128xf32>
    %151 = vector.broadcast %8 : vector<1x128xf32> to vector<8x128xf32>
    %152 = arith.addf %150, %151 : vector<8x128xf32>
    %153 = arith.mulf %140, %152 : vector<8x128xf32>
    %154 = arith.addf %149, %153 : vector<8x128xf32>
    %155 = math.tanh %154 : vector<8x128xf32>
    %156 = arith.subf %100, %155 : vector<8x128xf32>
    %157 = arith.mulf %148, %156 : vector<8x128xf32>
    %158 = arith.addf %155, %157 : vector<8x128xf32>
    %159 = vector.extract_strided_slice %130 {offsets = [0, 0], sizes = [8, 128], strides = [1, 1]} : vector<8x384xf32> to vector<8x128xf32>
    %160 = vector.extract_strided_slice %132 {offsets = [0, 0], sizes = [8, 128], strides = [1, 1]} : vector<8x384xf32> to vector<8x128xf32>
    %161 = arith.addf %159, %160 : vector<8x128xf32>
    %162 = arith.negf %161 : vector<8x128xf32>
    %163 = math.exp %162 : vector<8x128xf32>
    %cst_45 = arith.constant 1.000000e+00 : f32
    %164 = vector.broadcast %cst_45 : f32 to vector<8x128xf32>
    %165 = arith.addf %164, %163 : vector<8x128xf32>
    %166 = arith.divf %164, %165 : vector<8x128xf32>
    %167 = vector.extract_strided_slice %130 {offsets = [0, 128], sizes = [8, 128], strides = [1, 1]} : vector<8x384xf32> to vector<8x128xf32>
    %168 = vector.extract_strided_slice %132 {offsets = [0, 128], sizes = [8, 128], strides = [1, 1]} : vector<8x384xf32> to vector<8x128xf32>
    %169 = arith.addf %167, %168 : vector<8x128xf32>
    %170 = arith.negf %169 : vector<8x128xf32>
    %171 = math.exp %170 : vector<8x128xf32>
    %cst_46 = arith.constant 1.000000e+00 : f32
    %172 = vector.broadcast %cst_46 : f32 to vector<8x128xf32>
    %173 = arith.addf %172, %171 : vector<8x128xf32>
    %174 = arith.divf %172, %173 : vector<8x128xf32>
    %175 = vector.extract_strided_slice %130 {offsets = [0, 256], sizes = [8, 128], strides = [1, 1]} : vector<8x384xf32> to vector<8x128xf32>
    %176 = vector.extract_strided_slice %132 {offsets = [0, 256], sizes = [8, 128], strides = [1, 1]} : vector<8x384xf32> to vector<8x128xf32>
    %177 = vector.broadcast %10 : vector<1x128xf32> to vector<8x128xf32>
    %178 = arith.addf %176, %177 : vector<8x128xf32>
    %179 = arith.mulf %166, %178 : vector<8x128xf32>
    %180 = arith.addf %175, %179 : vector<8x128xf32>
    %181 = math.tanh %180 : vector<8x128xf32>
    %182 = arith.subf %126, %181 : vector<8x128xf32>
    %183 = arith.mulf %174, %182 : vector<8x128xf32>
    %184 = arith.addf %181, %183 : vector<8x128xf32>
    %c16_47 = arith.constant 16 : index
    %c0_48 = arith.constant 0 : index
    %185 = vector.load %arg5[%c16_47, %c0_48] : memref<64x128xf32, #tpu.memory_space<vmem>>, vector<8x128xf32>
    tpu.vector_store %arg5[%c16_47, %c0_48], %158 {strides = array<i32>} : memref<64x128xf32, #tpu.memory_space<vmem>>, vector<8x128xf32>,
    %c40_49 = arith.constant 40 : index
    %c0_50 = arith.constant 0 : index
    %186 = vector.load %arg6[%c40_49, %c0_50] : memref<64x128xf32, #tpu.memory_space<vmem>>, vector<8x128xf32>
    tpu.vector_store %arg6[%c40_49, %c0_50], %184 {strides = array<i32>} : memref<64x128xf32, #tpu.memory_space<vmem>>, vector<8x128xf32>,
    %c24 = arith.constant 24 : index
    %c0_51 = arith.constant 0 : index
    %187 = vector.load %arg1[%c24, %c0_51] : memref<64x384xf32, #tpu.memory_space<vmem>>, vector<8x384xf32>
    %c32 = arith.constant 32 : index
    %c0_52 = arith.constant 0 : index
    %188 = vector.load %arg2[%c32, %c0_52] : memref<64x384xf32, #tpu.memory_space<vmem>>, vector<8x384xf32>
    %cst_53 = arith.constant dense<0.000000e+00> : vector<8x384xf32>
    %189 = tpu.matmul %158, %4, %cst_53 {dimension_numbers = #tpu.dot_dimension_numbers<[1], [0], [0], [1], [0, 0, 1, 1], [], []>} : vector<8x128xf32>, vector<128x384xf32>, vector<8x384xf32> -> vector<8x384xf32>
    %cst_54 = arith.constant dense<0.000000e+00> : vector<8x384xf32>
    %190 = tpu.matmul %184, %6, %cst_54 {dimension_numbers = #tpu.dot_dimension_numbers<[1], [0], [0], [1], [0, 0, 1, 1], [], []>} : vector<8x128xf32>, vector<128x384xf32>, vector<8x384xf32> -> vector<8x384xf32>
    %191 = vector.extract_strided_slice %187 {offsets = [0, 0], sizes = [8, 128], strides = [1, 1]} : vector<8x384xf32> to vector<8x128xf32>
    %192 = vector.extract_strided_slice %189 {offsets = [0, 0], sizes = [8, 128], strides = [1, 1]} : vector<8x384xf32> to vector<8x128xf32>
    %193 = arith.addf %191, %192 : vector<8x128xf32>
    %194 = arith.negf %193 : vector<8x128xf32>
    %195 = math.exp %194 : vector<8x128xf32>
    %cst_55 = arith.constant 1.000000e+00 : f32
    %196 = vector.broadcast %cst_55 : f32 to vector<8x128xf32>
    %197 = arith.addf %196, %195 : vector<8x128xf32>
    %198 = arith.divf %196, %197 : vector<8x128xf32>
    %199 = vector.extract_strided_slice %187 {offsets = [0, 128], sizes = [8, 128], strides = [1, 1]} : vector<8x384xf32> to vector<8x128xf32>
    %200 = vector.extract_strided_slice %189 {offsets = [0, 128], sizes = [8, 128], strides = [1, 1]} : vector<8x384xf32> to vector<8x128xf32>
    %201 = arith.addf %199, %200 : vector<8x128xf32>
    %202 = arith.negf %201 : vector<8x128xf32>
    %203 = math.exp %202 : vector<8x128xf32>
    %cst_56 = arith.constant 1.000000e+00 : f32
    %204 = vector.broadcast %cst_56 : f32 to vector<8x128xf32>
    %205 = arith.addf %204, %203 : vector<8x128xf32>
    %206 = arith.divf %204, %205 : vector<8x128xf32>
    %207 = vector.extract_strided_slice %187 {offsets = [0, 256], sizes = [8, 128], strides = [1, 1]} : vector<8x384xf32> to vector<8x128xf32>
    %208 = vector.extract_strided_slice %189 {offsets = [0, 256], sizes = [8, 128], strides = [1, 1]} : vector<8x384xf32> to vector<8x128xf32>
    %209 = vector.broadcast %8 : vector<1x128xf32> to vector<8x128xf32>
    %210 = arith.addf %208, %209 : vector<8x128xf32>
    %211 = arith.mulf %198, %210 : vector<8x128xf32>
    %212 = arith.addf %207, %211 : vector<8x128xf32>
    %213 = math.tanh %212 : vector<8x128xf32>
    %214 = arith.subf %158, %213 : vector<8x128xf32>
    %215 = arith.mulf %206, %214 : vector<8x128xf32>
    %216 = arith.addf %213, %215 : vector<8x128xf32>
    %217 = vector.extract_strided_slice %188 {offsets = [0, 0], sizes = [8, 128], strides = [1, 1]} : vector<8x384xf32> to vector<8x128xf32>
    %218 = vector.extract_strided_slice %190 {offsets = [0, 0], sizes = [8, 128], strides = [1, 1]} : vector<8x384xf32> to vector<8x128xf32>
    %219 = arith.addf %217, %218 : vector<8x128xf32>
    %220 = arith.negf %219 : vector<8x128xf32>
    %221 = math.exp %220 : vector<8x128xf32>
    %cst_57 = arith.constant 1.000000e+00 : f32
    %222 = vector.broadcast %cst_57 : f32 to vector<8x128xf32>
    %223 = arith.addf %222, %221 : vector<8x128xf32>
    %224 = arith.divf %222, %223 : vector<8x128xf32>
    %225 = vector.extract_strided_slice %188 {offsets = [0, 128], sizes = [8, 128], strides = [1, 1]} : vector<8x384xf32> to vector<8x128xf32>
    %226 = vector.extract_strided_slice %190 {offsets = [0, 128], sizes = [8, 128], strides = [1, 1]} : vector<8x384xf32> to vector<8x128xf32>
    %227 = arith.addf %225, %226 : vector<8x128xf32>
    %228 = arith.negf %227 : vector<8x128xf32>
    %229 = math.exp %228 : vector<8x128xf32>
    %cst_58 = arith.constant 1.000000e+00 : f32
    %230 = vector.broadcast %cst_58 : f32 to vector<8x128xf32>
    %231 = arith.addf %230, %229 : vector<8x128xf32>
    %232 = arith.divf %230, %231 : vector<8x128xf32>
    %233 = vector.extract_strided_slice %188 {offsets = [0, 256], sizes = [8, 128], strides = [1, 1]} : vector<8x384xf32> to vector<8x128xf32>
    %234 = vector.extract_strided_slice %190 {offsets = [0, 256], sizes = [8, 128], strides = [1, 1]} : vector<8x384xf32> to vector<8x128xf32>
    %235 = vector.broadcast %10 : vector<1x128xf32> to vector<8x128xf32>
    %236 = arith.addf %234, %235 : vector<8x128xf32>
    %237 = arith.mulf %224, %236 : vector<8x128xf32>
    %238 = arith.addf %233, %237 : vector<8x128xf32>
    %239 = math.tanh %238 : vector<8x128xf32>
    %240 = arith.subf %184, %239 : vector<8x128xf32>
    %241 = arith.mulf %232, %240 : vector<8x128xf32>
    %242 = arith.addf %239, %241 : vector<8x128xf32>
    %c24_59 = arith.constant 24 : index
    %c0_60 = arith.constant 0 : index
    %243 = vector.load %arg5[%c24_59, %c0_60] : memref<64x128xf32, #tpu.memory_space<vmem>>, vector<8x128xf32>
    tpu.vector_store %arg5[%c24_59, %c0_60], %216 {strides = array<i32>} : memref<64x128xf32, #tpu.memory_space<vmem>>, vector<8x128xf32>,
    %c32_61 = arith.constant 32 : index
    %c0_62 = arith.constant 0 : index
    %244 = vector.load %arg6[%c32_61, %c0_62] : memref<64x128xf32, #tpu.memory_space<vmem>>, vector<8x128xf32>
    tpu.vector_store %arg6[%c32_61, %c0_62], %242 {strides = array<i32>} : memref<64x128xf32, #tpu.memory_space<vmem>>, vector<8x128xf32>,
    %c32_63 = arith.constant 32 : index
    %c0_64 = arith.constant 0 : index
    %245 = vector.load %arg1[%c32_63, %c0_64] : memref<64x384xf32, #tpu.memory_space<vmem>>, vector<8x384xf32>
    %c24_65 = arith.constant 24 : index
    %c0_66 = arith.constant 0 : index
    %246 = vector.load %arg2[%c24_65, %c0_66] : memref<64x384xf32, #tpu.memory_space<vmem>>, vector<8x384xf32>
    %cst_67 = arith.constant dense<0.000000e+00> : vector<8x384xf32>
    %247 = tpu.matmul %216, %4, %cst_67 {dimension_numbers = #tpu.dot_dimension_numbers<[1], [0], [0], [1], [0, 0, 1, 1], [], []>} : vector<8x128xf32>, vector<128x384xf32>, vector<8x384xf32> -> vector<8x384xf32>
    %cst_68 = arith.constant dense<0.000000e+00> : vector<8x384xf32>
    %248 = tpu.matmul %242, %6, %cst_68 {dimension_numbers = #tpu.dot_dimension_numbers<[1], [0], [0], [1], [0, 0, 1, 1], [], []>} : vector<8x128xf32>, vector<128x384xf32>, vector<8x384xf32> -> vector<8x384xf32>
    %249 = vector.extract_strided_slice %245 {offsets = [0, 0], sizes = [8, 128], strides = [1, 1]} : vector<8x384xf32> to vector<8x128xf32>
    %250 = vector.extract_strided_slice %247 {offsets = [0, 0], sizes = [8, 128], strides = [1, 1]} : vector<8x384xf32> to vector<8x128xf32>
    %251 = arith.addf %249, %250 : vector<8x128xf32>
    %252 = arith.negf %251 : vector<8x128xf32>
    %253 = math.exp %252 : vector<8x128xf32>
    %cst_69 = arith.constant 1.000000e+00 : f32
    %254 = vector.broadcast %cst_69 : f32 to vector<8x128xf32>
    %255 = arith.addf %254, %253 : vector<8x128xf32>
    %256 = arith.divf %254, %255 : vector<8x128xf32>
    %257 = vector.extract_strided_slice %245 {offsets = [0, 128], sizes = [8, 128], strides = [1, 1]} : vector<8x384xf32> to vector<8x128xf32>
    %258 = vector.extract_strided_slice %247 {offsets = [0, 128], sizes = [8, 128], strides = [1, 1]} : vector<8x384xf32> to vector<8x128xf32>
    %259 = arith.addf %257, %258 : vector<8x128xf32>
    %260 = arith.negf %259 : vector<8x128xf32>
    %261 = math.exp %260 : vector<8x128xf32>
    %cst_70 = arith.constant 1.000000e+00 : f32
    %262 = vector.broadcast %cst_70 : f32 to vector<8x128xf32>
    %263 = arith.addf %262, %261 : vector<8x128xf32>
    %264 = arith.divf %262, %263 : vector<8x128xf32>
    %265 = vector.extract_strided_slice %245 {offsets = [0, 256], sizes = [8, 128], strides = [1, 1]} : vector<8x384xf32> to vector<8x128xf32>
    %266 = vector.extract_strided_slice %247 {offsets = [0, 256], sizes = [8, 128], strides = [1, 1]} : vector<8x384xf32> to vector<8x128xf32>
    %267 = vector.broadcast %8 : vector<1x128xf32> to vector<8x128xf32>
    %268 = arith.addf %266, %267 : vector<8x128xf32>
    %269 = arith.mulf %256, %268 : vector<8x128xf32>
    %270 = arith.addf %265, %269 : vector<8x128xf32>
    %271 = math.tanh %270 : vector<8x128xf32>
    %272 = arith.subf %216, %271 : vector<8x128xf32>
    %273 = arith.mulf %264, %272 : vector<8x128xf32>
    %274 = arith.addf %271, %273 : vector<8x128xf32>
    %275 = vector.extract_strided_slice %246 {offsets = [0, 0], sizes = [8, 128], strides = [1, 1]} : vector<8x384xf32> to vector<8x128xf32>
    %276 = vector.extract_strided_slice %248 {offsets = [0, 0], sizes = [8, 128], strides = [1, 1]} : vector<8x384xf32> to vector<8x128xf32>
    %277 = arith.addf %275, %276 : vector<8x128xf32>
    %278 = arith.negf %277 : vector<8x128xf32>
    %279 = math.exp %278 : vector<8x128xf32>
    %cst_71 = arith.constant 1.000000e+00 : f32
    %280 = vector.broadcast %cst_71 : f32 to vector<8x128xf32>
    %281 = arith.addf %280, %279 : vector<8x128xf32>
    %282 = arith.divf %280, %281 : vector<8x128xf32>
    %283 = vector.extract_strided_slice %246 {offsets = [0, 128], sizes = [8, 128], strides = [1, 1]} : vector<8x384xf32> to vector<8x128xf32>
    %284 = vector.extract_strided_slice %248 {offsets = [0, 128], sizes = [8, 128], strides = [1, 1]} : vector<8x384xf32> to vector<8x128xf32>
    %285 = arith.addf %283, %284 : vector<8x128xf32>
    %286 = arith.negf %285 : vector<8x128xf32>
    %287 = math.exp %286 : vector<8x128xf32>
    %cst_72 = arith.constant 1.000000e+00 : f32
    %288 = vector.broadcast %cst_72 : f32 to vector<8x128xf32>
    %289 = arith.addf %288, %287 : vector<8x128xf32>
    %290 = arith.divf %288, %289 : vector<8x128xf32>
    %291 = vector.extract_strided_slice %246 {offsets = [0, 256], sizes = [8, 128], strides = [1, 1]} : vector<8x384xf32> to vector<8x128xf32>
    %292 = vector.extract_strided_slice %248 {offsets = [0, 256], sizes = [8, 128], strides = [1, 1]} : vector<8x384xf32> to vector<8x128xf32>
    %293 = vector.broadcast %10 : vector<1x128xf32> to vector<8x128xf32>
    %294 = arith.addf %292, %293 : vector<8x128xf32>
    %295 = arith.mulf %282, %294 : vector<8x128xf32>
    %296 = arith.addf %291, %295 : vector<8x128xf32>
    %297 = math.tanh %296 : vector<8x128xf32>
    %298 = arith.subf %242, %297 : vector<8x128xf32>
    %299 = arith.mulf %290, %298 : vector<8x128xf32>
    %300 = arith.addf %297, %299 : vector<8x128xf32>
    %c32_73 = arith.constant 32 : index
    %c0_74 = arith.constant 0 : index
    %301 = vector.load %arg5[%c32_73, %c0_74] : memref<64x128xf32, #tpu.memory_space<vmem>>, vector<8x128xf32>
    tpu.vector_store %arg5[%c32_73, %c0_74], %274 {strides = array<i32>} : memref<64x128xf32, #tpu.memory_space<vmem>>, vector<8x128xf32>,
    %c24_75 = arith.constant 24 : index
    %c0_76 = arith.constant 0 : index
    %302 = vector.load %arg6[%c24_75, %c0_76] : memref<64x128xf32, #tpu.memory_space<vmem>>, vector<8x128xf32>
    tpu.vector_store %arg6[%c24_75, %c0_76], %300 {strides = array<i32>} : memref<64x128xf32, #tpu.memory_space<vmem>>, vector<8x128xf32>,
    %c40_77 = arith.constant 40 : index
    %c0_78 = arith.constant 0 : index
    %303 = vector.load %arg1[%c40_77, %c0_78] : memref<64x384xf32, #tpu.memory_space<vmem>>, vector<8x384xf32>
    %c16_79 = arith.constant 16 : index
    %c0_80 = arith.constant 0 : index
    %304 = vector.load %arg2[%c16_79, %c0_80] : memref<64x384xf32, #tpu.memory_space<vmem>>, vector<8x384xf32>
    %cst_81 = arith.constant dense<0.000000e+00> : vector<8x384xf32>
    %305 = tpu.matmul %274, %4, %cst_81 {dimension_numbers = #tpu.dot_dimension_numbers<[1], [0], [0], [1], [0, 0, 1, 1], [], []>} : vector<8x128xf32>, vector<128x384xf32>, vector<8x384xf32> -> vector<8x384xf32>
    %cst_82 = arith.constant dense<0.000000e+00> : vector<8x384xf32>
    %306 = tpu.matmul %300, %6, %cst_82 {dimension_numbers = #tpu.dot_dimension_numbers<[1], [0], [0], [1], [0, 0, 1, 1], [], []>} : vector<8x128xf32>, vector<128x384xf32>, vector<8x384xf32> -> vector<8x384xf32>
    %307 = vector.extract_strided_slice %303 {offsets = [0, 0], sizes = [8, 128], strides = [1, 1]} : vector<8x384xf32> to vector<8x128xf32>
    %308 = vector.extract_strided_slice %305 {offsets = [0, 0], sizes = [8, 128], strides = [1, 1]} : vector<8x384xf32> to vector<8x128xf32>
    %309 = arith.addf %307, %308 : vector<8x128xf32>
    %310 = arith.negf %309 : vector<8x128xf32>
    %311 = math.exp %310 : vector<8x128xf32>
    %cst_83 = arith.constant 1.000000e+00 : f32
    %312 = vector.broadcast %cst_83 : f32 to vector<8x128xf32>
    %313 = arith.addf %312, %311 : vector<8x128xf32>
    %314 = arith.divf %312, %313 : vector<8x128xf32>
    %315 = vector.extract_strided_slice %303 {offsets = [0, 128], sizes = [8, 128], strides = [1, 1]} : vector<8x384xf32> to vector<8x128xf32>
    %316 = vector.extract_strided_slice %305 {offsets = [0, 128], sizes = [8, 128], strides = [1, 1]} : vector<8x384xf32> to vector<8x128xf32>
    %317 = arith.addf %315, %316 : vector<8x128xf32>
    %318 = arith.negf %317 : vector<8x128xf32>
    %319 = math.exp %318 : vector<8x128xf32>
    %cst_84 = arith.constant 1.000000e+00 : f32
    %320 = vector.broadcast %cst_84 : f32 to vector<8x128xf32>
    %321 = arith.addf %320, %319 : vector<8x128xf32>
    %322 = arith.divf %320, %321 : vector<8x128xf32>
    %323 = vector.extract_strided_slice %303 {offsets = [0, 256], sizes = [8, 128], strides = [1, 1]} : vector<8x384xf32> to vector<8x128xf32>
    %324 = vector.extract_strided_slice %305 {offsets = [0, 256], sizes = [8, 128], strides = [1, 1]} : vector<8x384xf32> to vector<8x128xf32>
    %325 = vector.broadcast %8 : vector<1x128xf32> to vector<8x128xf32>
    %326 = arith.addf %324, %325 : vector<8x128xf32>
    %327 = arith.mulf %314, %326 : vector<8x128xf32>
    %328 = arith.addf %323, %327 : vector<8x128xf32>
    %329 = math.tanh %328 : vector<8x128xf32>
    %330 = arith.subf %274, %329 : vector<8x128xf32>
    %331 = arith.mulf %322, %330 : vector<8x128xf32>
    %332 = arith.addf %329, %331 : vector<8x128xf32>
    %333 = vector.extract_strided_slice %304 {offsets = [0, 0], sizes = [8, 128], strides = [1, 1]} : vector<8x384xf32> to vector<8x128xf32>
    %334 = vector.extract_strided_slice %306 {offsets = [0, 0], sizes = [8, 128], strides = [1, 1]} : vector<8x384xf32> to vector<8x128xf32>
    %335 = arith.addf %333, %334 : vector<8x128xf32>
    %336 = arith.negf %335 : vector<8x128xf32>
    %337 = math.exp %336 : vector<8x128xf32>
    %cst_85 = arith.constant 1.000000e+00 : f32
    %338 = vector.broadcast %cst_85 : f32 to vector<8x128xf32>
    %339 = arith.addf %338, %337 : vector<8x128xf32>
    %340 = arith.divf %338, %339 : vector<8x128xf32>
    %341 = vector.extract_strided_slice %304 {offsets = [0, 128], sizes = [8, 128], strides = [1, 1]} : vector<8x384xf32> to vector<8x128xf32>
    %342 = vector.extract_strided_slice %306 {offsets = [0, 128], sizes = [8, 128], strides = [1, 1]} : vector<8x384xf32> to vector<8x128xf32>
    %343 = arith.addf %341, %342 : vector<8x128xf32>
    %344 = arith.negf %343 : vector<8x128xf32>
    %345 = math.exp %344 : vector<8x128xf32>
    %cst_86 = arith.constant 1.000000e+00 : f32
    %346 = vector.broadcast %cst_86 : f32 to vector<8x128xf32>
    %347 = arith.addf %346, %345 : vector<8x128xf32>
    %348 = arith.divf %346, %347 : vector<8x128xf32>
    %349 = vector.extract_strided_slice %304 {offsets = [0, 256], sizes = [8, 128], strides = [1, 1]} : vector<8x384xf32> to vector<8x128xf32>
    %350 = vector.extract_strided_slice %306 {offsets = [0, 256], sizes = [8, 128], strides = [1, 1]} : vector<8x384xf32> to vector<8x128xf32>
    %351 = vector.broadcast %10 : vector<1x128xf32> to vector<8x128xf32>
    %352 = arith.addf %350, %351 : vector<8x128xf32>
    %353 = arith.mulf %340, %352 : vector<8x128xf32>
    %354 = arith.addf %349, %353 : vector<8x128xf32>
    %355 = math.tanh %354 : vector<8x128xf32>
    %356 = arith.subf %300, %355 : vector<8x128xf32>
    %357 = arith.mulf %348, %356 : vector<8x128xf32>
    %358 = arith.addf %355, %357 : vector<8x128xf32>
    %c40_87 = arith.constant 40 : index
    %c0_88 = arith.constant 0 : index
    %359 = vector.load %arg5[%c40_87, %c0_88] : memref<64x128xf32, #tpu.memory_space<vmem>>, vector<8x128xf32>
    tpu.vector_store %arg5[%c40_87, %c0_88], %332 {strides = array<i32>} : memref<64x128xf32, #tpu.memory_space<vmem>>, vector<8x128xf32>,
    %c16_89 = arith.constant 16 : index
    %c0_90 = arith.constant 0 : index
    %360 = vector.load %arg6[%c16_89, %c0_90] : memref<64x128xf32, #tpu.memory_space<vmem>>, vector<8x128xf32>
    tpu.vector_store %arg6[%c16_89, %c0_90], %358 {strides = array<i32>} : memref<64x128xf32, #tpu.memory_space<vmem>>, vector<8x128xf32>,
    %c48_91 = arith.constant 48 : index
    %c0_92 = arith.constant 0 : index
    %361 = vector.load %arg1[%c48_91, %c0_92] : memref<64x384xf32, #tpu.memory_space<vmem>>, vector<8x384xf32>
    %c8_93 = arith.constant 8 : index
    %c0_94 = arith.constant 0 : index
    %362 = vector.load %arg2[%c8_93, %c0_94] : memref<64x384xf32, #tpu.memory_space<vmem>>, vector<8x384xf32>
    %cst_95 = arith.constant dense<0.000000e+00> : vector<8x384xf32>
    %363 = tpu.matmul %332, %4, %cst_95 {dimension_numbers = #tpu.dot_dimension_numbers<[1], [0], [0], [1], [0, 0, 1, 1], [], []>} : vector<8x128xf32>, vector<128x384xf32>, vector<8x384xf32> -> vector<8x384xf32>
    %cst_96 = arith.constant dense<0.000000e+00> : vector<8x384xf32>
    %364 = tpu.matmul %358, %6, %cst_96 {dimension_numbers = #tpu.dot_dimension_numbers<[1], [0], [0], [1], [0, 0, 1, 1], [], []>} : vector<8x128xf32>, vector<128x384xf32>, vector<8x384xf32> -> vector<8x384xf32>
    %365 = vector.extract_strided_slice %361 {offsets = [0, 0], sizes = [8, 128], strides = [1, 1]} : vector<8x384xf32> to vector<8x128xf32>
    %366 = vector.extract_strided_slice %363 {offsets = [0, 0], sizes = [8, 128], strides = [1, 1]} : vector<8x384xf32> to vector<8x128xf32>
    %367 = arith.addf %365, %366 : vector<8x128xf32>
    %368 = arith.negf %367 : vector<8x128xf32>
    %369 = math.exp %368 : vector<8x128xf32>
    %cst_97 = arith.constant 1.000000e+00 : f32
    %370 = vector.broadcast %cst_97 : f32 to vector<8x128xf32>
    %371 = arith.addf %370, %369 : vector<8x128xf32>
    %372 = arith.divf %370, %371 : vector<8x128xf32>
    %373 = vector.extract_strided_slice %361 {offsets = [0, 128], sizes = [8, 128], strides = [1, 1]} : vector<8x384xf32> to vector<8x128xf32>
    %374 = vector.extract_strided_slice %363 {offsets = [0, 128], sizes = [8, 128], strides = [1, 1]} : vector<8x384xf32> to vector<8x128xf32>
    %375 = arith.addf %373, %374 : vector<8x128xf32>
    %376 = arith.negf %375 : vector<8x128xf32>
    %377 = math.exp %376 : vector<8x128xf32>
    %cst_98 = arith.constant 1.000000e+00 : f32
    %378 = vector.broadcast %cst_98 : f32 to vector<8x128xf32>
    %379 = arith.addf %378, %377 : vector<8x128xf32>
    %380 = arith.divf %378, %379 : vector<8x128xf32>
    %381 = vector.extract_strided_slice %361 {offsets = [0, 256], sizes = [8, 128], strides = [1, 1]} : vector<8x384xf32> to vector<8x128xf32>
    %382 = vector.extract_strided_slice %363 {offsets = [0, 256], sizes = [8, 128], strides = [1, 1]} : vector<8x384xf32> to vector<8x128xf32>
    %383 = vector.broadcast %8 : vector<1x128xf32> to vector<8x128xf32>
    %384 = arith.addf %382, %383 : vector<8x128xf32>
    %385 = arith.mulf %372, %384 : vector<8x128xf32>
    %386 = arith.addf %381, %385 : vector<8x128xf32>
    %387 = math.tanh %386 : vector<8x128xf32>
    %388 = arith.subf %332, %387 : vector<8x128xf32>
    %389 = arith.mulf %380, %388 : vector<8x128xf32>
    %390 = arith.addf %387, %389 : vector<8x128xf32>
    %391 = vector.extract_strided_slice %362 {offsets = [0, 0], sizes = [8, 128], strides = [1, 1]} : vector<8x384xf32> to vector<8x128xf32>
    %392 = vector.extract_strided_slice %364 {offsets = [0, 0], sizes = [8, 128], strides = [1, 1]} : vector<8x384xf32> to vector<8x128xf32>
    %393 = arith.addf %391, %392 : vector<8x128xf32>
    %394 = arith.negf %393 : vector<8x128xf32>
    %395 = math.exp %394 : vector<8x128xf32>
    %cst_99 = arith.constant 1.000000e+00 : f32
    %396 = vector.broadcast %cst_99 : f32 to vector<8x128xf32>
    %397 = arith.addf %396, %395 : vector<8x128xf32>
    %398 = arith.divf %396, %397 : vector<8x128xf32>
    %399 = vector.extract_strided_slice %362 {offsets = [0, 128], sizes = [8, 128], strides = [1, 1]} : vector<8x384xf32> to vector<8x128xf32>
    %400 = vector.extract_strided_slice %364 {offsets = [0, 128], sizes = [8, 128], strides = [1, 1]} : vector<8x384xf32> to vector<8x128xf32>
    %401 = arith.addf %399, %400 : vector<8x128xf32>
    %402 = arith.negf %401 : vector<8x128xf32>
    %403 = math.exp %402 : vector<8x128xf32>
    %cst_100 = arith.constant 1.000000e+00 : f32
    %404 = vector.broadcast %cst_100 : f32 to vector<8x128xf32>
    %405 = arith.addf %404, %403 : vector<8x128xf32>
    %406 = arith.divf %404, %405 : vector<8x128xf32>
    %407 = vector.extract_strided_slice %362 {offsets = [0, 256], sizes = [8, 128], strides = [1, 1]} : vector<8x384xf32> to vector<8x128xf32>
    %408 = vector.extract_strided_slice %364 {offsets = [0, 256], sizes = [8, 128], strides = [1, 1]} : vector<8x384xf32> to vector<8x128xf32>
    %409 = vector.broadcast %10 : vector<1x128xf32> to vector<8x128xf32>
    %410 = arith.addf %408, %409 : vector<8x128xf32>
    %411 = arith.mulf %398, %410 : vector<8x128xf32>
    %412 = arith.addf %407, %411 : vector<8x128xf32>
    %413 = math.tanh %412 : vector<8x128xf32>
    %414 = arith.subf %358, %413 : vector<8x128xf32>
    %415 = arith.mulf %406, %414 : vector<8x128xf32>
    %416 = arith.addf %413, %415 : vector<8x128xf32>
    %c48_101 = arith.constant 48 : index
    %c0_102 = arith.constant 0 : index
    %417 = vector.load %arg5[%c48_101, %c0_102] : memref<64x128xf32, #tpu.memory_space<vmem>>, vector<8x128xf32>
    tpu.vector_store %arg5[%c48_101, %c0_102], %390 {strides = array<i32>} : memref<64x128xf32, #tpu.memory_space<vmem>>, vector<8x128xf32>,
    %c8_103 = arith.constant 8 : index
    %c0_104 = arith.constant 0 : index
    %418 = vector.load %arg6[%c8_103, %c0_104] : memref<64x128xf32, #tpu.memory_space<vmem>>, vector<8x128xf32>
    tpu.vector_store %arg6[%c8_103, %c0_104], %416 {strides = array<i32>} : memref<64x128xf32, #tpu.memory_space<vmem>>, vector<8x128xf32>,
    %c56_105 = arith.constant 56 : index
    %c0_106 = arith.constant 0 : index
    %419 = vector.load %arg1[%c56_105, %c0_106] : memref<64x384xf32, #tpu.memory_space<vmem>>, vector<8x384xf32>
    %c0_107 = arith.constant 0 : index
    %c0_108 = arith.constant 0 : index
    %420 = vector.load %arg2[%c0_107, %c0_108] : memref<64x384xf32, #tpu.memory_space<vmem>>, vector<8x384xf32>
    %cst_109 = arith.constant dense<0.000000e+00> : vector<8x384xf32>
    %421 = tpu.matmul %390, %4, %cst_109 {dimension_numbers = #tpu.dot_dimension_numbers<[1], [0], [0], [1], [0, 0, 1, 1], [], []>} : vector<8x128xf32>, vector<128x384xf32>, vector<8x384xf32> -> vector<8x384xf32>
    %cst_110 = arith.constant dense<0.000000e+00> : vector<8x384xf32>
    %422 = tpu.matmul %416, %6, %cst_110 {dimension_numbers = #tpu.dot_dimension_numbers<[1], [0], [0], [1], [0, 0, 1, 1], [], []>} : vector<8x128xf32>, vector<128x384xf32>, vector<8x384xf32> -> vector<8x384xf32>
    %423 = vector.extract_strided_slice %419 {offsets = [0, 0], sizes = [8, 128], strides = [1, 1]} : vector<8x384xf32> to vector<8x128xf32>
    %424 = vector.extract_strided_slice %421 {offsets = [0, 0], sizes = [8, 128], strides = [1, 1]} : vector<8x384xf32> to vector<8x128xf32>
    %425 = arith.addf %423, %424 : vector<8x128xf32>
    %426 = arith.negf %425 : vector<8x128xf32>
    %427 = math.exp %426 : vector<8x128xf32>
    %cst_111 = arith.constant 1.000000e+00 : f32
    %428 = vector.broadcast %cst_111 : f32 to vector<8x128xf32>
    %429 = arith.addf %428, %427 : vector<8x128xf32>
    %430 = arith.divf %428, %429 : vector<8x128xf32>
    %431 = vector.extract_strided_slice %419 {offsets = [0, 128], sizes = [8, 128], strides = [1, 1]} : vector<8x384xf32> to vector<8x128xf32>
    %432 = vector.extract_strided_slice %421 {offsets = [0, 128], sizes = [8, 128], strides = [1, 1]} : vector<8x384xf32> to vector<8x128xf32>
    %433 = arith.addf %431, %432 : vector<8x128xf32>
    %434 = arith.negf %433 : vector<8x128xf32>
    %435 = math.exp %434 : vector<8x128xf32>
    %cst_112 = arith.constant 1.000000e+00 : f32
    %436 = vector.broadcast %cst_112 : f32 to vector<8x128xf32>
    %437 = arith.addf %436, %435 : vector<8x128xf32>
    %438 = arith.divf %436, %437 : vector<8x128xf32>
    %439 = vector.extract_strided_slice %419 {offsets = [0, 256], sizes = [8, 128], strides = [1, 1]} : vector<8x384xf32> to vector<8x128xf32>
    %440 = vector.extract_strided_slice %421 {offsets = [0, 256], sizes = [8, 128], strides = [1, 1]} : vector<8x384xf32> to vector<8x128xf32>
    %441 = vector.broadcast %8 : vector<1x128xf32> to vector<8x128xf32>
    %442 = arith.addf %440, %441 : vector<8x128xf32>
    %443 = arith.mulf %430, %442 : vector<8x128xf32>
    %444 = arith.addf %439, %443 : vector<8x128xf32>
    %445 = math.tanh %444 : vector<8x128xf32>
    %446 = arith.subf %390, %445 : vector<8x128xf32>
    %447 = arith.mulf %438, %446 : vector<8x128xf32>
    %448 = arith.addf %445, %447 : vector<8x128xf32>
    %449 = vector.extract_strided_slice %420 {offsets = [0, 0], sizes = [8, 128], strides = [1, 1]} : vector<8x384xf32> to vector<8x128xf32>
    %450 = vector.extract_strided_slice %422 {offsets = [0, 0], sizes = [8, 128], strides = [1, 1]} : vector<8x384xf32> to vector<8x128xf32>
    %451 = arith.addf %449, %450 : vector<8x128xf32>
    %452 = arith.negf %451 : vector<8x128xf32>
    %453 = math.exp %452 : vector<8x128xf32>
    %cst_113 = arith.constant 1.000000e+00 : f32
    %454 = vector.broadcast %cst_113 : f32 to vector<8x128xf32>
    %455 = arith.addf %454, %453 : vector<8x128xf32>
    %456 = arith.divf %454, %455 : vector<8x128xf32>
    %457 = vector.extract_strided_slice %420 {offsets = [0, 128], sizes = [8, 128], strides = [1, 1]} : vector<8x384xf32> to vector<8x128xf32>
    %458 = vector.extract_strided_slice %422 {offsets = [0, 128], sizes = [8, 128], strides = [1, 1]} : vector<8x384xf32> to vector<8x128xf32>
    %459 = arith.addf %457, %458 : vector<8x128xf32>
    %460 = arith.negf %459 : vector<8x128xf32>
    %461 = math.exp %460 : vector<8x128xf32>
    %cst_114 = arith.constant 1.000000e+00 : f32
    %462 = vector.broadcast %cst_114 : f32 to vector<8x128xf32>
    %463 = arith.addf %462, %461 : vector<8x128xf32>
    %464 = arith.divf %462, %463 : vector<8x128xf32>
    %465 = vector.extract_strided_slice %420 {offsets = [0, 256], sizes = [8, 128], strides = [1, 1]} : vector<8x384xf32> to vector<8x128xf32>
    %466 = vector.extract_strided_slice %422 {offsets = [0, 256], sizes = [8, 128], strides = [1, 1]} : vector<8x384xf32> to vector<8x128xf32>
    %467 = vector.broadcast %10 : vector<1x128xf32> to vector<8x128xf32>
    %468 = arith.addf %466, %467 : vector<8x128xf32>
    %469 = arith.mulf %456, %468 : vector<8x128xf32>
    %470 = arith.addf %465, %469 : vector<8x128xf32>
    %471 = math.tanh %470 : vector<8x128xf32>
    %472 = arith.subf %416, %471 : vector<8x128xf32>
    %473 = arith.mulf %464, %472 : vector<8x128xf32>
    %474 = arith.addf %471, %473 : vector<8x128xf32>
    %c56_115 = arith.constant 56 : index
    %c0_116 = arith.constant 0 : index
    %475 = vector.load %arg5[%c56_115, %c0_116] : memref<64x128xf32, #tpu.memory_space<vmem>>, vector<8x128xf32>
    tpu.vector_store %arg5[%c56_115, %c0_116], %448 {strides = array<i32>} : memref<64x128xf32, #tpu.memory_space<vmem>>, vector<8x128xf32>,
    %c0_117 = arith.constant 0 : index
    %c0_118 = arith.constant 0 : index
    %476 = vector.load %arg6[%c0_117, %c0_118] : memref<64x128xf32, #tpu.memory_space<vmem>>, vector<8x128xf32>
    tpu.vector_store %arg6[%c0_117, %c0_118], %474 {strides = array<i32>} : memref<64x128xf32, #tpu.memory_space<vmem>>, vector<8x128xf32>,
    %c0_119 = arith.constant 0 : index
    %c0_120 = arith.constant 0 : index
    %477 = vector.load %arg8[%c0_119, %c0_120] : memref<8x128xf32, #tpu.memory_space<vmem>>, vector<8x128xf32>
    tpu.vector_store %arg8[%c0_119, %c0_120], %448 {strides = array<i32>} : memref<8x128xf32, #tpu.memory_space<vmem>>, vector<8x128xf32>,
    %c0_121 = arith.constant 0 : index
    %c0_122 = arith.constant 0 : index
    %478 = vector.load %arg9[%c0_121, %c0_122] : memref<8x128xf32, #tpu.memory_space<vmem>>, vector<8x128xf32>
    tpu.vector_store %arg9[%c0_121, %c0_122], %474 {strides = array<i32>} : memref<8x128xf32, #tpu.memory_space<vmem>>, vector<8x128xf32>,
    %c0_i32_123 = arith.constant 0 : i32
    %479 = arith.cmpi eq, %arg0, %c0_i32_123 : i32
    %480 = arith.extui %479 : i1 to i32
    %c0_i32_124 = arith.constant 0 : i32
    %481 = arith.cmpi ne, %480, %c0_i32_124 : i32
    scf.if %481 {
      %c0_125 = arith.constant 0 : index
      %c0_126 = arith.constant 0 : index
      %c0_127 = arith.constant 0 : index
      %482 = vector.load %arg7[%c0_125, %c0_126, %c0_127] : memref<2x8x128xf32, #tpu.memory_space<vmem>>, vector<1x8x128xf32>
      %483 = vector.shape_cast %482 : vector<1x8x128xf32> to vector<8x128xf32>
      %484 = vector.shape_cast %448 : vector<8x128xf32> to vector<1x8x128xf32>
      tpu.vector_store %arg7[%c0_125, %c0_126, %c0_127], %484 {strides = array<i32>} : memref<2x8x128xf32, #tpu.memory_space<vmem>>, vector<1x8x128xf32>,
      %c1_128 = arith.constant 1 : index
      %c0_129 = arith.constant 0 : index
      %c0_130 = arith.constant 0 : index
      %485 = vector.load %arg7[%c1_128, %c0_129, %c0_130] : memref<2x8x128xf32, #tpu.memory_space<vmem>>, vector<1x8x128xf32>
      %486 = vector.shape_cast %485 : vector<1x8x128xf32> to vector<8x128xf32>
      %487 = vector.shape_cast %474 : vector<8x128xf32> to vector<1x8x128xf32>
      tpu.vector_store %arg7[%c1_128, %c0_129, %c0_130], %487 {strides = array<i32>} : memref<2x8x128xf32, #tpu.memory_space<vmem>>, vector<1x8x128xf32>,
    } else {
    }
    return
  }
  func.func @transform_0(%arg0: i32) -> (i32, i32) {
    %c0_i32 = arith.constant 0 : i32
    %c0_i32_0 = arith.constant 0 : i32
    return %arg0, %c0_i32 : i32, i32
  }
  func.func @transform_1(%arg0: i32) -> (i32, i32) {
    %c0_i32 = arith.constant 0 : i32
    %0 = arith.subi %c0_i32, %arg0 : i32
    %c0_i32_0 = arith.constant 0 : i32
    %c0_i32_1 = arith.constant 0 : i32
    return %0, %c0_i32_0 : i32, i32
  }
  func.func @transform_2(%arg0: i32) -> (i32, i32, i32) {
    %c0_i32 = arith.constant 0 : i32
    %c0_i32_0 = arith.constant 0 : i32
    %c0_i32_1 = arith.constant 0 : i32
    %c0_i32_2 = arith.constant 0 : i32
    return %c0_i32, %c0_i32_0, %c0_i32_1 : i32, i32, i32
  }
  func.func @transform_3(%arg0: i32) -> (i32, i32, i32) {
    %c0_i32 = arith.constant 0 : i32
    %c0_i32_0 = arith.constant 0 : i32
    %c0_i32_1 = arith.constant 0 : i32
    %c0_i32_2 = arith.constant 0 : i32
    return %c0_i32, %c0_i32_0, %c0_i32_1 : i32, i32, i32
  }
  func.func @transform_4(%arg0: i32) -> (i32, i32) {
    %c0_i32 = arith.constant 0 : i32
    %c0_i32_0 = arith.constant 0 : i32
    return %arg0, %c0_i32 : i32, i32
  }
  func.func @transform_5(%arg0: i32) -> (i32, i32) {
    %c0_i32 = arith.constant 0 : i32
    %0 = arith.subi %c0_i32, %arg0 : i32
    %c0_i32_0 = arith.constant 0 : i32
    %c0_i32_1 = arith.constant 0 : i32
    return %0, %c0_i32_0 : i32, i32
  }
  func.func @transform_6(%arg0: i32) -> (i32, i32, i32) {
    %c0_i32 = arith.constant 0 : i32
    %c0_i32_0 = arith.constant 0 : i32
    %c0_i32_1 = arith.constant 0 : i32
    %c0_i32_2 = arith.constant 0 : i32
    return %c0_i32, %c0_i32_0, %c0_i32_1 : i32, i32, i32
  }
}

module attributes {stable_mosaic.version = 11 : i64} {
  func.func @_mlp_head_kernel(%arg0: memref<2x64xf32, #tpu.memory_space<vmem>>, %arg1: memref<64x32xf32, #tpu.memory_space<vmem>>, %arg2: memref<1x32xf32, #tpu.memory_space<vmem>>, %arg3: memref<32x4xf32, #tpu.memory_space<vmem>>, %arg4: memref<1x4xf32, #tpu.memory_space<vmem>>, %arg5: memref<2x4xf32, #tpu.memory_space<vmem>>) attributes {dimension_semantics = [], scalar_prefetch = 0 : i64, scratch_operands = 0 : i64, tpu.core_type = #tpu.core_type<tc>} {
    %c0 = arith.constant 0 : index
    %c0_0 = arith.constant 0 : index
    %0 = vector.load %arg0[%c0, %c0_0] : memref<2x64xf32, #tpu.memory_space<vmem>>, vector<2x64xf32>
    %c0_1 = arith.constant 0 : index
    %c0_2 = arith.constant 0 : index
    %1 = vector.load %arg1[%c0_1, %c0_2] : memref<64x32xf32, #tpu.memory_space<vmem>>, vector<64x32xf32>
    %cst = arith.constant dense<0.000000e+00> : vector<2x32xf32>
    %2 = tpu.matmul %0, %1, %cst {dimension_numbers = #tpu.dot_dimension_numbers<[1], [0], [0], [1], [0, 0, 1, 1], [], []>} : vector<2x64xf32>, vector<64x32xf32>, vector<2x32xf32> -> vector<2x32xf32>
    %c0_3 = arith.constant 0 : index
    %c0_4 = arith.constant 0 : index
    %3 = vector.load %arg2[%c0_3, %c0_4] : memref<1x32xf32, #tpu.memory_space<vmem>>, vector<1x32xf32>
    %4 = vector.broadcast %3 : vector<1x32xf32> to vector<2x32xf32>
    %5 = arith.addf %2, %4 : vector<2x32xf32>
    %cst_5 = arith.constant 0.000000e+00 : f32
    %6 = vector.broadcast %cst_5 : f32 to vector<2x32xf32>
    %7 = arith.cmpf ogt, %5, %6 : vector<2x32xf32>
    %cst_6 = arith.constant 0.00999999977 : f32
    %8 = vector.broadcast %cst_6 : f32 to vector<2x32xf32>
    %9 = arith.mulf %8, %5 : vector<2x32xf32>
    %10 = arith.select %7, %5, %9 : vector<2x32xi1>, vector<2x32xf32>
    %c0_7 = arith.constant 0 : index
    %c0_8 = arith.constant 0 : index
    %11 = vector.load %arg3[%c0_7, %c0_8] : memref<32x4xf32, #tpu.memory_space<vmem>>, vector<32x4xf32>
    %cst_9 = arith.constant dense<0.000000e+00> : vector<2x4xf32>
    %12 = tpu.matmul %10, %11, %cst_9 {dimension_numbers = #tpu.dot_dimension_numbers<[1], [0], [0], [1], [0, 0, 1, 1], [], []>} : vector<2x32xf32>, vector<32x4xf32>, vector<2x4xf32> -> vector<2x4xf32>
    %c0_10 = arith.constant 0 : index
    %c0_11 = arith.constant 0 : index
    %13 = vector.load %arg4[%c0_10, %c0_11] : memref<1x4xf32, #tpu.memory_space<vmem>>, vector<1x4xf32>
    %14 = vector.broadcast %13 : vector<1x4xf32> to vector<2x4xf32>
    %15 = arith.addf %12, %14 : vector<2x4xf32>
    %c0_12 = arith.constant 0 : index
    %c0_13 = arith.constant 0 : index
    %16 = vector.load %arg5[%c0_12, %c0_13] : memref<2x4xf32, #tpu.memory_space<vmem>>, vector<2x4xf32>
    tpu.vector_store %arg5[%c0_12, %c0_13], %15 {strides = array<i32>} : memref<2x4xf32, #tpu.memory_space<vmem>>, vector<2x4xf32>,
    return
  }
}

</mosaic_0001>

<bundles_post_ra>
// kernel: _lambda_.5
= control target key start
LH: loop header
LB: loop body
LE: loop exit
PB: predicated region body
PF: predicated region fallthrough
CT: control target
= control target key end

     0   :  { %10 = vsyncpa [#allocation3], 0  ;;  %s882_s15 = smov [#allocation2]   ;;  %s1191_s0 = inlined_call_operand.vmem [shape: f32[64,128], index: 0, kind: input, shape index: {}]   ;;  %s1192_s1 = inlined_call_operand.hbm [shape: f32[2,1,128,384], index: 1, kind: input, shape index: {}]   ;;  %s1193_s2 = inlined_call_operand.vmem [shape: f32[2,1,384], index: 2, kind: input, shape index: {}]   ;;  %s1194_s3 = inlined_call_operand.vmem [shape: f32[64,384], index: 3, kind: output, shape index: {0}]   ;;  %s1195_s4 = inlined_call_operand.vmem [shape: f32[64,384], index: 4, kind: output, shape index: {1}]  }
   0x1   :  { %s18_s16 = sshll.u32 %s882_s15, 4  ;;  %s19_s16 = int_to_ptr.vmem [resolvable:$true] %s18_s16 }
   0x2   :  { %s868_s17 = scalar_lea.vmem %s19_s16, 12288  ;;  %p873_p1 = scmp.lt.s32.totalorder %s19_s16, %s19_s16 }
   0x3   :  { %p869_p0 = scmp.ne.s32.totalorder %s19_s16, %s868_s17  ;;  %p874_p2 = scmp.lt.s32.totalorder %s868_s17, %s868_s17 }
   0x5   :  { %p875_p3 = por %p874_p2, %p873_p1 }
   0x7   :  { %p876_p4 = pnand %p875_p3, %p869_p0 }
   0x9   :  { %879 = shalt.err (!%p876_p4)
}
   0xa   :  { %s883_s18 = smov 384   ;;  %s884_s19 = smov 24  }
   0xb   :  { %24 = dma.hbm_to_vmem [thread:$0]  %s1192_s1, 12288, %s19_s16, [#allocation3], %s883_s18, %s883_s18, %s884_s19  }
   0xc   :  { %880 = dma.done.wait [#allocation3], 12288  }
   0xd   :  { %881 = vsyncadd [#allocation3], 4294955008  ;;  %v885_v0 = vmov 0.0   ;;  %v85_v1 = vld [vmem:[#allocation2 + $0x170] sm:$0xff]  ;;  %v84_v2 = vld [vmem:[#allocation2 + $0x168] sm:$0xff] }
   0xe   :  { %151 = vmatprep.mubr.f32.mxu0 %v885_v0  ;;  %v82_v3 = vld [vmem:[#allocation2 + $0x158] sm:$0xff]  ;;  %87 = vmatprep.subr.mxu0 %v85_v1  ;;  %v81_v4 = vld [vmem:[#allocation2 + $0x150] sm:$0xff]  ;;  %v79_v5 = vld [vmem:[#allocation2 + $0x140] sm:$0xff] }
   0xf   :  { %88 = vmatpush1.msra.mxu0 %v84_v2  ;;  %v78_v6 = vld [vmem:[#allocation2 + $0x138] sm:$0xff]  ;;  %v76_v7 = vld [vmem:[#allocation2 + $0x128] sm:$0xff]  ;;  %v75_v8 = vld [vmem:[#allocation2 + $0x120] sm:$0xff] }
  0x10   :  { %89 = vmatprep.subr.mxu0 %v82_v3  ;;  %v86_v9 = vld [vmem:[#allocation2 + $0x178] sm:$0xff]  ;;  %v73_v10 = vld [vmem:[#allocation2 + $0x110] sm:$0xff]  ;;  %v83_v11 = vld [vmem:[#allocation2 + $0x160] sm:$0xff] }
  0x11   :  { %90 = vmatpush1.msra.mxu0 %v81_v4  ;;  %768 = vmatprep.subr.mxu1 %v86_v9  ;;  %v72_v12 = vld [vmem:[#allocation2 + $0x108] sm:$0xff]  ;;  %v70_v14 = vld [vmem:[#allocation2 + $0xf8] sm:$0xff]  ;;  %v69_v15 = vld [vmem:[#allocation2 + $0xf0] sm:$0xff] }
  0x12   :  { %91 = vmatprep.subr.mxu0 %v79_v5  ;;  %769 = vmatpush3.msra.mxu1 %v86_v9  ;;  %v80_v13 = vld [vmem:[#allocation2 + $0x148] sm:$0xff]  ;;  %v77_v16 = vld [vmem:[#allocation2 + $0x130] sm:$0xff]  ;;  %v67_v17 = vld [vmem:[#allocation2 + $0xe0] sm:$0xff] }
  0x13   :  { %92 = vmatpush1.msra.mxu0 %v78_v6  ;;  %770 = vmatprep.subr.mxu1 %v83_v11  ;;  %v66_v18 = vld [vmem:[#allocation2 + $0xd8] sm:$0xff]  ;;  %v64_v20 = vld [vmem:[#allocation2 + $0xc8] sm:$0xff]  ;;  %v63_v21 = vld [vmem:[#allocation2 + $0xc0] sm:$0xff] }
  0x14   :  { %93 = vmatprep.subr.mxu0 %v76_v7  ;;  %771 = vmatpush3.msra.mxu1 %v83_v11  ;;  %v74_v19 = vld [vmem:[#allocation2 + $0x118] sm:$0xff]  ;;  %v71_v22 = vld [vmem:[#allocation2 + $0x100] sm:$0xff]  ;;  %v61_v23 = vld [vmem:[#allocation2 + $0xb0] sm:$0xff] }
  0x15   :  { %94 = vmatpush1.msra.mxu0 %v75_v8  ;;  %772 = vmatprep.subr.mxu1 %v80_v13  ;;  %v60_v24 = vld [vmem:[#allocation2 + $0xa8] sm:$0xff]  ;;  %v58_v26 = vld [vmem:[#allocation2 + $0x98] sm:$0xff]  ;;  %v57_v27 = vld [vmem:[#allocation2 + $0x90] sm:$0xff] }
  0x16   :  { %95 = vmatprep.subr.mxu0 %v73_v10  ;;  %773 = vmatpush3.msra.mxu1 %v80_v13  ;;  %v68_v25 = vld [vmem:[#allocation2 + $0xe8] sm:$0xff]  ;;  %v65_v28 = vld [vmem:[#allocation2 + $0xd0] sm:$0xff]  ;;  %v55_v29 = vld [vmem:[#allocation2 + $0x80] sm:$0xff] }
  0x17   :  { %96 = vmatpush1.msra.mxu0 %v72_v12  ;;  %774 = vmatprep.subr.mxu1 %v77_v16  ;;  %v54_v30 = vld [vmem:[#allocation2 + $0x78] sm:$0xff]  ;;  %v52_v32 = vld [vmem:[#allocation2 + $0x68] sm:$0xff]  ;;  %v51_v33 = vld [vmem:[#allocation2 + $0x60] sm:$0xff] }
  0x18   :  { %97 = vmatprep.subr.mxu0 %v70_v14  ;;  %775 = vmatpush3.msra.mxu1 %v77_v16  ;;  %v62_v31 = vld [vmem:[#allocation2 + $0xb8] sm:$0xff]  ;;  %v59_v34 = vld [vmem:[#allocation2 + $0xa0] sm:$0xff]  ;;  %v49_v35 = vld [vmem:[#allocation2 + $0x50] sm:$0xff] }
  0x19   :  { %98 = vmatpush1.msra.mxu0 %v69_v15  ;;  %776 = vmatprep.subr.mxu1 %v74_v19  ;;  %v48_v36 = vld [vmem:[#allocation2 + $0x48] sm:$0xff]  ;;  %v46_v38 = vld [vmem:[#allocation2 + $0x38] sm:$0xff]  ;;  %v45_v39 = vld [vmem:[#allocation2 + $0x30] sm:$0xff] }
  0x1a   :  { %99 = vmatprep.subr.mxu0 %v67_v17  ;;  %777 = vmatpush3.msra.mxu1 %v74_v19  ;;  %v56_v37 = vld [vmem:[#allocation2 + $0x88] sm:$0xff]  ;;  %v53_v40 = vld [vmem:[#allocation2 + $0x70] sm:$0xff]  ;;  %v43_v41 = vld [vmem:[#allocation2 + $0x20] sm:$0xff] }
  0x1b   :  { %100 = vmatpush1.msra.mxu0 %v66_v18  ;;  %778 = vmatprep.subr.mxu1 %v71_v22  ;;  %v42_v42 = vld [vmem:[#allocation2 + $0x18] sm:$0xff]  ;;  %v40_v44 = vld [vmem:[#allocation2 + $0x8] sm:$0xff]  ;;  %v39_v45 = vld [vmem:[#allocation2] sm:$0xff] }
  0x1c   :  { %101 = vmatprep.subr.mxu0 %v64_v20  ;;  %779 = vmatpush3.msra.mxu1 %v71_v22  ;;  %v50_v43 = vld [vmem:[#allocation2 + $0x58] sm:$0xff]  ;;  %v47_v46 = vld [vmem:[#allocation2 + $0x40] sm:$0xff]  ;;  %v426_v48 = vld [vmem:[#allocation2 + $0x2f0] sm:$0xff] }
  0x1d   :  { %102 = vmatpush1.msra.mxu0 %v63_v21  ;;  %780 = vmatprep.subr.mxu1 %v68_v25  ;;  %v918_v47 = vld [vmem:[%s1191_s0] sm:$0xff]  ;;  %v425_v49 = vld [vmem:[#allocation2 + $0x2e8] sm:$0xff]  ;;  %v423_v50 = vld [vmem:[#allocation2 + $0x2d8] sm:$0xff] }
  0x1e   :  { %103 = vmatprep.subr.mxu0 %v61_v23  ;;  %781 = vmatpush3.msra.mxu1 %v68_v25  ;;  %v422_v51 = vld [vmem:[#allocation2 + $0x2d0] sm:$0xff]  ;;  %v44_v52 = vld [vmem:[#allocation2 + $0x28] sm:$0xff]  ;;  %v420_v54 = vld [vmem:[#allocation2 + $0x2c0] sm:$0xff] }
  0x1f   :  { %104 = vmatpush1.msra.mxu0 %v60_v24  ;;  %782 = vmatprep.subr.mxu1 %v65_v28  ;;  %v925_v53 = vld [vmem:[%s1191_s0 + $0x8] sm:$0xff]  ;;  %v419_v55 = vld [vmem:[#allocation2 + $0x2b8] sm:$0xff]  ;;  %v416_v57 = vld [vmem:[#allocation2 + $0x2a0] sm:$0xff] }
  0x20   :  { %105 = vmatprep.subr.mxu0 %v58_v26  ;;  %783 = vmatpush3.msra.mxu1 %v65_v28  ;;  %v417_v56 = vld [vmem:[#allocation2 + $0x2a8] sm:$0xff]  ;;  %v41_v58 = vld [vmem:[#allocation2 + $0x10] sm:$0xff]  ;;  %v411_v62 = vld [vmem:[#allocation2 + $0x278] sm:$0xff] }
  0x21   :  { %106 = vmatpush1.msra.mxu0 %v57_v27  ;;  %784 = vmatprep.subr.mxu1 %v62_v31  ;;  %v932_v59 = vld [vmem:[%s1191_s0 + $0x10] sm:$0xff]  ;;  %v413_v61 = vld [vmem:[#allocation2 + $0x288] sm:$0xff]  ;;  %v939_v1 = vld [vmem:[%s1191_s0 + $0x18] sm:$0xff] }
  0x22   :  { %107 = vmatprep.subr.mxu0 %v55_v29  ;;  %785 = vmatpush3.msra.mxu1 %v62_v31  ;;  %v414_v60 = vld [vmem:[#allocation2 + $0x290] sm:$0xff]  ;;  %v408_v2 = vld [vmem:[#allocation2 + $0x260] sm:$0xff]  ;;  %v407_v3 = vld [vmem:[#allocation2 + $0x258] sm:$0xff] }
  0x23   :  { %108 = vmatpush1.msra.mxu0 %v54_v30  ;;  %786 = vmatprep.subr.mxu1 %v59_v34  ;;  %v410_v63 = vld [vmem:[#allocation2 + $0x270] sm:$0xff]  ;;  %v405_v4 = vld [vmem:[#allocation2 + $0x248] sm:$0xff]  ;;  %v427_v5 = vld [vmem:[#allocation2 + $0x2f8] sm:$0xff] }
  0x24   :  { %109 = vmatprep.subr.mxu0 %v52_v32  ;;  %787 = vmatpush3.msra.mxu1 %v59_v34  ;;  %v404_v6 = vld [vmem:[#allocation2 + $0x240] sm:$0xff]  ;;  %v402_v8 = vld [vmem:[#allocation2 + $0x230] sm:$0xff]  ;;  %v401_v9 = vld [vmem:[#allocation2 + $0x228] sm:$0xff] }
  0x25   :  { %110 = vmatpush1.msra.mxu0 %v51_v33  ;;  %788 = vmatprep.subr.mxu1 %v56_v37  ;;  %v947_v7 = vld [vmem:[%s1191_s0 + $0x20] sm:$0xff]  ;;  %v399_v11 = vld [vmem:[#allocation2 + $0x218] sm:$0xff]  ;;  %v398_v12 = vld [vmem:[#allocation2 + $0x210] sm:$0xff] }
  0x26   :  { %111 = vmatprep.subr.mxu0 %v49_v35  ;;  %789 = vmatpush3.msra.mxu1 %v56_v37  ;;  %v424_v10 = vld [vmem:[#allocation2 + $0x2e0] sm:$0xff]  ;;  %v421_v13 = vld [vmem:[#allocation2 + $0x2c8] sm:$0xff]  ;;  %v395_v16 = vld [vmem:[#allocation2 + $0x1f8] sm:$0xff] }
  0x27   :  { %112 = vmatpush1.msra.mxu0 %v48_v36  ;;  %790 = vmatprep.subr.mxu1 %v53_v40  ;;  %v954_v14 = vld [vmem:[%s1191_s0 + $0x28] sm:$0xff]  ;;  %v396_v15 = vld [vmem:[#allocation2 + $0x200] sm:$0xff]  ;;  %v418_v17 = vld [vmem:[#allocation2 + $0x2b0] sm:$0xff] }
  0x28   :  { %113 = vmatprep.subr.mxu0 %v46_v38  ;;  %791 = vmatpush3.msra.mxu1 %v53_v40  ;;  %v393_v18 = vld [vmem:[#allocation2 + $0x1e8] sm:$0xff]  ;;  %v392_v19 = vld [vmem:[#allocation2 + $0x1e0] sm:$0xff]  ;;  %v415_v20 = vld [vmem:[#allocation2 + $0x298] sm:$0xff] }
  0x29   :  { %114 = vmatpush1.msra.mxu0 %v45_v39  ;;  %792 = vmatprep.subr.mxu1 %v50_v43  ;;  %v961_v21 = vld [vmem:[%s1191_s0 + $0x30] sm:$0xff]  ;;  %v389_v23 = vld [vmem:[#allocation2 + $0x1c8] sm:$0xff]  ;;  %v412_v24 = vld [vmem:[#allocation2 + $0x280] sm:$0xff] }
  0x2a   :  { %115 = vmatprep.subr.mxu0 %v43_v41  ;;  %793 = vmatpush3.msra.mxu1 %v50_v43  ;;  %v390_v22 = vld [vmem:[#allocation2 + $0x1d0] sm:$0xff]  ;;  %v387_v25 = vld [vmem:[#allocation2 + $0x1b8] sm:$0xff]  ;;  %v409_v27 = vld [vmem:[#allocation2 + $0x268] sm:$0xff] }
  0x2b   :  { %116 = vmatpush1.msra.mxu0 %v42_v42  ;;  %794 = vmatprep.subr.mxu1 %v47_v46  ;;  %v386_v26 = vld [vmem:[#allocation2 + $0x1b0] sm:$0xff]  ;;  %v968_v28 = vld [vmem:[%s1191_s0 + $0x38] sm:$0xff]  ;;  %v384_v29 = vld [vmem:[#allocation2 + $0x1a0] sm:$0xff]  ;;  %v306_v42 = vlaneseq }
  0x2c   :  { %117 = vmatprep.subr.mxu0 %v40_v44  ;;  %795 = vmatpush3.msra.mxu1 %v47_v46  ;;  %v383_v30 = vld [vmem:[#allocation2 + $0x198] sm:$0xff]  ;;  %v406_v31 = vld [vmem:[#allocation2 + $0x250] sm:$0xff]  ;;  %v381_v32 = vld [vmem:[#allocation2 + $0x188] sm:$0xff] }
  0x2d   :  { %118 = vmatpush1.msra.mxu0 %v39_v45  ;;  %796 = vmatprep.subr.mxu1 %v44_v52  ;;  %v380_v33 = vld [vmem:[#allocation2 + $0x180] sm:$0xff]  ;;  %v403_v34 = vld [vmem:[#allocation2 + $0x238] sm:$0xff]  ;;  %v397_v36 = vld [vmem:[#allocation2 + $0x208] sm:$0xff]  ;;  %v1002_v43 = vshrl.u32 %v306_v42, 7 }
  0x2e   :  { %152 = vmatmul.mubr.f32.vlgmr.msra.gmra.mxu0 %v918_v47  ;;  %428 = vmatprep.subr.mxu0 %v426_v48  ;;  %v400_v35 = vld [vmem:[#allocation2 + $0x220] sm:$0xff]  ;;  %v394_v37 = vld [vmem:[#allocation2 + $0x1f0] sm:$0xff]  ;;  %v391_v38 = vld [vmem:[#allocation2 + $0x1d8] sm:$0xff] }
  0x2f   :  { %429 = vmatpush1.msra.mxu0 %v425_v49  ;;  %157 = vmatprep.mubr.f32.mxu0 %v885_v0  ;;  %v388_v39 = vld [vmem:[#allocation2 + $0x1c0] sm:$0xff]  ;;  %v385_v40 = vld [vmem:[#allocation2 + $0x1a8] sm:$0xff]  ;;  %v382_v41 = vld [vmem:[#allocation2 + $0x190] sm:$0xff]  ;;  %v308_v44 = vsub.s32 0, %v1002_v43  ;;  %v312_v46 = vsub.s32 1, %v1002_v43 }
  0x30   :  { %430 = vmatprep.subr.mxu0 %v423_v50  ;;  %797 = vmatpush3.msra.mxu1 %v44_v52  ;;  %v30_v45 = vld [vmem:[%s1193_s2] sm:$0x7] }
  0x31   :  { %431 = vmatpush1.msra.mxu0 %v422_v51  ;;  %798 = vmatprep.subr.mxu1 %v41_v58  ;;  %v313_v48 = vrot.slane %v30_v45, %v312_v46 }
  0x32   :  { %158 = vmatmul.mubr.f32.gmra.mxu0 %v925_v53  ;;  %432 = vmatprep.subr.mxu0 %v420_v54 }
  0x33   :  { %433 = vmatpush1.msra.mxu0 %v419_v55  ;;  %163 = vmatprep.mubr.f32.mxu0 %v885_v0 }
  0x34   :  { %434 = vmatprep.subr.mxu0 %v417_v56  ;;  %799 = vmatpush3.msra.mxu1 %v41_v58 }
  0x35   :  { %435 = vmatpush1.msra.mxu0 %v416_v57  ;;  %800 = vmatprep.mubr.f32.mxu1 %v918_v47  ;;  %v316_v57 = vsub.s32 2, %v1002_v43 }
  0x36   :  { %164 = vmatmul.mubr.f32.gmra.mxu0 %v932_v59  ;;  %436 = vmatprep.subr.mxu0 %v414_v60 }
  0x37   :  { %437 = vmatpush1.msra.mxu0 %v413_v61  ;;  %169 = vmatprep.mubr.f32.mxu0 %v885_v0 }
  0x38   :  { %438 = vmatprep.subr.mxu0 %v411_v62  ;;  %812 = vmatprep.subr.mxu1 %v427_v5  ;;  %v1027_v62 = vrot.slane %v30_v45, %v316_v57 }
  0x39   :  { %439 = vmatpush1.msra.mxu0 %v410_v63  ;;  %801 = vmatmul.mubr.f32.vlgmr.msra.gmra.mxu1 %v925_v53 }
  0x3a   :  { %170 = vmatmul.mubr.f32.gmra.mxu0 %v939_v1  ;;  %440 = vmatprep.subr.mxu0 %v408_v2 }
  0x3b   :  { %441 = vmatpush1.msra.mxu0 %v407_v3  ;;  %175 = vmatprep.mubr.f32.mxu0 %v885_v0 }
  0x3c   :  { %442 = vmatprep.subr.mxu0 %v405_v4  ;;  %813 = vmatpush3.msra.mxu1 %v427_v5 }
  0x3d   :  { %443 = vmatpush1.msra.mxu0 %v404_v6  ;;  %814 = vmatprep.subr.mxu1 %v424_v10 }
  0x3e   :  { %176 = vmatmul.mubr.f32.gmra.mxu0 %v947_v7  ;;  %444 = vmatprep.subr.mxu0 %v402_v8 }
  0x3f   :  { %445 = vmatpush1.msra.mxu0 %v401_v9  ;;  %815 = vmatpush3.msra.mxu1 %v424_v10 }
  0x40   :  { %446 = vmatprep.subr.mxu0 %v399_v11  ;;  %181 = vmatprep.mubr.f32.mxu0 %v885_v0 }
  0x41   :  { %447 = vmatpush1.msra.mxu0 %v398_v12  ;;  %816 = vmatprep.subr.mxu1 %v421_v13 }
  0x42   :  { %182 = vmatmul.mubr.f32.gmra.mxu0 %v954_v14  ;;  %448 = vmatprep.subr.mxu0 %v396_v15 }
  0x43   :  { %817 = vmatpush3.msra.mxu1 %v421_v13  ;;  %449 = vmatpush1.msra.mxu0 %v395_v16 }
  0x44   :  { %818 = vmatprep.subr.mxu1 %v418_v17  ;;  %450 = vmatprep.subr.mxu0 %v393_v18 }
  0x45   :  { %819 = vmatpush3.msra.mxu1 %v418_v17  ;;  %187 = vmatprep.mubr.f32.mxu0 %v885_v0 }
  0x46   :  { %451 = vmatpush1.msra.mxu0 %v392_v19  ;;  %820 = vmatprep.subr.mxu1 %v415_v20  ;;  %v719_v19 = vld [vmem:[%s1193_s2 + $0x3] sm:$0x7] }
  0x47   :  { %188 = vmatmul.mubr.f32.gmra.mxu0 %v961_v21  ;;  %452 = vmatprep.subr.mxu0 %v390_v22 }
  0x48   :  { %821 = vmatpush3.msra.mxu1 %v415_v20  ;;  %453 = vmatpush1.msra.mxu0 %v389_v23  ;;  %v1067_v23 = vrot.slane %v719_v19, %v308_v44 }
  0x49   :  { %822 = vmatprep.subr.mxu1 %v412_v24  ;;  %454 = vmatprep.subr.mxu0 %v387_v25  ;;  %v1072_v25 = vrot.slane %v719_v19, %v312_v46 }
  0x4a   :  { %823 = vmatpush3.msra.mxu1 %v412_v24  ;;  %193 = vmatprep.mubr.f32.mxu0 %v885_v0 }
  0x4b   :  { %455 = vmatpush1.msra.mxu0 %v386_v26  ;;  %824 = vmatprep.subr.mxu1 %v409_v27 }
  0x4c   :  { %194 = vmatmul.mubr.f32.gmra.mxu0 %v968_v28  ;;  %456 = vmatprep.subr.mxu0 %v384_v29 }
  0x4d   :  { %825 = vmatpush3.msra.mxu1 %v409_v27  ;;  %457 = vmatpush1.msra.mxu0 %v383_v30 }
  0x4e   :  { %826 = vmatprep.subr.mxu1 %v406_v31  ;;  %458 = vmatprep.subr.mxu0 %v381_v32 }
  0x4f   :  { %827 = vmatpush3.msra.mxu1 %v406_v31  ;;  %459 = vmatpush1.msra.mxu0 %v380_v33 }
  0x50   :  { %492 = vmatprep.mubr.f32.mxu0 %v885_v0  ;;  %828 = vmatprep.subr.mxu1 %v403_v34 }
  0x51   :  { %493 = vmatmul.mubr.f32.vlgmr.msra.gmra.mxu0 %v918_v47  ;;  %829 = vmatpush3.msra.mxu1 %v403_v34 }
  0x52   :  { %830 = vmatprep.subr.mxu1 %v400_v35  ;;  %803 = vmatprep.mubr.f32.mxu1 %v932_v59 }
  0x53   :  { %831 = vmatpush3.msra.mxu1 %v400_v35  ;;  %498 = vmatprep.mubr.f32.mxu0 %v885_v0 }
  0x54   :  { %804 = vmatmul.mubr.f32.gmra.mxu1 %v939_v1  ;;  %832 = vmatprep.subr.mxu1 %v397_v36 }
  0x55   :  { %499 = vmatmul.mubr.f32.gmra.mxu0 %v925_v53  ;;  %833 = vmatpush3.msra.mxu1 %v397_v36 }
  0x56   :  { %834 = vmatprep.subr.mxu1 %v394_v37  ;;  %806 = vmatprep.mubr.f32.mxu1 %v947_v7 }
  0x57   :  { %835 = vmatpush3.msra.mxu1 %v394_v37  ;;  %504 = vmatprep.mubr.f32.mxu0 %v885_v0 }
  0x58   :  { %807 = vmatmul.mubr.f32.gmra.mxu1 %v954_v14  ;;  %836 = vmatprep.subr.mxu1 %v391_v38 }
  0x59   :  { %505 = vmatmul.mubr.f32.gmra.mxu0 %v932_v59  ;;  %837 = vmatpush3.msra.mxu1 %v391_v38 }
  0x5a   :  { %838 = vmatprep.subr.mxu1 %v388_v39  ;;  %809 = vmatprep.mubr.f32.mxu1 %v961_v21 }
  0x5b   :  { %839 = vmatpush3.msra.mxu1 %v388_v39  ;;  %510 = vmatprep.mubr.f32.mxu0 %v885_v0 }
  0x5c   :  { %810 = vmatmul.mubr.f32.gmra.mxu1 %v968_v28  ;;  %840 = vmatprep.subr.mxu1 %v385_v40 }
  0x5d   :  { %511 = vmatmul.mubr.f32.gmra.mxu0 %v939_v1  ;;  %841 = vmatpush3.msra.mxu1 %v385_v40 }
  0x5e   :  { %842 = vmatprep.subr.mxu1 %v382_v41  ;;  %844 = vmatprep.mubr.f32.mxu1 %v918_v47  ;;  %v309_v47 = vrot.slane %v30_v45, %v308_v44 }
  0x5f   :  { %843 = vmatpush3.msra.mxu1 %v382_v41  ;;  %516 = vmatprep.mubr.f32.mxu0 %v885_v0 }
  0x60   :  { %845 = vmatmul.mubr.f32.vlgmr.msra.gmra.mxu1 %v925_v53 }
  0x61   :  { %517 = vmatmul.mubr.f32.gmra.mxu0 %v947_v7  ;;  %847 = vmatprep.mubr.f32.mxu1 %v932_v59 }
  0x62   :  { %522 = vmatprep.mubr.f32.mxu0 %v885_v0 }
  0x64   :  { %848 = vmatmul.mubr.f32.gmra.mxu1 %v939_v1 }
  0x65   :  { %523 = vmatmul.mubr.f32.gmra.mxu0 %v954_v14  ;;  %850 = vmatprep.mubr.f32.mxu1 %v947_v7 }
  0x66   :  { %528 = vmatprep.mubr.f32.mxu0 %v885_v0 }
  0x68   :  { %851 = vmatmul.mubr.f32.gmra.mxu1 %v954_v14 }
  0x69   :  { %529 = vmatmul.mubr.f32.gmra.mxu0 %v961_v21  ;;  %853 = vmatprep.mubr.f32.mxu1 %v961_v21 }
  0x6a   :  { %534 = vmatprep.mubr.f32.mxu0 %v885_v0 }
  0x6c   :  { %854 = vmatmul.mubr.f32.gmra.mxu1 %v968_v28 }
  0x6d   :  { %535 = vmatmul.mubr.f32.gmra.mxu0 %v968_v28 }
  0xee   :  { %v153_v49 = vpop.f32.mrf.mxu0 }
  0xef   :  { %v321_v50 = vadd.f32 %v309_v47, %v153_v49 }
  0xf0   :  { %v155_v0 = vpop.f32.mrf.mxu0 }
  0xf1   :  { %345 = vst [vmem:[%s1194_s3] sm:$0xff] %v321_v50  ;;  %v322_v51 = vadd.f32 %v313_v48, %v155_v0  ;;  %v658_v50 = vrot.slane %v719_v19, %v316_v57 }
  0xf2   :  { %v159_v52 = vpop.f32.mrf.mxu0 }
  0xf3   :  { %346 = vst [vmem:[%s1194_s3 + $0x8] sm:$0xff] %v322_v51  ;;  %v324_v53 = vadd.f32 %v309_v47, %v159_v52 }
  0xf4   :  { %v161_v54 = vpop.f32.mrf.mxu0 }
  0xf5   :  { %348 = vst [vmem:[%s1194_s3 + $0x18] sm:$0xff] %v324_v53  ;;  %v325_v55 = vadd.f32 %v313_v48, %v161_v54 }
  0xf6   :  { %v165_v56 = vpop.f32.mrf.mxu0 }
  0xf7   :  { %349 = vst [vmem:[%s1194_s3 + $0x20] sm:$0xff] %v325_v55  ;;  %v327_v58 = vadd.f32 %v309_v47, %v165_v56 }
  0xf8   :  { %v167_v59 = vpop.f32.mrf.mxu0 }
  0xf9   :  { %351 = vst [vmem:[%s1194_s3 + $0x30] sm:$0xff] %v327_v58  ;;  %v328_v60 = vadd.f32 %v313_v48, %v167_v59  ;;  %v802_v3 = vpop.f32.mrf.mxu1 }
  0xfa   :  { %v171_v61 = vpop.f32.mrf.mxu0  ;;  %v326_v5 = vadd.f32 %v802_v3, %v1027_v62 }
  0xfb   :  { %352 = vst [vmem:[%s1194_s3 + $0x38] sm:$0xff] %v328_v60  ;;  %v330_v63 = vadd.f32 %v309_v47, %v171_v61  ;;  %v266_v7 = vpop.f32.mrf.mxu1 }
  0xfc   :  { %v173_v1 = vpop.f32.mrf.mxu0  ;;  %350 = vst [vmem:[%s1194_s3 + $0x28] sm:$0xff] %v326_v5  ;;  %v323_v9 = vadd.f32 %v1027_v62, %v266_v7 }
  0xfd   :  { %354 = vst [vmem:[%s1194_s3 + $0x48] sm:$0xff] %v330_v63  ;;  %v331_v2 = vadd.f32 %v313_v48, %v173_v1 }
  0xfe   :  { %v177_v4 = vpop.f32.mrf.mxu0  ;;  %347 = vst [vmem:[%s1194_s3 + $0x10] sm:$0xff] %v323_v9 }
  0xff   :  { %355 = vst [vmem:[%s1194_s3 + $0x50] sm:$0xff] %v331_v2  ;;  %v333_v6 = vadd.f32 %v309_v47, %v177_v4 }
 0x100   :  { %v179_v8 = vpop.f32.mrf.mxu0 }
 0x101   :  { %357 = vst [vmem:[%s1194_s3 + $0x60] sm:$0xff] %v333_v6  ;;  %v334_v10 = vadd.f32 %v313_v48, %v179_v8 }
 0x102   :  { %v183_v11 = vpop.f32.mrf.mxu0 }
 0x103   :  { %358 = vst [vmem:[%s1194_s3 + $0x68] sm:$0xff] %v334_v10  ;;  %v336_v12 = vadd.f32 %v309_v47, %v183_v11 }
 0x104   :  { %v185_v13 = vpop.f32.mrf.mxu0 }
 0x105   :  { %360 = vst [vmem:[%s1194_s3 + $0x78] sm:$0xff] %v336_v12  ;;  %v337_v14 = vadd.f32 %v313_v48, %v185_v13 }
 0x107   :  { %361 = vst [vmem:[%s1194_s3 + $0x80] sm:$0xff] %v337_v14  ;;  %v189_v15 = vpop.f32.mrf.mxu0 }
 0x108   :  { %v339_v16 = vadd.f32 %v309_v47, %v189_v15 }
 0x109   :  { %v191_v17 = vpop.f32.mrf.mxu0 }
 0x10a   :  { %363 = vst [vmem:[%s1194_s3 + $0x90] sm:$0xff] %v339_v16  ;;  %v340_v18 = vadd.f32 %v313_v48, %v191_v17 }
 0x10c   :  { %364 = vst [vmem:[%s1194_s3 + $0x98] sm:$0xff] %v340_v18  ;;  %v195_v20 = vpop.f32.mrf.mxu0 }
 0x10d   :  { %v342_v21 = vadd.f32 %v309_v47, %v195_v20 }
 0x10e   :  { %v197_v22 = vpop.f32.mrf.mxu0 }
 0x10f   :  { %366 = vst [vmem:[%s1194_s3 + $0xa8] sm:$0xff] %v342_v21  ;;  %v343_v24 = vadd.f32 %v313_v48, %v197_v22 }
 0x111   :  { %367 = vst [vmem:[%s1194_s3 + $0xb0] sm:$0xff] %v343_v24  ;;  %v494_v26 = vpop.f32.mrf.mxu0 }
 0x112   :  { %v662_v27 = vadd.f32 %v1067_v23, %v494_v26 }
 0x113   :  { %v496_v28 = vpop.f32.mrf.mxu0 }
 0x114   :  { %686 = vst [vmem:[%s1195_s4] sm:$0xff] %v662_v27  ;;  %v663_v29 = vadd.f32 %v1072_v25, %v496_v28  ;;  %v805_v30 = vpop.f32.mrf.mxu1 }
 0x115   :  { %v332_v31 = vadd.f32 %v805_v30, %v1027_v62  ;;  %v500_v32 = vpop.f32.mrf.mxu0 }
 0x116   :  { %687 = vst [vmem:[%s1195_s4 + $0x8] sm:$0xff] %v663_v29  ;;  %v665_v33 = vadd.f32 %v1067_v23, %v500_v32  ;;  %v276_v34 = vpop.f32.mrf.mxu1 }
 0x117   :  { %356 = vst [vmem:[%s1194_s3 + $0x58] sm:$0xff] %v332_v31  ;;  %v329_v35 = vadd.f32 %v1027_v62, %v276_v34  ;;  %v502_v36 = vpop.f32.mrf.mxu0 }
 0x118   :  { %689 = vst [vmem:[%s1195_s4 + $0x18] sm:$0xff] %v665_v33  ;;  %v666_v37 = vadd.f32 %v1072_v25, %v502_v36  ;;  %v808_v38 = vpop.f32.mrf.mxu1 }
 0x119   :  { %353 = vst [vmem:[%s1194_s3 + $0x40] sm:$0xff] %v329_v35  ;;  %v338_v39 = vadd.f32 %v808_v38, %v1027_v62  ;;  %v506_v40 = vpop.f32.mrf.mxu0 }
 0x11a   :  { %690 = vst [vmem:[%s1195_s4 + $0x20] sm:$0xff] %v666_v37  ;;  %v668_v41 = vadd.f32 %v1067_v23, %v506_v40  ;;  %v286_v42 = vpop.f32.mrf.mxu1 }
 0x11b   :  { %362 = vst [vmem:[%s1194_s3 + $0x88] sm:$0xff] %v338_v39  ;;  %v335_v44 = vadd.f32 %v1027_v62, %v286_v42  ;;  %v508_v45 = vpop.f32.mrf.mxu0 }
 0x11c   :  { %692 = vst [vmem:[%s1195_s4 + $0x30] sm:$0xff] %v668_v41  ;;  %v669_v46 = vadd.f32 %v1072_v25, %v508_v45  ;;  %v811_v47 = vpop.f32.mrf.mxu1 }
 0x11d   :  { %359 = vst [vmem:[%s1194_s3 + $0x70] sm:$0xff] %v335_v44  ;;  %v344_v48 = vadd.f32 %v811_v47, %v1027_v62  ;;  %v512_v49 = vpop.f32.mrf.mxu0 }
 0x11e   :  { %693 = vst [vmem:[%s1195_s4 + $0x38] sm:$0xff] %v669_v46  ;;  %v671_v0 = vadd.f32 %v1067_v23, %v512_v49  ;;  %v296_v51 = vpop.f32.mrf.mxu1 }
 0x11f   :  { %368 = vst [vmem:[%s1194_s3 + $0xb8] sm:$0xff] %v344_v48  ;;  %v341_v52 = vadd.f32 %v1027_v62, %v296_v51  ;;  %v514_v53 = vpop.f32.mrf.mxu0 }
 0x120   :  { %695 = vst [vmem:[%s1195_s4 + $0x48] sm:$0xff] %v671_v0  ;;  %v672_v43 = vadd.f32 %v1072_v25, %v514_v53  ;;  %v846_v54 = vpop.f32.mrf.mxu1 }
 0x121   :  { %365 = vst [vmem:[%s1194_s3 + $0xa0] sm:$0xff] %v341_v52  ;;  %v667_v55 = vadd.f32 %v846_v54, %v658_v50  ;;  %v518_v56 = vpop.f32.mrf.mxu0 }
 0x122   :  { %696 = vst [vmem:[%s1195_s4 + $0x50] sm:$0xff] %v672_v43  ;;  %v674_v57 = vadd.f32 %v1067_v23, %v518_v56  ;;  %v607_v58 = vpop.f32.mrf.mxu1 }
 0x123   :  { %691 = vst [vmem:[%s1195_s4 + $0x28] sm:$0xff] %v667_v55  ;;  %v664_v59 = vadd.f32 %v658_v50, %v607_v58  ;;  %v520_v60 = vpop.f32.mrf.mxu0 }
 0x124   :  { %698 = vst [vmem:[%s1195_s4 + $0x60] sm:$0xff] %v674_v57  ;;  %v675_v61 = vadd.f32 %v1072_v25, %v520_v60  ;;  %v849_v62 = vpop.f32.mrf.mxu1 }
 0x125   :  { %688 = vst [vmem:[%s1195_s4 + $0x10] sm:$0xff] %v664_v59  ;;  %v673_v63 = vadd.f32 %v849_v62, %v658_v50  ;;  %v524_v1 = vpop.f32.mrf.mxu0 }
 0x126   :  { %699 = vst [vmem:[%s1195_s4 + $0x68] sm:$0xff] %v675_v61  ;;  %v677_v2 = vadd.f32 %v1067_v23, %v524_v1  ;;  %v617_v3 = vpop.f32.mrf.mxu1 }
 0x127   :  { %697 = vst [vmem:[%s1195_s4 + $0x58] sm:$0xff] %v673_v63  ;;  %v670_v4 = vadd.f32 %v658_v50, %v617_v3  ;;  %v526_v5 = vpop.f32.mrf.mxu0 }
 0x128   :  { %701 = vst [vmem:[%s1195_s4 + $0x78] sm:$0xff] %v677_v2  ;;  %v678_v6 = vadd.f32 %v1072_v25, %v526_v5  ;;  %v852_v7 = vpop.f32.mrf.mxu1 }
 0x129   :  { %694 = vst [vmem:[%s1195_s4 + $0x40] sm:$0xff] %v670_v4  ;;  %v679_v8 = vadd.f32 %v852_v7, %v658_v50  ;;  %v530_v9 = vpop.f32.mrf.mxu0 }
 0x12a   :  { %702 = vst [vmem:[%s1195_s4 + $0x80] sm:$0xff] %v678_v6  ;;  %v680_v10 = vadd.f32 %v1067_v23, %v530_v9  ;;  %v627_v11 = vpop.f32.mrf.mxu1 }
 0x12b   :  { %703 = vst [vmem:[%s1195_s4 + $0x88] sm:$0xff] %v679_v8  ;;  %v676_v12 = vadd.f32 %v658_v50, %v627_v11  ;;  %v532_v13 = vpop.f32.mrf.mxu0 }
 0x12c   :  { %704 = vst [vmem:[%s1195_s4 + $0x90] sm:$0xff] %v680_v10  ;;  %v681_v14 = vadd.f32 %v1072_v25, %v532_v13  ;;  %v855_v15 = vpop.f32.mrf.mxu1 }
 0x12d   :  { %700 = vst [vmem:[%s1195_s4 + $0x70] sm:$0xff] %v676_v12  ;;  %v685_v16 = vadd.f32 %v855_v15, %v658_v50  ;;  %v536_v17 = vpop.f32.mrf.mxu0 }
 0x12e   :  { %705 = vst [vmem:[%s1195_s4 + $0x98] sm:$0xff] %v681_v14  ;;  %v683_v18 = vadd.f32 %v1067_v23, %v536_v17  ;;  %v637_v19 = vpop.f32.mrf.mxu1 }
 0x12f   :  { %709 = vst [vmem:[%s1195_s4 + $0xb8] sm:$0xff] %v685_v16  ;;  %v682_v20 = vadd.f32 %v658_v50, %v637_v19  ;;  %v538_v21 = vpop.f32.mrf.mxu0 }
 0x130   :  { %707 = vst [vmem:[%s1195_s4 + $0xa8] sm:$0xff] %v683_v18  ;;  %v684_v22 = vadd.f32 %v1072_v25, %v538_v21 }
 0x131   :  { %706 = vst [vmem:[%s1195_s4 + $0xa0] sm:$0xff] %v682_v20 }
 0x132   :  { %708 = vst [vmem:[%s1195_s4 + $0xb0] sm:$0xff] %v684_v22 }
 0x133   :  { %718 = vsyncpa [#allocation3], 1 }

// kernel: _lambda_.7
= control target key start
LH: loop header
LB: loop body
LE: loop exit
PB: predicated region body
PF: predicated region fallthrough
CT: control target
= control target key end

     0   :  { %v1723_v3 = vmov 0.0   ;;  %s2776_s2 = inlined_call_operand.vmem [shape: f32[2,2,128,384], index: 2, kind: input, shape index: {}]   ;;  %s2777_s0 = inlined_call_operand.vmem [shape: f32[64,128], index: 0, kind: input, shape index: {}]   ;;  %s2778_s1 = inlined_call_operand.vmem [shape: f32[64,128], index: 1, kind: input, shape index: {}]   ;;  %s2779_s3 = inlined_call_operand.vmem [shape: f32[2,1,384], index: 3, kind: input, shape index: {}]   ;;  %s2780_s4 = inlined_call_operand.vmem [shape: f32[64,384], index: 4, kind: output, shape index: {0}]   ;;  %s2781_s5 = inlined_call_operand.vmem [shape: f32[64,384], index: 5, kind: output, shape index: {1}]  }
   0x1   :  { %v74_v0 = vld [vmem:[%s2776_s2 + $0x170] sm:$0xff]  ;;  %v75_v1 = vld [vmem:[%s2776_s2 + $0x178] sm:$0xff]  ;;  %v73_v2 = vld [vmem:[%s2776_s2 + $0x168] sm:$0xff]  ;;  %140 = vmatprep.mubr.f32.mxu0 %v1723_v3 }
   0x2   :  { %76 = vmatprep.subr.mxu0 %v74_v0  ;;  %1546 = vmatprep.subr.mxu1 %v75_v1  ;;  %v71_v4 = vld [vmem:[%s2776_s2 + $0x158] sm:$0xff]  ;;  %v72_v5 = vld [vmem:[%s2776_s2 + $0x160] sm:$0xff]  ;;  %v70_v6 = vld [vmem:[%s2776_s2 + $0x150] sm:$0xff] }
   0x3   :  { %77 = vmatpush1.msra.mxu0 %v73_v2  ;;  %1547 = vmatpush3.msra.mxu1 %v75_v1  ;;  %v68_v7 = vld [vmem:[%s2776_s2 + $0x140] sm:$0xff]  ;;  %v69_v8 = vld [vmem:[%s2776_s2 + $0x148] sm:$0xff]  ;;  %v67_v9 = vld [vmem:[%s2776_s2 + $0x138] sm:$0xff] }
   0x4   :  { %78 = vmatprep.subr.mxu0 %v71_v4  ;;  %1548 = vmatprep.subr.mxu1 %v72_v5  ;;  %v65_v10 = vld [vmem:[%s2776_s2 + $0x128] sm:$0xff]  ;;  %v66_v11 = vld [vmem:[%s2776_s2 + $0x130] sm:$0xff]  ;;  %v64_v12 = vld [vmem:[%s2776_s2 + $0x120] sm:$0xff] }
   0x5   :  { %79 = vmatpush1.msra.mxu0 %v70_v6  ;;  %1549 = vmatpush3.msra.mxu1 %v72_v5  ;;  %v62_v13 = vld [vmem:[%s2776_s2 + $0x110] sm:$0xff]  ;;  %v63_v14 = vld [vmem:[%s2776_s2 + $0x118] sm:$0xff]  ;;  %v61_v15 = vld [vmem:[%s2776_s2 + $0x108] sm:$0xff] }
   0x6   :  { %80 = vmatprep.subr.mxu0 %v68_v7  ;;  %1550 = vmatprep.subr.mxu1 %v69_v8  ;;  %v59_v16 = vld [vmem:[%s2776_s2 + $0xf8] sm:$0xff]  ;;  %v60_v17 = vld [vmem:[%s2776_s2 + $0x100] sm:$0xff]  ;;  %v58_v18 = vld [vmem:[%s2776_s2 + $0xf0] sm:$0xff] }
   0x7   :  { %81 = vmatpush1.msra.mxu0 %v67_v9  ;;  %1551 = vmatpush3.msra.mxu1 %v69_v8  ;;  %v56_v19 = vld [vmem:[%s2776_s2 + $0xe0] sm:$0xff]  ;;  %v57_v20 = vld [vmem:[%s2776_s2 + $0xe8] sm:$0xff]  ;;  %v55_v21 = vld [vmem:[%s2776_s2 + $0xd8] sm:$0xff] }
   0x8   :  { %82 = vmatprep.subr.mxu0 %v65_v10  ;;  %1552 = vmatprep.subr.mxu1 %v66_v11  ;;  %v53_v22 = vld [vmem:[%s2776_s2 + $0xc8] sm:$0xff]  ;;  %v54_v23 = vld [vmem:[%s2776_s2 + $0xd0] sm:$0xff]  ;;  %v52_v24 = vld [vmem:[%s2776_s2 + $0xc0] sm:$0xff] }
   0x9   :  { %83 = vmatpush1.msra.mxu0 %v64_v12  ;;  %1553 = vmatpush3.msra.mxu1 %v66_v11  ;;  %v50_v25 = vld [vmem:[%s2776_s2 + $0xb0] sm:$0xff]  ;;  %v51_v26 = vld [vmem:[%s2776_s2 + $0xb8] sm:$0xff]  ;;  %v49_v27 = vld [vmem:[%s2776_s2 + $0xa8] sm:$0xff] }
   0xa   :  { %84 = vmatprep.subr.mxu0 %v62_v13  ;;  %1554 = vmatprep.subr.mxu1 %v63_v14  ;;  %v47_v28 = vld [vmem:[%s2776_s2 + $0x98] sm:$0xff]  ;;  %v48_v29 = vld [vmem:[%s2776_s2 + $0xa0] sm:$0xff]  ;;  %v46_v30 = vld [vmem:[%s2776_s2 + $0x90] sm:$0xff] }
   0xb   :  { %85 = vmatpush1.msra.mxu0 %v61_v15  ;;  %1555 = vmatpush3.msra.mxu1 %v63_v14  ;;  %v44_v31 = vld [vmem:[%s2776_s2 + $0x80] sm:$0xff]  ;;  %v45_v32 = vld [vmem:[%s2776_s2 + $0x88] sm:$0xff]  ;;  %v43_v33 = vld [vmem:[%s2776_s2 + $0x78] sm:$0xff] }
   0xc   :  { %86 = vmatprep.subr.mxu0 %v59_v16  ;;  %1556 = vmatprep.subr.mxu1 %v60_v17  ;;  %v41_v34 = vld [vmem:[%s2776_s2 + $0x68] sm:$0xff]  ;;  %v42_v35 = vld [vmem:[%s2776_s2 + $0x70] sm:$0xff]  ;;  %v40_v36 = vld [vmem:[%s2776_s2 + $0x60] sm:$0xff] }
   0xd   :  { %87 = vmatpush1.msra.mxu0 %v58_v18  ;;  %1557 = vmatpush3.msra.mxu1 %v60_v17  ;;  %v38_v37 = vld [vmem:[%s2776_s2 + $0x50] sm:$0xff]  ;;  %v39_v38 = vld [vmem:[%s2776_s2 + $0x58] sm:$0xff]  ;;  %v37_v39 = vld [vmem:[%s2776_s2 + $0x48] sm:$0xff] }
   0xe   :  { %88 = vmatprep.subr.mxu0 %v56_v19  ;;  %1558 = vmatprep.subr.mxu1 %v57_v20  ;;  %v35_v40 = vld [vmem:[%s2776_s2 + $0x38] sm:$0xff]  ;;  %v36_v41 = vld [vmem:[%s2776_s2 + $0x40] sm:$0xff]  ;;  %v34_v42 = vld [vmem:[%s2776_s2 + $0x30] sm:$0xff] }
   0xf   :  { %89 = vmatpush1.msra.mxu0 %v55_v21  ;;  %1559 = vmatpush3.msra.mxu1 %v57_v20  ;;  %v32_v43 = vld [vmem:[%s2776_s2 + $0x20] sm:$0xff]  ;;  %v33_v44 = vld [vmem:[%s2776_s2 + $0x28] sm:$0xff]  ;;  %v31_v45 = vld [vmem:[%s2776_s2 + $0x18] sm:$0xff] }
  0x10   :  { %90 = vmatprep.subr.mxu0 %v53_v22  ;;  %1560 = vmatprep.subr.mxu1 %v54_v23  ;;  %v29_v46 = vld [vmem:[%s2776_s2 + $0x8] sm:$0xff]  ;;  %v30_v47 = vld [vmem:[%s2776_s2 + $0x10] sm:$0xff]  ;;  %v28_v48 = vld [vmem:[%s2776_s2] sm:$0xff] }
  0x11   :  { %91 = vmatpush1.msra.mxu0 %v52_v24  ;;  %1561 = vmatpush3.msra.mxu1 %v54_v23  ;;  %v1902_v49 = vld [vmem:[%s2777_s0] sm:$0xff]  ;;  %v1351_v50 = vld [vmem:[%s2776_s2 + $0x2f0] sm:$0xff]  ;;  %v1352_v51 = vld [vmem:[%s2776_s2 + $0x2f8] sm:$0xff] }
  0x12   :  { %92 = vmatprep.subr.mxu0 %v50_v25  ;;  %1562 = vmatprep.subr.mxu1 %v51_v26  ;;  %v1913_v52 = vld [vmem:[%s2777_s0 + $0x8] sm:$0xff]  ;;  %v1348_v54 = vld [vmem:[%s2776_s2 + $0x2d8] sm:$0xff]  ;;  %v1349_v55 = vld [vmem:[%s2776_s2 + $0x2e0] sm:$0xff] }
  0x13   :  { %93 = vmatpush1.msra.mxu0 %v49_v27  ;;  %1563 = vmatpush3.msra.mxu1 %v51_v26  ;;  %v1350_v53 = vld [vmem:[%s2776_s2 + $0x2e8] sm:$0xff]  ;;  %v1347_v56 = vld [vmem:[%s2776_s2 + $0x2d0] sm:$0xff]  ;;  %v1345_v57 = vld [vmem:[%s2776_s2 + $0x2c0] sm:$0xff] }
  0x14   :  { %94 = vmatprep.subr.mxu0 %v47_v28  ;;  %1564 = vmatprep.subr.mxu1 %v48_v29  ;;  %v1346_v58 = vld [vmem:[%s2776_s2 + $0x2c8] sm:$0xff]  ;;  %v1344_v59 = vld [vmem:[%s2776_s2 + $0x2b8] sm:$0xff]  ;;  %v1343_v61 = vld [vmem:[%s2776_s2 + $0x2b0] sm:$0xff] }
  0x15   :  { %95 = vmatpush1.msra.mxu0 %v46_v30  ;;  %1565 = vmatpush3.msra.mxu1 %v48_v29  ;;  %v1342_v60 = vld [vmem:[%s2776_s2 + $0x2a8] sm:$0xff]  ;;  %v1341_v62 = vld [vmem:[%s2776_s2 + $0x2a0] sm:$0xff]  ;;  %v1953_v63 = vld [vmem:[%s2777_s0 + $0x10] sm:$0xff] }
  0x16   :  { %96 = vmatprep.subr.mxu0 %v44_v31  ;;  %1566 = vmatprep.subr.mxu1 %v45_v32  ;;  %v1339_v0 = vld [vmem:[%s2776_s2 + $0x290] sm:$0xff]  ;;  %v1340_v1 = vld [vmem:[%s2776_s2 + $0x298] sm:$0xff]  ;;  %v1338_v2 = vld [vmem:[%s2776_s2 + $0x288] sm:$0xff] }
  0x17   :  { %97 = vmatpush1.msra.mxu0 %v43_v33  ;;  %1567 = vmatpush3.msra.mxu1 %v45_v32  ;;  %v1336_v4 = vld [vmem:[%s2776_s2 + $0x278] sm:$0xff]  ;;  %v1337_v5 = vld [vmem:[%s2776_s2 + $0x280] sm:$0xff]  ;;  %v1335_v6 = vld [vmem:[%s2776_s2 + $0x270] sm:$0xff] }
  0x18   :  { %98 = vmatprep.subr.mxu0 %v41_v34  ;;  %1568 = vmatprep.subr.mxu1 %v42_v35  ;;  %v1978_v7 = vld [vmem:[%s2777_s0 + $0x18] sm:$0xff]  ;;  %v1333_v8 = vld [vmem:[%s2776_s2 + $0x260] sm:$0xff]  ;;  %v1334_v9 = vld [vmem:[%s2776_s2 + $0x268] sm:$0xff] }
  0x19   :  { %99 = vmatpush1.msra.mxu0 %v40_v36  ;;  %1569 = vmatpush3.msra.mxu1 %v42_v35  ;;  %v1332_v10 = vld [vmem:[%s2776_s2 + $0x258] sm:$0xff]  ;;  %v1330_v11 = vld [vmem:[%s2776_s2 + $0x248] sm:$0xff]  ;;  %v1331_v12 = vld [vmem:[%s2776_s2 + $0x250] sm:$0xff] }
  0x1a   :  { %100 = vmatprep.subr.mxu0 %v38_v37  ;;  %1570 = vmatprep.subr.mxu1 %v39_v38  ;;  %v1329_v13 = vld [vmem:[%s2776_s2 + $0x240] sm:$0xff]  ;;  %v1327_v15 = vld [vmem:[%s2776_s2 + $0x230] sm:$0xff]  ;;  %v1328_v16 = vld [vmem:[%s2776_s2 + $0x238] sm:$0xff] }
  0x1b   :  { %101 = vmatpush1.msra.mxu0 %v37_v39  ;;  %1571 = vmatpush3.msra.mxu1 %v39_v38  ;;  %v2003_v14 = vld [vmem:[%s2777_s0 + $0x20] sm:$0xff]  ;;  %v1326_v17 = vld [vmem:[%s2776_s2 + $0x228] sm:$0xff]  ;;  %v1324_v18 = vld [vmem:[%s2776_s2 + $0x218] sm:$0xff] }
  0x1c   :  { %102 = vmatprep.subr.mxu0 %v35_v40  ;;  %1572 = vmatprep.subr.mxu1 %v36_v41  ;;  %v1325_v19 = vld [vmem:[%s2776_s2 + $0x220] sm:$0xff]  ;;  %v1323_v20 = vld [vmem:[%s2776_s2 + $0x210] sm:$0xff]  ;;  %v2028_v21 = vld [vmem:[%s2777_s0 + $0x28] sm:$0xff] }
  0x1d   :  { %103 = vmatpush1.msra.mxu0 %v34_v42  ;;  %1573 = vmatpush3.msra.mxu1 %v36_v41  ;;  %v1321_v22 = vld [vmem:[%s2776_s2 + $0x200] sm:$0xff]  ;;  %v1322_v23 = vld [vmem:[%s2776_s2 + $0x208] sm:$0xff]  ;;  %v1320_v24 = vld [vmem:[%s2776_s2 + $0x1f8] sm:$0xff] }
  0x1e   :  { %104 = vmatprep.subr.mxu0 %v32_v43  ;;  %1574 = vmatprep.subr.mxu1 %v33_v44  ;;  %v1318_v25 = vld [vmem:[%s2776_s2 + $0x1e8] sm:$0xff]  ;;  %v1319_v26 = vld [vmem:[%s2776_s2 + $0x1f0] sm:$0xff]  ;;  %v1317_v27 = vld [vmem:[%s2776_s2 + $0x1e0] sm:$0xff] }
  0x1f   :  { %105 = vmatpush1.msra.mxu0 %v31_v45  ;;  %1575 = vmatpush3.msra.mxu1 %v33_v44  ;;  %v2055_v28 = vld [vmem:[%s2777_s0 + $0x30] sm:$0xff]  ;;  %v1316_v30 = vld [vmem:[%s2776_s2 + $0x1d8] sm:$0xff]  ;;  %v1314_v31 = vld [vmem:[%s2776_s2 + $0x1c8] sm:$0xff] }
  0x20   :  { %106 = vmatprep.subr.mxu0 %v29_v46  ;;  %1576 = vmatprep.subr.mxu1 %v30_v47  ;;  %v1315_v29 = vld [vmem:[%s2776_s2 + $0x1d0] sm:$0xff]  ;;  %v1312_v32 = vld [vmem:[%s2776_s2 + $0x1b8] sm:$0xff]  ;;  %v1313_v33 = vld [vmem:[%s2776_s2 + $0x1c0] sm:$0xff] }
  0x21   :  { %107 = vmatpush1.msra.mxu0 %v28_v48  ;;  %1577 = vmatpush3.msra.mxu1 %v30_v47  ;;  %v1311_v34 = vld [vmem:[%s2776_s2 + $0x1b0] sm:$0xff]  ;;  %v2082_v35 = vld [vmem:[%s2777_s0 + $0x38] sm:$0xff]  ;;  %v1309_v36 = vld [vmem:[%s2776_s2 + $0x1a0] sm:$0xff] }
  0x22   :  { %141 = vmatmul.mubr.f32.vlgmr.msra.gmra.mxu0 %v1902_v49  ;;  %1578 = vmatprep.mubr.f32.mxu1 %v1902_v49  ;;  %v1310_v37 = vld [vmem:[%s2776_s2 + $0x1a8] sm:$0xff]  ;;  %v1308_v38 = vld [vmem:[%s2776_s2 + $0x198] sm:$0xff]  ;;  %v1307_v40 = vld [vmem:[%s2776_s2 + $0x190] sm:$0xff] }
  0x23   :  { %391 = vmatprep.subr.mxu0 %v1351_v50  ;;  %1590 = vmatprep.subr.mxu1 %v1352_v51  ;;  %v1306_v39 = vld [vmem:[%s2776_s2 + $0x188] sm:$0xff]  ;;  %v1305_v41 = vld [vmem:[%s2776_s2 + $0x180] sm:$0xff]  ;;  %v1400_v44 = vld [vmem:[%s2776_s2 + $0x470] sm:$0xff] }
  0x24   :  { %1579 = vmatmul.mubr.f32.vlgmr.msra.gmra.mxu1 %v1913_v52  ;;  %392 = vmatpush1.msra.mxu0 %v1350_v53  ;;  %v2109_v42 = vld [vmem:[%s2778_s1] sm:$0xff]  ;;  %v2114_v43 = vld [vmem:[%s2778_s1 + $0x8] sm:$0xff]  ;;  %v1401_v45 = vld [vmem:[%s2776_s2 + $0x478] sm:$0xff] }
  0x25   :  { %1591 = vmatpush3.msra.mxu1 %v1352_v51  ;;  %393 = vmatprep.subr.mxu0 %v1348_v54  ;;  %v1399_v46 = vld [vmem:[%s2776_s2 + $0x468] sm:$0xff]  ;;  %v1397_v47 = vld [vmem:[%s2776_s2 + $0x458] sm:$0xff]  ;;  %v1398_v48 = vld [vmem:[%s2776_s2 + $0x460] sm:$0xff] }
  0x26   :  { %1592 = vmatprep.subr.mxu1 %v1349_v55  ;;  %146 = vmatprep.mubr.f32.mxu0 %v1723_v3  ;;  %v1396_v50 = vld [vmem:[%s2776_s2 + $0x450] sm:$0xff]  ;;  %v1394_v51 = vld [vmem:[%s2776_s2 + $0x440] sm:$0xff]  ;;  %v1395_v53 = vld [vmem:[%s2776_s2 + $0x448] sm:$0xff] }
  0x27   :  { %394 = vmatpush1.msra.mxu0 %v1347_v56  ;;  %1593 = vmatpush3.msra.mxu1 %v1349_v55  ;;  %v2148_v54 = vld [vmem:[%s2778_s1 + $0x10] sm:$0xff]  ;;  %v1393_v55 = vld [vmem:[%s2776_s2 + $0x438] sm:$0xff] }
  0x28   :  { %147 = vmatmul.mubr.f32.gmra.mxu0 %v1913_v52  ;;  %395 = vmatprep.subr.mxu0 %v1345_v57  ;;  %v2157_v56 = vld [vmem:[%s2778_s1 + $0x18] sm:$0xff]  ;;  %v1391_v57 = vld [vmem:[%s2776_s2 + $0x428] sm:$0xff] }
  0x29   :  { %1594 = vmatprep.subr.mxu1 %v1346_v58  ;;  %396 = vmatpush1.msra.mxu0 %v1344_v59  ;;  %v1390_v59 = vld [vmem:[%s2776_s2 + $0x420] sm:$0xff] }
  0x2a   :  { %1595 = vmatpush3.msra.mxu1 %v1346_v58  ;;  %397 = vmatprep.subr.mxu0 %v1342_v60  ;;  %v1392_v58 = vld [vmem:[%s2776_s2 + $0x430] sm:$0xff] }
  0x2b   :  { %1596 = vmatprep.subr.mxu1 %v1343_v61  ;;  %152 = vmatprep.mubr.f32.mxu0 %v1723_v3  ;;  %v1388_v60 = vld [vmem:[%s2776_s2 + $0x410] sm:$0xff] }
  0x2c   :  { %398 = vmatpush1.msra.mxu0 %v1341_v62  ;;  %1597 = vmatpush3.msra.mxu1 %v1343_v61  ;;  %v1389_v61 = vld [vmem:[%s2776_s2 + $0x418] sm:$0xff]  ;;  %v2180_v62 = vld [vmem:[%s2778_s1 + $0x20] sm:$0xff] }
  0x2d   :  { %153 = vmatmul.mubr.f32.gmra.mxu0 %v1953_v63  ;;  %399 = vmatprep.subr.mxu0 %v1339_v0  ;;  %v1387_v0 = vld [vmem:[%s2776_s2 + $0x408] sm:$0xff] }
  0x2e   :  { %1598 = vmatprep.subr.mxu1 %v1340_v1  ;;  %400 = vmatpush1.msra.mxu0 %v1338_v2  ;;  %v1385_v2 = vld [vmem:[%s2776_s2 + $0x3f8] sm:$0xff] }
  0x2f   :  { %1599 = vmatpush3.msra.mxu1 %v1340_v1  ;;  %401 = vmatprep.subr.mxu0 %v1336_v4  ;;  %v2189_v1 = vld [vmem:[%s2778_s1 + $0x28] sm:$0xff]  ;;  %v1386_v4 = vld [vmem:[%s2776_s2 + $0x400] sm:$0xff] }
  0x30   :  { %1600 = vmatprep.subr.mxu1 %v1337_v5  ;;  %158 = vmatprep.mubr.f32.mxu0 %v1723_v3 }
  0x31   :  { %402 = vmatpush1.msra.mxu0 %v1335_v6  ;;  %1601 = vmatpush3.msra.mxu1 %v1337_v5  ;;  %v1384_v5 = vld [vmem:[%s2776_s2 + $0x3f0] sm:$0xff]  ;;  %v1382_v6 = vld [vmem:[%s2776_s2 + $0x3e0] sm:$0xff] }
  0x32   :  { %159 = vmatmul.mubr.f32.gmra.mxu0 %v1978_v7  ;;  %403 = vmatprep.subr.mxu0 %v1333_v8  ;;  %v1383_v8 = vld [vmem:[%s2776_s2 + $0x3e8] sm:$0xff] }
  0x33   :  { %1602 = vmatprep.subr.mxu1 %v1334_v9  ;;  %404 = vmatpush1.msra.mxu0 %v1332_v10  ;;  %v1381_v10 = vld [vmem:[%s2776_s2 + $0x3d8] sm:$0xff] }
  0x34   :  { %1603 = vmatpush3.msra.mxu1 %v1334_v9  ;;  %405 = vmatprep.subr.mxu0 %v1330_v11  ;;  %v2212_v9 = vld [vmem:[%s2778_s1 + $0x30] sm:$0xff]  ;;  %v2221_v11 = vld [vmem:[%s2778_s1 + $0x38] sm:$0xff] }
  0x35   :  { %1604 = vmatprep.subr.mxu1 %v1331_v12  ;;  %164 = vmatprep.mubr.f32.mxu0 %v1723_v3 }
  0x36   :  { %406 = vmatpush1.msra.mxu0 %v1329_v13  ;;  %1605 = vmatpush3.msra.mxu1 %v1331_v12  ;;  %v1379_v12 = vld [vmem:[%s2776_s2 + $0x3c8] sm:$0xff]  ;;  %v1380_v13 = vld [vmem:[%s2776_s2 + $0x3d0] sm:$0xff] }
  0x37   :  { %165 = vmatmul.mubr.f32.gmra.mxu0 %v2003_v14  ;;  %407 = vmatprep.subr.mxu0 %v1327_v15  ;;  %v1378_v15 = vld [vmem:[%s2776_s2 + $0x3c0] sm:$0xff] }
  0x38   :  { %1606 = vmatprep.subr.mxu1 %v1328_v16  ;;  %408 = vmatpush1.msra.mxu0 %v1326_v17  ;;  %v1377_v17 = vld [vmem:[%s2776_s2 + $0x3b8] sm:$0xff] }
  0x39   :  { %1607 = vmatpush3.msra.mxu1 %v1328_v16  ;;  %409 = vmatprep.subr.mxu0 %v1324_v18  ;;  %v1376_v16 = vld [vmem:[%s2776_s2 + $0x3b0] sm:$0xff]  ;;  %v1375_v18 = vld [vmem:[%s2776_s2 + $0x3a8] sm:$0xff] }
  0x3a   :  { %1608 = vmatprep.subr.mxu1 %v1325_v19  ;;  %170 = vmatprep.mubr.f32.mxu0 %v1723_v3 }
  0x3b   :  { %1581 = vmatprep.mubr.f32.mxu1 %v1953_v63  ;;  %410 = vmatpush1.msra.mxu0 %v1323_v20  ;;  %v1374_v20 = vld [vmem:[%s2776_s2 + $0x3a0] sm:$0xff] }
  0x3c   :  { %1609 = vmatpush3.msra.mxu1 %v1325_v19  ;;  %171 = vmatmul.mubr.f32.gmra.mxu0 %v2028_v21  ;;  %v1373_v19 = vld [vmem:[%s2776_s2 + $0x398] sm:$0xff] }
  0x3d   :  { %1582 = vmatmul.mubr.f32.gmra.mxu1 %v1978_v7  ;;  %411 = vmatprep.subr.mxu0 %v1321_v22  ;;  %v1372_v22 = vld [vmem:[%s2776_s2 + $0x390] sm:$0xff] }
  0x3e   :  { %1610 = vmatprep.subr.mxu1 %v1322_v23  ;;  %412 = vmatpush1.msra.mxu0 %v1320_v24  ;;  %v1371_v24 = vld [vmem:[%s2776_s2 + $0x388] sm:$0xff] }
  0x3f   :  { %1611 = vmatpush3.msra.mxu1 %v1322_v23  ;;  %413 = vmatprep.subr.mxu0 %v1318_v25  ;;  %v1370_v23 = vld [vmem:[%s2776_s2 + $0x380] sm:$0xff]  ;;  %v1369_v25 = vld [vmem:[%s2776_s2 + $0x378] sm:$0xff] }
  0x40   :  { %1612 = vmatprep.subr.mxu1 %v1319_v26  ;;  %176 = vmatprep.mubr.f32.mxu0 %v1723_v3 }
  0x41   :  { %1584 = vmatprep.mubr.f32.mxu1 %v2003_v14  ;;  %414 = vmatpush1.msra.mxu0 %v1317_v27  ;;  %v1368_v27 = vld [vmem:[%s2776_s2 + $0x370] sm:$0xff] }
  0x42   :  { %1613 = vmatpush3.msra.mxu1 %v1319_v26  ;;  %177 = vmatmul.mubr.f32.gmra.mxu0 %v2055_v28  ;;  %v1367_v26 = vld [vmem:[%s2776_s2 + $0x368] sm:$0xff] }
  0x43   :  { %1585 = vmatmul.mubr.f32.gmra.mxu1 %v2028_v21  ;;  %415 = vmatprep.subr.mxu0 %v1315_v29  ;;  %v1366_v29 = vld [vmem:[%s2776_s2 + $0x360] sm:$0xff] }
  0x44   :  { %1614 = vmatprep.subr.mxu1 %v1316_v30  ;;  %416 = vmatpush1.msra.mxu0 %v1314_v31  ;;  %v1365_v31 = vld [vmem:[%s2776_s2 + $0x358] sm:$0xff] }
  0x45   :  { %1615 = vmatpush3.msra.mxu1 %v1316_v30  ;;  %417 = vmatprep.subr.mxu0 %v1312_v32  ;;  %v1364_v30 = vld [vmem:[%s2776_s2 + $0x350] sm:$0xff]  ;;  %v1363_v32 = vld [vmem:[%s2776_s2 + $0x348] sm:$0xff] }
  0x46   :  { %1616 = vmatprep.subr.mxu1 %v1313_v33  ;;  %182 = vmatprep.mubr.f32.mxu0 %v1723_v3 }
  0x47   :  { %1587 = vmatprep.mubr.f32.mxu1 %v2055_v28  ;;  %418 = vmatpush1.msra.mxu0 %v1311_v34  ;;  %v1362_v34 = vld [vmem:[%s2776_s2 + $0x340] sm:$0xff] }
  0x48   :  { %1617 = vmatpush3.msra.mxu1 %v1313_v33  ;;  %183 = vmatmul.mubr.f32.gmra.mxu0 %v2082_v35  ;;  %v1361_v33 = vld [vmem:[%s2776_s2 + $0x338] sm:$0xff] }
  0x49   :  { %1588 = vmatmul.mubr.f32.gmra.mxu1 %v2082_v35  ;;  %419 = vmatprep.subr.mxu0 %v1309_v36  ;;  %v1360_v36 = vld [vmem:[%s2776_s2 + $0x330] sm:$0xff] }
  0x4a   :  { %1618 = vmatprep.subr.mxu1 %v1310_v37  ;;  %420 = vmatpush1.msra.mxu0 %v1308_v38  ;;  %v1359_v38 = vld [vmem:[%s2776_s2 + $0x328] sm:$0xff] }
  0x4b   :  { %1619 = vmatpush3.msra.mxu1 %v1310_v37  ;;  %421 = vmatprep.subr.mxu0 %v1306_v39  ;;  %v1358_v37 = vld [vmem:[%s2776_s2 + $0x320] sm:$0xff]  ;;  %v1357_v39 = vld [vmem:[%s2776_s2 + $0x318] sm:$0xff] }
  0x4c   :  { %1620 = vmatprep.subr.mxu1 %v1307_v40  ;;  %422 = vmatpush1.msra.mxu0 %v1305_v41  ;;  %v1356_v41 = vld [vmem:[%s2776_s2 + $0x310] sm:$0xff] }
  0x4d   :  { %455 = vmatprep.mubr.f32.mxu0 %v1723_v3  ;;  %1621 = vmatpush3.msra.mxu1 %v1307_v40  ;;  %v1355_v40 = vld [vmem:[%s2776_s2 + $0x308] sm:$0xff] }
  0x4e   :  { %1622 = vmatprep.mubr.f32.mxu1 %v2109_v42  ;;  %456 = vmatmul.mubr.f32.vlgmr.msra.gmra.mxu0 %v2109_v42 }
  0x4f   :  { %1623 = vmatmul.mubr.f32.vlgmr.msra.gmra.mxu1 %v2114_v43  ;;  %716 = vmatprep.subr.mxu0 %v1400_v44  ;;  %v1354_v44 = vld [vmem:[%s2776_s2 + $0x300] sm:$0xff] }
  0x50   :  { %1634 = vmatprep.subr.mxu1 %v1401_v45  ;;  %717 = vmatpush1.msra.mxu0 %v1399_v46  ;;  %v1449_v46 = vld [vmem:[%s2776_s2 + $0x5f8] sm:$0xff] }
  0x51   :  { %1635 = vmatpush3.msra.mxu1 %v1401_v45  ;;  %718 = vmatprep.subr.mxu0 %v1397_v47  ;;  %v1448_v45 = vld [vmem:[%s2776_s2 + $0x5f0] sm:$0xff]  ;;  %v1447_v47 = vld [vmem:[%s2776_s2 + $0x5e8] sm:$0xff] }
  0x52   :  { %1636 = vmatprep.subr.mxu1 %v1398_v48  ;;  %461 = vmatprep.mubr.f32.mxu0 %v1723_v3 }
  0x53   :  { %719 = vmatpush1.msra.mxu0 %v1396_v50  ;;  %1637 = vmatpush3.msra.mxu1 %v1398_v48  ;;  %v1445_v48 = vld [vmem:[%s2776_s2 + $0x5d8] sm:$0xff]  ;;  %v1446_v50 = vld [vmem:[%s2776_s2 + $0x5e0] sm:$0xff] }
  0x54   :  { %462 = vmatmul.mubr.f32.gmra.mxu0 %v2114_v43  ;;  %720 = vmatprep.subr.mxu0 %v1394_v51  ;;  %v1444_v51 = vld [vmem:[%s2776_s2 + $0x5d0] sm:$0xff] }
  0x55   :  { %1638 = vmatprep.subr.mxu1 %v1395_v53  ;;  %1625 = vmatprep.mubr.f32.mxu1 %v2148_v54 }
  0x56   :  { %721 = vmatpush1.msra.mxu0 %v1393_v55  ;;  %1639 = vmatpush3.msra.mxu1 %v1395_v53  ;;  %v1443_v53 = vld [vmem:[%s2776_s2 + $0x5c8] sm:$0xff]  ;;  %v1441_v55 = vld [vmem:[%s2776_s2 + $0x5b8] sm:$0xff] }
  0x57   :  { %1626 = vmatmul.mubr.f32.gmra.mxu1 %v2157_v56  ;;  %722 = vmatprep.subr.mxu0 %v1391_v57  ;;  %v1439_v57 = vld [vmem:[%s2776_s2 + $0x5a8] sm:$0xff] }
  0x58   :  { %1640 = vmatprep.subr.mxu1 %v1392_v58  ;;  %467 = vmatprep.mubr.f32.mxu0 %v1723_v3 }
  0x59   :  { %723 = vmatpush1.msra.mxu0 %v1390_v59  ;;  %1641 = vmatpush3.msra.mxu1 %v1392_v58  ;;  %v1440_v58 = vld [vmem:[%s2776_s2 + $0x5b0] sm:$0xff]  ;;  %v1438_v59 = vld [vmem:[%s2776_s2 + $0x5a0] sm:$0xff] }
  0x5a   :  { %468 = vmatmul.mubr.f32.gmra.mxu0 %v2148_v54  ;;  %724 = vmatprep.subr.mxu0 %v1388_v60  ;;  %v1436_v60 = vld [vmem:[%s2776_s2 + $0x590] sm:$0xff] }
  0x5b   :  { %1642 = vmatprep.subr.mxu1 %v1389_v61  ;;  %1628 = vmatprep.mubr.f32.mxu1 %v2180_v62 }
  0x5c   :  { %725 = vmatpush1.msra.mxu0 %v1387_v0  ;;  %1643 = vmatpush3.msra.mxu1 %v1389_v61  ;;  %v1435_v61 = vld [vmem:[%s2776_s2 + $0x588] sm:$0xff]  ;;  %v1433_v0 = vld [vmem:[%s2776_s2 + $0x578] sm:$0xff] }
  0x5d   :  { %1629 = vmatmul.mubr.f32.gmra.mxu1 %v2189_v1  ;;  %726 = vmatprep.subr.mxu0 %v1385_v2  ;;  %v1434_v2 = vld [vmem:[%s2776_s2 + $0x580] sm:$0xff] }
  0x5e   :  { %1644 = vmatprep.subr.mxu1 %v1386_v4  ;;  %473 = vmatprep.mubr.f32.mxu0 %v1723_v3 }
  0x5f   :  { %727 = vmatpush1.msra.mxu0 %v1384_v5  ;;  %1645 = vmatpush3.msra.mxu1 %v1386_v4  ;;  %v1432_v4 = vld [vmem:[%s2776_s2 + $0x570] sm:$0xff]  ;;  %v1430_v5 = vld [vmem:[%s2776_s2 + $0x560] sm:$0xff] }
  0x60   :  { %474 = vmatmul.mubr.f32.gmra.mxu0 %v2157_v56  ;;  %728 = vmatprep.subr.mxu0 %v1382_v6  ;;  %v1431_v6 = vld [vmem:[%s2776_s2 + $0x568] sm:$0xff] }
  0x61   :  { %1646 = vmatprep.subr.mxu1 %v1383_v8  ;;  %1631 = vmatprep.mubr.f32.mxu1 %v2212_v9 }
  0x62   :  { %729 = vmatpush1.msra.mxu0 %v1381_v10  ;;  %1647 = vmatpush3.msra.mxu1 %v1383_v8  ;;  %v1429_v8 = vld [vmem:[%s2776_s2 + $0x558] sm:$0xff]  ;;  %v1427_v10 = vld [vmem:[%s2776_s2 + $0x548] sm:$0xff] }
  0x63   :  { %1632 = vmatmul.mubr.f32.gmra.mxu1 %v2221_v11  ;;  %730 = vmatprep.subr.mxu0 %v1379_v12  ;;  %v1428_v12 = vld [vmem:[%s2776_s2 + $0x550] sm:$0xff] }
  0x64   :  { %1648 = vmatprep.subr.mxu1 %v1380_v13  ;;  %479 = vmatprep.mubr.f32.mxu0 %v1723_v3 }
  0x65   :  { %731 = vmatpush1.msra.mxu0 %v1378_v15  ;;  %1649 = vmatpush3.msra.mxu1 %v1380_v13  ;;  %v1426_v13 = vld [vmem:[%s2776_s2 + $0x540] sm:$0xff]  ;;  %v1424_v15 = vld [vmem:[%s2776_s2 + $0x530] sm:$0xff] }
  0x66   :  { %480 = vmatmul.mubr.f32.gmra.mxu0 %v2180_v62  ;;  %732 = vmatprep.subr.mxu0 %v1376_v16  ;;  %v1425_v16 = vld [vmem:[%s2776_s2 + $0x538] sm:$0xff] }
  0x67   :  { %1650 = vmatprep.subr.mxu1 %v1377_v17  ;;  %733 = vmatpush1.msra.mxu0 %v1375_v18  ;;  %v1421_v18 = vld [vmem:[%s2776_s2 + $0x518] sm:$0xff] }
  0x68   :  { %1651 = vmatpush3.msra.mxu1 %v1377_v17  ;;  %734 = vmatprep.subr.mxu0 %v1373_v19  ;;  %v1423_v17 = vld [vmem:[%s2776_s2 + $0x528] sm:$0xff]  ;;  %v1422_v19 = vld [vmem:[%s2776_s2 + $0x520] sm:$0xff] }
  0x69   :  { %1652 = vmatprep.subr.mxu1 %v1374_v20  ;;  %485 = vmatprep.mubr.f32.mxu0 %v1723_v3 }
  0x6a   :  { %735 = vmatpush1.msra.mxu0 %v1372_v22  ;;  %1653 = vmatpush3.msra.mxu1 %v1374_v20  ;;  %v1420_v20 = vld [vmem:[%s2776_s2 + $0x510] sm:$0xff]  ;;  %v1418_v22 = vld [vmem:[%s2776_s2 + $0x500] sm:$0xff] }
  0x6b   :  { %486 = vmatmul.mubr.f32.gmra.mxu0 %v2189_v1  ;;  %736 = vmatprep.subr.mxu0 %v1370_v23  ;;  %v1419_v23 = vld [vmem:[%s2776_s2 + $0x508] sm:$0xff] }
  0x6c   :  { %1654 = vmatprep.subr.mxu1 %v1371_v24  ;;  %737 = vmatpush1.msra.mxu0 %v1369_v25  ;;  %v1415_v25 = vld [vmem:[%s2776_s2 + $0x4e8] sm:$0xff] }
  0x6d   :  { %1655 = vmatpush3.msra.mxu1 %v1371_v24  ;;  %738 = vmatprep.subr.mxu0 %v1367_v26  ;;  %v1417_v24 = vld [vmem:[%s2776_s2 + $0x4f8] sm:$0xff]  ;;  %v1414_v26 = vld [vmem:[%s2776_s2 + $0x4e0] sm:$0xff] }
  0x6e   :  { %1656 = vmatprep.subr.mxu1 %v1368_v27  ;;  %491 = vmatprep.mubr.f32.mxu0 %v1723_v3 }
  0x6f   :  { %739 = vmatpush1.msra.mxu0 %v1366_v29  ;;  %1657 = vmatpush3.msra.mxu1 %v1368_v27  ;;  %v1413_v27 = vld [vmem:[%s2776_s2 + $0x4d8] sm:$0xff]  ;;  %v1411_v29 = vld [vmem:[%s2776_s2 + $0x4c8] sm:$0xff] }
  0x70   :  { %492 = vmatmul.mubr.f32.gmra.mxu0 %v2212_v9  ;;  %740 = vmatprep.subr.mxu0 %v1364_v30  ;;  %v1409_v30 = vld [vmem:[%s2776_s2 + $0x4b8] sm:$0xff] }
  0x71   :  { %1658 = vmatprep.subr.mxu1 %v1365_v31  ;;  %741 = vmatpush1.msra.mxu0 %v1363_v32  ;;  %v1407_v32 = vld [vmem:[%s2776_s2 + $0x4a8] sm:$0xff] }
  0x72   :  { %1659 = vmatpush3.msra.mxu1 %v1365_v31  ;;  %742 = vmatprep.subr.mxu0 %v1361_v33  ;;  %v1408_v31 = vld [vmem:[%s2776_s2 + $0x4b0] sm:$0xff]  ;;  %v1405_v33 = vld [vmem:[%s2776_s2 + $0x498] sm:$0xff] }
  0x73   :  { %1660 = vmatprep.subr.mxu1 %v1362_v34  ;;  %497 = vmatprep.mubr.f32.mxu0 %v1723_v3 }
  0x74   :  { %743 = vmatpush1.msra.mxu0 %v1360_v36  ;;  %1661 = vmatpush3.msra.mxu1 %v1362_v34  ;;  %v1403_v34 = vld [vmem:[%s2776_s2 + $0x488] sm:$0xff]  ;;  %v1402_v36 = vld [vmem:[%s2776_s2 + $0x480] sm:$0xff] }
  0x75   :  { %498 = vmatmul.mubr.f32.gmra.mxu0 %v2221_v11  ;;  %744 = vmatprep.subr.mxu0 %v1358_v37 }
  0x76   :  { %1662 = vmatprep.subr.mxu1 %v1359_v38  ;;  %745 = vmatpush1.msra.mxu0 %v1357_v39 }
  0x77   :  { %1663 = vmatpush3.msra.mxu1 %v1359_v38  ;;  %746 = vmatprep.subr.mxu0 %v1355_v40 }
  0x78   :  { %1664 = vmatprep.subr.mxu1 %v1356_v41  ;;  %747 = vmatpush1.msra.mxu0 %v1354_v44 }
  0x79   :  { %780 = vmatprep.mubr.f32.mxu0 %v1723_v3  ;;  %1665 = vmatpush3.msra.mxu1 %v1356_v41 }
  0x7a   :  { %781 = vmatmul.mubr.f32.vlgmr.msra.gmra.mxu0 %v1902_v49  ;;  %1666 = vmatprep.mubr.f32.mxu1 %v1902_v49  ;;  %v1442_v49 = vld [vmem:[%s2776_s2 + $0x5c0] sm:$0xff] }
  0x7b   :  { %1031 = vmatprep.subr.mxu0 %v1448_v45  ;;  %1678 = vmatprep.subr.mxu1 %v1449_v46 }
  0x7c   :  { %1667 = vmatmul.mubr.f32.vlgmr.msra.gmra.mxu1 %v1913_v52  ;;  %1032 = vmatpush1.msra.mxu0 %v1447_v47 }
  0x7d   :  { %1679 = vmatpush3.msra.mxu1 %v1449_v46  ;;  %1033 = vmatprep.subr.mxu0 %v1445_v48 }
  0x7e   :  { %1680 = vmatprep.subr.mxu1 %v1446_v50  ;;  %786 = vmatprep.mubr.f32.mxu0 %v1723_v3 }
  0x7f   :  { %1034 = vmatpush1.msra.mxu0 %v1444_v51  ;;  %1681 = vmatpush3.msra.mxu1 %v1446_v50 }
  0x80   :  { %787 = vmatmul.mubr.f32.gmra.mxu0 %v1913_v52  ;;  %1035 = vmatprep.subr.mxu0 %v1442_v49  ;;  %v1437_v52 = vld [vmem:[%s2776_s2 + $0x598] sm:$0xff] }
  0x81   :  { %1682 = vmatprep.subr.mxu1 %v1443_v53  ;;  %1036 = vmatpush1.msra.mxu0 %v1441_v55 }
  0x82   :  { %1683 = vmatpush3.msra.mxu1 %v1443_v53  ;;  %1037 = vmatprep.subr.mxu0 %v1439_v57  ;;  %v19_v53 = vld [vmem:[%s2779_s3] sm:$0x7] }
  0x83   :  { %1684 = vmatprep.subr.mxu1 %v1440_v58  ;;  %792 = vmatprep.mubr.f32.mxu0 %v1723_v3 }
  0x84   :  { %1038 = vmatpush1.msra.mxu0 %v1438_v59  ;;  %1685 = vmatpush3.msra.mxu1 %v1440_v58 }
  0x85   :  { %793 = vmatmul.mubr.f32.gmra.mxu0 %v1953_v63  ;;  %1039 = vmatprep.subr.mxu0 %v1436_v60 }
  0x86   :  { %1686 = vmatprep.subr.mxu1 %v1437_v52  ;;  %1040 = vmatpush1.msra.mxu0 %v1435_v61 }
  0x87   :  { %1687 = vmatpush3.msra.mxu1 %v1437_v52  ;;  %1041 = vmatprep.subr.mxu0 %v1433_v0 }
  0x88   :  { %1688 = vmatprep.subr.mxu1 %v1434_v2  ;;  %798 = vmatprep.mubr.f32.mxu0 %v1723_v3 }
  0x89   :  { %1042 = vmatpush1.msra.mxu0 %v1432_v4  ;;  %1689 = vmatpush3.msra.mxu1 %v1434_v2 }
  0x8a   :  { %799 = vmatmul.mubr.f32.gmra.mxu0 %v1978_v7  ;;  %1043 = vmatprep.subr.mxu0 %v1430_v5 }
  0x8b   :  { %1690 = vmatprep.subr.mxu1 %v1431_v6  ;;  %1044 = vmatpush1.msra.mxu0 %v1429_v8 }
  0x8c   :  { %1691 = vmatpush3.msra.mxu1 %v1431_v6  ;;  %1045 = vmatprep.subr.mxu0 %v1427_v10 }
  0x8d   :  { %1692 = vmatprep.subr.mxu1 %v1428_v12  ;;  %804 = vmatprep.mubr.f32.mxu0 %v1723_v3 }
  0x8e   :  { %1046 = vmatpush1.msra.mxu0 %v1426_v13  ;;  %1693 = vmatpush3.msra.mxu1 %v1428_v12 }
  0x8f   :  { %805 = vmatmul.mubr.f32.gmra.mxu0 %v2003_v14  ;;  %1047 = vmatprep.subr.mxu0 %v1424_v15 }
  0x90   :  { %1694 = vmatprep.subr.mxu1 %v1425_v16  ;;  %1048 = vmatpush1.msra.mxu0 %v1423_v17 }
  0x91   :  { %1695 = vmatpush3.msra.mxu1 %v1425_v16  ;;  %1049 = vmatprep.subr.mxu0 %v1421_v18 }
  0x92   :  { %1696 = vmatprep.subr.mxu1 %v1422_v19  ;;  %810 = vmatprep.mubr.f32.mxu0 %v1723_v3 }
  0x93   :  { %1669 = vmatprep.mubr.f32.mxu1 %v1953_v63  ;;  %1050 = vmatpush1.msra.mxu0 %v1420_v20  ;;  %v1416_v63 = vld [vmem:[%s2776_s2 + $0x4f0] sm:$0xff] }
  0x94   :  { %1697 = vmatpush3.msra.mxu1 %v1422_v19  ;;  %811 = vmatmul.mubr.f32.gmra.mxu0 %v2028_v21 }
  0x95   :  { %1670 = vmatmul.mubr.f32.gmra.mxu1 %v1978_v7  ;;  %1051 = vmatprep.subr.mxu0 %v1418_v22  ;;  %v1412_v7 = vld [vmem:[%s2776_s2 + $0x4d0] sm:$0xff] }
  0x96   :  { %1698 = vmatprep.subr.mxu1 %v1419_v23  ;;  %1052 = vmatpush1.msra.mxu0 %v1417_v24 }
  0x97   :  { %1699 = vmatpush3.msra.mxu1 %v1419_v23  ;;  %1053 = vmatprep.subr.mxu0 %v1415_v25 }
  0x98   :  { %1700 = vmatprep.subr.mxu1 %v1416_v63  ;;  %816 = vmatprep.mubr.f32.mxu0 %v1723_v3 }
  0x99   :  { %1672 = vmatprep.mubr.f32.mxu1 %v2003_v14  ;;  %1054 = vmatpush1.msra.mxu0 %v1414_v26  ;;  %v1410_v14 = vld [vmem:[%s2776_s2 + $0x4c0] sm:$0xff] }
  0x9a   :  { %1701 = vmatpush3.msra.mxu1 %v1416_v63  ;;  %817 = vmatmul.mubr.f32.gmra.mxu0 %v2055_v28 }
  0x9b   :  { %1673 = vmatmul.mubr.f32.gmra.mxu1 %v2028_v21  ;;  %1055 = vmatprep.subr.mxu0 %v1412_v7  ;;  %v1406_v21 = vld [vmem:[%s2776_s2 + $0x4a0] sm:$0xff] }
  0x9c   :  { %1702 = vmatprep.subr.mxu1 %v1413_v27  ;;  %1056 = vmatpush1.msra.mxu0 %v1411_v29 }
  0x9d   :  { %1703 = vmatpush3.msra.mxu1 %v1413_v27  ;;  %1057 = vmatprep.subr.mxu0 %v1409_v30 }
  0x9e   :  { %1704 = vmatprep.subr.mxu1 %v1410_v14  ;;  %822 = vmatprep.mubr.f32.mxu0 %v1723_v3 }
  0x9f   :  { %1675 = vmatprep.mubr.f32.mxu1 %v2055_v28  ;;  %1058 = vmatpush1.msra.mxu0 %v1408_v31  ;;  %v1404_v28 = vld [vmem:[%s2776_s2 + $0x490] sm:$0xff] }
  0xa0   :  { %1705 = vmatpush3.msra.mxu1 %v1410_v14  ;;  %823 = vmatmul.mubr.f32.gmra.mxu0 %v2082_v35 }
  0xa1   :  { %1676 = vmatmul.mubr.f32.gmra.mxu1 %v2082_v35  ;;  %1059 = vmatprep.subr.mxu0 %v1406_v21 }
  0xa2   :  { %1706 = vmatprep.subr.mxu1 %v1407_v32  ;;  %1060 = vmatpush1.msra.mxu0 %v1405_v33 }
  0xa3   :  { %1707 = vmatpush3.msra.mxu1 %v1407_v32  ;;  %1061 = vmatprep.subr.mxu0 %v1403_v34 }
  0xa4   :  { %1708 = vmatprep.subr.mxu1 %v1404_v28  ;;  %1062 = vmatpush1.msra.mxu0 %v1402_v36 }
  0xa5   :  { %1095 = vmatprep.mubr.f32.mxu0 %v1723_v3  ;;  %1709 = vmatpush3.msra.mxu1 %v1404_v28 }
  0xa6   :  { %1710 = vmatprep.mubr.f32.mxu1 %v2109_v42  ;;  %1096 = vmatmul.mubr.f32.vlgmr.msra.gmra.mxu0 %v2109_v42 }
  0xa7   :  { %1711 = vmatmul.mubr.f32.vlgmr.msra.gmra.mxu1 %v2114_v43  ;;  %1101 = vmatprep.mubr.f32.mxu0 %v1723_v3 }
  0xa8   :  { %1713 = vmatprep.mubr.f32.mxu1 %v2148_v54 }
  0xaa   :  { %1102 = vmatmul.mubr.f32.gmra.mxu0 %v2114_v43 }
  0xab   :  { %1714 = vmatmul.mubr.f32.gmra.mxu1 %v2157_v56  ;;  %1107 = vmatprep.mubr.f32.mxu0 %v1723_v3 }
  0xac   :  { %1716 = vmatprep.mubr.f32.mxu1 %v2180_v62 }
  0xae   :  { %1108 = vmatmul.mubr.f32.gmra.mxu0 %v2148_v54 }
  0xaf   :  { %1717 = vmatmul.mubr.f32.gmra.mxu1 %v2189_v1  ;;  %1113 = vmatprep.mubr.f32.mxu0 %v1723_v3 }
  0xb0   :  { %1719 = vmatprep.mubr.f32.mxu1 %v2212_v9 }
  0xb2   :  { %1114 = vmatmul.mubr.f32.gmra.mxu0 %v2157_v56 }
  0xb3   :  { %1720 = vmatmul.mubr.f32.gmra.mxu1 %v2221_v11  ;;  %1119 = vmatprep.mubr.f32.mxu0 %v1723_v3 }
  0xb6   :  { %1120 = vmatmul.mubr.f32.gmra.mxu0 %v2180_v62 }
  0xb7   :  { %1125 = vmatprep.mubr.f32.mxu0 %v1723_v3 }
  0xba   :  { %1126 = vmatmul.mubr.f32.gmra.mxu0 %v2189_v1 }
  0xbb   :  { %1131 = vmatprep.mubr.f32.mxu0 %v1723_v3 }
  0xbe   :  { %1132 = vmatmul.mubr.f32.gmra.mxu0 %v2212_v9 }
  0xbf   :  { %1137 = vmatprep.mubr.f32.mxu0 %v1723_v3 }
  0xc2   :  { %1138 = vmatmul.mubr.f32.gmra.mxu0 %v2221_v11  ;;  %v295_v11 = vlaneseq }
  0xc4   :  { %v2520_v46 = vshrl.u32 %v295_v11, 7 }
  0xc6   :  { %v297_v51 = vsub.s32 0, %v2520_v46  ;;  %v305_v55 = vsub.s32 2, %v2520_v46  ;;  %v301_v57 = vsub.s32 1, %v2520_v46 }
  0xc8   :  { %v2536_v59 = vrot.slane %v19_v53, %v297_v51  ;;  %v306_v52 = vrot.slane %v19_v53, %v305_v55  ;;  %v2544_v0 = vrot.slane %v19_v53, %v301_v57 }
  0xe2   :  { %v142_v35 = vpop.f32.mrf.mxu0 }
  0xe3   :  { %v310_v4 = vadd.f32 %v2536_v59, %v142_v35 }
  0xe4   :  { %v144_v42 = vpop.f32.mrf.mxu0  ;;  %v1580_v1 = vpop.f32.mrf.mxu1 }
  0xe5   :  { %v315_v5 = vadd.f32 %v1580_v1, %v306_v52  ;;  %v311_v8 = vadd.f32 %v2544_v0, %v144_v42 }
  0xe6   :  { %v255_v9 = vpop.f32.mrf.mxu1 }
  0xe7   :  { %v312_v13 = vadd.f32 %v306_v52, %v255_v9 }
  0xe8   :  { %v148_v43 = vpop.f32.mrf.mxu0 }
  0xe9   :  { %v313_v20 = vadd.f32 %v2536_v59, %v148_v43 }
  0xea   :  { %v150_v54 = vpop.f32.mrf.mxu0 }
  0xeb   :  { %v314_v24 = vadd.f32 %v2544_v0, %v150_v54 }
  0xed   :  { %v154_v56 = vpop.f32.mrf.mxu0 }
  0xee   :  { %v316_v30 = vadd.f32 %v2536_v59, %v154_v56 }
  0xef   :  { %v2506_v37 = vpop.f32.mrf.mxu0 }
  0xf0   :  { %v317_v33 = vadd.f32 %v2544_v0, %v2506_v37 }
  0xf2   :  { %v2508_v62 = vpop.f32.mrf.mxu0 }
  0xf3   :  { %v319_v54 = vadd.f32 %v2536_v59, %v2508_v62 }
  0xf4   :  { %v2510_v38 = vpop.f32.mrf.mxu0 }
  0xf5   :  { %v320_v11 = vadd.f32 %v2544_v0, %v2510_v38 }
  0xf7   :  { %v2512_v39 = vpop.f32.mrf.mxu0 }
  0xf9   :  { %v2514_v40 = vpop.f32.mrf.mxu0 }
  0xfc   :  { %v2516_v3 = vpop.f32.mrf.mxu0 }
  0xfd   :  { %v1583_v41 = vpop.f32.mrf.mxu1 }
  0xfe   :  { %v2518_v44 = vpop.f32.mrf.mxu0  ;;  %v321_v22 = vadd.f32 %v1583_v41, %v306_v52 }
  0xff   :  { %v265_v45 = vpop.f32.mrf.mxu1 }
 0x100   :  { %v318_v63 = vadd.f32 %v306_v52, %v265_v45 }
 0x102   :  { %v2522_v47 = vpop.f32.mrf.mxu0 }
 0x103   :  { %v1586_v48 = vpop.f32.mrf.mxu1 }
 0x104   :  { %v2524_v50 = vpop.f32.mrf.mxu0  ;;  %v327_v31 = vadd.f32 %v1586_v48, %v306_v52 }
 0x105   :  { %v275_v49 = vpop.f32.mrf.mxu1 }
 0x106   :  { %v324_v28 = vadd.f32 %v306_v52, %v275_v49 }
 0x108   :  { %v2532_v58 = vpop.f32.mrf.mxu0 }
 0x109   :  { %v1589_v60 = vpop.f32.mrf.mxu1 }
 0x10a   :  { %v2540_v61 = vpop.f32.mrf.mxu0  ;;  %v333_v37 = vadd.f32 %v1589_v60, %v306_v52  ;;  %v322_v60 = vadd.f32 %v2536_v59, %v2512_v39 }
 0x10b   :  { %v285_v2 = vpop.f32.mrf.mxu1 }
 0x10c   :  { %v330_v45 = vadd.f32 %v306_v52, %v285_v2 }
 0x10e   :  { %v457_v6 = vpop.f32.mrf.mxu0 }
 0x10f   :  { %v609_v10 = vadd.f32 %v457_v6, %v310_v4  ;;  %v1624_v12 = vpop.f32.mrf.mxu1  ;;  %v323_v4 = vadd.f32 %v2544_v0, %v2514_v40  ;;  %v326_v40 = vadd.f32 %v2544_v0, %v2518_v44 }
 0x110   :  { %v614_v15 = vadd.f32 %v1624_v12, %v315_v5  ;;  %v459_v16 = vpop.f32.mrf.mxu0 }
 0x111   :  { %633 = vst [vmem:[%s2780_s4] sm:$0xff] %v609_v10  ;;  %v610_v17 = vadd.f32 %v459_v16, %v311_v8  ;;  %v570_v18 = vpop.f32.mrf.mxu1  ;;  %v325_v8 = vadd.f32 %v2536_v59, %v2516_v3  ;;  %v328_v16 = vadd.f32 %v2536_v59, %v2522_v47 }
 0x112   :  { %638 = vst [vmem:[%s2780_s4 + $0x28] sm:$0xff] %v614_v15  ;;  %v611_v19 = vadd.f32 %v570_v18, %v312_v13 }
 0x113   :  { %634 = vst [vmem:[%s2780_s4 + $0x8] sm:$0xff] %v610_v17  ;;  %v329_v17 = vadd.f32 %v2544_v0, %v2524_v50 }
 0x114   :  { %635 = vst [vmem:[%s2780_s4 + $0x10] sm:$0xff] %v611_v19  ;;  %v463_v23 = vpop.f32.mrf.mxu0 }
 0x115   :  { %v612_v25 = vadd.f32 %v463_v23, %v313_v20  ;;  %v331_v20 = vadd.f32 %v2536_v59, %v2532_v58 }
 0x116   :  { %v465_v26 = vpop.f32.mrf.mxu0 }
 0x117   :  { %636 = vst [vmem:[%s2780_s4 + $0x18] sm:$0xff] %v612_v25  ;;  %v613_v7 = vadd.f32 %v465_v26, %v314_v24  ;;  %v1627_v27 = vpop.f32.mrf.mxu1 }
 0x118   :  { %v620_v29 = vadd.f32 %v1627_v27, %v321_v22  ;;  %v332_v22 = vadd.f32 %v2544_v0, %v2540_v61 }
 0x119   :  { %637 = vst [vmem:[%s2780_s4 + $0x20] sm:$0xff] %v613_v7  ;;  %v580_v14 = vpop.f32.mrf.mxu1 }
 0x11a   :  { %644 = vst [vmem:[%s2780_s4 + $0x58] sm:$0xff] %v620_v29  ;;  %v469_v21 = vpop.f32.mrf.mxu0  ;;  %v617_v32 = vadd.f32 %v580_v14, %v318_v63 }
 0x11b   :  { %v615_v34 = vadd.f32 %v469_v21, %v316_v30 }
 0x11c   :  { %641 = vst [vmem:[%s2780_s4 + $0x40] sm:$0xff] %v617_v32  ;;  %v471_v36 = vpop.f32.mrf.mxu0 }
 0x11d   :  { %639 = vst [vmem:[%s2780_s4 + $0x30] sm:$0xff] %v615_v34  ;;  %v616_v35 = vadd.f32 %v471_v36, %v317_v33  ;;  %v1630_v42 = vpop.f32.mrf.mxu1 }
 0x11e   :  { %v626_v43 = vadd.f32 %v1630_v42, %v327_v31  ;;  %v1353_v42 = vld [vmem:[%s2779_s3 + $0x3] sm:$0x7] }
 0x11f   :  { %640 = vst [vmem:[%s2780_s4 + $0x38] sm:$0xff] %v616_v35  ;;  %v590_v56 = vpop.f32.mrf.mxu1 }
 0x120   :  { %650 = vst [vmem:[%s2780_s4 + $0x88] sm:$0xff] %v626_v43  ;;  %v475_v1 = vpop.f32.mrf.mxu0  ;;  %v623_v9 = vadd.f32 %v590_v56, %v324_v28 }
 0x121   :  { %v618_v41 = vadd.f32 %v475_v1, %v319_v54  ;;  %v2668_v54 = vrot.slane %v1353_v42, %v297_v51 }
 0x122   :  { %647 = vst [vmem:[%s2780_s4 + $0x70] sm:$0xff] %v623_v9  ;;  %v477_v62 = vpop.f32.mrf.mxu0  ;;  %v2676_v9 = vrot.slane %v1353_v42, %v301_v57 }
 0x123   :  { %642 = vst [vmem:[%s2780_s4 + $0x48] sm:$0xff] %v618_v41  ;;  %v619_v48 = vadd.f32 %v477_v62, %v320_v11  ;;  %v1633_v49 = vpop.f32.mrf.mxu1 }
 0x124   :  { %v632_v53 = vadd.f32 %v1633_v49, %v333_v37  ;;  %v946_v37 = vrot.slane %v1353_v42, %v305_v55 }
 0x125   :  { %643 = vst [vmem:[%s2780_s4 + $0x50] sm:$0xff] %v619_v48  ;;  %v600_v38 = vpop.f32.mrf.mxu1 }
 0x126   :  { %656 = vst [vmem:[%s2780_s4 + $0xb8] sm:$0xff] %v632_v53  ;;  %v481_v52 = vpop.f32.mrf.mxu0  ;;  %v629_v2 = vadd.f32 %v600_v38, %v330_v45 }
 0x127   :  { %v621_v5 = vadd.f32 %v481_v52, %v322_v60 }
 0x128   :  { %653 = vst [vmem:[%s2780_s4 + $0xa0] sm:$0xff] %v629_v2  ;;  %v483_v39 = vpop.f32.mrf.mxu0 }
 0x129   :  { %645 = vst [vmem:[%s2780_s4 + $0x60] sm:$0xff] %v621_v5  ;;  %v622_v6 = vadd.f32 %v483_v39, %v323_v4 }
 0x12b   :  { %646 = vst [vmem:[%s2780_s4 + $0x68] sm:$0xff] %v622_v6  ;;  %v487_v10 = vpop.f32.mrf.mxu0 }
 0x12c   :  { %v624_v12 = vadd.f32 %v487_v10, %v325_v8 }
 0x12d   :  { %v489_v13 = vpop.f32.mrf.mxu0 }
 0x12e   :  { %648 = vst [vmem:[%s2780_s4 + $0x78] sm:$0xff] %v624_v12  ;;  %v625_v15 = vadd.f32 %v489_v13, %v326_v40 }
 0x130   :  { %649 = vst [vmem:[%s2780_s4 + $0x80] sm:$0xff] %v625_v15  ;;  %v493_v3 = vpop.f32.mrf.mxu0 }
 0x131   :  { %v627_v18 = vadd.f32 %v493_v3, %v328_v16 }
 0x132   :  { %v495_v44 = vpop.f32.mrf.mxu0 }
 0x133   :  { %651 = vst [vmem:[%s2780_s4 + $0x90] sm:$0xff] %v627_v18  ;;  %v628_v19 = vadd.f32 %v495_v44, %v329_v17 }
 0x135   :  { %652 = vst [vmem:[%s2780_s4 + $0x98] sm:$0xff] %v628_v19  ;;  %v499_v47 = vpop.f32.mrf.mxu0 }
 0x136   :  { %v630_v23 = vadd.f32 %v499_v47, %v331_v20 }
 0x137   :  { %v501_v50 = vpop.f32.mrf.mxu0 }
 0x138   :  { %654 = vst [vmem:[%s2780_s4 + $0xa8] sm:$0xff] %v630_v23  ;;  %v631_v24 = vadd.f32 %v501_v50, %v332_v22 }
 0x13a   :  { %655 = vst [vmem:[%s2780_s4 + $0xb0] sm:$0xff] %v631_v24  ;;  %v782_v58 = vpop.f32.mrf.mxu0 }
 0x13b   :  { %v950_v41 = vadd.f32 %v2668_v54, %v782_v58 }
 0x13c   :  { %v784_v59 = vpop.f32.mrf.mxu0  ;;  %v1668_v0 = vpop.f32.mrf.mxu1 }
 0x13d   :  { %v955_v45 = vadd.f32 %v1668_v0, %v946_v37  ;;  %v951_v48 = vadd.f32 %v2676_v9, %v784_v59 }
 0x13e   :  { %v895_v14 = vpop.f32.mrf.mxu1 }
 0x13f   :  { %v952_v53 = vadd.f32 %v946_v37, %v895_v14 }
 0x140   :  { %v788_v25 = vpop.f32.mrf.mxu0 }
 0x141   :  { %v953_v55 = vadd.f32 %v2668_v54, %v788_v25 }
 0x142   :  { %v790_v63 = vpop.f32.mrf.mxu0 }
 0x143   :  { %v954_v39 = vadd.f32 %v2676_v9, %v790_v63 }
 0x145   :  { %v794_v26 = vpop.f32.mrf.mxu0 }
 0x146   :  { %v956_v13 = vadd.f32 %v2668_v54, %v794_v26 }
 0x147   :  { %v796_v7 = vpop.f32.mrf.mxu0 }
 0x148   :  { %v957_v44 = vadd.f32 %v2676_v9, %v796_v7 }
 0x14a   :  { %v2645_v27 = vpop.f32.mrf.mxu0 }
 0x14b   :  { %v959_v50 = vadd.f32 %v2668_v54, %v2645_v27 }
 0x14c   :  { %v2647_v61 = vpop.f32.mrf.mxu0 }
 0x14d   :  { %v960_v26 = vadd.f32 %v2676_v9, %v2647_v61 }
 0x14f   :  { %v2649_v29 = vpop.f32.mrf.mxu0 }
 0x151   :  { %v2651_v30 = vpop.f32.mrf.mxu0 }
 0x152   :  { %v963_v42 = vadd.f32 %v2676_v9, %v2651_v30 }
 0x154   :  { %v2653_v31 = vpop.f32.mrf.mxu0 }
 0x155   :  { %v1671_v21 = vpop.f32.mrf.mxu1 }
 0x156   :  { %v2655_v32 = vpop.f32.mrf.mxu0  ;;  %v961_v60 = vadd.f32 %v1671_v21, %v946_v37  ;;  %v962_v21 = vadd.f32 %v2668_v54, %v2649_v29 }
 0x157   :  { %v905_v33 = vpop.f32.mrf.mxu1  ;;  %v966_v30 = vadd.f32 %v2676_v9, %v2655_v32 }
 0x158   :  { %v958_v2 = vadd.f32 %v946_v37, %v905_v33 }
 0x15a   :  { %v2657_v34 = vpop.f32.mrf.mxu0 }
 0x15b   :  { %v1674_v28 = vpop.f32.mrf.mxu1 }
 0x15c   :  { %v2659_v36 = vpop.f32.mrf.mxu0  ;;  %v967_v10 = vadd.f32 %v1674_v28, %v946_v37 }
 0x15d   :  { %v915_v35 = vpop.f32.mrf.mxu1 }
 0x15e   :  { %v964_v3 = vadd.f32 %v946_v37, %v915_v35 }
 0x160   :  { %v2664_v43 = vpop.f32.mrf.mxu0 }
 0x161   :  { %v1677_v56 = vpop.f32.mrf.mxu1 }
 0x162   :  { %v2672_v1 = vpop.f32.mrf.mxu0  ;;  %v973_v47 = vadd.f32 %v1677_v56, %v946_v37 }
 0x163   :  { %v925_v11 = vpop.f32.mrf.mxu1 }
 0x164   :  { %v970_v59 = vadd.f32 %v946_v37, %v925_v11  ;;  %v965_v37 = vadd.f32 %v2668_v54, %v2653_v31 }
 0x166   :  { %v1097_v62 = vpop.f32.mrf.mxu0 }
 0x167   :  { %v1249_v49 = vadd.f32 %v1097_v62, %v950_v41  ;;  %v1712_v51 = vpop.f32.mrf.mxu1 }
 0x168   :  { %v1254_v38 = vadd.f32 %v1712_v51, %v955_v45  ;;  %v1099_v52 = vpop.f32.mrf.mxu0  ;;  %v969_v51 = vadd.f32 %v2676_v9, %v2659_v36 }
 0x169   :  { %1273 = vst [vmem:[%s2781_s5] sm:$0xff] %v1249_v49  ;;  %v1250_v46 = vadd.f32 %v1099_v52, %v951_v48  ;;  %v1210_v57 = vpop.f32.mrf.mxu1  ;;  %v968_v48 = vadd.f32 %v2668_v54, %v2657_v34  ;;  %v972_v52 = vadd.f32 %v2676_v9, %v2672_v1 }
 0x16a   :  { %1278 = vst [vmem:[%s2781_s5 + $0x28] sm:$0xff] %v1254_v38  ;;  %v1251_v4 = vadd.f32 %v1210_v57, %v952_v53  ;;  %v1103_v5 = vpop.f32.mrf.mxu0 }
 0x16b   :  { %1274 = vst [vmem:[%s2781_s5 + $0x8] sm:$0xff] %v1250_v46  ;;  %v1252_v6 = vadd.f32 %v1103_v5, %v953_v55  ;;  %v1715_v8 = vpop.f32.mrf.mxu1 }
 0x16c   :  { %1275 = vst [vmem:[%s2781_s5 + $0x10] sm:$0xff] %v1251_v4  ;;  %v1260_v40 = vadd.f32 %v1715_v8, %v961_v60  ;;  %v1105_v12 = vpop.f32.mrf.mxu0  ;;  %v971_v60 = vadd.f32 %v2668_v54, %v2664_v43 }
 0x16d   :  { %1276 = vst [vmem:[%s2781_s5 + $0x18] sm:$0xff] %v1252_v6  ;;  %v1253_v15 = vadd.f32 %v1105_v12, %v954_v39  ;;  %v1220_v16 = vpop.f32.mrf.mxu1 }
 0x16e   :  { %1284 = vst [vmem:[%s2781_s5 + $0x58] sm:$0xff] %v1260_v40  ;;  %v1257_v17 = vadd.f32 %v1220_v16, %v958_v2  ;;  %v1109_v18 = vpop.f32.mrf.mxu0 }
 0x16f   :  { %1277 = vst [vmem:[%s2781_s5 + $0x20] sm:$0xff] %v1253_v15  ;;  %v1255_v19 = vadd.f32 %v1109_v18, %v956_v13  ;;  %v1718_v20 = vpop.f32.mrf.mxu1 }
 0x170   :  { %1281 = vst [vmem:[%s2781_s5 + $0x40] sm:$0xff] %v1257_v17  ;;  %v1266_v22 = vadd.f32 %v1718_v20, %v967_v10  ;;  %v1111_v23 = vpop.f32.mrf.mxu0 }
 0x171   :  { %1279 = vst [vmem:[%s2781_s5 + $0x30] sm:$0xff] %v1255_v19  ;;  %v1256_v24 = vadd.f32 %v1111_v23, %v957_v44  ;;  %v1230_v58 = vpop.f32.mrf.mxu1 }
 0x172   :  { %1290 = vst [vmem:[%s2781_s5 + $0x88] sm:$0xff] %v1266_v22  ;;  %v1263_v25 = vadd.f32 %v1230_v58, %v964_v3  ;;  %v1115_v63 = vpop.f32.mrf.mxu0 }
 0x173   :  { %1280 = vst [vmem:[%s2781_s5 + $0x38] sm:$0xff] %v1256_v24  ;;  %v1258_v7 = vadd.f32 %v1115_v63, %v959_v50  ;;  %v1721_v27 = vpop.f32.mrf.mxu1 }
 0x174   :  { %1287 = vst [vmem:[%s2781_s5 + $0x70] sm:$0xff] %v1263_v25  ;;  %v1272_v0 = vadd.f32 %v1721_v27, %v973_v47  ;;  %v1117_v14 = vpop.f32.mrf.mxu0 }
 0x175   :  { %1282 = vst [vmem:[%s2781_s5 + $0x48] sm:$0xff] %v1258_v7  ;;  %v1259_v61 = vadd.f32 %v1117_v14, %v960_v26  ;;  %v1240_v33 = vpop.f32.mrf.mxu1 }
 0x176   :  { %1296 = vst [vmem:[%s2781_s5 + $0xb8] sm:$0xff] %v1272_v0  ;;  %v1269_v28 = vadd.f32 %v1240_v33, %v970_v59  ;;  %v1121_v35 = vpop.f32.mrf.mxu0 }
 0x177   :  { %1283 = vst [vmem:[%s2781_s5 + $0x50] sm:$0xff] %v1259_v61  ;;  %v1261_v29 = vadd.f32 %v1121_v35, %v962_v21 }
 0x178   :  { %1293 = vst [vmem:[%s2781_s5 + $0xa0] sm:$0xff] %v1269_v28  ;;  %v1123_v56 = vpop.f32.mrf.mxu0 }
 0x179   :  { %1285 = vst [vmem:[%s2781_s5 + $0x60] sm:$0xff] %v1261_v29  ;;  %v1262_v11 = vadd.f32 %v1123_v56, %v963_v42 }
 0x17a   :  { %v1127_v41 = vpop.f32.mrf.mxu0 }
 0x17b   :  { %1286 = vst [vmem:[%s2781_s5 + $0x68] sm:$0xff] %v1262_v11  ;;  %v1264_v45 = vadd.f32 %v1127_v41, %v965_v37 }
 0x17c   :  { %v1129_v62 = vpop.f32.mrf.mxu0 }
 0x17d   :  { %1288 = vst [vmem:[%s2781_s5 + $0x78] sm:$0xff] %v1264_v45  ;;  %v1265_v31 = vadd.f32 %v1129_v62, %v966_v30 }
 0x17e   :  { %v1133_v49 = vpop.f32.mrf.mxu0 }
 0x17f   :  { %1289 = vst [vmem:[%s2781_s5 + $0x80] sm:$0xff] %v1265_v31  ;;  %v1267_v32 = vadd.f32 %v1133_v49, %v968_v48 }
 0x180   :  { %v1135_v53 = vpop.f32.mrf.mxu0 }
 0x181   :  { %1291 = vst [vmem:[%s2781_s5 + $0x90] sm:$0xff] %v1267_v32  ;;  %v1268_v34 = vadd.f32 %v1135_v53, %v969_v51 }
 0x182   :  { %v1139_v38 = vpop.f32.mrf.mxu0 }
 0x183   :  { %1292 = vst [vmem:[%s2781_s5 + $0x98] sm:$0xff] %v1268_v34  ;;  %v1270_v36 = vadd.f32 %v1139_v38, %v971_v60 }
 0x184   :  { %v1141_v55 = vpop.f32.mrf.mxu0 }
 0x185   :  { %1294 = vst [vmem:[%s2781_s5 + $0xa8] sm:$0xff] %v1270_v36  ;;  %v1271_v43 = vadd.f32 %v1141_v55, %v972_v52 }
 0x187   :  { %1295 = vst [vmem:[%s2781_s5 + $0xb0] sm:$0xff] %v1271_v43 }

// kernel: _lambda_.6
= control target key start
LH: loop header
LB: loop body
LE: loop exit
PB: predicated region body
PF: predicated region fallthrough
CT: control target
= control target key end

     0   :  { %12 = vsyncpa [#allocation5], 0  ;;  %s6236_s0 = inlined_call_operand.vmem [shape: f32[64,384], index: 0, kind: input, shape index: {}]   ;;  %s6237_s1 = inlined_call_operand.vmem [shape: f32[64,384], index: 1, kind: input, shape index: {}]   ;;  %s6238_s2 = inlined_call_operand.hbm [shape: f32[2,128,384], index: 2, kind: input, shape index: {}]   ;;  %s6239_s3 = inlined_call_operand.hbm [shape: f32[2,1,128], index: 3, kind: input, shape index: {}]   ;;  %s6240_s4 = inlined_call_operand.vmem [shape: f32[64,128], index: 4, kind: output, shape index: {0}]   ;;  %s6241_s5 = inlined_call_operand.vmem [shape: f32[64,128], index: 5, kind: output, shape index: {1}]   ;;  %s6242_s6 = inlined_call_operand.hbm [shape: f32[2,8,128], index: 6, kind: output, shape index: {2}]  }
   0x1   :  { %13 = vsyncpa [#allocation8], 0 }
   0x2   :  { %14 = vsyncpa [#allocation6], 0  ;;  %s4225_s21 = smov [#allocation4]  }
   0x3   :  { %s33_s22 = sshll.u32 %s4225_s21, 4  ;;  %s34_s22 = int_to_ptr.vmem [resolvable:$true] %s33_s22 }
   0x4   :  { %s4167_s23 = scalar_lea.vmem %s34_s22, 12288  ;;  %p4172_p1 = scmp.lt.s32.totalorder %s34_s22, %s34_s22 }
   0x5   :  { %p4168_p0 = scmp.ne.s32.totalorder %s34_s22, %s4167_s23  ;;  %p4173_p2 = scmp.lt.s32.totalorder %s4167_s23, %s4167_s23 }
   0x7   :  { %p4174_p3 = por %p4173_p2, %p4172_p1 }
   0x9   :  { %p4175_p4 = pnand %p4174_p3, %p4168_p0 }
   0xb   :  { %4178 = shalt.err (!%p4175_p4)
}
   0xc   :  { %s4226_s24 = smov 384   ;;  %s4227_s25 = smov 24  }
   0xd   :  { %39 = dma.hbm_to_vmem [thread:$0]  %s6238_s2, 12288, %s34_s22, [#allocation5], %s4226_s24, %s4226_s24, %s4227_s25  }
   0xe   :  { %s4228_s28 = smov [#allocation7]  }
   0xf   :  { %s45_s29 = sshll.u32 %s4228_s28, 4  ;;  %s46_s29 = int_to_ptr.vmem [resolvable:$true] %s45_s29 }
  0x10   :  { %s4187_s30 = scalar_lea.vmem %s46_s29, 32  ;;  %p4192_p6 = scmp.lt.s32.totalorder %s46_s29, %s46_s29 }
  0x11   :  { %p4188_p5 = scmp.ne.s32.totalorder %s46_s29, %s4187_s30  ;;  %p4193_p7 = scmp.lt.s32.totalorder %s4187_s30, %s4187_s30 }
  0x13   :  { %p4194_p8 = por %p4193_p7, %p4192_p6 }
  0x15   :  { %p4195_p9 = pnand %p4194_p8, %p4188_p5 }
  0x17   :  { %4198 = shalt.err (!%p4195_p9)
}
  0x18   :  { %s4229_s7 = smov 16   ;;  %s4230_s8 = smov 1  }
  0x19   :  { %51 = dma.hbm_to_vmem [thread:$0]  %s6239_s3, 32, %s46_s29, [#allocation8], %s4229_s7, %s4229_s7, %s4230_s8  }
  0x1a   :  { %4219 = dma.done.wait [#allocation5], 12288  }
  0x1b   :  { %4220 = vsyncadd [#allocation5], 4294955008 }
  0x1c   :  { %4221 = dma.done.wait [#allocation8], 32  }
  0x1d   :  { %4222 = vsyncadd [#allocation8], 4294967264  ;;  %v6320_v0 = vmov 0.0   ;;  %vm4232_vm0 = vmmov 0   ;;  %v4281_v1 = vld [vmem:[#allocation4 + $0x170] sm:$0xff]  ;;  %v4283_v2 = vld [vmem:[#allocation4 + $0x168] sm:$0xff] }
  0x1e   :  { %3232 = vmatprep.subr.mxu1 %v6320_v0  ;;  %266 = vmatprep.mubr.f32.mxu0 %v6320_v0  ;;  %6474 = vst [vmem:[#allocation13_spill] sm:$0xff] %v4283_v2  ;;  %v4285_v3 = vld [vmem:[#allocation4 + $0x158] sm:$0xff]  ;;  %v4288_v4 = vld [vmem:[#allocation4 + $0x150] sm:$0xff]  ;;  %v4291_v5 = vld [vmem:[#allocation4 + $0x140] sm:$0xff]  ;;  %s4233_s30 = smov [#allocation9]  }
  0x1f   :  { %3264 = vmatprep.mubr.msk.f32.mxu1 %vm4232_vm0, %v6320_v0  ;;  %202 = vmatprep.subr.mxu0 %v4281_v1  ;;  %v4294_v6 = vld [vmem:[#allocation4 + $0x138] sm:$0xff]  ;;  %v4297_v7 = vld [vmem:[#allocation4 + $0x128] sm:$0xff]  ;;  %v4300_v8 = vld [vmem:[#allocation4 + $0x120] sm:$0xff]  ;;  %s2889_s7 = sshll.u32 %s4233_s30, 4  ;;  %s2890_s7 = int_to_ptr.vmem [resolvable:$true] %s2889_s7 }
  0x20   :  { %203 = vmatpush1.msra.mxu0 %v4283_v2  ;;  %v4303_v9 = vld [vmem:[#allocation4 + $0x110] sm:$0xff]  ;;  %v4306_v10 = vld [vmem:[#allocation4 + $0x108] sm:$0xff]  ;;  %v4309_v11 = vld [vmem:[#allocation4 + $0xf8] sm:$0xff]  ;;  %p4204_p11 = scmp.lt.s32.totalorder %s2890_s7, %s2890_s7 }
  0x21   :  { %204 = vmatprep.subr.mxu0 %v4285_v3  ;;  %v4312_v12 = vld [vmem:[#allocation4 + $0xf0] sm:$0xff]  ;;  %v4315_v13 = vld [vmem:[#allocation4 + $0xe0] sm:$0xff]  ;;  %v4317_v14 = vld [vmem:[#allocation4 + $0x178] sm:$0xff] }
  0x22   :  { %205 = vmatpush1.msra.mxu0 %v4288_v4  ;;  %v4320_v15 = vld [vmem:[#allocation4 + $0xd8] sm:$0xff]  ;;  %3233 = vmatpush3.msra.mxu1 %v4317_v14  ;;  %v4323_v16 = vld [vmem:[#allocation4 + $0x160] sm:$0xff]  ;;  %v4326_v17 = vld [vmem:[#allocation4 + $0xc8] sm:$0xff] }
  0x23   :  { %206 = vmatprep.subr.mxu0 %v4291_v5  ;;  %3234 = vmatprep.subr.mxu1 %v6320_v0  ;;  %v4329_v18 = vld [vmem:[#allocation4 + $0x148] sm:$0xff]  ;;  %v4332_v19 = vld [vmem:[#allocation4 + $0xc0] sm:$0xff]  ;;  %v4336_v20 = vld [vmem:[#allocation4 + $0xb0] sm:$0xff] }
  0x24   :  { %207 = vmatpush1.msra.mxu0 %v4294_v6  ;;  %3235 = vmatpush3.msra.mxu1 %v4323_v16  ;;  %v4339_v21 = vld [vmem:[#allocation4 + $0x130] sm:$0xff]  ;;  %v4342_v22 = vld [vmem:[#allocation4 + $0xa8] sm:$0xff]  ;;  %v4346_v23 = vld [vmem:[#allocation4 + $0x98] sm:$0xff] }
  0x25   :  { %208 = vmatprep.subr.mxu0 %v4297_v7  ;;  %3236 = vmatprep.subr.mxu1 %v6320_v0  ;;  %v4349_v24 = vld [vmem:[#allocation4 + $0x118] sm:$0xff]  ;;  %v4352_v25 = vld [vmem:[#allocation4 + $0x90] sm:$0xff]  ;;  %v4356_v26 = vld [vmem:[#allocation4 + $0x80] sm:$0xff] }
  0x26   :  { %209 = vmatpush1.msra.mxu0 %v4300_v8  ;;  %3237 = vmatpush3.msra.mxu1 %v4329_v18  ;;  %v4359_v27 = vld [vmem:[#allocation4 + $0x100] sm:$0xff]  ;;  %v4362_v28 = vld [vmem:[#allocation4 + $0x78] sm:$0xff]  ;;  %v4366_v29 = vld [vmem:[#allocation4 + $0x68] sm:$0xff] }
  0x27   :  { %210 = vmatprep.subr.mxu0 %v4303_v9  ;;  %3238 = vmatprep.subr.mxu1 %v6320_v0  ;;  %6475 = vst [vmem:[#allocation14_spill] sm:$0xff] %v4366_v29  ;;  %v4369_v30 = vld [vmem:[#allocation4 + $0xe8] sm:$0xff]  ;;  %v4372_v31 = vld [vmem:[#allocation4 + $0x60] sm:$0xff]  ;;  %v4376_v32 = vld [vmem:[#allocation4 + $0x50] sm:$0xff] }
  0x28   :  { %211 = vmatpush1.msra.mxu0 %v4306_v10  ;;  %3239 = vmatpush3.msra.mxu1 %v4339_v21  ;;  %6476 = vst [vmem:[#allocation15_spill] sm:$0xff] %v4372_v31  ;;  %6477 = vst [vmem:[#allocation16_spill] sm:$0xff] %v4376_v32  ;;  %v4379_v33 = vld [vmem:[#allocation4 + $0xd0] sm:$0xff]  ;;  %v4382_v34 = vld [vmem:[#allocation4 + $0x48] sm:$0xff] }
  0x29   :  { %212 = vmatprep.subr.mxu0 %v4309_v11  ;;  %3240 = vmatprep.subr.mxu1 %v6320_v0  ;;  %6478 = vst [vmem:[#allocation17_spill] sm:$0xff] %v4382_v34  ;;  %v4386_v35 = vld [vmem:[#allocation4 + $0x38] sm:$0xff]  ;;  %v4392_v37 = vld [vmem:[#allocation4 + $0x30] sm:$0xff]  ;;  %v4396_v38 = vld [vmem:[#allocation4 + $0x20] sm:$0xff] }
  0x2a   :  { %213 = vmatpush1.msra.mxu0 %v4312_v12  ;;  %3241 = vmatpush3.msra.mxu1 %v4349_v24  ;;  %6479 = vst [vmem:[#allocation18_spill] sm:$0xff] %v4386_v35  ;;  %v4389_v36 = vld [vmem:[#allocation4 + $0xb8] sm:$0xff]  ;;  %6480 = vst [vmem:[#allocation19_spill] sm:$0xff] %v4392_v37  ;;  %v4399_v39 = vld [vmem:[#allocation4 + $0xa0] sm:$0xff] }
  0x2b   :  { %214 = vmatprep.subr.mxu0 %v4315_v13  ;;  %3242 = vmatprep.subr.mxu1 %v6320_v0  ;;  %6481 = vst [vmem:[#allocation20_spill] sm:$0xff] %v4396_v38  ;;  %v4402_v40 = vld [vmem:[#allocation4 + $0x18] sm:$0xff]  ;;  %v4406_v41 = vld [vmem:[#allocation4 + $0x8] sm:$0xff]  ;;  %v4412_v43 = vld [vmem:[#allocation4] sm:$0xff] }
  0x2c   :  { %215 = vmatpush1.msra.mxu0 %v4320_v15  ;;  %3243 = vmatpush3.msra.mxu1 %v4359_v27  ;;  %6482 = vst [vmem:[#allocation21_spill] sm:$0xff] %v4402_v40  ;;  %6483 = vst [vmem:[#allocation22_spill] sm:$0xff] %v4406_v41  ;;  %v4409_v42 = vld [vmem:[#allocation4 + $0x88] sm:$0xff]  ;;  %v4416_v44 = vld [vmem:[#allocation4 + $0x2f0] sm:$0xff] }
  0x2d   :  { %216 = vmatprep.subr.mxu0 %v4326_v17  ;;  %3244 = vmatprep.subr.mxu1 %v6320_v0  ;;  %6484 = vst [vmem:[#allocation23_spill] sm:$0xff] %v4409_v42  ;;  %6485 = vst [vmem:[#allocation24_spill] sm:$0xff] %v4412_v43  ;;  %v4420_v45 = vld [vmem:[#allocation4 + $0x2e8] sm:$0xff]  ;;  %v4423_v46 = vld [vmem:[#allocation4 + $0x70] sm:$0xff] }
  0x2e   :  { %217 = vmatpush1.msra.mxu0 %v4332_v19  ;;  %3245 = vmatpush3.msra.mxu1 %v4369_v30  ;;  %6486 = vst [vmem:[#allocation25_spill] sm:$0xff] %v4416_v44  ;;  %6487 = vst [vmem:[#allocation26_spill] sm:$0xff] %v4423_v46  ;;  %v4426_v47 = vld [vmem:[#allocation4 + $0x2d8] sm:$0xff]  ;;  %v4431_v48 = vld [vmem:[#allocation4 + $0x2d0] sm:$0xff] }
  0x2f   :  { %218 = vmatprep.subr.mxu0 %v4336_v20  ;;  %3246 = vmatprep.subr.mxu1 %v6320_v0  ;;  %v4433_v49 = vld [vmem:[#allocation4 + $0x58] sm:$0xff]  ;;  %v4436_v50 = vld [vmem:[#allocation4 + $0x2c0] sm:$0xff]  ;;  %v4446_v53 = vld [vmem:[#allocation4 + $0x2a8] sm:$0xff] }
  0x30   :  { %219 = vmatpush1.msra.mxu0 %v4342_v22  ;;  %3247 = vmatpush3.msra.mxu1 %v4379_v33  ;;  %6488 = vst [vmem:[#allocation27_spill] sm:$0xff] %v4433_v49  ;;  %6489 = vst [vmem:[#allocation28_spill] sm:$0xff] %v4436_v50  ;;  %v4440_v51 = vld [vmem:[#allocation4 + $0x2b8] sm:$0xff]  ;;  %v4443_v52 = vld [vmem:[#allocation4 + $0x40] sm:$0xff] }
  0x31   :  { %220 = vmatprep.subr.mxu0 %v4346_v23  ;;  %3248 = vmatprep.subr.mxu1 %v6320_v0  ;;  %6490 = vst [vmem:[#allocation29_spill] sm:$0xff] %v4440_v51  ;;  %6491 = vst [vmem:[#allocation30_spill] sm:$0xff] %v4443_v52  ;;  %v4450_v54 = vld [vmem:[#allocation4 + $0x2a0] sm:$0xff]  ;;  %v4453_v55 = vld [vmem:[#allocation4 + $0x28] sm:$0xff] }
  0x32   :  { %221 = vmatpush1.msra.mxu0 %v4352_v25  ;;  %3249 = vmatpush3.msra.mxu1 %v4389_v36  ;;  %6492 = vst [vmem:[#allocation31_spill] sm:$0xff] %v4446_v53  ;;  %6493 = vst [vmem:[#allocation32_spill] sm:$0xff] %v4450_v54  ;;  %v4456_v56 = vld [vmem:[#allocation4 + $0x290] sm:$0xff]  ;;  %v4460_v57 = vld [vmem:[#allocation4 + $0x288] sm:$0xff] }
  0x33   :  { %222 = vmatprep.subr.mxu0 %v4356_v26  ;;  %3250 = vmatprep.subr.mxu1 %v6320_v0  ;;  %6494 = vst [vmem:[#allocation33_spill] sm:$0xff] %v4453_v55  ;;  %6495 = vst [vmem:[#allocation34_spill] sm:$0xff] %v4456_v56  ;;  %v4463_v58 = vld [vmem:[#allocation4 + $0x10] sm:$0xff]  ;;  %v4466_v59 = vld [vmem:[#allocation4 + $0x278] sm:$0xff] }
  0x34   :  { %223 = vmatpush1.msra.mxu0 %v4362_v28  ;;  %3251 = vmatpush3.msra.mxu1 %v4399_v39  ;;  %6496 = vst [vmem:[#allocation35_spill] sm:$0xff] %v4460_v57  ;;  %6497 = vst [vmem:[#allocation36_spill] sm:$0xff] %v4463_v58  ;;  %v4470_v60 = vld [vmem:[#allocation4 + $0x270] sm:$0xff]  ;;  %v4474_v61 = vld [vmem:[#allocation4 + $0x260] sm:$0xff] }
  0x35   :  { %224 = vmatprep.subr.mxu0 %v4366_v29  ;;  %3252 = vmatprep.subr.mxu1 %v6320_v0  ;;  %6498 = vst [vmem:[#allocation37_spill] sm:$0xff] %v4466_v59  ;;  %6499 = vst [vmem:[#allocation38_spill] sm:$0xff] %v4470_v60  ;;  %v4478_v62 = vld [vmem:[#allocation4 + $0x258] sm:$0xff] }
  0x36   :  { %225 = vmatpush1.msra.mxu0 %v4372_v31  ;;  %3253 = vmatpush3.msra.mxu1 %v4409_v42  ;;  %6500 = vst [vmem:[#allocation39_spill] sm:$0xff] %v4474_v61  ;;  %6501 = vst [vmem:[#allocation40_spill] sm:$0xff] %v4478_v62  ;;  %v4481_v63 = vld [vmem:[#allocation4 + $0x2f8] sm:$0xff] }
  0x37   :  { %226 = vmatprep.subr.mxu0 %v4376_v32  ;;  %3254 = vmatprep.subr.mxu1 %v6320_v0 }
  0x38   :  { %227 = vmatpush1.msra.mxu0 %v4382_v34  ;;  %3255 = vmatpush3.msra.mxu1 %v4423_v46 }
  0x39   :  { %228 = vmatprep.subr.mxu0 %v4386_v35  ;;  %3256 = vmatprep.subr.mxu1 %v6320_v0 }
  0x3a   :  { %229 = vmatpush1.msra.mxu0 %v4392_v37  ;;  %3257 = vmatpush3.msra.mxu1 %v4433_v49 }
  0x3b   :  { %230 = vmatprep.subr.mxu0 %v4396_v38  ;;  %3258 = vmatprep.subr.mxu1 %v6320_v0 }
  0x3c   :  { %231 = vmatpush1.msra.mxu0 %v4402_v40  ;;  %3259 = vmatpush3.msra.mxu1 %v4443_v52 }
  0x3d   :  { %232 = vmatprep.subr.mxu0 %v4406_v41  ;;  %3260 = vmatprep.subr.mxu1 %v6320_v0 }
  0x3e   :  { %233 = vmatpush1.msra.mxu0 %v4412_v43  ;;  %3261 = vmatpush3.msra.mxu1 %v4453_v55 }
  0x3f   :  { %267 = vmatmul.mubr.f32.vlgmr.msra.gmra.mxu0 %v6320_v0  ;;  %343 = vmatprep.subr.mxu0 %v4416_v44 }
  0x40   :  { %344 = vmatpush1.msra.mxu0 %v4420_v45  ;;  %3262 = vmatprep.subr.mxu1 %v6320_v0 }
  0x41   :  { %345 = vmatprep.subr.mxu0 %v4426_v47  ;;  %3263 = vmatpush3.msra.mxu1 %v4463_v58 }
  0x42   :  { %346 = vmatpush1.msra.mxu0 %v4431_v48  ;;  %3267 = vmatprep.subr.mxu1 %v6320_v0 }
  0x43   :  { %347 = vmatprep.subr.mxu0 %v4436_v50  ;;  %3265 = vmatmul.mubr.f32.vlgmr.msra.gmra.mxu1 %v6320_v0  ;;  %v4521_v50 = vld [vmem:[#allocation4 + $0x298] sm:$0xff] }
  0x44   :  { %348 = vmatpush1.msra.mxu0 %v4440_v51  ;;  %407 = vmatprep.mubr.f32.mxu0 %v6320_v0  ;;  %v4511_v51 = vld [vmem:[#allocation4 + $0x2b0] sm:$0xff]  ;;  %6512 = vst [vmem:[#allocation51_spill] sm:$0xff] %v4521_v50 }
  0x45   :  { %349 = vmatprep.subr.mxu0 %v4446_v53  ;;  %3268 = vmatpush3.msra.mxu1 %v4481_v63  ;;  %v4501_v53 = vld [vmem:[#allocation4 + $0x2c8] sm:$0xff]  ;;  %6509 = vst [vmem:[#allocation48_spill] sm:$0xff] %v4511_v51 }
  0x46   :  { %350 = vmatpush1.msra.mxu0 %v4450_v54  ;;  %v4491_v54 = vld [vmem:[#allocation4 + $0x2e0] sm:$0xff]  ;;  %3269 = vmatprep.subr.mxu1 %v6320_v0  ;;  %6506 = vst [vmem:[#allocation45_spill] sm:$0xff] %v4501_v53 }
  0x47   :  { %351 = vmatprep.subr.mxu0 %v4456_v56  ;;  %v4484_v56 = vld [vmem:[#allocation4 + $0x248] sm:$0xff]  ;;  %3270 = vmatpush3.msra.mxu1 %v4491_v54 }
  0x48   :  { %352 = vmatpush1.msra.mxu0 %v4460_v57  ;;  %6502 = vst [vmem:[#allocation41_spill] sm:$0xff] %v4484_v56  ;;  %v4488_v57 = vld [vmem:[#allocation4 + $0x240] sm:$0xff]  ;;  %3271 = vmatprep.subr.mxu1 %v6320_v0 }
  0x49   :  { %353 = vmatprep.subr.mxu0 %v4466_v59  ;;  %6503 = vst [vmem:[#allocation42_spill] sm:$0xff] %v4488_v57  ;;  %v4494_v59 = vld [vmem:[#allocation4 + $0x230] sm:$0xff]  ;;  %3272 = vmatpush3.msra.mxu1 %v4501_v53  ;;  %v4531_v53 = vld [vmem:[#allocation4 + $0x280] sm:$0xff] }
  0x4a   :  { %354 = vmatpush1.msra.mxu0 %v4470_v60  ;;  %6504 = vst [vmem:[#allocation43_spill] sm:$0xff] %v4494_v59  ;;  %v4498_v60 = vld [vmem:[#allocation4 + $0x228] sm:$0xff]  ;;  %3273 = vmatprep.subr.mxu1 %v6320_v0  ;;  %6515 = vst [vmem:[#allocation54_spill] sm:$0xff] %v4531_v53 }
  0x4b   :  { %355 = vmatprep.subr.mxu0 %v4474_v61  ;;  %6505 = vst [vmem:[#allocation44_spill] sm:$0xff] %v4498_v60  ;;  %v4504_v61 = vld [vmem:[#allocation4 + $0x218] sm:$0xff]  ;;  %3274 = vmatpush3.msra.mxu1 %v4511_v51  ;;  %v4541_v51 = vld [vmem:[#allocation4 + $0x268] sm:$0xff] }
  0x4c   :  { %356 = vmatpush1.msra.mxu0 %v4478_v62  ;;  %6507 = vst [vmem:[#allocation46_spill] sm:$0xff] %v4504_v61  ;;  %v4508_v62 = vld [vmem:[#allocation4 + $0x210] sm:$0xff]  ;;  %3275 = vmatprep.subr.mxu1 %v6320_v0  ;;  %6518 = vst [vmem:[#allocation57_spill] sm:$0xff] %v4541_v51 }
  0x4d   :  { %357 = vmatprep.subr.mxu0 %v4484_v56  ;;  %6508 = vst [vmem:[#allocation47_spill] sm:$0xff] %v4508_v62  ;;  %v4514_v56 = vld [vmem:[#allocation4 + $0x200] sm:$0xff]  ;;  %3276 = vmatpush3.msra.mxu1 %v4521_v50  ;;  %v4551_v50 = vld [vmem:[#allocation4 + $0x250] sm:$0xff] }
  0x4e   :  { %358 = vmatpush1.msra.mxu0 %v4488_v57  ;;  %6510 = vst [vmem:[#allocation49_spill] sm:$0xff] %v4514_v56  ;;  %v4518_v57 = vld [vmem:[#allocation4 + $0x1f8] sm:$0xff]  ;;  %3277 = vmatprep.subr.mxu1 %v6320_v0  ;;  %6521 = vst [vmem:[#allocation60_spill] sm:$0xff] %v4551_v50 }
  0x4f   :  { %359 = vmatprep.subr.mxu0 %v4494_v59  ;;  %6511 = vst [vmem:[#allocation50_spill] sm:$0xff] %v4518_v57  ;;  %v4524_v59 = vld [vmem:[#allocation4 + $0x1e8] sm:$0xff]  ;;  %3278 = vmatpush3.msra.mxu1 %v4531_v53  ;;  %v4561_v53 = vld [vmem:[#allocation4 + $0x238] sm:$0xff] }
  0x50   :  { %360 = vmatpush1.msra.mxu0 %v4498_v60  ;;  %6513 = vst [vmem:[#allocation52_spill] sm:$0xff] %v4524_v59  ;;  %v4528_v60 = vld [vmem:[#allocation4 + $0x1e0] sm:$0xff]  ;;  %3279 = vmatprep.subr.mxu1 %v6320_v0  ;;  %6524 = vst [vmem:[#allocation63_spill] sm:$0xff] %v4561_v53 }
  0x51   :  { %361 = vmatprep.subr.mxu0 %v4504_v61  ;;  %6514 = vst [vmem:[#allocation53_spill] sm:$0xff] %v4528_v60  ;;  %v4534_v61 = vld [vmem:[#allocation4 + $0x1d0] sm:$0xff]  ;;  %3280 = vmatpush3.msra.mxu1 %v4541_v51  ;;  %v4571_v51 = vld [vmem:[#allocation4 + $0x220] sm:$0xff] }
  0x52   :  { %362 = vmatpush1.msra.mxu0 %v4508_v62  ;;  %6516 = vst [vmem:[#allocation55_spill] sm:$0xff] %v4534_v61  ;;  %v4538_v62 = vld [vmem:[#allocation4 + $0x1c8] sm:$0xff]  ;;  %3281 = vmatprep.subr.mxu1 %v6320_v0  ;;  %6527 = vst [vmem:[#allocation66_spill] sm:$0xff] %v4571_v51 }
  0x53   :  { %363 = vmatprep.subr.mxu0 %v4514_v56  ;;  %6517 = vst [vmem:[#allocation56_spill] sm:$0xff] %v4538_v62  ;;  %v4544_v56 = vld [vmem:[#allocation4 + $0x1b8] sm:$0xff]  ;;  %3282 = vmatpush3.msra.mxu1 %v4551_v50 }
  0x54   :  { %364 = vmatpush1.msra.mxu0 %v4518_v57  ;;  %6519 = vst [vmem:[#allocation58_spill] sm:$0xff] %v4544_v56  ;;  %v4548_v57 = vld [vmem:[#allocation4 + $0x1b0] sm:$0xff]  ;;  %3283 = vmatprep.subr.mxu1 %v6320_v0 }
  0x55   :  { %365 = vmatprep.subr.mxu0 %v4524_v59  ;;  %6520 = vst [vmem:[#allocation59_spill] sm:$0xff] %v4548_v57  ;;  %v4554_v59 = vld [vmem:[#allocation4 + $0x1a0] sm:$0xff]  ;;  %3284 = vmatpush3.msra.mxu1 %v4561_v53 }
  0x56   :  { %366 = vmatpush1.msra.mxu0 %v4528_v60  ;;  %6522 = vst [vmem:[#allocation61_spill] sm:$0xff] %v4554_v59  ;;  %v4558_v60 = vld [vmem:[#allocation4 + $0x198] sm:$0xff]  ;;  %3285 = vmatprep.subr.mxu1 %v6320_v0 }
  0x57   :  { %367 = vmatprep.subr.mxu0 %v4534_v61  ;;  %6523 = vst [vmem:[#allocation62_spill] sm:$0xff] %v4558_v60  ;;  %v4564_v61 = vld [vmem:[#allocation4 + $0x188] sm:$0xff]  ;;  %3286 = vmatpush3.msra.mxu1 %v4571_v51 }
  0x58   :  { %368 = vmatpush1.msra.mxu0 %v4538_v62  ;;  %6525 = vst [vmem:[#allocation64_spill] sm:$0xff] %v4564_v61  ;;  %v4568_v62 = vld [vmem:[#allocation4 + $0x180] sm:$0xff]  ;;  %3287 = vmatprep.subr.mxu1 %v6320_v0 }
  0x59   :  { %369 = vmatprep.subr.mxu0 %v4544_v56  ;;  %6526 = vst [vmem:[#allocation65_spill] sm:$0xff] %v4568_v62  ;;  %3299 = vmatprep.mubr.msk.f32.mxu1 %vm4232_vm0, %v6320_v0 }
  0x5a   :  { %370 = vmatpush1.msra.mxu0 %v4548_v57  ;;  %v4577_v57 = vld [vmem:[#allocation4 + $0x208] sm:$0xff] }
  0x5b   :  { %371 = vmatprep.subr.mxu0 %v4554_v59  ;;  %6528 = vst [vmem:[#allocation67_spill] sm:$0xff] %v4577_v57  ;;  %v4583_v59 = vld [vmem:[#allocation4 + $0x1f0] sm:$0xff]  ;;  %3288 = vmatpush3.msra.mxu1 %v4577_v57 }
  0x5c   :  { %372 = vmatpush1.msra.mxu0 %v4558_v60  ;;  %6529 = vst [vmem:[#allocation68_spill] sm:$0xff] %v4583_v59  ;;  %3289 = vmatprep.subr.mxu1 %v6320_v0  ;;  %v4601_v60 = vld [vmem:[#allocation4 + $0x1a8] sm:$0xff] }
  0x5d   :  { %373 = vmatprep.subr.mxu0 %v4564_v61  ;;  %v4589_v61 = vld [vmem:[#allocation4 + $0x1d8] sm:$0xff]  ;;  %3290 = vmatpush3.msra.mxu1 %v4583_v59 }
  0x5e   :  { %374 = vmatpush1.msra.mxu0 %v4568_v62  ;;  %6530 = vst [vmem:[#allocation69_spill] sm:$0xff] %v4589_v61  ;;  %3291 = vmatprep.subr.mxu1 %v6320_v0  ;;  %v4595_v62 = vld [vmem:[#allocation4 + $0x1c0] sm:$0xff] }
  0x5f   :  { %408 = vmatmul.mubr.f32.vlgmr.msra.gmra.mxu0 %v6320_v0  ;;  %546 = vmatprep.subr.mxu0 %v4281_v1 }
  0x60   :  { %547 = vmatpush1.msra.mxu0 %v4283_v2  ;;  %3292 = vmatpush3.msra.mxu1 %v4589_v61  ;;  %v4607_v2 = vld [vmem:[#allocation4 + $0x190] sm:$0xff] }
  0x61   :  { %548 = vmatprep.subr.mxu0 %v4285_v3  ;;  %3293 = vmatprep.subr.mxu1 %v6320_v0 }
  0x62   :  { %549 = vmatpush1.msra.mxu0 %v4288_v4  ;;  %3294 = vmatpush3.msra.mxu1 %v4595_v62 }
  0x63   :  { %550 = vmatprep.subr.mxu0 %v4291_v5  ;;  %3295 = vmatprep.subr.mxu1 %v6320_v0 }
  0x64   :  { %551 = vmatpush1.msra.mxu0 %v4294_v6  ;;  %3296 = vmatpush3.msra.mxu1 %v4601_v60 }
  0x65   :  { %552 = vmatprep.subr.mxu0 %v4297_v7  ;;  %3297 = vmatprep.subr.mxu1 %v6320_v0 }
  0x66   :  { %553 = vmatpush1.msra.mxu0 %v4300_v8  ;;  %3298 = vmatpush3.msra.mxu1 %v4607_v2 }
  0x67   :  { %554 = vmatprep.subr.mxu0 %v4303_v9  ;;  %3300 = vmatmul.mubr.f32.vlgmr.msra.gmra.mxu1 %v6320_v0 }
  0x68   :  { %555 = vmatpush1.msra.mxu0 %v4306_v10  ;;  %3302 = vmatprep.subr.mxu1 %v6320_v0 }
  0x69   :  { %3303 = vmatpush3.msra.mxu1 %v4317_v14  ;;  %556 = vmatprep.subr.mxu0 %v4309_v11 }
  0x6a   :  { %3304 = vmatprep.subr.mxu1 %v6320_v0  ;;  %557 = vmatpush1.msra.mxu0 %v4312_v12 }
  0x6b   :  { %3305 = vmatpush3.msra.mxu1 %v4323_v16  ;;  %558 = vmatprep.subr.mxu0 %v4315_v13 }
  0x6c   :  { %3306 = vmatprep.subr.mxu1 %v6320_v0  ;;  %559 = vmatpush1.msra.mxu0 %v4320_v15 }
  0x6d   :  { %3307 = vmatpush3.msra.mxu1 %v4329_v18  ;;  %560 = vmatprep.subr.mxu0 %v4326_v17 }
  0x6e   :  { %3308 = vmatprep.subr.mxu1 %v6320_v0  ;;  %561 = vmatpush1.msra.mxu0 %v4332_v19 }
  0x6f   :  { %3309 = vmatpush3.msra.mxu1 %v4339_v21  ;;  %562 = vmatprep.subr.mxu0 %v4336_v20 }
  0x70   :  { %3310 = vmatprep.subr.mxu1 %v6320_v0  ;;  %563 = vmatpush1.msra.mxu0 %v4342_v22 }
  0x71   :  { %3311 = vmatpush3.msra.mxu1 %v4349_v24  ;;  %564 = vmatprep.subr.mxu0 %v4346_v23 }
  0x72   :  { %3312 = vmatprep.subr.mxu1 %v6320_v0  ;;  %565 = vmatpush1.msra.mxu0 %v4352_v25 }
  0x73   :  { %3313 = vmatpush3.msra.mxu1 %v4359_v27  ;;  %566 = vmatprep.subr.mxu0 %v4356_v26 }
  0x74   :  { %3314 = vmatprep.subr.mxu1 %v6320_v0  ;;  %567 = vmatpush1.msra.mxu0 %v4362_v28 }
  0x75   :  { %3315 = vmatpush3.msra.mxu1 %v4369_v30  ;;  %568 = vmatprep.subr.mxu0 %v4366_v29 }
  0x76   :  { %3316 = vmatprep.subr.mxu1 %v6320_v0  ;;  %569 = vmatpush1.msra.mxu0 %v4372_v31 }
  0x77   :  { %3317 = vmatpush3.msra.mxu1 %v4379_v33  ;;  %570 = vmatprep.subr.mxu0 %v4376_v32 }
  0x78   :  { %3318 = vmatprep.subr.mxu1 %v6320_v0  ;;  %571 = vmatpush1.msra.mxu0 %v4382_v34 }
  0x79   :  { %3319 = vmatpush3.msra.mxu1 %v4389_v36  ;;  %572 = vmatprep.subr.mxu0 %v4386_v35 }
  0x7a   :  { %3320 = vmatprep.subr.mxu1 %v6320_v0  ;;  %573 = vmatpush1.msra.mxu0 %v4392_v37 }
  0x7b   :  { %3321 = vmatpush3.msra.mxu1 %v4399_v39  ;;  %574 = vmatprep.subr.mxu0 %v4396_v38  ;;  %v197_v38 = vld [vmem:[%s6236_s0 + $0x8] sm:$0xff] }
  0x7c   :  { %3322 = vmatprep.subr.mxu1 %v6320_v0  ;;  %575 = vmatpush1.msra.mxu0 %v4402_v40 }
  0x7d   :  { %3323 = vmatpush3.msra.mxu1 %v4409_v42  ;;  %576 = vmatprep.subr.mxu0 %v4406_v41 }
  0x7e   :  { %3324 = vmatprep.subr.mxu1 %v6320_v0  ;;  %577 = vmatpush1.msra.mxu0 %v4412_v43  ;;  %v196_v43 = vld [vmem:[%s6236_s0] sm:$0xff] }
  0x7f   :  { %3325 = vmatpush3.msra.mxu1 %v4423_v46  ;;  %610 = vmatprep.mubr.f32.mxu0 %v6320_v0 }
  0x80   :  { %3326 = vmatprep.subr.mxu1 %v6320_v0  ;;  %3334 = vmatprep.mubr.msk.f32.mxu1 %vm4232_vm0, %v6320_v0 }
  0x81   :  { %3327 = vmatpush3.msra.mxu1 %v4433_v49  ;;  %687 = vmatprep.subr.mxu0 %v4416_v44 }
  0x82   :  { %3328 = vmatprep.subr.mxu1 %v6320_v0 }
  0x83   :  { %3329 = vmatpush3.msra.mxu1 %v4443_v52 }
  0x84   :  { %3330 = vmatprep.subr.mxu1 %v6320_v0 }
  0x85   :  { %3331 = vmatpush3.msra.mxu1 %v4453_v55 }
  0x86   :  { %3332 = vmatprep.subr.mxu1 %v6320_v0 }
  0x87   :  { %3333 = vmatpush3.msra.mxu1 %v4463_v58 }
  0x88   :  { %3337 = vmatprep.subr.mxu1 %v6320_v0  ;;  %v4682_v0 = vld [vmem:[#allocation7] ss:$0 sm:$0xff] }
  0x89   :  { %6531 = vst [vmem:[#allocation70_spill] sm:$0xff] %v4682_v0 }
  0xff   :  { %v268_v41 = vpop.f32.mrf.mxu0 }
 0x100   :  { %v484_v44 = vadd.f32 %v268_v41, %v196_v43  ;;  %v199_v41 = vld [vmem:[%s6237_s1 + $0xa8] sm:$0xff] }
 0x101   :  { %v270_v52 = vpop.f32.mrf.mxu0 }
 0x102   :  { %v2926_v40 = vmul.f32 -1.442695, %v484_v44  ;;  %v491_v37 = vadd.f32 %v270_v52, %v197_v38  ;;  %v200_v52 = vld [vmem:[%s6237_s1 + $0xb0] sm:$0xff] }
 0x103   :  { %v339_v55 = vpop.f32.mrf.mxu1 }
 0x104   :  { %3803 = vpow2.f32 %v2926_v40  ;;  %v2927_v49 = vmul.f32 -1.442695, %v491_v37  ;;  %v504_v40 = vadd.f32 %v4682_v0, %v339_v55 }
 0x105   :  { %v3266_v35 = vpop.f32.mrf.mxu1 }
 0x106   :  { %3805 = vpow2.f32 %v2927_v49  ;;  %v198_v35 = vld [vmem:[%s6236_s0 + $0x10] sm:$0xff] }
 0x111   :  { %v3804_v58 = vpop.eup %3803 }
 0x112   :  { %v488_v34 = vadd.f32 1.0, %v3804_v58 }
 0x113   :  { %v3806_v44 = vpop.eup %3805 }
 0x114   :  { %3807 = vrcp.f32 %v488_v34  ;;  %v495_v49 = vadd.f32 1.0, %v3806_v44 }
 0x11f   :  { %v409_v43 = vpop.f32.mrf.mxu0 }
 0x120   :  { %v511_v32 = vadd.f32 %v409_v43, %v199_v41 }
 0x121   :  { %v3808_v46 = vpop.eup %3807  ;;  %v411_v55 = vpop.f32.mrf.mxu0 }
 0x122   :  { %v505_v37 = vmul.f32 %v3808_v46, %v504_v40  ;;  %v2929_v38 = vmul.f32 -1.442695, %v511_v32  ;;  %v518_v58 = vadd.f32 %v411_v55, %v200_v52  ;;  %v201_v55 = vld [vmem:[%s6237_s1 + $0xb8] sm:$0xff] }
 0x124   :  { %v506_v34 = vadd.f32 %v505_v37, %v198_v35  ;;  %3809 = vpow2.f32 %v2929_v38  ;;  %v2930_v43 = vmul.f32 -1.442695, %v518_v58  ;;  %v6534_v35 = vld [vmem:[#allocation28_spill] sm:$0xff]  ;;  %v6535_v37 = vld [vmem:[#allocation29_spill] sm:$0xff] }
 0x125   :  { %v6536_v38 = vld [vmem:[#allocation45_spill] sm:$0xff]  ;;  %v6538_v58 = vld [vmem:[#allocation32_spill] sm:$0xff] }
 0x126   :  { %3811 = vtanh.f32 %v506_v34  ;;  %v6537_v34 = vld [vmem:[#allocation31_spill] sm:$0xff] }
 0x127   :  { %3813 = vrcp.f32 %v495_v49  ;;  %v480_v0 = vpop.f32.mrf.mxu1 }
 0x128   :  { %3815 = vpow2.f32 %v2930_v43  ;;  %v6540_v43 = vld [vmem:[#allocation34_spill] sm:$0xff] }
 0x129   :  { %v3301_v41 = vpop.f32.mrf.mxu1 }
 0x131   :  { %v3810_v31 = vpop.eup %3809 }
 0x132   :  { %v515_v29 = vadd.f32 1.0, %v3810_v31  ;;  %v4704_v31 = vld [vmem:[#allocation7 + $0x1] ss:$0 sm:$0xff] }
 0x133   :  { %v3812_v42 = vpop.eup %3811  ;;  %6532 = vst [vmem:[#allocation71_spill] sm:$0xff] %v4704_v31 }
 0x134   :  { %3817 = vrcp.f32 %v515_v29  ;;  %v508_v32 = vsub.f32 0.0, %v3812_v42  ;;  %v3814_v46 = vpop.eup %3813  ;;  %v6533_v29 = vmov 0.0  }
 0x135   :  { %v3816_v49 = vpop.eup %3815 }
 0x136   :  { %v509_v40 = vmul.f32 %v3814_v46, %v508_v32  ;;  %v6541_v32 = vld [vmem:[#allocation35_spill] sm:$0xff] }
 0x137   :  { %v6542_v46 = vld [vmem:[#allocation51_spill] sm:$0xff] }
 0x138   :  { %v4694_v44 = vadd.f32 %v3812_v42, %v509_v40  ;;  %v531_v42 = vadd.f32 %v4704_v31, %v480_v0  ;;  %v6539_v0 = vld [vmem:[#allocation48_spill] sm:$0xff]  ;;  %v522_v40 = vadd.f32 1.0, %v3816_v49  ;;  %v6549_v49 = vld [vmem:[#allocation41_spill] sm:$0xff] }
 0x13a   :  { %538 = vst [vmem:[%s6240_s4] sm:$0xff] %v4694_v44  ;;  %611 = vmatmul.mubr.f32.vlgmr.msra.gmra.mxu0 %v4694_v44  ;;  %3335 = vmatmul.mubr.f32.vlgmr.msra.gmra.mxu1 %v4694_v44 }
 0x13b   :  { %688 = vmatpush1.msra.mxu0 %v4420_v45  ;;  %3338 = vmatpush3.msra.mxu1 %v4481_v63 }
 0x13c   :  { %689 = vmatprep.subr.mxu0 %v4426_v47  ;;  %3339 = vmatprep.subr.mxu1 %v6533_v29 }
 0x13d   :  { %690 = vmatpush1.msra.mxu0 %v4431_v48  ;;  %3340 = vmatpush3.msra.mxu1 %v4491_v54 }
 0x13e   :  { %691 = vmatprep.subr.mxu0 %v6534_v35  ;;  %3341 = vmatprep.subr.mxu1 %v6533_v29 }
 0x13f   :  { %692 = vmatpush1.msra.mxu0 %v6535_v37  ;;  %3342 = vmatpush3.msra.mxu1 %v6536_v38  ;;  %v6544_v38 = vld [vmem:[#allocation38_spill] sm:$0xff] }
 0x140   :  { %693 = vmatprep.subr.mxu0 %v6537_v34  ;;  %3343 = vmatprep.subr.mxu1 %v6533_v29  ;;  %v6543_v34 = vld [vmem:[#allocation37_spill] sm:$0xff] }
 0x141   :  { %v3818_v52 = vpop.eup %3817  ;;  %694 = vmatpush1.msra.mxu0 %v6538_v58  ;;  %3344 = vmatpush3.msra.mxu1 %v6539_v0  ;;  %v6545_v58 = vld [vmem:[#allocation54_spill] sm:$0xff] }
 0x142   :  { %v532_v41 = vmul.f32 %v3818_v52, %v531_v42  ;;  %695 = vmatprep.subr.mxu0 %v6540_v43  ;;  %3345 = vmatprep.subr.mxu1 %v6533_v29  ;;  %v6546_v42 = vld [vmem:[#allocation39_spill] sm:$0xff]  ;;  %v6547_v52 = vld [vmem:[#allocation40_spill] sm:$0xff] }
 0x143   :  { %696 = vmatpush1.msra.mxu0 %v6541_v32  ;;  %3346 = vmatpush3.msra.mxu1 %v6542_v46  ;;  %v6548_v32 = vld [vmem:[#allocation57_spill] sm:$0xff] }
 0x144   :  { %v533_v31 = vadd.f32 %v532_v41, %v201_v55  ;;  %697 = vmatprep.subr.mxu0 %v6543_v34  ;;  %3347 = vmatprep.subr.mxu1 %v6533_v29  ;;  %v6550_v55 = vld [vmem:[#allocation42_spill] sm:$0xff]  ;;  %v6551_v41 = vld [vmem:[#allocation43_spill] sm:$0xff] }
 0x145   :  { %698 = vmatpush1.msra.mxu0 %v6544_v38  ;;  %3348 = vmatpush3.msra.mxu1 %v6545_v58 }
 0x146   :  { %3819 = vtanh.f32 %v533_v31  ;;  %699 = vmatprep.subr.mxu0 %v6546_v42  ;;  %3349 = vmatprep.subr.mxu1 %v6533_v29  ;;  %v6552_v31 = vld [vmem:[#allocation44_spill] sm:$0xff] }
 0x147   :  { %700 = vmatpush1.msra.mxu0 %v6547_v52  ;;  %3350 = vmatpush3.msra.mxu1 %v6548_v32  ;;  %3821 = vrcp.f32 %v522_v40  ;;  %v6553_v52 = vld [vmem:[#allocation46_spill] sm:$0xff]  ;;  %v6554_v40 = vld [vmem:[#allocation47_spill] sm:$0xff] }
 0x148   :  { %701 = vmatprep.subr.mxu0 %v6549_v49  ;;  %3351 = vmatprep.subr.mxu1 %v6533_v29  ;;  %v6555_v49 = vld [vmem:[#allocation49_spill] sm:$0xff] }
 0x149   :  { %702 = vmatpush1.msra.mxu0 %v6550_v55  ;;  %3352 = vmatpush3.msra.mxu1 %v4551_v50  ;;  %v6556_v50 = vld [vmem:[#allocation50_spill] sm:$0xff] }
 0x14a   :  { %703 = vmatprep.subr.mxu0 %v6551_v41  ;;  %3353 = vmatprep.subr.mxu1 %v6533_v29  ;;  %v6557_v41 = vld [vmem:[#allocation52_spill] sm:$0xff] }
 0x14b   :  { %704 = vmatpush1.msra.mxu0 %v6552_v31  ;;  %3354 = vmatpush3.msra.mxu1 %v4561_v53  ;;  %v6558_v53 = vld [vmem:[#allocation53_spill] sm:$0xff] }
 0x14c   :  { %705 = vmatprep.subr.mxu0 %v6553_v52  ;;  %3355 = vmatprep.subr.mxu1 %v6533_v29  ;;  %v6559_v52 = vld [vmem:[#allocation55_spill] sm:$0xff] }
 0x14d   :  { %706 = vmatpush1.msra.mxu0 %v6554_v40  ;;  %3356 = vmatpush3.msra.mxu1 %v4571_v51 }
 0x14e   :  { %707 = vmatprep.subr.mxu0 %v6555_v49  ;;  %3357 = vmatprep.subr.mxu1 %v6533_v29  ;;  %v6560_v49 = vld [vmem:[#allocation56_spill] sm:$0xff] }
 0x14f   :  { %708 = vmatpush1.msra.mxu0 %v6556_v50  ;;  %3358 = vmatpush3.msra.mxu1 %v4577_v57  ;;  %v6561_v50 = vld [vmem:[#allocation59_spill] sm:$0xff] }
 0x150   :  { %709 = vmatprep.subr.mxu0 %v6557_v41  ;;  %3359 = vmatprep.subr.mxu1 %v6533_v29 }
 0x151   :  { %710 = vmatpush1.msra.mxu0 %v6558_v53  ;;  %3360 = vmatpush3.msra.mxu1 %v4583_v59  ;;  %v6562_v59 = vld [vmem:[#allocation61_spill] sm:$0xff]  ;;  %v6563_v53 = vld [vmem:[#allocation62_spill] sm:$0xff] }
 0x152   :  { %711 = vmatprep.subr.mxu0 %v6559_v52  ;;  %3361 = vmatprep.subr.mxu1 %v6533_v29 }
 0x153   :  { %v3820_v51 = vpop.eup %3819  ;;  %712 = vmatpush1.msra.mxu0 %v6560_v49  ;;  %3362 = vmatpush3.msra.mxu1 %v4589_v61  ;;  %v6564_v61 = vld [vmem:[#allocation64_spill] sm:$0xff]  ;;  %v6565_v49 = vld [vmem:[#allocation65_spill] sm:$0xff] }
 0x154   :  { %713 = vmatprep.subr.mxu0 %v4544_v56  ;;  %3363 = vmatprep.subr.mxu1 %v6533_v29  ;;  %v535_v41 = vsub.f32 0.0, %v3820_v51  ;;  %v3822_v57 = vpop.eup %3821 }
 0x155   :  { %714 = vmatpush1.msra.mxu0 %v6561_v50  ;;  %3364 = vmatpush3.msra.mxu1 %v4595_v62 }
 0x156   :  { %715 = vmatprep.subr.mxu0 %v6562_v59  ;;  %3365 = vmatprep.subr.mxu1 %v6533_v29  ;;  %v536_v52 = vmul.f32 %v3822_v57, %v535_v41  ;;  %v6584_v57 = vld [vmem:[#allocation70_spill] sm:$0xff] }
 0x157   :  { %716 = vmatpush1.msra.mxu0 %v6563_v53  ;;  %3366 = vmatpush3.msra.mxu1 %v4601_v60 }
 0x158   :  { %717 = vmatprep.subr.mxu0 %v6564_v61  ;;  %3367 = vmatprep.subr.mxu1 %v6533_v29  ;;  %v4768_v56 = vadd.f32 %v3820_v51, %v536_v52  ;;  %v6566_v51 = vld [vmem:[#allocation13_spill] sm:$0xff] }
 0x159   :  { %718 = vmatpush1.msra.mxu0 %v6565_v49  ;;  %751 = vmatprep.mubr.f32.mxu0 %v6533_v29 }
 0x15a   :  { %3368 = vmatpush3.msra.mxu1 %v4607_v2  ;;  %3369 = vmatprep.mubr.msk.f32.mxu1 %vm4232_vm0, %v6533_v29  ;;  %539 = vst [vmem:[%s6241_s5 + $0x38] sm:$0xff] %v4768_v56 }
 0x15b   :  { %752 = vmatmul.mubr.f32.vlgmr.msra.gmra.mxu0 %v4768_v56  ;;  %3370 = vmatmul.mubr.f32.vlgmr.msra.gmra.mxu1 %v4768_v56 }
 0x15c   :  { %878 = vmatprep.subr.mxu0 %v4281_v1  ;;  %3372 = vmatprep.subr.mxu1 %v6533_v29  ;;  %v6567_v1 = vld [vmem:[#allocation23_spill] sm:$0xff] }
 0x15d   :  { %879 = vmatpush1.msra.mxu0 %v6566_v51  ;;  %3373 = vmatpush3.msra.mxu1 %v4317_v14  ;;  %v6579_v14 = vld [vmem:[#allocation33_spill] sm:$0xff] }
 0x15e   :  { %880 = vmatprep.subr.mxu0 %v4285_v3  ;;  %3374 = vmatprep.subr.mxu1 %v6533_v29  ;;  %v6568_v3 = vld [vmem:[#allocation14_spill] sm:$0xff] }
 0x15f   :  { %881 = vmatpush1.msra.mxu0 %v4288_v4  ;;  %3375 = vmatpush3.msra.mxu1 %v4323_v16  ;;  %v6569_v4 = vld [vmem:[#allocation15_spill] sm:$0xff]  ;;  %v6581_v16 = vld [vmem:[#allocation24_spill] sm:$0xff] }
 0x160   :  { %882 = vmatprep.subr.mxu0 %v4291_v5  ;;  %3376 = vmatprep.subr.mxu1 %v6533_v29  ;;  %v6570_v5 = vld [vmem:[#allocation26_spill] sm:$0xff] }
 0x161   :  { %883 = vmatpush1.msra.mxu0 %v4294_v6  ;;  %3377 = vmatpush3.msra.mxu1 %v4329_v18  ;;  %v6571_v6 = vld [vmem:[#allocation16_spill] sm:$0xff]  ;;  %v6583_v18 = vld [vmem:[#allocation25_spill] sm:$0xff] }
 0x162   :  { %884 = vmatprep.subr.mxu0 %v4297_v7  ;;  %3378 = vmatprep.subr.mxu1 %v6533_v29  ;;  %v6572_v7 = vld [vmem:[#allocation17_spill] sm:$0xff] }
 0x163   :  { %885 = vmatpush1.msra.mxu0 %v4300_v8  ;;  %3379 = vmatpush3.msra.mxu1 %v4339_v21  ;;  %v6573_v8 = vld [vmem:[#allocation27_spill] sm:$0xff] }
 0x164   :  { %886 = vmatprep.subr.mxu0 %v4303_v9  ;;  %3380 = vmatprep.subr.mxu1 %v6533_v29  ;;  %v6574_v9 = vld [vmem:[#allocation18_spill] sm:$0xff] }
 0x165   :  { %887 = vmatpush1.msra.mxu0 %v4306_v10  ;;  %3381 = vmatpush3.msra.mxu1 %v4349_v24  ;;  %v6575_v10 = vld [vmem:[#allocation19_spill] sm:$0xff] }
 0x166   :  { %888 = vmatprep.subr.mxu0 %v4309_v11  ;;  %3382 = vmatprep.subr.mxu1 %v6533_v29  ;;  %v6576_v11 = vld [vmem:[#allocation30_spill] sm:$0xff] }
 0x167   :  { %889 = vmatpush1.msra.mxu0 %v4312_v12  ;;  %3383 = vmatpush3.msra.mxu1 %v4359_v27  ;;  %v6577_v12 = vld [vmem:[#allocation20_spill] sm:$0xff] }
 0x168   :  { %890 = vmatprep.subr.mxu0 %v4315_v13  ;;  %3384 = vmatprep.subr.mxu1 %v6533_v29  ;;  %v6578_v13 = vld [vmem:[#allocation21_spill] sm:$0xff] }
 0x169   :  { %891 = vmatpush1.msra.mxu0 %v4320_v15  ;;  %3385 = vmatpush3.msra.mxu1 %v4369_v30  ;;  %v6580_v15 = vld [vmem:[#allocation22_spill] sm:$0xff] }
 0x16a   :  { %892 = vmatprep.subr.mxu0 %v4326_v17  ;;  %3386 = vmatprep.subr.mxu1 %v6533_v29  ;;  %v6582_v17 = vld [vmem:[#allocation36_spill] sm:$0xff] }
 0x16b   :  { %893 = vmatpush1.msra.mxu0 %v4332_v19  ;;  %3387 = vmatpush3.msra.mxu1 %v4379_v33  ;;  %v540_v19 = vld [vmem:[%s6236_s0 + $0x18] sm:$0xff] }
 0x16c   :  { %894 = vmatprep.subr.mxu0 %v4336_v20  ;;  %3388 = vmatprep.subr.mxu1 %v6533_v29 }
 0x16d   :  { %895 = vmatpush1.msra.mxu0 %v4342_v22  ;;  %3389 = vmatpush3.msra.mxu1 %v4389_v36  ;;  %v543_v36 = vld [vmem:[%s6237_s1 + $0x90] sm:$0xff] }
 0x16e   :  { %896 = vmatprep.subr.mxu0 %v4346_v23  ;;  %3390 = vmatprep.subr.mxu1 %v6533_v29 }
 0x16f   :  { %897 = vmatpush1.msra.mxu0 %v4352_v25  ;;  %3391 = vmatpush3.msra.mxu1 %v4399_v39  ;;  %v541_v25 = vld [vmem:[%s6236_s0 + $0x20] sm:$0xff] }
 0x170   :  { %898 = vmatprep.subr.mxu0 %v4356_v26  ;;  %3392 = vmatprep.subr.mxu1 %v6533_v29 }
 0x171   :  { %899 = vmatpush1.msra.mxu0 %v4362_v28  ;;  %3393 = vmatpush3.msra.mxu1 %v6567_v1 }
 0x172   :  { %900 = vmatprep.subr.mxu0 %v6568_v3  ;;  %3394 = vmatprep.subr.mxu1 %v6533_v29  ;;  %v542_v3 = vld [vmem:[%s6236_s0 + $0x28] sm:$0xff] }
 0x173   :  { %901 = vmatpush1.msra.mxu0 %v6569_v4  ;;  %3395 = vmatpush3.msra.mxu1 %v6570_v5 }
 0x174   :  { %902 = vmatprep.subr.mxu0 %v6571_v6  ;;  %3396 = vmatprep.subr.mxu1 %v6533_v29 }
 0x175   :  { %903 = vmatpush1.msra.mxu0 %v6572_v7  ;;  %3397 = vmatpush3.msra.mxu1 %v6573_v8 }
 0x176   :  { %904 = vmatprep.subr.mxu0 %v6574_v9  ;;  %3398 = vmatprep.subr.mxu1 %v6533_v29 }
 0x177   :  { %905 = vmatpush1.msra.mxu0 %v6575_v10  ;;  %3399 = vmatpush3.msra.mxu1 %v6576_v11  ;;  %v544_v10 = vld [vmem:[%s6237_s1 + $0x98] sm:$0xff] }
 0x178   :  { %906 = vmatprep.subr.mxu0 %v6577_v12  ;;  %3400 = vmatprep.subr.mxu1 %v6533_v29 }
 0x179   :  { %907 = vmatpush1.msra.mxu0 %v6578_v13  ;;  %3401 = vmatpush3.msra.mxu1 %v6579_v14 }
 0x17a   :  { %908 = vmatprep.subr.mxu0 %v6580_v15  ;;  %3402 = vmatprep.subr.mxu1 %v6533_v29 }
 0x17b   :  { %909 = vmatpush1.msra.mxu0 %v6581_v16  ;;  %942 = vmatprep.mubr.f32.mxu0 %v6533_v29 }
 0x17c   :  { %3403 = vmatpush3.msra.mxu1 %v6582_v17  ;;  %3404 = vmatprep.mubr.msk.f32.mxu1 %vm4232_vm0, %v6533_v29 }
 0x17d   :  { %1019 = vmatprep.subr.mxu0 %v6583_v18  ;;  %3407 = vmatprep.subr.mxu1 %v6533_v29 }
 0x1fa   :  { %v612_v20 = vpop.f32.mrf.mxu0  ;;  %v683_v21 = vpop.f32.mrf.mxu1 }
 0x1fb   :  { %v828_v22 = vadd.f32 %v612_v20, %v540_v19  ;;  %v842_v52 = vadd.f32 %v6584_v57, %v683_v21  ;;  %v6586_v21 = vld [vmem:[#allocation31_spill] sm:$0xff] }
 0x1fc   :  { %v3336_v23 = vpop.f32.mrf.mxu1  ;;  %v614_v26 = vpop.f32.mrf.mxu0 }
 0x1fd   :  { %v2932_v24 = vmul.f32 -1.442695, %v828_v22  ;;  %v835_v27 = vadd.f32 %v614_v26, %v541_v25  ;;  %v6588_v22 = vld [vmem:[#allocation32_spill] sm:$0xff]  ;;  %v6599_v25 = vld [vmem:[#allocation67_spill] sm:$0xff] }
 0x1fe   :  { %v6600_v26 = vld [vmem:[#allocation52_spill] sm:$0xff] }
 0x1ff   :  { %3823 = vpow2.f32 %v2932_v24  ;;  %v2933_v28 = vmul.f32 -1.442695, %v835_v27  ;;  %v6597_v24 = vld [vmem:[#allocation49_spill] sm:$0xff]  ;;  %v6602_v27 = vld [vmem:[#allocation68_spill] sm:$0xff] }
 0x201   :  { %3825 = vpow2.f32 %v2933_v28  ;;  %v6603_v28 = vld [vmem:[#allocation55_spill] sm:$0xff] }
 0x20c   :  { %v3824_v30 = vpop.eup %3823 }
 0x20d   :  { %v832_v33 = vadd.f32 1.0, %v3824_v30  ;;  %v6605_v30 = vld [vmem:[#allocation69_spill] sm:$0xff] }
 0x20e   :  { %v3826_v39 = vpop.eup %3825 }
 0x20f   :  { %3827 = vrcp.f32 %v832_v33  ;;  %v839_v9 = vadd.f32 1.0, %v3826_v39 }
 0x21b   :  { %v753_v41 = vpop.f32.mrf.mxu0  ;;  %v824_v51 = vpop.f32.mrf.mxu1 }
 0x21c   :  { %v3828_v1 = vpop.eup %3827  ;;  %v849_v4 = vadd.f32 %v753_v41, %v543_v36  ;;  %v6606_v36 = vld [vmem:[#allocation58_spill] sm:$0xff] }
 0x21d   :  { %v843_v5 = vmul.f32 %v3828_v1, %v842_v52  ;;  %v3371_v6 = vpop.f32.mrf.mxu1  ;;  %v755_v11 = vpop.f32.mrf.mxu0  ;;  %v4983_v1 = vld [vmem:[#allocation4 + $0x128] sm:$0xff] }
 0x21e   :  { %v2934_v7 = vmul.f32 -1.442695, %v849_v4  ;;  %v856_v12 = vadd.f32 %v755_v11, %v544_v10  ;;  %v4990_v4 = vld [vmem:[#allocation4 + $0x130] sm:$0xff]  ;;  %v4997_v6 = vld [vmem:[#allocation4 + $0x108] sm:$0xff]  ;;  %v5010_v10 = vld [vmem:[#allocation4 + $0x100] sm:$0xff] }
 0x21f   :  { %v844_v8 = vadd.f32 %v843_v5, %v542_v3  ;;  %v4987_v3 = vld [vmem:[#allocation4 + $0x120] sm:$0xff]  ;;  %v4993_v5 = vld [vmem:[#allocation4 + $0x110] sm:$0xff] }
 0x220   :  { %3829 = vpow2.f32 %v2934_v7  ;;  %v2935_v13 = vmul.f32 -1.442695, %v856_v12  ;;  %v5000_v7 = vld [vmem:[#allocation4 + $0x118] sm:$0xff]  ;;  %v5013_v11 = vld [vmem:[#allocation4 + $0xe0] sm:$0xff] }
 0x221   :  { %3831 = vtanh.f32 %v844_v8  ;;  %v5003_v8 = vld [vmem:[#allocation4 + $0xf8] sm:$0xff] }
 0x222   :  { %3833 = vrcp.f32 %v839_v9  ;;  %v5007_v9 = vld [vmem:[#allocation4 + $0xf0] sm:$0xff]  ;;  %v5017_v12 = vld [vmem:[#allocation4 + $0xd8] sm:$0xff] }
 0x223   :  { %3835 = vpow2.f32 %v2935_v13  ;;  %v5020_v13 = vld [vmem:[#allocation4 + $0xe8] sm:$0xff] }
 0x22d   :  { %v3830_v14 = vpop.eup %3829 }
 0x22e   :  { %v3832_v15 = vpop.eup %3831  ;;  %v853_v16 = vadd.f32 1.0, %v3830_v14  ;;  %v5023_v14 = vld [vmem:[#allocation4 + $0xc8] sm:$0xff] }
 0x22f   :  { %v846_v17 = vsub.f32 %v4694_v44, %v3832_v15  ;;  %v3834_v18 = vpop.eup %3833  ;;  %v6585_v44 = vld [vmem:[#allocation45_spill] sm:$0xff] }
 0x230   :  { %3837 = vrcp.f32 %v853_v16  ;;  %v5030_v16 = vld [vmem:[#allocation4 + $0xd0] sm:$0xff] }
 0x231   :  { %v847_v19 = vmul.f32 %v3834_v18, %v846_v17  ;;  %v5033_v17 = vld [vmem:[#allocation4 + $0xb0] sm:$0xff]  ;;  %v5037_v18 = vld [vmem:[#allocation4 + $0xa8] sm:$0xff] }
 0x232   :  { %6607 = vst [vmem:[#allocation28_spill] sm:$0xff] %v5033_v17  ;;  %6608 = vst [vmem:[#allocation29_spill] sm:$0xff] %v5037_v18 }
 0x233   :  { %v4867_v20 = vadd.f32 %v3832_v15, %v847_v19  ;;  %v5027_v15 = vld [vmem:[#allocation4 + $0xc0] sm:$0xff]  ;;  %v5040_v19 = vld [vmem:[#allocation4 + $0xb8] sm:$0xff] }
 0x234   :  { %6609 = vst [vmem:[#allocation48_spill] sm:$0xff] %v5040_v19 }
 0x235   :  { %870 = vst [vmem:[%s6240_s4 + $0x8] sm:$0xff] %v4867_v20  ;;  %943 = vmatmul.mubr.f32.vlgmr.msra.gmra.mxu0 %v4867_v20  ;;  %3405 = vmatmul.mubr.f32.vlgmr.msra.gmra.mxu1 %v4867_v20 }
 0x236   :  { %1020 = vmatpush1.msra.mxu0 %v4420_v45  ;;  %3408 = vmatpush3.msra.mxu1 %v4481_v63  ;;  %v3836_v45 = vpop.eup %3835 }
 0x237   :  { %1021 = vmatprep.subr.mxu0 %v4426_v47  ;;  %3409 = vmatprep.subr.mxu1 %v6533_v29  ;;  %v6587_v47 = vld [vmem:[#allocation71_spill] sm:$0xff] }
 0x238   :  { %1022 = vmatpush1.msra.mxu0 %v4431_v48  ;;  %3410 = vmatpush3.msra.mxu1 %v4491_v54  ;;  %v863_v63 = vadd.f32 %v6587_v47, %v824_v51  ;;  %v545_v54 = vld [vmem:[%s6237_s1 + $0xa0] sm:$0xff]  ;;  %v4980_v51 = vld [vmem:[#allocation4 + $0x148] sm:$0xff] }
 0x239   :  { %1023 = vmatprep.subr.mxu0 %v6534_v35  ;;  %3411 = vmatprep.subr.mxu1 %v6533_v29 }
 0x23a   :  { %1024 = vmatpush1.msra.mxu0 %v6535_v37  ;;  %3412 = vmatpush3.msra.mxu1 %v6585_v44  ;;  %v6589_v37 = vld [vmem:[#allocation35_spill] sm:$0xff]  ;;  %v5043_v44 = vld [vmem:[#allocation4 + $0x98] sm:$0xff] }
 0x23b   :  { %1025 = vmatprep.subr.mxu0 %v6586_v21  ;;  %3413 = vmatprep.subr.mxu1 %v6533_v29  ;;  %6610 = vst [vmem:[#allocation34_spill] sm:$0xff] %v5043_v44  ;;  %v5047_v21 = vld [vmem:[#allocation4 + $0x90] sm:$0xff] }
 0x23c   :  { %1026 = vmatpush1.msra.mxu0 %v6588_v22  ;;  %3414 = vmatpush3.msra.mxu1 %v6539_v0  ;;  %v860_v0 = vadd.f32 1.0, %v3836_v45  ;;  %6611 = vst [vmem:[#allocation51_spill] sm:$0xff] %v5047_v21  ;;  %v5050_v45 = vld [vmem:[#allocation4 + $0xa0] sm:$0xff]  ;;  %v5057_v22 = vld [vmem:[#allocation4 + $0x78] sm:$0xff] }
 0x23d   :  { %v3838_v48 = vpop.eup %3837  ;;  %1027 = vmatprep.subr.mxu0 %v6540_v43  ;;  %3415 = vmatprep.subr.mxu1 %v6533_v29  ;;  %v6590_v43 = vld [vmem:[#allocation40_spill] sm:$0xff]  ;;  %6612 = vst [vmem:[#allocation37_spill] sm:$0xff] %v5050_v45  ;;  %6614 = vst [vmem:[#allocation54_spill] sm:$0xff] %v5057_v22 }
 0x23e   :  { %v864_v35 = vmul.f32 %v3838_v48, %v863_v63  ;;  %1028 = vmatpush1.msra.mxu0 %v6589_v37  ;;  %3416 = vmatpush3.msra.mxu1 %v6542_v46  ;;  %v6591_v46 = vld [vmem:[#allocation41_spill] sm:$0xff]  ;;  %v5053_v63 = vld [vmem:[#allocation4 + $0x80] sm:$0xff]  ;;  %v5060_v48 = vld [vmem:[#allocation4 + $0x88] sm:$0xff] }
 0x23f   :  { %1029 = vmatprep.subr.mxu0 %v6543_v34  ;;  %3417 = vmatprep.subr.mxu1 %v6533_v29  ;;  %v6592_v34 = vld [vmem:[#allocation60_spill] sm:$0xff]  ;;  %6613 = vst [vmem:[#allocation38_spill] sm:$0xff] %v5053_v63  ;;  %6615 = vst [vmem:[#allocation39_spill] sm:$0xff] %v5060_v48 }
 0x240   :  { %v865_v23 = vadd.f32 %v864_v35, %v545_v54  ;;  %1030 = vmatpush1.msra.mxu0 %v6544_v38  ;;  %3418 = vmatpush3.msra.mxu1 %v6545_v58  ;;  %v6593_v38 = vld [vmem:[#allocation43_spill] sm:$0xff]  ;;  %v5070_v37 = vld [vmem:[#allocation4 + $0x70] sm:$0xff] }
 0x241   :  { %1031 = vmatprep.subr.mxu0 %v6546_v42  ;;  %3419 = vmatprep.subr.mxu1 %v6533_v29  ;;  %v6594_v58 = vld [vmem:[#allocation63_spill] sm:$0xff]  ;;  %v6595_v42 = vld [vmem:[#allocation46_spill] sm:$0xff]  ;;  %6618 = vst [vmem:[#allocation44_spill] sm:$0xff] %v5070_v37 }
 0x242   :  { %3839 = vtanh.f32 %v865_v23  ;;  %1032 = vmatpush1.msra.mxu0 %v6590_v43  ;;  %3420 = vmatpush3.msra.mxu1 %v6548_v32  ;;  %v6596_v32 = vld [vmem:[#allocation66_spill] sm:$0xff]  ;;  %v5063_v54 = vld [vmem:[#allocation4 + $0x68] sm:$0xff]  ;;  %v5073_v23 = vld [vmem:[#allocation4 + $0x50] sm:$0xff] }
 0x243   :  { %1033 = vmatprep.subr.mxu0 %v6591_v46  ;;  %3421 = vmatprep.subr.mxu1 %v6533_v29  ;;  %3841 = vrcp.f32 %v860_v0  ;;  %6616 = vst [vmem:[#allocation57_spill] sm:$0xff] %v5063_v54  ;;  %v5067_v35 = vld [vmem:[#allocation4 + $0x60] sm:$0xff]  ;;  %6619 = vst [vmem:[#allocation47_spill] sm:$0xff] %v5073_v23  ;;  %v5077_v0 = vld [vmem:[#allocation4 + $0x48] sm:$0xff] }
 0x244   :  { %1034 = vmatpush1.msra.mxu0 %v6550_v55  ;;  %3422 = vmatpush3.msra.mxu1 %v6592_v34  ;;  %v6598_v55 = vld [vmem:[#allocation50_spill] sm:$0xff]  ;;  %6617 = vst [vmem:[#allocation42_spill] sm:$0xff] %v5067_v35  ;;  %6620 = vst [vmem:[#allocation59_spill] sm:$0xff] %v5077_v0  ;;  %v5087_v34 = vld [vmem:[#allocation4 + $0x30] sm:$0xff] }
 0x245   :  { %1035 = vmatprep.subr.mxu0 %v6593_v38  ;;  %3423 = vmatprep.subr.mxu1 %v6533_v29  ;;  %v5080_v43 = vld [vmem:[#allocation4 + $0x58] sm:$0xff]  ;;  %6623 = vst [vmem:[#allocation64_spill] sm:$0xff] %v5087_v34  ;;  %v5090_v38 = vld [vmem:[#allocation4 + $0x40] sm:$0xff] }
 0x246   :  { %1036 = vmatpush1.msra.mxu0 %v6552_v31  ;;  %3424 = vmatpush3.msra.mxu1 %v6594_v58  ;;  %v6601_v31 = vld [vmem:[#allocation53_spill] sm:$0xff]  ;;  %6621 = vst [vmem:[#allocation61_spill] sm:$0xff] %v5080_v43  ;;  %6624 = vst [vmem:[#allocation65_spill] sm:$0xff] %v5090_v38  ;;  %v5093_v58 = vld [vmem:[#allocation4 + $0x20] sm:$0xff] }
 0x247   :  { %1037 = vmatprep.subr.mxu0 %v6595_v42  ;;  %3425 = vmatprep.subr.mxu1 %v6533_v29  ;;  %v5083_v46 = vld [vmem:[#allocation4 + $0x38] sm:$0xff]  ;;  %6625 = vst [vmem:[#allocation13_spill] sm:$0xff] %v5093_v58 }
 0x248   :  { %1038 = vmatpush1.msra.mxu0 %v6554_v40  ;;  %3426 = vmatpush3.msra.mxu1 %v6596_v32  ;;  %v6604_v40 = vld [vmem:[#allocation56_spill] sm:$0xff]  ;;  %6622 = vst [vmem:[#allocation62_spill] sm:$0xff] %v5083_v46  ;;  %v5097_v42 = vld [vmem:[#allocation4 + $0x18] sm:$0xff] }
 0x249   :  { %1039 = vmatprep.subr.mxu0 %v6597_v24  ;;  %3427 = vmatprep.subr.mxu1 %v6533_v29  ;;  %6626 = vst [vmem:[#allocation23_spill] sm:$0xff] %v5097_v42  ;;  %v5100_v32 = vld [vmem:[#allocation4 + $0x28] sm:$0xff] }
 0x24a   :  { %1040 = vmatpush1.msra.mxu0 %v6598_v55  ;;  %3428 = vmatpush3.msra.mxu1 %v6599_v25  ;;  %6627 = vst [vmem:[#allocation14_spill] sm:$0xff] %v5100_v32  ;;  %v5103_v24 = vld [vmem:[#allocation4 + $0x8] sm:$0xff]  ;;  %v5107_v55 = vld [vmem:[#allocation4] sm:$0xff]  ;;  %v5111_v25 = vld [vmem:[#allocation4 + $0x10] sm:$0xff] }
 0x24b   :  { %1041 = vmatprep.subr.mxu0 %v6600_v26  ;;  %3429 = vmatprep.subr.mxu1 %v6533_v29  ;;  %6628 = vst [vmem:[#allocation15_spill] sm:$0xff] %v5103_v24  ;;  %6629 = vst [vmem:[#allocation26_spill] sm:$0xff] %v5107_v55  ;;  %v5116_v26 = vld [vmem:[#allocation4 + $0x2f0] sm:$0xff] }
 0x24c   :  { %1042 = vmatpush1.msra.mxu0 %v6601_v31  ;;  %3430 = vmatpush3.msra.mxu1 %v6602_v27  ;;  %6630 = vst [vmem:[#allocation16_spill] sm:$0xff] %v5111_v25  ;;  %6631 = vst [vmem:[#allocation17_spill] sm:$0xff] %v5116_v26  ;;  %v872_v31 = vld [vmem:[%s6236_s0 + $0x30] sm:$0xff] }
 0x24d   :  { %1043 = vmatprep.subr.mxu0 %v6603_v28  ;;  %3431 = vmatprep.subr.mxu1 %v6533_v29 }
 0x24e   :  { %1044 = vmatpush1.msra.mxu0 %v6604_v40  ;;  %3432 = vmatpush3.msra.mxu1 %v6605_v30 }
 0x24f   :  { %v3840_v33 = vpop.eup %3839  ;;  %1045 = vmatprep.subr.mxu0 %v6606_v36  ;;  %3433 = vmatprep.subr.mxu1 %v6533_v29  ;;  %v873_v36 = vld [vmem:[%s6236_s0 + $0x38] sm:$0xff] }
 0x250   :  { %1046 = vmatpush1.msra.mxu0 %v6561_v50  ;;  %3434 = vmatpush3.msra.mxu1 %v4595_v62  ;;  %v867_v39 = vsub.f32 %v4768_v56, %v3840_v33  ;;  %v3842_v52 = vpop.eup %3841  ;;  %v4957_v56 = vld [vmem:[#allocation4 + $0x168] sm:$0xff]  ;;  %v4973_v62 = vld [vmem:[#allocation4 + $0x140] sm:$0xff] }
 0x251   :  { %1047 = vmatprep.subr.mxu0 %v6562_v59  ;;  %3435 = vmatprep.subr.mxu1 %v6533_v29  ;;  %v4963_v59 = vld [vmem:[#allocation4 + $0x158] sm:$0xff] }
 0x252   :  { %1048 = vmatpush1.msra.mxu0 %v6563_v53  ;;  %3436 = vmatpush3.msra.mxu1 %v4601_v60  ;;  %v868_v41 = vmul.f32 %v3842_v52, %v867_v39  ;;  %v4953_v53 = vld [vmem:[#allocation4 + $0x170] sm:$0xff] }
 0x253   :  { %1049 = vmatprep.subr.mxu0 %v6564_v61  ;;  %3437 = vmatprep.subr.mxu1 %v6533_v29  ;;  %v4967_v60 = vld [vmem:[#allocation4 + $0x150] sm:$0xff]  ;;  %v4970_v61 = vld [vmem:[#allocation4 + $0x160] sm:$0xff] }
 0x254   :  { %1050 = vmatpush1.msra.mxu0 %v6565_v49  ;;  %1083 = vmatprep.mubr.f32.mxu0 %v6533_v29  ;;  %v4942_v50 = vadd.f32 %v3840_v33, %v868_v41  ;;  %v4977_v49 = vld [vmem:[#allocation4 + $0x138] sm:$0xff] }
 0x255   :  { %3438 = vmatpush3.msra.mxu1 %v4607_v2  ;;  %3439 = vmatprep.mubr.msk.f32.mxu1 %vm4232_vm0, %v6533_v29  ;;  %v4960_v2 = vld [vmem:[#allocation4 + $0x178] sm:$0xff] }
 0x256   :  { %871 = vst [vmem:[%s6241_s5 + $0x30] sm:$0xff] %v4942_v50  ;;  %1084 = vmatmul.mubr.f32.vlgmr.msra.gmra.mxu0 %v4942_v50  ;;  %3440 = vmatmul.mubr.f32.vlgmr.msra.gmra.mxu1 %v4942_v50 }
 0x257   :  { %1210 = vmatprep.subr.mxu0 %v4953_v53  ;;  %3442 = vmatprep.subr.mxu1 %v6533_v29 }
 0x258   :  { %1211 = vmatpush1.msra.mxu0 %v4957_v56  ;;  %3443 = vmatpush3.msra.mxu1 %v4960_v2 }
 0x259   :  { %1212 = vmatprep.subr.mxu0 %v4963_v59  ;;  %3444 = vmatprep.subr.mxu1 %v6533_v29 }
 0x25a   :  { %1213 = vmatpush1.msra.mxu0 %v4967_v60  ;;  %3445 = vmatpush3.msra.mxu1 %v4970_v61 }
 0x25b   :  { %1214 = vmatprep.subr.mxu0 %v4973_v62  ;;  %3446 = vmatprep.subr.mxu1 %v6533_v29 }
 0x25c   :  { %1215 = vmatpush1.msra.mxu0 %v4977_v49  ;;  %3447 = vmatpush3.msra.mxu1 %v4980_v51 }
 0x25d   :  { %1216 = vmatprep.subr.mxu0 %v4983_v1  ;;  %3448 = vmatprep.subr.mxu1 %v6533_v29 }
 0x25e   :  { %1217 = vmatpush1.msra.mxu0 %v4987_v3  ;;  %3449 = vmatpush3.msra.mxu1 %v4990_v4 }
 0x25f   :  { %1218 = vmatprep.subr.mxu0 %v4993_v5  ;;  %3450 = vmatprep.subr.mxu1 %v6533_v29 }
 0x260   :  { %1219 = vmatpush1.msra.mxu0 %v4997_v6  ;;  %3451 = vmatpush3.msra.mxu1 %v5000_v7 }
 0x261   :  { %1220 = vmatprep.subr.mxu0 %v5003_v8  ;;  %3452 = vmatprep.subr.mxu1 %v6533_v29 }
 0x262   :  { %1221 = vmatpush1.msra.mxu0 %v5007_v9  ;;  %3453 = vmatpush3.msra.mxu1 %v5010_v10 }
 0x263   :  { %1222 = vmatprep.subr.mxu0 %v5013_v11  ;;  %3454 = vmatprep.subr.mxu1 %v6533_v29 }
 0x264   :  { %1223 = vmatpush1.msra.mxu0 %v5017_v12  ;;  %3455 = vmatpush3.msra.mxu1 %v5020_v13 }
 0x265   :  { %1224 = vmatprep.subr.mxu0 %v5023_v14  ;;  %3456 = vmatprep.subr.mxu1 %v6533_v29 }
 0x266   :  { %1225 = vmatpush1.msra.mxu0 %v5027_v15  ;;  %3457 = vmatpush3.msra.mxu1 %v5030_v16 }
 0x267   :  { %1226 = vmatprep.subr.mxu0 %v5033_v17  ;;  %3458 = vmatprep.subr.mxu1 %v6533_v29 }
 0x268   :  { %1227 = vmatpush1.msra.mxu0 %v5037_v18  ;;  %3459 = vmatpush3.msra.mxu1 %v5040_v19 }
 0x269   :  { %1228 = vmatprep.subr.mxu0 %v5043_v44  ;;  %3460 = vmatprep.subr.mxu1 %v6533_v29 }
 0x26a   :  { %1229 = vmatpush1.msra.mxu0 %v5047_v21  ;;  %3461 = vmatpush3.msra.mxu1 %v5050_v45 }
 0x26b   :  { %1230 = vmatprep.subr.mxu0 %v5053_v63  ;;  %3462 = vmatprep.subr.mxu1 %v6533_v29 }
 0x26c   :  { %1231 = vmatpush1.msra.mxu0 %v5057_v22  ;;  %3463 = vmatpush3.msra.mxu1 %v5060_v48 }
 0x26d   :  { %1232 = vmatprep.subr.mxu0 %v5063_v54  ;;  %3464 = vmatprep.subr.mxu1 %v6533_v29 }
 0x26e   :  { %1233 = vmatpush1.msra.mxu0 %v5067_v35  ;;  %3465 = vmatpush3.msra.mxu1 %v5070_v37 }
 0x26f   :  { %1234 = vmatprep.subr.mxu0 %v5073_v23  ;;  %3466 = vmatprep.subr.mxu1 %v6533_v29 }
 0x270   :  { %1235 = vmatpush1.msra.mxu0 %v5077_v0  ;;  %3467 = vmatpush3.msra.mxu1 %v5080_v43 }
 0x271   :  { %1236 = vmatprep.subr.mxu0 %v5083_v46  ;;  %3468 = vmatprep.subr.mxu1 %v6533_v29 }
 0x272   :  { %1237 = vmatpush1.msra.mxu0 %v5087_v34  ;;  %3469 = vmatpush3.msra.mxu1 %v5090_v38 }
 0x273   :  { %1238 = vmatprep.subr.mxu0 %v5093_v58  ;;  %3470 = vmatprep.subr.mxu1 %v6533_v29 }
 0x274   :  { %1239 = vmatpush1.msra.mxu0 %v5097_v42  ;;  %3471 = vmatpush3.msra.mxu1 %v5100_v32 }
 0x275   :  { %1240 = vmatprep.subr.mxu0 %v5103_v24  ;;  %3472 = vmatprep.subr.mxu1 %v6533_v29 }
 0x276   :  { %1241 = vmatpush1.msra.mxu0 %v5107_v55  ;;  %1274 = vmatprep.mubr.f32.mxu0 %v6533_v29  ;;  %v875_v55 = vld [vmem:[%s6237_s1 + $0x78] sm:$0xff] }
 0x277   :  { %3473 = vmatpush3.msra.mxu1 %v5111_v25  ;;  %3474 = vmatprep.mubr.msk.f32.mxu1 %vm4232_vm0, %v6533_v29 }
 0x278   :  { %1351 = vmatprep.subr.mxu0 %v5116_v26  ;;  %3477 = vmatprep.subr.mxu1 %v6533_v29 }
 0x2f5   :  { %v944_v27 = vpop.f32.mrf.mxu0  ;;  %v1015_v28 = vpop.f32.mrf.mxu1 }
 0x2f6   :  { %v1160_v40 = vadd.f32 %v944_v27, %v872_v31  ;;  %v1174_v31 = vadd.f32 %v6584_v57, %v1015_v28  ;;  %v876_v57 = vld [vmem:[%s6237_s1 + $0x80] sm:$0xff] }
 0x2f7   :  { %v3406_v30 = vpop.f32.mrf.mxu1  ;;  %v946_v39 = vpop.f32.mrf.mxu0 }
 0x2f8   :  { %v2936_v33 = vmul.f32 -1.442695, %v1160_v40  ;;  %v1167_v52 = vadd.f32 %v946_v39, %v873_v36 }
 0x2fa   :  { %3843 = vpow2.f32 %v2936_v33  ;;  %v2937_v41 = vmul.f32 -1.442695, %v1167_v52  ;;  %v874_v33 = vld [vmem:[%s6236_s0 + $0x40] sm:$0xff] }
 0x2fc   :  { %3845 = vpow2.f32 %v2937_v41 }
 0x307   :  { %v3844_v26 = vpop.eup %3843 }
 0x308   :  { %v1164_v25 = vadd.f32 1.0, %v3844_v26 }
 0x309   :  { %v3846_v24 = vpop.eup %3845 }
 0x30a   :  { %3847 = vrcp.f32 %v1164_v25  ;;  %v1171_v25 = vadd.f32 1.0, %v3846_v24 }
 0x316   :  { %v1085_v27 = vpop.f32.mrf.mxu0  ;;  %v1156_v40 = vpop.f32.mrf.mxu1 }
 0x317   :  { %v3848_v30 = vpop.eup %3847  ;;  %v1181_v36 = vadd.f32 %v1085_v27, %v875_v55 }
 0x318   :  { %v1175_v39 = vmul.f32 %v3848_v30, %v1174_v31  ;;  %v3441_v52 = vpop.f32.mrf.mxu1  ;;  %v1087_v28 = vpop.f32.mrf.mxu0  ;;  %v5165_v30 = vld [vmem:[#allocation4 + $0x2b8] sm:$0xff] }
 0x319   :  { %v2938_v26 = vmul.f32 -1.442695, %v1181_v36  ;;  %v1188_v32 = vadd.f32 %v1087_v28, %v876_v57  ;;  %v5171_v36 = vld [vmem:[#allocation4 + $0x2a8] sm:$0xff]  ;;  %v1195_v52 = vadd.f32 %v6587_v47, %v1156_v40  ;;  %v5185_v28 = vld [vmem:[#allocation4 + $0x290] sm:$0xff] }
 0x31a   :  { %v1176_v41 = vadd.f32 %v1175_v39, %v874_v33  ;;  %v5168_v33 = vld [vmem:[#allocation4 + $0x2c8] sm:$0xff]  ;;  %6633 = vst [vmem:[#allocation18_spill] sm:$0xff] %v5185_v28 }
 0x31b   :  { %3849 = vpow2.f32 %v2938_v26  ;;  %v2939_v42 = vmul.f32 -1.442695, %v1188_v32  ;;  %v5145_v32 = vld [vmem:[#allocation4 + $0x2e8] sm:$0xff]  ;;  %v5176_v26 = vld [vmem:[#allocation4 + $0x2a0] sm:$0xff] }
 0x31c   :  { %3851 = vtanh.f32 %v1176_v41  ;;  %v5179_v41 = vld [vmem:[#allocation4 + $0x2b0] sm:$0xff]  ;;  %v877_v57 = vld [vmem:[%s6237_s1 + $0x88] sm:$0xff] }
 0x31d   :  { %3853 = vrcp.f32 %v1171_v25  ;;  %6632 = vst [vmem:[#allocation27_spill] sm:$0xff] %v5179_v41  ;;  %v5189_v40 = vld [vmem:[#allocation4 + $0x288] sm:$0xff] }
 0x31e   :  { %3855 = vpow2.f32 %v2939_v42  ;;  %v5161_v42 = vld [vmem:[#allocation4 + $0x2c0] sm:$0xff] }
 0x328   :  { %v3850_v58 = vpop.eup %3849 }
 0x329   :  { %v3852_v38 = vpop.eup %3851  ;;  %v1185_v34 = vadd.f32 1.0, %v3850_v58  ;;  %v5148_v58 = vld [vmem:[#allocation4 + $0x2f8] sm:$0xff] }
 0x32a   :  { %v1178_v55 = vsub.f32 %v4867_v20, %v3852_v38  ;;  %v3854_v31 = vpop.eup %3853  ;;  %v5151_v20 = vld [vmem:[#allocation4 + $0x2d8] sm:$0xff] }
 0x32b   :  { %3857 = vrcp.f32 %v1185_v34  ;;  %v5155_v34 = vld [vmem:[#allocation4 + $0x2d0] sm:$0xff]  ;;  %v3856_v39 = vpop.eup %3855 }
 0x32c   :  { %v1179_v27 = vmul.f32 %v3854_v31, %v1178_v55  ;;  %v5192_v55 = vld [vmem:[#allocation4 + $0x298] sm:$0xff] }
 0x32d   :  { %v5195_v31 = vld [vmem:[#allocation4 + $0x278] sm:$0xff] }
 0x32e   :  { %v5137_v24 = vadd.f32 %v3852_v38, %v1179_v27  ;;  %v5158_v38 = vld [vmem:[#allocation4 + $0x2e0] sm:$0xff]  ;;  %6634 = vst [vmem:[#allocation19_spill] sm:$0xff] %v5195_v31 }
 0x330   :  { %1202 = vst [vmem:[%s6240_s4 + $0x10] sm:$0xff] %v5137_v24  ;;  %1275 = vmatmul.mubr.f32.vlgmr.msra.gmra.mxu0 %v5137_v24  ;;  %3475 = vmatmul.mubr.f32.vlgmr.msra.gmra.mxu1 %v5137_v24 }
 0x331   :  { %1352 = vmatpush1.msra.mxu0 %v5145_v32  ;;  %3478 = vmatpush3.msra.mxu1 %v5148_v58 }
 0x332   :  { %1353 = vmatprep.subr.mxu0 %v5151_v20  ;;  %3479 = vmatprep.subr.mxu1 %v6533_v29 }
 0x333   :  { %1354 = vmatpush1.msra.mxu0 %v5155_v34  ;;  %3480 = vmatpush3.msra.mxu1 %v5158_v38 }
 0x334   :  { %1355 = vmatprep.subr.mxu0 %v5161_v42  ;;  %3481 = vmatprep.subr.mxu1 %v6533_v29 }
 0x335   :  { %1356 = vmatpush1.msra.mxu0 %v5165_v30  ;;  %3482 = vmatpush3.msra.mxu1 %v5168_v33 }
 0x336   :  { %1357 = vmatprep.subr.mxu0 %v5171_v36  ;;  %3483 = vmatprep.subr.mxu1 %v6533_v29 }
 0x337   :  { %1358 = vmatpush1.msra.mxu0 %v5176_v26  ;;  %3484 = vmatpush3.msra.mxu1 %v5179_v41  ;;  %v1192_v41 = vadd.f32 1.0, %v3856_v39  ;;  %v5212_v39 = vld [vmem:[#allocation4 + $0x268] sm:$0xff] }
 0x338   :  { %v3858_v25 = vpop.eup %3857  ;;  %1359 = vmatprep.subr.mxu0 %v5185_v28  ;;  %3485 = vmatprep.subr.mxu1 %v6533_v29  ;;  %v5199_v28 = vld [vmem:[#allocation4 + $0x270] sm:$0xff]  ;;  %6639 = vst [vmem:[#allocation22_spill] sm:$0xff] %v5212_v39 }
 0x339   :  { %v1196_v47 = vmul.f32 %v3858_v25, %v1195_v52  ;;  %1360 = vmatpush1.msra.mxu0 %v5189_v40  ;;  %3486 = vmatpush3.msra.mxu1 %v5192_v55  ;;  %6635 = vst [vmem:[#allocation30_spill] sm:$0xff] %v5199_v28  ;;  %v5202_v52 = vld [vmem:[#allocation4 + $0x280] sm:$0xff] }
 0x33a   :  { %1361 = vmatprep.subr.mxu0 %v5195_v31  ;;  %3487 = vmatprep.subr.mxu1 %v6533_v29  ;;  %6636 = vst [vmem:[#allocation20_spill] sm:$0xff] %v5202_v52  ;;  %v5205_v25 = vld [vmem:[#allocation4 + $0x260] sm:$0xff]  ;;  %v5209_v31 = vld [vmem:[#allocation4 + $0x258] sm:$0xff] }
 0x33b   :  { %v1197_v27 = vadd.f32 %v1196_v47, %v877_v57  ;;  %1362 = vmatpush1.msra.mxu0 %v5199_v28  ;;  %3488 = vmatpush3.msra.mxu1 %v5202_v52  ;;  %6637 = vst [vmem:[#allocation21_spill] sm:$0xff] %v5205_v25  ;;  %6638 = vst [vmem:[#allocation33_spill] sm:$0xff] %v5209_v31  ;;  %v5215_v57 = vld [vmem:[#allocation4 + $0x248] sm:$0xff]  ;;  %v5219_v47 = vld [vmem:[#allocation4 + $0x240] sm:$0xff] }
 0x33c   :  { %1363 = vmatprep.subr.mxu0 %v5205_v25  ;;  %3489 = vmatprep.subr.mxu1 %v6533_v29  ;;  %6640 = vst [vmem:[#allocation24_spill] sm:$0xff] %v5215_v57  ;;  %6641 = vst [vmem:[#allocation36_spill] sm:$0xff] %v5219_v47  ;;  %v5286_v52 = vld [vmem:[#allocation4 + $0x1a0] sm:$0xff]  ;;  %v5296_v28 = vld [vmem:[#allocation4 + $0x188] sm:$0xff] }
 0x33d   :  { %3859 = vtanh.f32 %v1197_v27  ;;  %1364 = vmatpush1.msra.mxu0 %v5209_v31  ;;  %3490 = vmatpush3.msra.mxu1 %v5212_v39  ;;  %v5222_v27 = vld [vmem:[#allocation4 + $0x250] sm:$0xff]  ;;  %v5229_v39 = vld [vmem:[#allocation4 + $0x228] sm:$0xff]  ;;  %6661 = vst [vmem:[#allocation68_spill] sm:$0xff] %v5286_v52 }
 0x33e   :  { %1365 = vmatprep.subr.mxu0 %v5215_v57  ;;  %3491 = vmatprep.subr.mxu1 %v6533_v29  ;;  %3861 = vrcp.f32 %v1192_v41  ;;  %6642 = vst [vmem:[#allocation25_spill] sm:$0xff] %v5222_v27  ;;  %v5225_v31 = vld [vmem:[#allocation4 + $0x230] sm:$0xff]  ;;  %6644 = vst [vmem:[#allocation45_spill] sm:$0xff] %v5229_v39  ;;  %v5232_v57 = vld [vmem:[#allocation4 + $0x238] sm:$0xff] }
 0x33f   :  { %1366 = vmatpush1.msra.mxu0 %v5219_v47  ;;  %3492 = vmatpush3.msra.mxu1 %v5222_v27  ;;  %6643 = vst [vmem:[#allocation70_spill] sm:$0xff] %v5225_v31  ;;  %6645 = vst [vmem:[#allocation31_spill] sm:$0xff] %v5232_v57  ;;  %v5235_v41 = vld [vmem:[#allocation4 + $0x218] sm:$0xff]  ;;  %v5239_v27 = vld [vmem:[#allocation4 + $0x210] sm:$0xff] }
 0x340   :  { %1367 = vmatprep.subr.mxu0 %v5225_v31  ;;  %3493 = vmatprep.subr.mxu1 %v6533_v29  ;;  %6646 = vst [vmem:[#allocation71_spill] sm:$0xff] %v5235_v41  ;;  %6647 = vst [vmem:[#allocation32_spill] sm:$0xff] %v5239_v27  ;;  %v5242_v31 = vld [vmem:[#allocation4 + $0x220] sm:$0xff] }
 0x341   :  { %1368 = vmatpush1.msra.mxu0 %v5229_v39  ;;  %3494 = vmatpush3.msra.mxu1 %v5232_v57  ;;  %6648 = vst [vmem:[#allocation35_spill] sm:$0xff] %v5242_v31  ;;  %v5245_v47 = vld [vmem:[#allocation4 + $0x200] sm:$0xff]  ;;  %v5249_v57 = vld [vmem:[#allocation4 + $0x1f8] sm:$0xff]  ;;  %v5255_v39 = vld [vmem:[#allocation4 + $0x1e8] sm:$0xff] }
 0x342   :  { %1369 = vmatprep.subr.mxu0 %v5235_v41  ;;  %3495 = vmatprep.subr.mxu1 %v6533_v29  ;;  %6649 = vst [vmem:[#allocation40_spill] sm:$0xff] %v5245_v47  ;;  %6650 = vst [vmem:[#allocation41_spill] sm:$0xff] %v5249_v57  ;;  %v5252_v41 = vld [vmem:[#allocation4 + $0x208] sm:$0xff] }
 0x343   :  { %1370 = vmatpush1.msra.mxu0 %v5239_v27  ;;  %3496 = vmatpush3.msra.mxu1 %v5242_v31  ;;  %6651 = vst [vmem:[#allocation60_spill] sm:$0xff] %v5252_v41  ;;  %6652 = vst [vmem:[#allocation43_spill] sm:$0xff] %v5255_v39  ;;  %v5259_v31 = vld [vmem:[#allocation4 + $0x1e0] sm:$0xff]  ;;  %v5265_v27 = vld [vmem:[#allocation4 + $0x1d0] sm:$0xff] }
 0x344   :  { %1371 = vmatprep.subr.mxu0 %v5245_v47  ;;  %3497 = vmatprep.subr.mxu1 %v6533_v29  ;;  %6653 = vst [vmem:[#allocation63_spill] sm:$0xff] %v5259_v31  ;;  %v5262_v47 = vld [vmem:[#allocation4 + $0x1f0] sm:$0xff]  ;;  %6655 = vst [vmem:[#allocation66_spill] sm:$0xff] %v5265_v27 }
 0x345   :  { %1372 = vmatpush1.msra.mxu0 %v5249_v57  ;;  %3498 = vmatpush3.msra.mxu1 %v5252_v41  ;;  %6654 = vst [vmem:[#allocation46_spill] sm:$0xff] %v5262_v47  ;;  %v5269_v41 = vld [vmem:[#allocation4 + $0x1c8] sm:$0xff] }
 0x346   :  { %1373 = vmatprep.subr.mxu0 %v5255_v39  ;;  %3499 = vmatprep.subr.mxu1 %v6533_v29  ;;  %6656 = vst [vmem:[#allocation49_spill] sm:$0xff] %v5269_v41  ;;  %v5272_v39 = vld [vmem:[#allocation4 + $0x1d8] sm:$0xff] }
 0x347   :  { %1374 = vmatpush1.msra.mxu0 %v5259_v31  ;;  %3500 = vmatpush3.msra.mxu1 %v5262_v47  ;;  %6657 = vst [vmem:[#allocation50_spill] sm:$0xff] %v5272_v39  ;;  %v5275_v31 = vld [vmem:[#allocation4 + $0x1b8] sm:$0xff]  ;;  %v5279_v47 = vld [vmem:[#allocation4 + $0x1b0] sm:$0xff] }
 0x348   :  { %1375 = vmatprep.subr.mxu0 %v5265_v27  ;;  %3501 = vmatprep.subr.mxu1 %v6533_v29  ;;  %6658 = vst [vmem:[#allocation67_spill] sm:$0xff] %v5275_v31  ;;  %6659 = vst [vmem:[#allocation52_spill] sm:$0xff] %v5279_v47  ;;  %v5282_v27 = vld [vmem:[#allocation4 + $0x1c0] sm:$0xff] }
 0x349   :  { %1376 = vmatpush1.msra.mxu0 %v5269_v41  ;;  %3502 = vmatpush3.msra.mxu1 %v5272_v39  ;;  %6660 = vst [vmem:[#allocation53_spill] sm:$0xff] %v5282_v27  ;;  %v5293_v39 = vld [vmem:[#allocation4 + $0x1a8] sm:$0xff] }
 0x34a   :  { %v3860_v57 = vpop.eup %3859  ;;  %1377 = vmatprep.subr.mxu0 %v5275_v31  ;;  %3503 = vmatprep.subr.mxu1 %v6533_v29  ;;  %v5290_v31 = vld [vmem:[#allocation4 + $0x198] sm:$0xff] }
 0x34b   :  { %1378 = vmatpush1.msra.mxu0 %v5279_v47  ;;  %3504 = vmatpush3.msra.mxu1 %v5282_v27  ;;  %v1199_v41 = vsub.f32 %v4942_v50, %v3860_v57  ;;  %v3862_v25 = vpop.eup %3861  ;;  %6662 = vst [vmem:[#allocation55_spill] sm:$0xff] %v5290_v31  ;;  %v5300_v50 = vld [vmem:[#allocation4 + $0x180] sm:$0xff] }
 0x34c   :  { %1379 = vmatprep.subr.mxu0 %v5286_v52  ;;  %3505 = vmatprep.subr.mxu1 %v6533_v29 }
 0x34d   :  { %1380 = vmatpush1.msra.mxu0 %v5290_v31  ;;  %3506 = vmatpush3.msra.mxu1 %v5293_v39  ;;  %v1200_v47 = vmul.f32 %v3862_v25, %v1199_v41  ;;  %v5306_v31 = vld [vmem:[#allocation4 + $0x190] sm:$0xff]  ;;  %v6666_v41 = vld [vmem:[#allocation23_spill] sm:$0xff] }
 0x34e   :  { %1381 = vmatprep.subr.mxu0 %v5296_v28  ;;  %3507 = vmatprep.subr.mxu1 %v6533_v29  ;;  %v6663_v25 = vld [vmem:[#allocation64_spill] sm:$0xff] }
 0x34f   :  { %1382 = vmatpush1.msra.mxu0 %v5300_v50  ;;  %1415 = vmatprep.mubr.f32.mxu0 %v6533_v29  ;;  %v5304_v52 = vadd.f32 %v3860_v57, %v1200_v47  ;;  %v6664_v57 = vld [vmem:[#allocation65_spill] sm:$0xff] }
 0x350   :  { %3508 = vmatpush3.msra.mxu1 %v5306_v31  ;;  %3509 = vmatprep.mubr.msk.f32.mxu1 %vm4232_vm0, %v6533_v29  ;;  %v6665_v47 = vld [vmem:[#allocation13_spill] sm:$0xff] }
 0x351   :  { %1203 = vst [vmem:[%s6241_s5 + $0x28] sm:$0xff] %v5304_v52  ;;  %1416 = vmatmul.mubr.f32.vlgmr.msra.gmra.mxu0 %v5304_v52  ;;  %3510 = vmatmul.mubr.f32.vlgmr.msra.gmra.mxu1 %v5304_v52 }
 0x352   :  { %1542 = vmatprep.subr.mxu0 %v4953_v53  ;;  %3512 = vmatprep.subr.mxu1 %v6533_v29 }
 0x353   :  { %1543 = vmatpush1.msra.mxu0 %v4957_v56  ;;  %3513 = vmatpush3.msra.mxu1 %v4960_v2 }
 0x354   :  { %1544 = vmatprep.subr.mxu0 %v4963_v59  ;;  %3514 = vmatprep.subr.mxu1 %v6533_v29 }
 0x355   :  { %1545 = vmatpush1.msra.mxu0 %v4967_v60  ;;  %3515 = vmatpush3.msra.mxu1 %v4970_v61 }
 0x356   :  { %1546 = vmatprep.subr.mxu0 %v4973_v62  ;;  %3516 = vmatprep.subr.mxu1 %v6533_v29 }
 0x357   :  { %1547 = vmatpush1.msra.mxu0 %v4977_v49  ;;  %3517 = vmatpush3.msra.mxu1 %v4980_v51 }
 0x358   :  { %1548 = vmatprep.subr.mxu0 %v4983_v1  ;;  %3518 = vmatprep.subr.mxu1 %v6533_v29 }
 0x359   :  { %1549 = vmatpush1.msra.mxu0 %v4987_v3  ;;  %3519 = vmatpush3.msra.mxu1 %v4990_v4 }
 0x35a   :  { %1550 = vmatprep.subr.mxu0 %v4993_v5  ;;  %3520 = vmatprep.subr.mxu1 %v6533_v29 }
 0x35b   :  { %1551 = vmatpush1.msra.mxu0 %v4997_v6  ;;  %3521 = vmatpush3.msra.mxu1 %v5000_v7 }
 0x35c   :  { %1552 = vmatprep.subr.mxu0 %v5003_v8  ;;  %3522 = vmatprep.subr.mxu1 %v6533_v29 }
 0x35d   :  { %1553 = vmatpush1.msra.mxu0 %v5007_v9  ;;  %3523 = vmatpush3.msra.mxu1 %v5010_v10 }
 0x35e   :  { %1554 = vmatprep.subr.mxu0 %v5013_v11  ;;  %3524 = vmatprep.subr.mxu1 %v6533_v29 }
 0x35f   :  { %1555 = vmatpush1.msra.mxu0 %v5017_v12  ;;  %3525 = vmatpush3.msra.mxu1 %v5020_v13 }
 0x360   :  { %1556 = vmatprep.subr.mxu0 %v5023_v14  ;;  %3526 = vmatprep.subr.mxu1 %v6533_v29 }
 0x361   :  { %1557 = vmatpush1.msra.mxu0 %v5027_v15  ;;  %3527 = vmatpush3.msra.mxu1 %v5030_v16 }
 0x362   :  { %1558 = vmatprep.subr.mxu0 %v5033_v17  ;;  %3528 = vmatprep.subr.mxu1 %v6533_v29 }
 0x363   :  { %1559 = vmatpush1.msra.mxu0 %v5037_v18  ;;  %3529 = vmatpush3.msra.mxu1 %v5040_v19 }
 0x364   :  { %1560 = vmatprep.subr.mxu0 %v5043_v44  ;;  %3530 = vmatprep.subr.mxu1 %v6533_v29 }
 0x365   :  { %1561 = vmatpush1.msra.mxu0 %v5047_v21  ;;  %3531 = vmatpush3.msra.mxu1 %v5050_v45 }
 0x366   :  { %1562 = vmatprep.subr.mxu0 %v5053_v63  ;;  %3532 = vmatprep.subr.mxu1 %v6533_v29 }
 0x367   :  { %1563 = vmatpush1.msra.mxu0 %v5057_v22  ;;  %3533 = vmatpush3.msra.mxu1 %v5060_v48  ;;  %v1207_v22 = vld [vmem:[%s6237_s1 + $0x60] sm:$0xff] }
 0x368   :  { %1564 = vmatprep.subr.mxu0 %v5063_v54  ;;  %3534 = vmatprep.subr.mxu1 %v6533_v29 }
 0x369   :  { %1565 = vmatpush1.msra.mxu0 %v5067_v35  ;;  %3535 = vmatpush3.msra.mxu1 %v5070_v37  ;;  %v6668_v37 = vld [vmem:[#allocation15_spill] sm:$0xff] }
 0x36a   :  { %1566 = vmatprep.subr.mxu0 %v5073_v23  ;;  %3536 = vmatprep.subr.mxu1 %v6533_v29  ;;  %v6667_v23 = vld [vmem:[#allocation14_spill] sm:$0xff] }
 0x36b   :  { %1567 = vmatpush1.msra.mxu0 %v5077_v0  ;;  %3537 = vmatpush3.msra.mxu1 %v5080_v43  ;;  %v6669_v43 = vld [vmem:[#allocation26_spill] sm:$0xff] }
 0x36c   :  { %1568 = vmatprep.subr.mxu0 %v5083_v46  ;;  %3538 = vmatprep.subr.mxu1 %v6533_v29  ;;  %v6670_v46 = vld [vmem:[#allocation16_spill] sm:$0xff] }
 0x36d   :  { %1569 = vmatpush1.msra.mxu0 %v6663_v25  ;;  %3539 = vmatpush3.msra.mxu1 %v6664_v57 }
 0x36e   :  { %1570 = vmatprep.subr.mxu0 %v6665_v47  ;;  %3540 = vmatprep.subr.mxu1 %v6533_v29  ;;  %v6671_v47 = vld [vmem:[#allocation17_spill] sm:$0xff] }
 0x36f   :  { %1571 = vmatpush1.msra.mxu0 %v6666_v41  ;;  %3541 = vmatpush3.msra.mxu1 %v6667_v23  ;;  %v1204_v23 = vld [vmem:[%s6236_s0 + $0x48] sm:$0xff] }
 0x370   :  { %1572 = vmatprep.subr.mxu0 %v6668_v37  ;;  %3542 = vmatprep.subr.mxu1 %v6533_v29 }
 0x371   :  { %1573 = vmatpush1.msra.mxu0 %v6669_v43  ;;  %1606 = vmatprep.mubr.f32.mxu0 %v6533_v29 }
 0x372   :  { %3543 = vmatpush3.msra.mxu1 %v6670_v46  ;;  %3544 = vmatprep.mubr.msk.f32.mxu1 %vm4232_vm0, %v6533_v29  ;;  %v1205_v46 = vld [vmem:[%s6236_s0 + $0x50] sm:$0xff] }
 0x373   :  { %1683 = vmatprep.subr.mxu0 %v6671_v47  ;;  %3547 = vmatprep.subr.mxu1 %v6533_v29 }
 0x3f0   :  { %v1276_v37 = vpop.f32.mrf.mxu0  ;;  %v1347_v41 = vpop.f32.mrf.mxu1 }
 0x3f1   :  { %v1492_v57 = vadd.f32 %v1276_v37, %v1204_v23  ;;  %v5395_v37 = vld [vmem:[#allocation7] ss:$0 sm:$0xff] }
 0x3f2   :  { %v3476_v25 = vpop.f32.mrf.mxu1  ;;  %v1278_v0 = vpop.f32.mrf.mxu0  ;;  %6672 = vst [vmem:[#allocation56_spill] sm:$0xff] %v5395_v37  ;;  %v1506_v23 = vadd.f32 %v5395_v37, %v1347_v41  ;;  %v1208_v41 = vld [vmem:[%s6237_s1 + $0x68] sm:$0xff] }
 0x3f3   :  { %v2940_v43 = vmul.f32 -1.442695, %v1492_v57  ;;  %v1499_v35 = vadd.f32 %v1278_v0, %v1205_v46 }
 0x3f5   :  { %3863 = vpow2.f32 %v2940_v43  ;;  %v2941_v54 = vmul.f32 -1.442695, %v1499_v35  ;;  %v1206_v35 = vld [vmem:[%s6236_s0 + $0x58] sm:$0xff] }
 0x3f7   :  { %3865 = vpow2.f32 %v2941_v54 }
 0x402   :  { %v3864_v47 = vpop.eup %3863 }
 0x403   :  { %v1496_v48 = vadd.f32 1.0, %v3864_v47 }
 0x404   :  { %v3866_v63 = vpop.eup %3865 }
 0x405   :  { %3867 = vrcp.f32 %v1496_v48  ;;  %v1503_v45 = vadd.f32 1.0, %v3866_v63 }
 0x411   :  { %v1417_v43 = vpop.f32.mrf.mxu0  ;;  %v1488_v25 = vpop.f32.mrf.mxu1 }
 0x412   :  { %v3868_v57 = vpop.eup %3867  ;;  %v1513_v0 = vadd.f32 %v1417_v43, %v1207_v22 }
 0x413   :  { %v1507_v46 = vmul.f32 %v3868_v57, %v1506_v23  ;;  %v3511_v54 = vpop.f32.mrf.mxu1  ;;  %v1419_v37 = vpop.f32.mrf.mxu0  ;;  %v6675_v57 = vld [vmem:[#allocation19_spill] sm:$0xff] }
 0x414   :  { %v2942_v48 = vmul.f32 -1.442695, %v1513_v0  ;;  %v1520_v21 = vadd.f32 %v1419_v37, %v1208_v41  ;;  %v6676_v0 = vld [vmem:[#allocation30_spill] sm:$0xff]  ;;  %v6678_v54 = vld [vmem:[#allocation21_spill] sm:$0xff]  ;;  %v6681_v41 = vld [vmem:[#allocation24_spill] sm:$0xff] }
 0x415   :  { %v1508_v47 = vadd.f32 %v1507_v46, %v1206_v35  ;;  %v6677_v46 = vld [vmem:[#allocation20_spill] sm:$0xff] }
 0x416   :  { %3869 = vpow2.f32 %v2942_v48  ;;  %v2943_v44 = vmul.f32 -1.442695, %v1520_v21  ;;  %v6679_v48 = vld [vmem:[#allocation33_spill] sm:$0xff] }
 0x417   :  { %3871 = vtanh.f32 %v1508_v47  ;;  %v6680_v47 = vld [vmem:[#allocation22_spill] sm:$0xff] }
 0x418   :  { %3873 = vrcp.f32 %v1503_v45  ;;  %v1209_v45 = vld [vmem:[%s6237_s1 + $0x70] sm:$0xff] }
 0x419   :  { %3875 = vpow2.f32 %v2943_v44  ;;  %v6673_v44 = vld [vmem:[#allocation27_spill] sm:$0xff] }
 0x423   :  { %v3870_v19 = vpop.eup %3869 }
 0x424   :  { %v3872_v18 = vpop.eup %3871  ;;  %v1517_v17 = vadd.f32 1.0, %v3870_v19 }
 0x425   :  { %v1510_v22 = vsub.f32 %v5137_v24, %v3872_v18  ;;  %v3874_v23 = vpop.eup %3873  ;;  %v6674_v24 = vld [vmem:[#allocation18_spill] sm:$0xff] }
 0x426   :  { %3877 = vrcp.f32 %v1517_v17  ;;  %v3876_v17 = vpop.eup %3875 }
 0x427   :  { %v1511_v43 = vmul.f32 %v3874_v23, %v1510_v22  ;;  %v1524_v35 = vadd.f32 1.0, %v3876_v17  ;;  %v6682_v22 = vld [vmem:[#allocation36_spill] sm:$0xff]  ;;  %v6683_v23 = vld [vmem:[#allocation25_spill] sm:$0xff] }
 0x428   :  { %v6685_v17 = vld [vmem:[#allocation45_spill] sm:$0xff] }
 0x429   :  { %v5405_v63 = vadd.f32 %v3872_v18, %v1511_v43  ;;  %v5425_v18 = vld [vmem:[#allocation7 + $0x1] ss:$0 sm:$0xff] }
 0x42a   :  { %v1527_v19 = vadd.f32 %v5425_v18, %v1488_v25  ;;  %v6684_v43 = vld [vmem:[#allocation70_spill] sm:$0xff] }
 0x42b   :  { %1534 = vst [vmem:[%s6240_s4 + $0x18] sm:$0xff] %v5405_v63  ;;  %1607 = vmatmul.mubr.f32.vlgmr.msra.gmra.mxu0 %v5405_v63  ;;  %3545 = vmatmul.mubr.f32.vlgmr.msra.gmra.mxu1 %v5405_v63 }
 0x42c   :  { %1684 = vmatpush1.msra.mxu0 %v5145_v32  ;;  %3548 = vmatpush3.msra.mxu1 %v5148_v58 }
 0x42d   :  { %1685 = vmatprep.subr.mxu0 %v5151_v20  ;;  %3549 = vmatprep.subr.mxu1 %v6533_v29 }
 0x42e   :  { %1686 = vmatpush1.msra.mxu0 %v5155_v34  ;;  %3550 = vmatpush3.msra.mxu1 %v5158_v38 }
 0x42f   :  { %1687 = vmatprep.subr.mxu0 %v5161_v42  ;;  %3551 = vmatprep.subr.mxu1 %v6533_v29 }
 0x430   :  { %1688 = vmatpush1.msra.mxu0 %v5165_v30  ;;  %3552 = vmatpush3.msra.mxu1 %v5168_v33 }
 0x431   :  { %1689 = vmatprep.subr.mxu0 %v5171_v36  ;;  %3553 = vmatprep.subr.mxu1 %v6533_v29 }
 0x432   :  { %1690 = vmatpush1.msra.mxu0 %v5176_v26  ;;  %3554 = vmatpush3.msra.mxu1 %v6673_v44 }
 0x433   :  { %v3878_v21 = vpop.eup %3877  ;;  %1691 = vmatprep.subr.mxu0 %v6674_v24  ;;  %3555 = vmatprep.subr.mxu1 %v6533_v29 }
 0x434   :  { %v1528_v37 = vmul.f32 %v3878_v21, %v1527_v19  ;;  %1692 = vmatpush1.msra.mxu0 %v5189_v40  ;;  %3556 = vmatpush3.msra.mxu1 %v5192_v55  ;;  %v6686_v19 = vld [vmem:[#allocation31_spill] sm:$0xff] }
 0x435   :  { %1693 = vmatprep.subr.mxu0 %v6675_v57  ;;  %3557 = vmatprep.subr.mxu1 %v6533_v29  ;;  %v6687_v21 = vld [vmem:[#allocation71_spill] sm:$0xff] }
 0x436   :  { %v1529_v25 = vadd.f32 %v1528_v37, %v1209_v45  ;;  %1694 = vmatpush1.msra.mxu0 %v6676_v0  ;;  %3558 = vmatpush3.msra.mxu1 %v6677_v46  ;;  %v6688_v45 = vld [vmem:[#allocation32_spill] sm:$0xff]  ;;  %v6689_v37 = vld [vmem:[#allocation35_spill] sm:$0xff] }
 0x437   :  { %1695 = vmatprep.subr.mxu0 %v6678_v54  ;;  %3559 = vmatprep.subr.mxu1 %v6533_v29 }
 0x438   :  { %3879 = vtanh.f32 %v1529_v25  ;;  %1696 = vmatpush1.msra.mxu0 %v6679_v48  ;;  %3560 = vmatpush3.msra.mxu1 %v6680_v47  ;;  %v6690_v25 = vld [vmem:[#allocation40_spill] sm:$0xff] }
 0x439   :  { %1697 = vmatprep.subr.mxu0 %v6681_v41  ;;  %3561 = vmatprep.subr.mxu1 %v6533_v29  ;;  %3881 = vrcp.f32 %v1524_v35  ;;  %v6691_v35 = vld [vmem:[#allocation41_spill] sm:$0xff] }
 0x43a   :  { %1698 = vmatpush1.msra.mxu0 %v6682_v22  ;;  %3562 = vmatpush3.msra.mxu1 %v6683_v23  ;;  %v6693_v23 = vld [vmem:[#allocation43_spill] sm:$0xff] }
 0x43b   :  { %1699 = vmatprep.subr.mxu0 %v6684_v43  ;;  %3563 = vmatprep.subr.mxu1 %v6533_v29  ;;  %v6692_v43 = vld [vmem:[#allocation60_spill] sm:$0xff] }
 0x43c   :  { %1700 = vmatpush1.msra.mxu0 %v6685_v17  ;;  %3564 = vmatpush3.msra.mxu1 %v6686_v19  ;;  %v6694_v19 = vld [vmem:[#allocation63_spill] sm:$0xff]  ;;  %v6696_v17 = vld [vmem:[#allocation66_spill] sm:$0xff] }
 0x43d   :  { %1701 = vmatprep.subr.mxu0 %v6687_v21  ;;  %3565 = vmatprep.subr.mxu1 %v6533_v29  ;;  %v6695_v21 = vld [vmem:[#allocation46_spill] sm:$0xff] }
 0x43e   :  { %1702 = vmatpush1.msra.mxu0 %v6688_v45  ;;  %3566 = vmatpush3.msra.mxu1 %v6689_v37  ;;  %v6697_v37 = vld [vmem:[#allocation49_spill] sm:$0xff] }
 0x43f   :  { %1703 = vmatprep.subr.mxu0 %v6690_v25  ;;  %3567 = vmatprep.subr.mxu1 %v6533_v29  ;;  %v6698_v25 = vld [vmem:[#allocation50_spill] sm:$0xff] }
 0x440   :  { %1704 = vmatpush1.msra.mxu0 %v6691_v35  ;;  %3568 = vmatpush3.msra.mxu1 %v6692_v43  ;;  %v6699_v35 = vld [vmem:[#allocation67_spill] sm:$0xff]  ;;  %v6701_v43 = vld [vmem:[#allocation68_spill] sm:$0xff] }
 0x441   :  { %1705 = vmatprep.subr.mxu0 %v6693_v23  ;;  %3569 = vmatprep.subr.mxu1 %v6533_v29  ;;  %v6700_v23 = vld [vmem:[#allocation52_spill] sm:$0xff] }
 0x442   :  { %1706 = vmatpush1.msra.mxu0 %v6694_v19  ;;  %3570 = vmatpush3.msra.mxu1 %v6695_v21 }
 0x443   :  { %1707 = vmatprep.subr.mxu0 %v6696_v17  ;;  %3571 = vmatprep.subr.mxu1 %v6533_v29  ;;  %v6702_v17 = vld [vmem:[#allocation55_spill] sm:$0xff] }
 0x444   :  { %1708 = vmatpush1.msra.mxu0 %v6697_v37  ;;  %3572 = vmatpush3.msra.mxu1 %v6698_v25 }
 0x445   :  { %v3880_v45 = vpop.eup %3879  ;;  %1709 = vmatprep.subr.mxu0 %v6699_v35  ;;  %3573 = vmatprep.subr.mxu1 %v6533_v29 }
 0x446   :  { %1710 = vmatpush1.msra.mxu0 %v6700_v23  ;;  %3574 = vmatpush3.msra.mxu1 %v5282_v27  ;;  %v1531_v19 = vsub.f32 %v5304_v52, %v3880_v45  ;;  %v3882_v21 = vpop.eup %3881  ;;  %v6727_v52 = vld [vmem:[#allocation17_spill] sm:$0xff] }
 0x447   :  { %1711 = vmatprep.subr.mxu0 %v6701_v43  ;;  %3575 = vmatprep.subr.mxu1 %v6533_v29 }
 0x448   :  { %1712 = vmatpush1.msra.mxu0 %v6702_v17  ;;  %3576 = vmatpush3.msra.mxu1 %v5293_v39  ;;  %v1532_v25 = vmul.f32 %v3882_v21, %v1531_v19  ;;  %v1536_v19 = vld [vmem:[%s6236_s0 + $0x60] sm:$0xff] }
 0x449   :  { %1713 = vmatprep.subr.mxu0 %v5296_v28  ;;  %3577 = vmatprep.subr.mxu1 %v6533_v29 }
 0x44a   :  { %1714 = vmatpush1.msra.mxu0 %v5300_v50  ;;  %1747 = vmatprep.mubr.f32.mxu0 %v6533_v29  ;;  %v5482_v27 = vadd.f32 %v3880_v45, %v1532_v25 }
 0x44b   :  { %3578 = vmatpush3.msra.mxu1 %v5306_v31  ;;  %3579 = vmatprep.mubr.msk.f32.mxu1 %vm4232_vm0, %v6533_v29 }
 0x44c   :  { %1535 = vst [vmem:[%s6241_s5 + $0x20] sm:$0xff] %v5482_v27  ;;  %1748 = vmatmul.mubr.f32.vlgmr.msra.gmra.mxu0 %v5482_v27  ;;  %3580 = vmatmul.mubr.f32.vlgmr.msra.gmra.mxu1 %v5482_v27 }
 0x44d   :  { %1874 = vmatprep.subr.mxu0 %v4953_v53  ;;  %3582 = vmatprep.subr.mxu1 %v6533_v29  ;;  %v6703_v53 = vld [vmem:[#allocation28_spill] sm:$0xff] }
 0x44e   :  { %1875 = vmatpush1.msra.mxu0 %v4957_v56  ;;  %3583 = vmatpush3.msra.mxu1 %v4960_v2  ;;  %v6704_v56 = vld [vmem:[#allocation29_spill] sm:$0xff]  ;;  %v6705_v2 = vld [vmem:[#allocation48_spill] sm:$0xff] }
 0x44f   :  { %1876 = vmatprep.subr.mxu0 %v4963_v59  ;;  %3584 = vmatprep.subr.mxu1 %v6533_v29  ;;  %v6706_v59 = vld [vmem:[#allocation34_spill] sm:$0xff] }
 0x450   :  { %1877 = vmatpush1.msra.mxu0 %v4967_v60  ;;  %3585 = vmatpush3.msra.mxu1 %v4970_v61  ;;  %v6707_v60 = vld [vmem:[#allocation51_spill] sm:$0xff]  ;;  %v6708_v61 = vld [vmem:[#allocation37_spill] sm:$0xff] }
 0x451   :  { %1878 = vmatprep.subr.mxu0 %v4973_v62  ;;  %3586 = vmatprep.subr.mxu1 %v6533_v29  ;;  %v6709_v62 = vld [vmem:[#allocation38_spill] sm:$0xff] }
 0x452   :  { %1879 = vmatpush1.msra.mxu0 %v4977_v49  ;;  %3587 = vmatpush3.msra.mxu1 %v4980_v51  ;;  %v6710_v49 = vld [vmem:[#allocation54_spill] sm:$0xff]  ;;  %v6711_v51 = vld [vmem:[#allocation39_spill] sm:$0xff] }
 0x453   :  { %1880 = vmatprep.subr.mxu0 %v4983_v1  ;;  %3588 = vmatprep.subr.mxu1 %v6533_v29  ;;  %v6712_v1 = vld [vmem:[#allocation57_spill] sm:$0xff] }
 0x454   :  { %1881 = vmatpush1.msra.mxu0 %v4987_v3  ;;  %3589 = vmatpush3.msra.mxu1 %v4990_v4  ;;  %v6713_v3 = vld [vmem:[#allocation42_spill] sm:$0xff]  ;;  %v6714_v4 = vld [vmem:[#allocation44_spill] sm:$0xff] }
 0x455   :  { %1882 = vmatprep.subr.mxu0 %v4993_v5  ;;  %3590 = vmatprep.subr.mxu1 %v6533_v29  ;;  %v6715_v5 = vld [vmem:[#allocation47_spill] sm:$0xff] }
 0x456   :  { %1883 = vmatpush1.msra.mxu0 %v4997_v6  ;;  %3591 = vmatpush3.msra.mxu1 %v5000_v7  ;;  %v6716_v6 = vld [vmem:[#allocation59_spill] sm:$0xff]  ;;  %v6717_v7 = vld [vmem:[#allocation61_spill] sm:$0xff] }
 0x457   :  { %1884 = vmatprep.subr.mxu0 %v5003_v8  ;;  %3592 = vmatprep.subr.mxu1 %v6533_v29  ;;  %v6718_v8 = vld [vmem:[#allocation62_spill] sm:$0xff] }
 0x458   :  { %1885 = vmatpush1.msra.mxu0 %v5007_v9  ;;  %3593 = vmatpush3.msra.mxu1 %v5010_v10  ;;  %v6719_v9 = vld [vmem:[#allocation64_spill] sm:$0xff]  ;;  %v6720_v10 = vld [vmem:[#allocation65_spill] sm:$0xff] }
 0x459   :  { %1886 = vmatprep.subr.mxu0 %v5013_v11  ;;  %3594 = vmatprep.subr.mxu1 %v6533_v29  ;;  %v6721_v11 = vld [vmem:[#allocation13_spill] sm:$0xff] }
 0x45a   :  { %1887 = vmatpush1.msra.mxu0 %v5017_v12  ;;  %3595 = vmatpush3.msra.mxu1 %v5020_v13  ;;  %v6722_v12 = vld [vmem:[#allocation23_spill] sm:$0xff]  ;;  %v6723_v13 = vld [vmem:[#allocation14_spill] sm:$0xff] }
 0x45b   :  { %1888 = vmatprep.subr.mxu0 %v5023_v14  ;;  %3596 = vmatprep.subr.mxu1 %v6533_v29  ;;  %v6724_v14 = vld [vmem:[#allocation15_spill] sm:$0xff] }
 0x45c   :  { %1889 = vmatpush1.msra.mxu0 %v5027_v15  ;;  %3597 = vmatpush3.msra.mxu1 %v5030_v16  ;;  %v6725_v15 = vld [vmem:[#allocation26_spill] sm:$0xff]  ;;  %v6726_v16 = vld [vmem:[#allocation16_spill] sm:$0xff] }
 0x45d   :  { %1890 = vmatprep.subr.mxu0 %v6703_v53  ;;  %3598 = vmatprep.subr.mxu1 %v6533_v29 }
 0x45e   :  { %1891 = vmatpush1.msra.mxu0 %v6704_v56  ;;  %3599 = vmatpush3.msra.mxu1 %v6705_v2  ;;  %v1537_v2 = vld [vmem:[%s6236_s0 + $0x68] sm:$0xff] }
 0x45f   :  { %1892 = vmatprep.subr.mxu0 %v6706_v59  ;;  %3600 = vmatprep.subr.mxu1 %v6533_v29 }
 0x460   :  { %1893 = vmatpush1.msra.mxu0 %v6707_v60  ;;  %3601 = vmatpush3.msra.mxu1 %v6708_v61 }
 0x461   :  { %1894 = vmatprep.subr.mxu0 %v6709_v62  ;;  %3602 = vmatprep.subr.mxu1 %v6533_v29 }
 0x462   :  { %1895 = vmatpush1.msra.mxu0 %v6710_v49  ;;  %3603 = vmatpush3.msra.mxu1 %v6711_v51  ;;  %v1539_v51 = vld [vmem:[%s6237_s1 + $0x48] sm:$0xff] }
 0x463   :  { %1896 = vmatprep.subr.mxu0 %v6712_v1  ;;  %3604 = vmatprep.subr.mxu1 %v6533_v29 }
 0x464   :  { %1897 = vmatpush1.msra.mxu0 %v6713_v3  ;;  %3605 = vmatpush3.msra.mxu1 %v6714_v4  ;;  %v6728_v3 = vld [vmem:[#allocation56_spill] sm:$0xff] }
 0x465   :  { %1898 = vmatprep.subr.mxu0 %v6715_v5  ;;  %3606 = vmatprep.subr.mxu1 %v6533_v29 }
 0x466   :  { %1899 = vmatpush1.msra.mxu0 %v6716_v6  ;;  %3607 = vmatpush3.msra.mxu1 %v6717_v7 }
 0x467   :  { %1900 = vmatprep.subr.mxu0 %v6718_v8  ;;  %3608 = vmatprep.subr.mxu1 %v6533_v29  ;;  %v1538_v8 = vld [vmem:[%s6236_s0 + $0x70] sm:$0xff] }
 0x468   :  { %1901 = vmatpush1.msra.mxu0 %v6719_v9  ;;  %3609 = vmatpush3.msra.mxu1 %v6720_v10 }
 0x469   :  { %1902 = vmatprep.subr.mxu0 %v6721_v11  ;;  %3610 = vmatprep.subr.mxu1 %v6533_v29 }
 0x46a   :  { %1903 = vmatpush1.msra.mxu0 %v6722_v12  ;;  %3611 = vmatpush3.msra.mxu1 %v6723_v13 }
 0x46b   :  { %1904 = vmatprep.subr.mxu0 %v6724_v14  ;;  %3612 = vmatprep.subr.mxu1 %v6533_v29 }
 0x46c   :  { %1905 = vmatpush1.msra.mxu0 %v6725_v15  ;;  %1938 = vmatprep.mubr.f32.mxu0 %v6533_v29  ;;  %v1540_v15 = vld [vmem:[%s6237_s1 + $0x50] sm:$0xff] }
 0x46d   :  { %3613 = vmatpush3.msra.mxu1 %v6726_v16  ;;  %3614 = vmatprep.mubr.msk.f32.mxu1 %vm4232_vm0, %v6533_v29 }
 0x46e   :  { %2015 = vmatprep.subr.mxu0 %v6727_v52  ;;  %3617 = vmatprep.subr.mxu1 %v6533_v29 }
 0x4eb   :  { %v1608_v21 = vpop.f32.mrf.mxu0  ;;  %v1679_v45 = vpop.f32.mrf.mxu1 }
 0x4ec   :  { %v1824_v25 = vadd.f32 %v1608_v21, %v1536_v19  ;;  %v1838_v4 = vadd.f32 %v6728_v3, %v1679_v45 }
 0x4ed   :  { %v3546_v53 = vpop.f32.mrf.mxu1  ;;  %v1610_v59 = vpop.f32.mrf.mxu0 }
 0x4ee   :  { %v2944_v56 = vmul.f32 -1.442695, %v1824_v25  ;;  %v1831_v60 = vadd.f32 %v1610_v59, %v1537_v2 }
 0x4f0   :  { %3883 = vpow2.f32 %v2944_v56  ;;  %v2945_v61 = vmul.f32 -1.442695, %v1831_v60  ;;  %v6744_v60 = vld [vmem:[#allocation53_spill] sm:$0xff] }
 0x4f2   :  { %3885 = vpow2.f32 %v2945_v61 }
 0x4fd   :  { %v3884_v62 = vpop.eup %3883 }
 0x4fe   :  { %v1828_v49 = vadd.f32 1.0, %v3884_v62 }
 0x4ff   :  { %v3886_v1 = vpop.eup %3885 }
 0x500   :  { %3887 = vrcp.f32 %v1828_v49  ;;  %v1835_v14 = vadd.f32 1.0, %v3886_v1  ;;  %v5692_v49 = vld [vmem:[#allocation4 + $0x148] sm:$0xff]  ;;  %v5699_v1 = vld [vmem:[#allocation4 + $0x120] sm:$0xff] }
 0x50c   :  { %v1749_v5 = vpop.f32.mrf.mxu0  ;;  %v1820_v6 = vpop.f32.mrf.mxu1 }
 0x50d   :  { %v3888_v7 = vpop.eup %3887  ;;  %v1845_v9 = vadd.f32 %v1749_v5, %v1539_v51  ;;  %v5695_v51 = vld [vmem:[#allocation4 + $0x128] sm:$0xff]  ;;  %v5705_v5 = vld [vmem:[#allocation4 + $0x110] sm:$0xff] }
 0x50e   :  { %v1839_v10 = vmul.f32 %v3888_v7, %v1838_v4  ;;  %v3581_v11 = vpop.f32.mrf.mxu1  ;;  %v1751_v16 = vpop.f32.mrf.mxu0  ;;  %v5702_v4 = vld [vmem:[#allocation4 + $0x130] sm:$0xff]  ;;  %v5712_v7 = vld [vmem:[#allocation4 + $0x118] sm:$0xff] }
 0x50f   :  { %v2946_v12 = vmul.f32 -1.442695, %v1845_v9  ;;  %v1852_v52 = vadd.f32 %v1751_v16, %v1540_v15  ;;  %v5719_v9 = vld [vmem:[#allocation4 + $0xf0] sm:$0xff]  ;;  %v5725_v11 = vld [vmem:[#allocation4 + $0xe0] sm:$0xff] }
 0x510   :  { %v1840_v13 = vadd.f32 %v1839_v10, %v1538_v8  ;;  %v5715_v8 = vld [vmem:[#allocation4 + $0xf8] sm:$0xff]  ;;  %v5722_v10 = vld [vmem:[#allocation4 + $0x100] sm:$0xff]  ;;  %v5742_v16 = vld [vmem:[#allocation4 + $0xd0] sm:$0xff] }
 0x511   :  { %3889 = vpow2.f32 %v2946_v12  ;;  %v2947_v19 = vmul.f32 -1.442695, %v1852_v52  ;;  %v5729_v12 = vld [vmem:[#allocation4 + $0xd8] sm:$0xff]  ;;  %v5739_v15 = vld [vmem:[#allocation4 + $0xc0] sm:$0xff]  ;;  %v5745_v52 = vld [vmem:[#allocation4 + $0xb0] sm:$0xff] }
 0x512   :  { %3891 = vtanh.f32 %v1840_v13  ;;  %v5732_v13 = vld [vmem:[#allocation4 + $0xe8] sm:$0xff] }
 0x513   :  { %3893 = vrcp.f32 %v1835_v14  ;;  %v5735_v14 = vld [vmem:[#allocation4 + $0xc8] sm:$0xff] }
 0x514   :  { %3895 = vpow2.f32 %v2947_v19  ;;  %v5749_v19 = vld [vmem:[#allocation4 + $0xa8] sm:$0xff] }
 0x51e   :  { %v3890_v21 = vpop.eup %3889 }
 0x51f   :  { %v3892_v45 = vpop.eup %3891  ;;  %v1849_v25 = vadd.f32 1.0, %v3890_v21  ;;  %v5752_v21 = vld [vmem:[#allocation4 + $0xb8] sm:$0xff] }
 0x520   :  { %v1842_v53 = vsub.f32 %v5405_v63, %v3892_v45  ;;  %v3894_v56 = vpop.eup %3893  ;;  %v6734_v63 = vld [vmem:[#allocation32_spill] sm:$0xff] }
 0x521   :  { %3897 = vrcp.f32 %v1849_v25  ;;  %v5759_v25 = vld [vmem:[#allocation4 + $0x90] sm:$0xff] }
 0x522   :  { %v1843_v2 = vmul.f32 %v3894_v56, %v1842_v53  ;;  %v5762_v53 = vld [vmem:[#allocation4 + $0xa0] sm:$0xff] }
 0x523   :  { %v5765_v56 = vld [vmem:[#allocation4 + $0x80] sm:$0xff] }
 0x524   :  { %v5579_v59 = vadd.f32 %v3892_v45, %v1843_v2  ;;  %v5755_v45 = vld [vmem:[#allocation4 + $0x98] sm:$0xff] }
 0x525   :  { %v5769_v2 = vld [vmem:[#allocation4 + $0x78] sm:$0xff] }
 0x526   :  { %1866 = vst [vmem:[%s6240_s4 + $0x20] sm:$0xff] %v5579_v59  ;;  %1939 = vmatmul.mubr.f32.vlgmr.msra.gmra.mxu0 %v5579_v59  ;;  %3615 = vmatmul.mubr.f32.vlgmr.msra.gmra.mxu1 %v5579_v59 }
 0x527   :  { %2016 = vmatpush1.msra.mxu0 %v5145_v32  ;;  %3618 = vmatpush3.msra.mxu1 %v5148_v58  ;;  %v3896_v32 = vpop.eup %3895  ;;  %v1859_v58 = vadd.f32 %v5425_v18, %v1820_v6  ;;  %v5709_v6 = vld [vmem:[#allocation4 + $0x108] sm:$0xff] }
 0x528   :  { %2017 = vmatprep.subr.mxu0 %v5151_v20  ;;  %3619 = vmatprep.subr.mxu1 %v6533_v29 }
 0x529   :  { %2018 = vmatpush1.msra.mxu0 %v5155_v34  ;;  %3620 = vmatpush3.msra.mxu1 %v5158_v38  ;;  %v1541_v34 = vld [vmem:[%s6237_s1 + $0x58] sm:$0xff] }
 0x52a   :  { %2019 = vmatprep.subr.mxu0 %v5161_v42  ;;  %3621 = vmatprep.subr.mxu1 %v6533_v29 }
 0x52b   :  { %2020 = vmatpush1.msra.mxu0 %v5165_v30  ;;  %3622 = vmatpush3.msra.mxu1 %v5168_v33  ;;  %v1856_v30 = vadd.f32 1.0, %v3896_v32  ;;  %v6729_v33 = vld [vmem:[#allocation25_spill] sm:$0xff]  ;;  %v5772_v32 = vld [vmem:[#allocation4 + $0x88] sm:$0xff] }
 0x52c   :  { %2021 = vmatprep.subr.mxu0 %v5171_v36  ;;  %3623 = vmatprep.subr.mxu1 %v6533_v29  ;;  %v6730_v36 = vld [vmem:[#allocation70_spill] sm:$0xff] }
 0x52d   :  { %2022 = vmatpush1.msra.mxu0 %v5176_v26  ;;  %3624 = vmatpush3.msra.mxu1 %v6673_v44  ;;  %v6731_v26 = vld [vmem:[#allocation45_spill] sm:$0xff]  ;;  %v6735_v44 = vld [vmem:[#allocation35_spill] sm:$0xff] }
 0x52e   :  { %v3898_v20 = vpop.eup %3897  ;;  %2023 = vmatprep.subr.mxu0 %v6674_v24  ;;  %3625 = vmatprep.subr.mxu1 %v6533_v29  ;;  %v6736_v24 = vld [vmem:[#allocation40_spill] sm:$0xff] }
 0x52f   :  { %v1860_v38 = vmul.f32 %v3898_v20, %v1859_v58  ;;  %2024 = vmatpush1.msra.mxu0 %v5189_v40  ;;  %3626 = vmatpush3.msra.mxu1 %v5192_v55  ;;  %v6732_v40 = vld [vmem:[#allocation31_spill] sm:$0xff] }
 0x530   :  { %2025 = vmatprep.subr.mxu0 %v6675_v57  ;;  %3627 = vmatprep.subr.mxu1 %v6533_v29  ;;  %v6733_v55 = vld [vmem:[#allocation71_spill] sm:$0xff]  ;;  %v6737_v57 = vld [vmem:[#allocation41_spill] sm:$0xff] }
 0x531   :  { %v1861_v42 = vadd.f32 %v1860_v38, %v1541_v34  ;;  %2026 = vmatpush1.msra.mxu0 %v6676_v0  ;;  %3628 = vmatpush3.msra.mxu1 %v6677_v46  ;;  %v6738_v0 = vld [vmem:[#allocation60_spill] sm:$0xff]  ;;  %v6739_v46 = vld [vmem:[#allocation43_spill] sm:$0xff] }
 0x532   :  { %2027 = vmatprep.subr.mxu0 %v6678_v54  ;;  %3629 = vmatprep.subr.mxu1 %v6533_v29  ;;  %v6740_v54 = vld [vmem:[#allocation63_spill] sm:$0xff]  ;;  %v5782_v34 = vld [vmem:[#allocation4 + $0x70] sm:$0xff] }
 0x533   :  { %3899 = vtanh.f32 %v1861_v42  ;;  %2028 = vmatpush1.msra.mxu0 %v6679_v48  ;;  %3630 = vmatpush3.msra.mxu1 %v6680_v47  ;;  %v6741_v48 = vld [vmem:[#allocation46_spill] sm:$0xff]  ;;  %v5775_v58 = vld [vmem:[#allocation4 + $0x68] sm:$0xff]  ;;  %v5785_v38 = vld [vmem:[#allocation4 + $0x50] sm:$0xff] }
 0x534   :  { %2029 = vmatprep.subr.mxu0 %v6681_v41  ;;  %3631 = vmatprep.subr.mxu1 %v6533_v29  ;;  %3901 = vrcp.f32 %v1856_v30  ;;  %v6742_v47 = vld [vmem:[#allocation66_spill] sm:$0xff]  ;;  %v5789_v42 = vld [vmem:[#allocation4 + $0x48] sm:$0xff] }
 0x535   :  { %2030 = vmatpush1.msra.mxu0 %v6682_v22  ;;  %3632 = vmatpush3.msra.mxu1 %v6729_v33  ;;  %v6743_v41 = vld [vmem:[#allocation50_spill] sm:$0xff] }
 0x536   :  { %2031 = vmatprep.subr.mxu0 %v6730_v36  ;;  %3633 = vmatprep.subr.mxu1 %v6533_v29  ;;  %v5779_v20 = vld [vmem:[#allocation4 + $0x60] sm:$0xff]  ;;  %v5792_v30 = vld [vmem:[#allocation4 + $0x58] sm:$0xff]  ;;  %v5799_v36 = vld [vmem:[#allocation4 + $0x30] sm:$0xff] }
 0x537   :  { %2032 = vmatpush1.msra.mxu0 %v6731_v26  ;;  %3634 = vmatpush3.msra.mxu1 %v6732_v40  ;;  %v5795_v33 = vld [vmem:[#allocation4 + $0x38] sm:$0xff]  ;;  %6745 = vst [vmem:[#allocation69_spill] sm:$0xff] %v5799_v36  ;;  %v5802_v26 = vld [vmem:[#allocation4 + $0x40] sm:$0xff] }
 0x538   :  { %2033 = vmatprep.subr.mxu0 %v6733_v55  ;;  %3635 = vmatprep.subr.mxu1 %v6533_v29  ;;  %6746 = vst [vmem:[#allocation58_spill] sm:$0xff] %v5802_v26  ;;  %v5805_v40 = vld [vmem:[#allocation4 + $0x20] sm:$0xff]  ;;  %v5809_v55 = vld [vmem:[#allocation4 + $0x18] sm:$0xff] }
 0x539   :  { %2034 = vmatpush1.msra.mxu0 %v6734_v63  ;;  %3636 = vmatpush3.msra.mxu1 %v6735_v44  ;;  %6747 = vst [vmem:[#allocation27_spill] sm:$0xff] %v5805_v40  ;;  %6748 = vst [vmem:[#allocation18_spill] sm:$0xff] %v5809_v55  ;;  %v5812_v63 = vld [vmem:[#allocation4 + $0x28] sm:$0xff] }
 0x53a   :  { %2035 = vmatprep.subr.mxu0 %v6736_v24  ;;  %3637 = vmatprep.subr.mxu1 %v6533_v29  ;;  %6749 = vst [vmem:[#allocation19_spill] sm:$0xff] %v5812_v63  ;;  %v5815_v44 = vld [vmem:[#allocation4 + $0x8] sm:$0xff]  ;;  %v5819_v24 = vld [vmem:[#allocation4] sm:$0xff] }
 0x53b   :  { %2036 = vmatpush1.msra.mxu0 %v6737_v57  ;;  %3638 = vmatpush3.msra.mxu1 %v6738_v0  ;;  %6750 = vst [vmem:[#allocation30_spill] sm:$0xff] %v5815_v44  ;;  %6751 = vst [vmem:[#allocation20_spill] sm:$0xff] %v5819_v24  ;;  %v5823_v57 = vld [vmem:[#allocation4 + $0x10] sm:$0xff] }
 0x53c   :  { %2037 = vmatprep.subr.mxu0 %v6739_v46  ;;  %3639 = vmatprep.subr.mxu1 %v6533_v29  ;;  %6752 = vst [vmem:[#allocation21_spill] sm:$0xff] %v5823_v57  ;;  %v5828_v0 = vld [vmem:[#allocation4 + $0x2f0] sm:$0xff]  ;;  %v1868_v46 = vld [vmem:[%s6236_s0 + $0x78] sm:$0xff] }
 0x53d   :  { %2038 = vmatpush1.msra.mxu0 %v6740_v54  ;;  %3640 = vmatpush3.msra.mxu1 %v6741_v48  ;;  %6753 = vst [vmem:[#allocation33_spill] sm:$0xff] %v5828_v0 }
 0x53e   :  { %2039 = vmatprep.subr.mxu0 %v6742_v47  ;;  %3641 = vmatprep.subr.mxu1 %v6533_v29 }
 0x53f   :  { %2040 = vmatpush1.msra.mxu0 %v6697_v37  ;;  %3642 = vmatpush3.msra.mxu1 %v6743_v41 }
 0x540   :  { %v3900_v22 = vpop.eup %3899  ;;  %2041 = vmatprep.subr.mxu0 %v6699_v35  ;;  %3643 = vmatprep.subr.mxu1 %v6533_v29  ;;  %v5689_v35 = vld [vmem:[#allocation4 + $0x138] sm:$0xff] }
 0x541   :  { %2042 = vmatpush1.msra.mxu0 %v6700_v23  ;;  %3644 = vmatpush3.msra.mxu1 %v6744_v60  ;;  %v1863_v61 = vsub.f32 %v5482_v27, %v3900_v22  ;;  %v3902_v62 = vpop.eup %3901  ;;  %v5675_v27 = vld [vmem:[#allocation4 + $0x158] sm:$0xff]  ;;  %v1869_v60 = vld [vmem:[%s6236_s0 + $0x80] sm:$0xff] }
 0x542   :  { %2043 = vmatprep.subr.mxu0 %v6701_v43  ;;  %3645 = vmatprep.subr.mxu1 %v6533_v29  ;;  %v5682_v43 = vld [vmem:[#allocation4 + $0x160] sm:$0xff] }
 0x543   :  { %2044 = vmatpush1.msra.mxu0 %v6702_v17  ;;  %3646 = vmatpush3.msra.mxu1 %v5293_v39  ;;  %v1864_v37 = vmul.f32 %v3902_v62, %v1863_v61  ;;  %v5669_v39 = vld [vmem:[#allocation4 + $0x168] sm:$0xff]  ;;  %v5685_v17 = vld [vmem:[#allocation4 + $0x140] sm:$0xff] }
 0x544   :  { %2045 = vmatprep.subr.mxu0 %v5296_v28  ;;  %3647 = vmatprep.subr.mxu1 %v6533_v29  ;;  %v5665_v28 = vld [vmem:[#allocation4 + $0x170] sm:$0xff] }
 0x545   :  { %2046 = vmatpush1.msra.mxu0 %v5300_v50  ;;  %2079 = vmatprep.mubr.f32.mxu0 %v6533_v29  ;;  %v5654_v23 = vadd.f32 %v3900_v22, %v1864_v37  ;;  %v5679_v50 = vld [vmem:[#allocation4 + $0x150] sm:$0xff] }
 0x546   :  { %3648 = vmatpush3.msra.mxu1 %v5306_v31  ;;  %3649 = vmatprep.mubr.msk.f32.mxu1 %vm4232_vm0, %v6533_v29  ;;  %v5672_v31 = vld [vmem:[#allocation4 + $0x178] sm:$0xff] }
 0x547   :  { %1867 = vst [vmem:[%s6241_s5 + $0x18] sm:$0xff] %v5654_v23  ;;  %2080 = vmatmul.mubr.f32.vlgmr.msra.gmra.mxu0 %v5654_v23  ;;  %3650 = vmatmul.mubr.f32.vlgmr.msra.gmra.mxu1 %v5654_v23 }
 0x548   :  { %2206 = vmatprep.subr.mxu0 %v5665_v28  ;;  %3652 = vmatprep.subr.mxu1 %v6533_v29 }
 0x549   :  { %2207 = vmatpush1.msra.mxu0 %v5669_v39  ;;  %3653 = vmatpush3.msra.mxu1 %v5672_v31 }
 0x54a   :  { %2208 = vmatprep.subr.mxu0 %v5675_v27  ;;  %3654 = vmatprep.subr.mxu1 %v6533_v29 }
 0x54b   :  { %2209 = vmatpush1.msra.mxu0 %v5679_v50  ;;  %3655 = vmatpush3.msra.mxu1 %v5682_v43 }
 0x54c   :  { %2210 = vmatprep.subr.mxu0 %v5685_v17  ;;  %3656 = vmatprep.subr.mxu1 %v6533_v29 }
 0x54d   :  { %2211 = vmatpush1.msra.mxu0 %v5689_v35  ;;  %3657 = vmatpush3.msra.mxu1 %v5692_v49 }
 0x54e   :  { %2212 = vmatprep.subr.mxu0 %v5695_v51  ;;  %3658 = vmatprep.subr.mxu1 %v6533_v29 }
 0x54f   :  { %2213 = vmatpush1.msra.mxu0 %v5699_v1  ;;  %3659 = vmatpush3.msra.mxu1 %v5702_v4 }
 0x550   :  { %2214 = vmatprep.subr.mxu0 %v5705_v5  ;;  %3660 = vmatprep.subr.mxu1 %v6533_v29 }
 0x551   :  { %2215 = vmatpush1.msra.mxu0 %v5709_v6  ;;  %3661 = vmatpush3.msra.mxu1 %v5712_v7 }
 0x552   :  { %2216 = vmatprep.subr.mxu0 %v5715_v8  ;;  %3662 = vmatprep.subr.mxu1 %v6533_v29 }
 0x553   :  { %2217 = vmatpush1.msra.mxu0 %v5719_v9  ;;  %3663 = vmatpush3.msra.mxu1 %v5722_v10 }
 0x554   :  { %2218 = vmatprep.subr.mxu0 %v5725_v11  ;;  %3664 = vmatprep.subr.mxu1 %v6533_v29 }
 0x555   :  { %2219 = vmatpush1.msra.mxu0 %v5729_v12  ;;  %3665 = vmatpush3.msra.mxu1 %v5732_v13 }
 0x556   :  { %2220 = vmatprep.subr.mxu0 %v5735_v14  ;;  %3666 = vmatprep.subr.mxu1 %v6533_v29 }
 0x557   :  { %2221 = vmatpush1.msra.mxu0 %v5739_v15  ;;  %3667 = vmatpush3.msra.mxu1 %v5742_v16 }
 0x558   :  { %2222 = vmatprep.subr.mxu0 %v5745_v52  ;;  %3668 = vmatprep.subr.mxu1 %v6533_v29 }
 0x559   :  { %2223 = vmatpush1.msra.mxu0 %v5749_v19  ;;  %3669 = vmatpush3.msra.mxu1 %v5752_v21 }
 0x55a   :  { %2224 = vmatprep.subr.mxu0 %v5755_v45  ;;  %3670 = vmatprep.subr.mxu1 %v6533_v29 }
 0x55b   :  { %2225 = vmatpush1.msra.mxu0 %v5759_v25  ;;  %3671 = vmatpush3.msra.mxu1 %v5762_v53 }
 0x55c   :  { %2226 = vmatprep.subr.mxu0 %v5765_v56  ;;  %3672 = vmatprep.subr.mxu1 %v6533_v29 }
 0x55d   :  { %2227 = vmatpush1.msra.mxu0 %v5769_v2  ;;  %3673 = vmatpush3.msra.mxu1 %v5772_v32 }
 0x55e   :  { %2228 = vmatprep.subr.mxu0 %v5775_v58  ;;  %3674 = vmatprep.subr.mxu1 %v6533_v29 }
 0x55f   :  { %2229 = vmatpush1.msra.mxu0 %v5779_v20  ;;  %3675 = vmatpush3.msra.mxu1 %v5782_v34 }
 0x560   :  { %2230 = vmatprep.subr.mxu0 %v5785_v38  ;;  %3676 = vmatprep.subr.mxu1 %v6533_v29 }
 0x561   :  { %2231 = vmatpush1.msra.mxu0 %v5789_v42  ;;  %3677 = vmatpush3.msra.mxu1 %v5792_v30 }
 0x562   :  { %2232 = vmatprep.subr.mxu0 %v5795_v33  ;;  %3678 = vmatprep.subr.mxu1 %v6533_v29 }
 0x563   :  { %2233 = vmatpush1.msra.mxu0 %v5799_v36  ;;  %3679 = vmatpush3.msra.mxu1 %v5802_v26 }
 0x564   :  { %2234 = vmatprep.subr.mxu0 %v5805_v40  ;;  %3680 = vmatprep.subr.mxu1 %v6533_v29 }
 0x565   :  { %2235 = vmatpush1.msra.mxu0 %v5809_v55  ;;  %3681 = vmatpush3.msra.mxu1 %v5812_v63 }
 0x566   :  { %2236 = vmatprep.subr.mxu0 %v5815_v44  ;;  %3682 = vmatprep.subr.mxu1 %v6533_v29 }
 0x567   :  { %2237 = vmatpush1.msra.mxu0 %v5819_v24  ;;  %2270 = vmatprep.mubr.f32.mxu0 %v6533_v29  ;;  %v1871_v24 = vld [vmem:[%s6237_s1 + $0x30] sm:$0xff] }
 0x568   :  { %3683 = vmatpush3.msra.mxu1 %v5823_v57  ;;  %3684 = vmatprep.mubr.msk.f32.mxu1 %vm4232_vm0, %v6533_v29 }
 0x569   :  { %2347 = vmatprep.subr.mxu0 %v5828_v0  ;;  %3687 = vmatprep.subr.mxu1 %v6533_v29 }
 0x5e6   :  { %v1940_v54 = vpop.f32.mrf.mxu0  ;;  %v2011_v48 = vpop.f32.mrf.mxu1 }
 0x5e7   :  { %v2156_v47 = vadd.f32 %v1940_v54, %v1868_v46  ;;  %v2170_v46 = vadd.f32 %v6728_v3, %v2011_v48  ;;  %v1872_v3 = vld [vmem:[%s6237_s1 + $0x38] sm:$0xff] }
 0x5e8   :  { %v3616_v41 = vpop.f32.mrf.mxu1  ;;  %v1942_v61 = vpop.f32.mrf.mxu0 }
 0x5e9   :  { %v2948_v22 = vmul.f32 -1.442695, %v2156_v47  ;;  %v2163_v62 = vadd.f32 %v1942_v61, %v1869_v60 }
 0x5eb   :  { %3903 = vpow2.f32 %v2948_v22  ;;  %v2949_v37 = vmul.f32 -1.442695, %v2163_v62  ;;  %v1870_v22 = vld [vmem:[%s6236_s0 + $0x88] sm:$0xff] }
 0x5ed   :  { %3905 = vpow2.f32 %v2949_v37 }
 0x5f8   :  { %v3904_v0 = vpop.eup %3903 }
 0x5f9   :  { %v2160_v57 = vadd.f32 1.0, %v3904_v0 }
 0x5fa   :  { %v3906_v44 = vpop.eup %3905 }
 0x5fb   :  { %3907 = vrcp.f32 %v2160_v57  ;;  %v2167_v57 = vadd.f32 1.0, %v3906_v44 }
 0x607   :  { %v2081_v54 = vpop.f32.mrf.mxu0  ;;  %v2152_v47 = vpop.f32.mrf.mxu1 }
 0x608   :  { %v3908_v41 = vpop.eup %3907  ;;  %v2177_v60 = vadd.f32 %v2081_v54, %v1871_v24 }
 0x609   :  { %v2171_v61 = vmul.f32 %v3908_v41, %v2170_v46  ;;  %v3651_v62 = vpop.f32.mrf.mxu1  ;;  %v2083_v48 = vpop.f32.mrf.mxu0  ;;  %v5877_v41 = vld [vmem:[#allocation4 + $0x2b8] sm:$0xff] }
 0x60a   :  { %v2950_v0 = vmul.f32 -1.442695, %v2177_v60  ;;  %v2184_v63 = vadd.f32 %v2083_v48, %v1872_v3  ;;  %v5883_v60 = vld [vmem:[#allocation4 + $0x2a8] sm:$0xff]  ;;  %v2191_v62 = vadd.f32 %v5425_v18, %v2152_v47  ;;  %v1873_v3 = vld [vmem:[%s6237_s1 + $0x40] sm:$0xff]  ;;  %v5897_v48 = vld [vmem:[#allocation4 + $0x290] sm:$0xff] }
 0x60b   :  { %v2172_v37 = vadd.f32 %v2171_v61, %v1870_v22  ;;  %v5880_v22 = vld [vmem:[#allocation4 + $0x2c8] sm:$0xff]  ;;  %6755 = vst [vmem:[#allocation24_spill] sm:$0xff] %v5897_v48 }
 0x60c   :  { %3909 = vpow2.f32 %v2950_v0  ;;  %v2951_v55 = vmul.f32 -1.442695, %v2184_v63  ;;  %v5857_v63 = vld [vmem:[#allocation4 + $0x2e8] sm:$0xff]  ;;  %v5888_v0 = vld [vmem:[#allocation4 + $0x2a0] sm:$0xff] }
 0x60d   :  { %3911 = vtanh.f32 %v2172_v37  ;;  %v5891_v37 = vld [vmem:[#allocation4 + $0x2b0] sm:$0xff]  ;;  %v5901_v47 = vld [vmem:[#allocation4 + $0x288] sm:$0xff] }
 0x60e   :  { %3913 = vrcp.f32 %v2167_v57  ;;  %6754 = vst [vmem:[#allocation22_spill] sm:$0xff] %v5891_v37 }
 0x60f   :  { %3915 = vpow2.f32 %v2951_v55  ;;  %v5873_v55 = vld [vmem:[#allocation4 + $0x2c0] sm:$0xff] }
 0x619   :  { %v3910_v40 = vpop.eup %3909 }
 0x61a   :  { %v3912_v26 = vpop.eup %3911  ;;  %v2181_v36 = vadd.f32 1.0, %v3910_v40  ;;  %v5860_v40 = vld [vmem:[#allocation4 + $0x2f8] sm:$0xff] }
 0x61b   :  { %v2174_v24 = vsub.f32 %v5579_v59, %v3912_v26  ;;  %v3914_v46 = vpop.eup %3913  ;;  %v5863_v59 = vld [vmem:[#allocation4 + $0x2d8] sm:$0xff] }
 0x61c   :  { %3917 = vrcp.f32 %v2181_v36  ;;  %v5867_v36 = vld [vmem:[#allocation4 + $0x2d0] sm:$0xff]  ;;  %v3916_v61 = vpop.eup %3915 }
 0x61d   :  { %v2175_v54 = vmul.f32 %v3914_v46, %v2174_v24  ;;  %v5904_v24 = vld [vmem:[#allocation4 + $0x298] sm:$0xff] }
 0x61e   :  { %v5907_v46 = vld [vmem:[#allocation4 + $0x278] sm:$0xff] }
 0x61f   :  { %v5849_v44 = vadd.f32 %v3912_v26, %v2175_v54  ;;  %v5870_v26 = vld [vmem:[#allocation4 + $0x2e0] sm:$0xff]  ;;  %6756 = vst [vmem:[#allocation36_spill] sm:$0xff] %v5907_v46 }
 0x621   :  { %2198 = vst [vmem:[%s6240_s4 + $0x28] sm:$0xff] %v5849_v44  ;;  %2271 = vmatmul.mubr.f32.vlgmr.msra.gmra.mxu0 %v5849_v44  ;;  %3685 = vmatmul.mubr.f32.vlgmr.msra.gmra.mxu1 %v5849_v44 }
 0x622   :  { %2348 = vmatpush1.msra.mxu0 %v5857_v63  ;;  %3688 = vmatpush3.msra.mxu1 %v5860_v40 }
 0x623   :  { %2349 = vmatprep.subr.mxu0 %v5863_v59  ;;  %3689 = vmatprep.subr.mxu1 %v6533_v29 }
 0x624   :  { %2350 = vmatpush1.msra.mxu0 %v5867_v36  ;;  %3690 = vmatpush3.msra.mxu1 %v5870_v26 }
 0x625   :  { %2351 = vmatprep.subr.mxu0 %v5873_v55  ;;  %3691 = vmatprep.subr.mxu1 %v6533_v29 }
 0x626   :  { %2352 = vmatpush1.msra.mxu0 %v5877_v41  ;;  %3692 = vmatpush3.msra.mxu1 %v5880_v22 }
 0x627   :  { %2353 = vmatprep.subr.mxu0 %v5883_v60  ;;  %3693 = vmatprep.subr.mxu1 %v6533_v29 }
 0x628   :  { %2354 = vmatpush1.msra.mxu0 %v5888_v0  ;;  %3694 = vmatpush3.msra.mxu1 %v5891_v37  ;;  %v2188_v37 = vadd.f32 1.0, %v3916_v61  ;;  %v5924_v61 = vld [vmem:[#allocation4 + $0x268] sm:$0xff] }
 0x629   :  { %v3918_v57 = vpop.eup %3917  ;;  %2355 = vmatprep.subr.mxu0 %v5897_v48  ;;  %3695 = vmatprep.subr.mxu1 %v6533_v29  ;;  %v5911_v48 = vld [vmem:[#allocation4 + $0x270] sm:$0xff]  ;;  %6761 = vst [vmem:[#allocation55_spill] sm:$0xff] %v5924_v61 }
 0x62a   :  { %v2192_v18 = vmul.f32 %v3918_v57, %v2191_v62  ;;  %2356 = vmatpush1.msra.mxu0 %v5901_v47  ;;  %3696 = vmatpush3.msra.mxu1 %v5904_v24  ;;  %6757 = vst [vmem:[#allocation49_spill] sm:$0xff] %v5911_v48  ;;  %v5914_v62 = vld [vmem:[#allocation4 + $0x280] sm:$0xff] }
 0x62b   :  { %2357 = vmatprep.subr.mxu0 %v5907_v46  ;;  %3697 = vmatprep.subr.mxu1 %v6533_v29  ;;  %6758 = vst [vmem:[#allocation67_spill] sm:$0xff] %v5914_v62  ;;  %v5917_v57 = vld [vmem:[#allocation4 + $0x260] sm:$0xff]  ;;  %v5921_v46 = vld [vmem:[#allocation4 + $0x258] sm:$0xff] }
 0x62c   :  { %v2193_v54 = vadd.f32 %v2192_v18, %v1873_v3  ;;  %2358 = vmatpush1.msra.mxu0 %v5911_v48  ;;  %3698 = vmatpush3.msra.mxu1 %v5914_v62  ;;  %6759 = vst [vmem:[#allocation52_spill] sm:$0xff] %v5917_v57  ;;  %6760 = vst [vmem:[#allocation68_spill] sm:$0xff] %v5921_v46  ;;  %v5927_v3 = vld [vmem:[#allocation4 + $0x248] sm:$0xff]  ;;  %v5931_v18 = vld [vmem:[#allocation4 + $0x240] sm:$0xff] }
 0x62d   :  { %2359 = vmatprep.subr.mxu0 %v5917_v57  ;;  %3699 = vmatprep.subr.mxu1 %v6533_v29  ;;  %6762 = vst [vmem:[#allocation28_spill] sm:$0xff] %v5927_v3  ;;  %6763 = vst [vmem:[#allocation29_spill] sm:$0xff] %v5931_v18  ;;  %v5998_v62 = vld [vmem:[#allocation4 + $0x1a0] sm:$0xff]  ;;  %v6008_v48 = vld [vmem:[#allocation4 + $0x188] sm:$0xff] }
 0x62e   :  { %3919 = vtanh.f32 %v2193_v54  ;;  %2360 = vmatpush1.msra.mxu0 %v5921_v46  ;;  %3700 = vmatpush3.msra.mxu1 %v5924_v61  ;;  %v5934_v54 = vld [vmem:[#allocation4 + $0x250] sm:$0xff]  ;;  %v5941_v61 = vld [vmem:[#allocation4 + $0x228] sm:$0xff]  ;;  %6782 = vst [vmem:[#allocation14_spill] sm:$0xff] %v5998_v62 }
 0x62f   :  { %2361 = vmatprep.subr.mxu0 %v5927_v3  ;;  %3701 = vmatprep.subr.mxu1 %v6533_v29  ;;  %3921 = vrcp.f32 %v2188_v37  ;;  %6764 = vst [vmem:[#allocation48_spill] sm:$0xff] %v5934_v54  ;;  %v5937_v46 = vld [vmem:[#allocation4 + $0x230] sm:$0xff]  ;;  %6766 = vst [vmem:[#allocation51_spill] sm:$0xff] %v5941_v61  ;;  %v5944_v3 = vld [vmem:[#allocation4 + $0x238] sm:$0xff] }
 0x630   :  { %2362 = vmatpush1.msra.mxu0 %v5931_v18  ;;  %3702 = vmatpush3.msra.mxu1 %v5934_v54  ;;  %6765 = vst [vmem:[#allocation34_spill] sm:$0xff] %v5937_v46  ;;  %6767 = vst [vmem:[#allocation37_spill] sm:$0xff] %v5944_v3  ;;  %v5947_v37 = vld [vmem:[#allocation4 + $0x218] sm:$0xff]  ;;  %v5951_v54 = vld [vmem:[#allocation4 + $0x210] sm:$0xff] }
 0x631   :  { %2363 = vmatprep.subr.mxu0 %v5937_v46  ;;  %3703 = vmatprep.subr.mxu1 %v6533_v29  ;;  %6768 = vst [vmem:[#allocation38_spill] sm:$0xff] %v5947_v37  ;;  %6769 = vst [vmem:[#allocation54_spill] sm:$0xff] %v5951_v54  ;;  %v5954_v46 = vld [vmem:[#allocation4 + $0x220] sm:$0xff] }
 0x632   :  { %2364 = vmatpush1.msra.mxu0 %v5941_v61  ;;  %3704 = vmatpush3.msra.mxu1 %v5944_v3  ;;  %6770 = vst [vmem:[#allocation39_spill] sm:$0xff] %v5954_v46  ;;  %v5957_v18 = vld [vmem:[#allocation4 + $0x200] sm:$0xff]  ;;  %v5961_v3 = vld [vmem:[#allocation4 + $0x1f8] sm:$0xff]  ;;  %v5967_v61 = vld [vmem:[#allocation4 + $0x1e8] sm:$0xff] }
 0x633   :  { %2365 = vmatprep.subr.mxu0 %v5947_v37  ;;  %3705 = vmatprep.subr.mxu1 %v6533_v29  ;;  %6771 = vst [vmem:[#allocation57_spill] sm:$0xff] %v5957_v18  ;;  %6772 = vst [vmem:[#allocation42_spill] sm:$0xff] %v5961_v3  ;;  %v5964_v37 = vld [vmem:[#allocation4 + $0x208] sm:$0xff] }
 0x634   :  { %2366 = vmatpush1.msra.mxu0 %v5951_v54  ;;  %3706 = vmatpush3.msra.mxu1 %v5954_v46  ;;  %6773 = vst [vmem:[#allocation44_spill] sm:$0xff] %v5964_v37  ;;  %6774 = vst [vmem:[#allocation47_spill] sm:$0xff] %v5967_v61  ;;  %v5971_v46 = vld [vmem:[#allocation4 + $0x1e0] sm:$0xff]  ;;  %v5977_v54 = vld [vmem:[#allocation4 + $0x1d0] sm:$0xff] }
 0x635   :  { %2367 = vmatprep.subr.mxu0 %v5957_v18  ;;  %3707 = vmatprep.subr.mxu1 %v6533_v29  ;;  %6775 = vst [vmem:[#allocation59_spill] sm:$0xff] %v5971_v46  ;;  %v5974_v18 = vld [vmem:[#allocation4 + $0x1f0] sm:$0xff]  ;;  %6777 = vst [vmem:[#allocation62_spill] sm:$0xff] %v5977_v54 }
 0x636   :  { %2368 = vmatpush1.msra.mxu0 %v5961_v3  ;;  %3708 = vmatpush3.msra.mxu1 %v5964_v37  ;;  %6776 = vst [vmem:[#allocation61_spill] sm:$0xff] %v5974_v18  ;;  %v5981_v37 = vld [vmem:[#allocation4 + $0x1c8] sm:$0xff] }
 0x637   :  { %2369 = vmatprep.subr.mxu0 %v5967_v61  ;;  %3709 = vmatprep.subr.mxu1 %v6533_v29  ;;  %6778 = vst [vmem:[#allocation64_spill] sm:$0xff] %v5981_v37  ;;  %v5984_v61 = vld [vmem:[#allocation4 + $0x1d8] sm:$0xff] }
 0x638   :  { %2370 = vmatpush1.msra.mxu0 %v5971_v46  ;;  %3710 = vmatpush3.msra.mxu1 %v5974_v18  ;;  %6779 = vst [vmem:[#allocation65_spill] sm:$0xff] %v5984_v61  ;;  %v5987_v46 = vld [vmem:[#allocation4 + $0x1b8] sm:$0xff]  ;;  %v5991_v18 = vld [vmem:[#allocation4 + $0x1b0] sm:$0xff] }
 0x639   :  { %2371 = vmatprep.subr.mxu0 %v5977_v54  ;;  %3711 = vmatprep.subr.mxu1 %v6533_v29  ;;  %6780 = vst [vmem:[#allocation13_spill] sm:$0xff] %v5987_v46  ;;  %6781 = vst [vmem:[#allocation23_spill] sm:$0xff] %v5991_v18  ;;  %v5994_v54 = vld [vmem:[#allocation4 + $0x1c0] sm:$0xff] }
 0x63a   :  { %2372 = vmatpush1.msra.mxu0 %v5981_v37  ;;  %3712 = vmatpush3.msra.mxu1 %v5984_v61  ;;  %v6005_v61 = vld [vmem:[#allocation4 + $0x1a8] sm:$0xff] }
 0x63b   :  { %v3920_v3 = vpop.eup %3919  ;;  %2373 = vmatprep.subr.mxu0 %v5987_v46  ;;  %3713 = vmatprep.subr.mxu1 %v6533_v29  ;;  %v6002_v46 = vld [vmem:[#allocation4 + $0x198] sm:$0xff] }
 0x63c   :  { %2374 = vmatpush1.msra.mxu0 %v5991_v18  ;;  %3714 = vmatpush3.msra.mxu1 %v5994_v54  ;;  %v2195_v37 = vsub.f32 %v5654_v23, %v3920_v3  ;;  %v3922_v57 = vpop.eup %3921  ;;  %6783 = vst [vmem:[#allocation15_spill] sm:$0xff] %v6002_v46  ;;  %v6012_v23 = vld [vmem:[#allocation4 + $0x180] sm:$0xff] }
 0x63d   :  { %2375 = vmatprep.subr.mxu0 %v5998_v62  ;;  %3715 = vmatprep.subr.mxu1 %v6533_v29 }
 0x63e   :  { %2376 = vmatpush1.msra.mxu0 %v6002_v46  ;;  %3716 = vmatpush3.msra.mxu1 %v6005_v61  ;;  %v2196_v18 = vmul.f32 %v3922_v57, %v2195_v37  ;;  %v6018_v46 = vld [vmem:[#allocation4 + $0x190] sm:$0xff] }
 0x63f   :  { %2377 = vmatprep.subr.mxu0 %v6008_v48  ;;  %3717 = vmatprep.subr.mxu1 %v6533_v29 }
 0x640   :  { %2378 = vmatpush1.msra.mxu0 %v6012_v23  ;;  %2411 = vmatprep.mubr.f32.mxu0 %v6533_v29  ;;  %v6016_v62 = vadd.f32 %v3920_v3, %v2196_v18 }
 0x641   :  { %3718 = vmatpush3.msra.mxu1 %v6018_v46  ;;  %3719 = vmatprep.mubr.msk.f32.mxu1 %vm4232_vm0, %v6533_v29 }
 0x642   :  { %2199 = vst [vmem:[%s6241_s5 + $0x10] sm:$0xff] %v6016_v62  ;;  %2412 = vmatmul.mubr.f32.vlgmr.msra.gmra.mxu0 %v6016_v62  ;;  %3720 = vmatmul.mubr.f32.vlgmr.msra.gmra.mxu1 %v6016_v62 }
 0x643   :  { %2538 = vmatprep.subr.mxu0 %v5665_v28  ;;  %3722 = vmatprep.subr.mxu1 %v6533_v29  ;;  %v6784_v28 = vld [vmem:[#allocation69_spill] sm:$0xff] }
 0x644   :  { %2539 = vmatpush1.msra.mxu0 %v5669_v39  ;;  %3723 = vmatpush3.msra.mxu1 %v5672_v31  ;;  %v6785_v39 = vld [vmem:[#allocation58_spill] sm:$0xff]  ;;  %v6786_v31 = vld [vmem:[#allocation27_spill] sm:$0xff] }
 0x645   :  { %2540 = vmatprep.subr.mxu0 %v5675_v27  ;;  %3724 = vmatprep.subr.mxu1 %v6533_v29  ;;  %v6787_v27 = vld [vmem:[#allocation18_spill] sm:$0xff] }
 0x646   :  { %2541 = vmatpush1.msra.mxu0 %v5679_v50  ;;  %3725 = vmatpush3.msra.mxu1 %v5682_v43  ;;  %v6788_v50 = vld [vmem:[#allocation19_spill] sm:$0xff]  ;;  %v6789_v43 = vld [vmem:[#allocation30_spill] sm:$0xff] }
 0x647   :  { %2542 = vmatprep.subr.mxu0 %v5685_v17  ;;  %3726 = vmatprep.subr.mxu1 %v6533_v29  ;;  %v6790_v17 = vld [vmem:[#allocation20_spill] sm:$0xff] }
 0x648   :  { %2543 = vmatpush1.msra.mxu0 %v5689_v35  ;;  %3727 = vmatpush3.msra.mxu1 %v5692_v49  ;;  %v6791_v35 = vld [vmem:[#allocation21_spill] sm:$0xff] }
 0x649   :  { %2544 = vmatprep.subr.mxu0 %v5695_v51  ;;  %3728 = vmatprep.subr.mxu1 %v6533_v29  ;;  %v6792_v49 = vld [vmem:[#allocation33_spill] sm:$0xff] }
 0x64a   :  { %2545 = vmatpush1.msra.mxu0 %v5699_v1  ;;  %3729 = vmatpush3.msra.mxu1 %v5702_v4  ;;  %v2200_v51 = vld [vmem:[%s6236_s0 + $0x90] sm:$0xff] }
 0x64b   :  { %2546 = vmatprep.subr.mxu0 %v5705_v5  ;;  %3730 = vmatprep.subr.mxu1 %v6533_v29 }
 0x64c   :  { %2547 = vmatpush1.msra.mxu0 %v5709_v6  ;;  %3731 = vmatpush3.msra.mxu1 %v5712_v7 }
 0x64d   :  { %2548 = vmatprep.subr.mxu0 %v5715_v8  ;;  %3732 = vmatprep.subr.mxu1 %v6533_v29  ;;  %v2201_v8 = vld [vmem:[%s6236_s0 + $0x98] sm:$0xff] }
 0x64e   :  { %2549 = vmatpush1.msra.mxu0 %v5719_v9  ;;  %3733 = vmatpush3.msra.mxu1 %v5722_v10 }
 0x64f   :  { %2550 = vmatprep.subr.mxu0 %v5725_v11  ;;  %3734 = vmatprep.subr.mxu1 %v6533_v29 }
 0x650   :  { %2551 = vmatpush1.msra.mxu0 %v5729_v12  ;;  %3735 = vmatpush3.msra.mxu1 %v5732_v13 }
 0x651   :  { %2552 = vmatprep.subr.mxu0 %v5735_v14  ;;  %3736 = vmatprep.subr.mxu1 %v6533_v29  ;;  %v2203_v14 = vld [vmem:[%s6237_s1 + $0x18] sm:$0xff] }
 0x652   :  { %2553 = vmatpush1.msra.mxu0 %v5739_v15  ;;  %3737 = vmatpush3.msra.mxu1 %v5742_v16  ;;  %v6107_v16 = vld [vmem:[#allocation7] ss:$0 sm:$0xff] }
 0x653   :  { %2554 = vmatprep.subr.mxu0 %v5745_v52  ;;  %3738 = vmatprep.subr.mxu1 %v6533_v29 }
 0x654   :  { %2555 = vmatpush1.msra.mxu0 %v5749_v19  ;;  %3739 = vmatpush3.msra.mxu1 %v5752_v21 }
 0x655   :  { %2556 = vmatprep.subr.mxu0 %v5755_v45  ;;  %3740 = vmatprep.subr.mxu1 %v6533_v29 }
 0x656   :  { %2557 = vmatpush1.msra.mxu0 %v5759_v25  ;;  %3741 = vmatpush3.msra.mxu1 %v5762_v53  ;;  %v2202_v25 = vld [vmem:[%s6236_s0 + $0xa0] sm:$0xff] }
 0x657   :  { %2558 = vmatprep.subr.mxu0 %v5765_v56  ;;  %3742 = vmatprep.subr.mxu1 %v6533_v29 }
 0x658   :  { %2559 = vmatpush1.msra.mxu0 %v5769_v2  ;;  %3743 = vmatpush3.msra.mxu1 %v5772_v32 }
 0x659   :  { %2560 = vmatprep.subr.mxu0 %v5775_v58  ;;  %3744 = vmatprep.subr.mxu1 %v6533_v29 }
 0x65a   :  { %2561 = vmatpush1.msra.mxu0 %v5779_v20  ;;  %3745 = vmatpush3.msra.mxu1 %v5782_v34  ;;  %v2204_v34 = vld [vmem:[%s6237_s1 + $0x20] sm:$0xff] }
 0x65b   :  { %2562 = vmatprep.subr.mxu0 %v5785_v38  ;;  %3746 = vmatprep.subr.mxu1 %v6533_v29 }
 0x65c   :  { %2563 = vmatpush1.msra.mxu0 %v5789_v42  ;;  %3747 = vmatpush3.msra.mxu1 %v5792_v30 }
 0x65d   :  { %2564 = vmatprep.subr.mxu0 %v5795_v33  ;;  %3748 = vmatprep.subr.mxu1 %v6533_v29 }
 0x65e   :  { %2565 = vmatpush1.msra.mxu0 %v6784_v28  ;;  %3749 = vmatpush3.msra.mxu1 %v6785_v39 }
 0x65f   :  { %2566 = vmatprep.subr.mxu0 %v6786_v31  ;;  %3750 = vmatprep.subr.mxu1 %v6533_v29  ;;  %v6796_v31 = vld [vmem:[#allocation49_spill] sm:$0xff] }
 0x660   :  { %2567 = vmatpush1.msra.mxu0 %v6787_v27  ;;  %3751 = vmatpush3.msra.mxu1 %v6788_v50  ;;  %v6797_v27 = vld [vmem:[#allocation67_spill] sm:$0xff]  ;;  %v6798_v50 = vld [vmem:[#allocation52_spill] sm:$0xff] }
 0x661   :  { %2568 = vmatprep.subr.mxu0 %v6789_v43  ;;  %3752 = vmatprep.subr.mxu1 %v6533_v29  ;;  %v6799_v43 = vld [vmem:[#allocation68_spill] sm:$0xff] }
 0x662   :  { %2569 = vmatpush1.msra.mxu0 %v6790_v17  ;;  %2602 = vmatprep.mubr.f32.mxu0 %v6533_v29  ;;  %v6802_v17 = vld [vmem:[#allocation29_spill] sm:$0xff] }
 0x663   :  { %3753 = vmatpush3.msra.mxu1 %v6791_v35  ;;  %3754 = vmatprep.mubr.msk.f32.mxu1 %vm4232_vm0, %v6533_v29  ;;  %v6803_v35 = vld [vmem:[#allocation48_spill] sm:$0xff] }
 0x664   :  { %2679 = vmatprep.subr.mxu0 %v6792_v49  ;;  %3757 = vmatprep.subr.mxu1 %v6533_v29  ;;  %v6804_v49 = vld [vmem:[#allocation34_spill] sm:$0xff] }
 0x6e1   :  { %v2272_v1 = vpop.f32.mrf.mxu0  ;;  %v2343_v4 = vpop.f32.mrf.mxu1 }
 0x6e2   :  { %v2488_v5 = vadd.f32 %v2272_v1, %v2200_v51  ;;  %v2502_v52 = vadd.f32 %v6107_v16, %v2343_v4  ;;  %v6805_v51 = vld [vmem:[#allocation51_spill] sm:$0xff]  ;;  %v6806_v1 = vld [vmem:[#allocation37_spill] sm:$0xff]  ;;  %v6807_v4 = vld [vmem:[#allocation38_spill] sm:$0xff] }
 0x6e3   :  { %v3686_v6 = vpop.f32.mrf.mxu1  ;;  %v2274_v9 = vpop.f32.mrf.mxu0 }
 0x6e4   :  { %v2952_v7 = vmul.f32 -1.442695, %v2488_v5  ;;  %v2495_v10 = vadd.f32 %v2274_v9, %v2201_v8  ;;  %v6808_v5 = vld [vmem:[#allocation54_spill] sm:$0xff]  ;;  %v6809_v6 = vld [vmem:[#allocation39_spill] sm:$0xff]  ;;  %v6812_v9 = vld [vmem:[#allocation44_spill] sm:$0xff] }
 0x6e5   :  { %v6811_v8 = vld [vmem:[#allocation42_spill] sm:$0xff] }
 0x6e6   :  { %3923 = vpow2.f32 %v2952_v7  ;;  %v2953_v11 = vmul.f32 -1.442695, %v2495_v10  ;;  %v6810_v7 = vld [vmem:[#allocation57_spill] sm:$0xff]  ;;  %v6813_v10 = vld [vmem:[#allocation47_spill] sm:$0xff] }
 0x6e8   :  { %3925 = vpow2.f32 %v2953_v11  ;;  %v6814_v11 = vld [vmem:[#allocation59_spill] sm:$0xff] }
 0x6f3   :  { %v3924_v12 = vpop.eup %3923 }
 0x6f4   :  { %v2492_v13 = vadd.f32 1.0, %v3924_v12  ;;  %v6815_v12 = vld [vmem:[#allocation61_spill] sm:$0xff] }
 0x6f5   :  { %v3926_v15 = vpop.eup %3925 }
 0x6f6   :  { %3927 = vrcp.f32 %v2492_v13  ;;  %v2499_v20 = vadd.f32 1.0, %v3926_v15  ;;  %v6816_v13 = vld [vmem:[#allocation62_spill] sm:$0xff]  ;;  %v6818_v15 = vld [vmem:[#allocation65_spill] sm:$0xff] }
 0x702   :  { %v2413_v19 = vpop.f32.mrf.mxu0  ;;  %v2484_v21 = vpop.f32.mrf.mxu1 }
 0x703   :  { %v3928_v45 = vpop.eup %3927  ;;  %v2509_v53 = vadd.f32 %v2413_v19, %v2203_v14  ;;  %v6817_v14 = vld [vmem:[#allocation64_spill] sm:$0xff]  ;;  %v6819_v19 = vld [vmem:[#allocation13_spill] sm:$0xff] }
 0x704   :  { %v2503_v56 = vmul.f32 %v3928_v45, %v2502_v52  ;;  %v3721_v2 = vpop.f32.mrf.mxu1  ;;  %v2415_v38 = vpop.f32.mrf.mxu0 }
 0x705   :  { %v2954_v32 = vmul.f32 -1.442695, %v2509_v53  ;;  %v2516_v42 = vadd.f32 %v2415_v38, %v2204_v34  ;;  %v6821_v53 = vld [vmem:[#allocation14_spill] sm:$0xff] }
 0x706   :  { %v2504_v58 = vadd.f32 %v2503_v56, %v2202_v25  ;;  %v6822_v56 = vld [vmem:[#allocation15_spill] sm:$0xff] }
 0x707   :  { %3929 = vpow2.f32 %v2954_v32  ;;  %v2955_v30 = vmul.f32 -1.442695, %v2516_v42 }
 0x708   :  { %3931 = vtanh.f32 %v2504_v58 }
 0x709   :  { %3933 = vrcp.f32 %v2499_v20 }
 0x70a   :  { %3935 = vpow2.f32 %v2955_v30  ;;  %v2535_v30 = vld [vmem:[%s6237_s1] sm:$0xff] }
 0x714   :  { %v3930_v33 = vpop.eup %3929 }
 0x715   :  { %v3932_v57 = vpop.eup %3931  ;;  %v2513_v3 = vadd.f32 1.0, %v3930_v33 }
 0x716   :  { %v2506_v18 = vsub.f32 %v5849_v44, %v3932_v57  ;;  %v3934_v37 = vpop.eup %3933 }
 0x717   :  { %3937 = vrcp.f32 %v2513_v3  ;;  %v3936_v44 = vpop.eup %3935 }
 0x718   :  { %v2507_v28 = vmul.f32 %v3934_v37, %v2506_v18 }
 0x71a   :  { %v6117_v39 = vadd.f32 %v3932_v57, %v2507_v28  ;;  %v2534_v28 = vld [vmem:[%s6236_s0 + $0xb8] sm:$0xff] }
 0x71c   :  { %2530 = vst [vmem:[%s6240_s4 + $0x30] sm:$0xff] %v6117_v39  ;;  %2603 = vmatmul.mubr.f32.vlgmr.msra.gmra.mxu0 %v6117_v39  ;;  %3755 = vmatmul.mubr.f32.vlgmr.msra.gmra.mxu1 %v6117_v39 }
 0x71d   :  { %2680 = vmatpush1.msra.mxu0 %v5857_v63  ;;  %3758 = vmatpush3.msra.mxu1 %v5860_v40  ;;  %v6137_v63 = vld [vmem:[#allocation7 + $0x1] ss:$0 sm:$0xff] }
 0x71e   :  { %2681 = vmatprep.subr.mxu0 %v5863_v59  ;;  %3759 = vmatprep.subr.mxu1 %v6533_v29  ;;  %v2523_v40 = vadd.f32 %v6137_v63, %v2484_v21  ;;  %v6793_v59 = vld [vmem:[#allocation22_spill] sm:$0xff]  ;;  %v6820_v21 = vld [vmem:[#allocation23_spill] sm:$0xff] }
 0x71f   :  { %2682 = vmatpush1.msra.mxu0 %v5867_v36  ;;  %3760 = vmatpush3.msra.mxu1 %v5870_v26  ;;  %v2205_v26 = vld [vmem:[%s6237_s1 + $0x28] sm:$0xff] }
 0x720   :  { %2683 = vmatprep.subr.mxu0 %v5873_v55  ;;  %3761 = vmatprep.subr.mxu1 %v6533_v29  ;;  %v6794_v55 = vld [vmem:[#allocation24_spill] sm:$0xff] }
 0x721   :  { %2684 = vmatpush1.msra.mxu0 %v5877_v41  ;;  %3762 = vmatpush3.msra.mxu1 %v5880_v22  ;;  %v6795_v22 = vld [vmem:[#allocation36_spill] sm:$0xff] }
 0x722   :  { %2685 = vmatprep.subr.mxu0 %v5883_v60  ;;  %3763 = vmatprep.subr.mxu1 %v6533_v29 }
 0x723   :  { %2686 = vmatpush1.msra.mxu0 %v5888_v0  ;;  %3764 = vmatpush3.msra.mxu1 %v6793_v59  ;;  %v2520_v0 = vadd.f32 1.0, %v3936_v44 }
 0x724   :  { %v3938_v36 = vpop.eup %3937  ;;  %2687 = vmatprep.subr.mxu0 %v6794_v55  ;;  %3765 = vmatprep.subr.mxu1 %v6533_v29 }
 0x725   :  { %v2524_v41 = vmul.f32 %v3938_v36, %v2523_v40  ;;  %2688 = vmatpush1.msra.mxu0 %v5901_v47  ;;  %3766 = vmatpush3.msra.mxu1 %v5904_v24  ;;  %v6800_v47 = vld [vmem:[#allocation55_spill] sm:$0xff]  ;;  %v6801_v24 = vld [vmem:[#allocation28_spill] sm:$0xff] }
 0x726   :  { %2689 = vmatprep.subr.mxu0 %v6795_v22  ;;  %3767 = vmatprep.subr.mxu1 %v6533_v29 }
 0x727   :  { %v2525_v60 = vadd.f32 %v2524_v41, %v2205_v26  ;;  %2690 = vmatpush1.msra.mxu0 %v6796_v31  ;;  %3768 = vmatpush3.msra.mxu1 %v6797_v27 }
 0x728   :  { %2691 = vmatprep.subr.mxu0 %v6798_v50  ;;  %3769 = vmatprep.subr.mxu1 %v6533_v29 }
 0x729   :  { %3939 = vtanh.f32 %v2525_v60  ;;  %2692 = vmatpush1.msra.mxu0 %v6799_v43  ;;  %3770 = vmatpush3.msra.mxu1 %v6800_v47 }
 0x72a   :  { %2693 = vmatprep.subr.mxu0 %v6801_v24  ;;  %3771 = vmatprep.subr.mxu1 %v6533_v29  ;;  %3941 = vrcp.f32 %v2520_v0 }
 0x72b   :  { %2694 = vmatpush1.msra.mxu0 %v6802_v17  ;;  %3772 = vmatpush3.msra.mxu1 %v6803_v35 }
 0x72c   :  { %2695 = vmatprep.subr.mxu0 %v6804_v49  ;;  %3773 = vmatprep.subr.mxu1 %v6533_v29 }
 0x72d   :  { %2696 = vmatpush1.msra.mxu0 %v6805_v51  ;;  %3774 = vmatpush3.msra.mxu1 %v6806_v1  ;;  %v2537_v51 = vld [vmem:[%s6237_s1 + $0x10] sm:$0xff] }
 0x72e   :  { %2697 = vmatprep.subr.mxu0 %v6807_v4  ;;  %3775 = vmatprep.subr.mxu1 %v6533_v29 }
 0x72f   :  { %2698 = vmatpush1.msra.mxu0 %v6808_v5  ;;  %3776 = vmatpush3.msra.mxu1 %v6809_v6 }
 0x730   :  { %2699 = vmatprep.subr.mxu0 %v6810_v7  ;;  %3777 = vmatprep.subr.mxu1 %v6533_v29 }
 0x731   :  { %2700 = vmatpush1.msra.mxu0 %v6811_v8  ;;  %3778 = vmatpush3.msra.mxu1 %v6812_v9 }
 0x732   :  { %2701 = vmatprep.subr.mxu0 %v6813_v10  ;;  %3779 = vmatprep.subr.mxu1 %v6533_v29 }
 0x733   :  { %2702 = vmatpush1.msra.mxu0 %v6814_v11  ;;  %3780 = vmatpush3.msra.mxu1 %v6815_v12 }
 0x734   :  { %2703 = vmatprep.subr.mxu0 %v6816_v13  ;;  %3781 = vmatprep.subr.mxu1 %v6533_v29 }
 0x735   :  { %2704 = vmatpush1.msra.mxu0 %v6817_v14  ;;  %3782 = vmatpush3.msra.mxu1 %v6818_v15 }
 0x736   :  { %v3940_v52 = vpop.eup %3939  ;;  %2705 = vmatprep.subr.mxu0 %v6819_v19  ;;  %3783 = vmatprep.subr.mxu1 %v6533_v29 }
 0x737   :  { %2706 = vmatpush1.msra.mxu0 %v6820_v21  ;;  %3784 = vmatpush3.msra.mxu1 %v5994_v54  ;;  %v2527_v45 = vsub.f32 %v6016_v62, %v3940_v52  ;;  %v3942_v25 = vpop.eup %3941 }
 0x738   :  { %2707 = vmatprep.subr.mxu0 %v6821_v53  ;;  %3785 = vmatprep.subr.mxu1 %v6533_v29 }
 0x739   :  { %2708 = vmatpush1.msra.mxu0 %v6822_v56  ;;  %3786 = vmatpush3.msra.mxu1 %v6005_v61  ;;  %v2528_v2 = vmul.f32 %v3942_v25, %v2527_v45 }
 0x73a   :  { %2709 = vmatprep.subr.mxu0 %v6008_v48  ;;  %3787 = vmatprep.subr.mxu1 %v6533_v29  ;;  %v2532_v48 = vld [vmem:[%s6236_s0 + $0xa8] sm:$0xff] }
 0x73b   :  { %2710 = vmatpush1.msra.mxu0 %v6012_v23  ;;  %2743 = vmatprep.mubr.f32.mxu0 %v6533_v29  ;;  %v6194_v54 = vadd.f32 %v3940_v52, %v2528_v2 }
 0x73c   :  { %3788 = vmatpush3.msra.mxu1 %v6018_v46  ;;  %3789 = vmatprep.mubr.msk.f32.mxu1 %vm4232_vm0, %v6533_v29  ;;  %v2533_v29 = vld [vmem:[%s6236_s0 + $0xb0] sm:$0xff] }
 0x73d   :  { %2531 = vst [vmem:[%s6241_s5 + $0x8] sm:$0xff] %v6194_v54  ;;  %2744 = vmatmul.mubr.f32.vlgmr.msra.gmra.mxu0 %v6194_v54  ;;  %3790 = vmatmul.mubr.f32.vlgmr.msra.gmra.mxu1 %v6194_v54 }
 0x7dc   :  { %v2604_v62 = vpop.f32.mrf.mxu0  ;;  %v2675_v61 = vpop.f32.mrf.mxu1 }
 0x7dd   :  { %v2820_v23 = vadd.f32 %v2604_v62, %v2532_v48  ;;  %v2834_v57 = vadd.f32 %v6107_v16, %v2675_v61  ;;  %v2536_v16 = vld [vmem:[%s6237_s1 + $0x8] sm:$0xff]  ;;  %s4199_s1 = scalar_lea.vmem %s2890_s7, 256 }
 0x7de   :  { %v3756_v46 = vpop.f32.mrf.mxu1  ;;  %v2606_v58 = vpop.f32.mrf.mxu0  ;;  %p4200_p10 = scmp.ne.s32.totalorder %s2890_s7, %s4199_s1  ;;  %p4205_p12 = scmp.lt.s32.totalorder %s4199_s1, %s4199_s1 }
 0x7df   :  { %v2956_v32 = vmul.f32 -1.442695, %v2820_v23  ;;  %v2827_v20 = vadd.f32 %v2606_v58, %v2533_v29 }
 0x7e0   :  { %p4206_p13 = por %p4205_p12, %p4204_p11 }
 0x7e1   :  { %3943 = vpow2.f32 %v2956_v32  ;;  %v2957_v34 = vmul.f32 -1.442695, %v2827_v20 }
 0x7e2   :  { %p4207_p0 = pnand %p4206_p13, %p4200_p10 }
 0x7e3   :  { %3945 = vpow2.f32 %v2957_v34 }
 0x7ee   :  { %v3944_v38 = vpop.eup %3943 }
 0x7ef   :  { %v2824_v42 = vadd.f32 1.0, %v3944_v38 }
 0x7f0   :  { %v3946_v33 = vpop.eup %3945 }
 0x7f1   :  { %3947 = vrcp.f32 %v2824_v42  ;;  %v2831_v55 = vadd.f32 1.0, %v3946_v33 }
 0x7fd   :  { %v2745_v3 = vpop.f32.mrf.mxu0  ;;  %v2816_v18 = vpop.f32.mrf.mxu1 }
 0x7fe   :  { %v3948_v37 = vpop.eup %3947  ;;  %v2841_v44 = vadd.f32 %v2745_v3, %v2535_v30  ;;  %v2855_v35 = vadd.f32 %v6137_v63, %v2816_v18 }
 0x7ff   :  { %v2835_v40 = vmul.f32 %v3948_v37, %v2834_v57  ;;  %v3791_v59 = vpop.f32.mrf.mxu1  ;;  %v2747_v41 = vpop.f32.mrf.mxu0 }
 0x800   :  { %v2958_v36 = vmul.f32 -1.442695, %v2841_v44  ;;  %v2848_v22 = vadd.f32 %v2747_v41, %v2536_v16 }
 0x801   :  { %v2836_v26 = vadd.f32 %v2835_v40, %v2534_v28 }
 0x802   :  { %3949 = vpow2.f32 %v2958_v36  ;;  %v2959_v60 = vmul.f32 -1.442695, %v2848_v22 }
 0x803   :  { %3951 = vtanh.f32 %v2836_v26 }
 0x804   :  { %3953 = vrcp.f32 %v2831_v55 }
 0x805   :  { %3955 = vpow2.f32 %v2959_v60 }
 0x80f   :  { %v3950_v0 = vpop.eup %3949 }
 0x810   :  { %v3952_v31 = vpop.eup %3951  ;;  %v2845_v27 = vadd.f32 1.0, %v3950_v0 }
 0x811   :  { %v2838_v50 = vsub.f32 %v6117_v39, %v3952_v31  ;;  %v3954_v43 = vpop.eup %3953 }
 0x812   :  { %3957 = vrcp.f32 %v2845_v27  ;;  %v3956_v17 = vpop.eup %3955 }
 0x813   :  { %v2839_v47 = vmul.f32 %v3954_v43, %v2838_v50  ;;  %v2852_v39 = vadd.f32 1.0, %v3956_v17 }
 0x815   :  { %v2840_v24 = vadd.f32 %v3952_v31, %v2839_v47 }
 0x817   :  { %2862 = vst [vmem:[%s6240_s4 + $0x38] sm:$0xff] %v2840_v24  ;;  %2869 = vst [vmem:[#allocation9] sm:$0xff] %v2840_v24 }
 0x81f   :  { %v3958_v49 = vpop.eup %3957 }
 0x820   :  { %v2856_v1 = vmul.f32 %v3958_v49, %v2855_v35 }
 0x822   :  { %v2857_v4 = vadd.f32 %v2856_v1, %v2537_v51 }
 0x824   :  { %3959 = vtanh.f32 %v2857_v4 }
 0x825   :  { %3961 = vrcp.f32 %v2852_v39 }
 0x831   :  { %v3960_v5 = vpop.eup %3959 }
 0x832   :  { %v2859_v6 = vsub.f32 %v6194_v54, %v3960_v5  ;;  %v3962_v7 = vpop.eup %3961 }
 0x834   :  { %v2860_v8 = vmul.f32 %v3962_v7, %v2859_v6 }
 0x836   :  { %v2861_v9 = vadd.f32 %v3960_v5, %v2860_v8 }
 0x838   :  { %2863 = vst [vmem:[%s6241_s5] sm:$0xff] %v2861_v9  ;;  %2871 = vst [vmem:[#allocation9 + $0x8] sm:$0xff] %v2861_v9 }
 0x839   :  { %4210 = shalt.err (!%p4207_p0)
}
 0x83a   :  { %s4234_s9 = smov 128   ;;  %s4235_s10 = smov 8  }
 0x83b   :  { %2895 = dma.vmem_to_hbm [thread:$0]  %s2890_s7, 256, %s6242_s6, [#allocation6], %s4234_s9, %s4234_s9, %s4235_s10  }
 0x83c   :  { %4223 = dma.done.wait [#allocation6], 256  }
 0x83d   :  { %4224 = vsyncadd [#allocation6], 4294967040 }
 0x83e   :  { %2909 = vsyncpa [#allocation5], 1 }
 0x83f   :  { %2910 = vsyncpa [#allocation8], 1 }
 0x840   :  { %2911 = vsyncpa [#allocation6], 1 }

// kernel: _lambda_.8
= control target key start
LH: loop header
LB: loop body
LE: loop exit
PB: predicated region body
PF: predicated region fallthrough
CT: control target
= control target key end

     0   :  { %12 = vsyncpa [#allocation5], 0  ;;  %v7067_v4 = vmov 0.0   ;;  %vm4204_vm0 = vmmov 0   ;;  %s7052_s0 = inlined_call_operand.vmem [shape: f32[64,384], index: 0, kind: input, shape index: {}]   ;;  %s7053_s1 = inlined_call_operand.vmem [shape: f32[64,384], index: 1, kind: input, shape index: {}]   ;;  %s7054_s2 = inlined_call_operand.vmem [shape: f32[2,128,384], index: 2, kind: input, shape index: {}]   ;;  %s7055_s3 = inlined_call_operand.vmem [shape: f32[2,1,128], index: 3, kind: input, shape index: {}]   ;;  %s7056_s4 = inlined_call_operand.hbm [shape: f32[64,128], index: 4, kind: output, shape index: {0}]   ;;  %s7057_s5 = inlined_call_operand.hbm [shape: f32[64,128], index: 5, kind: output, shape index: {1}]   ;;  %s7058_s6 = inlined_call_operand.vmem [shape: f32[2,8,128], index: 6, kind: output, shape index: {2}]  }
   0x1   :  { %v4247_v0 = vld [vmem:[%s7054_s2 + $0x170] sm:$0xff]  ;;  %v4252_v1 = vld [vmem:[%s7054_s2 + $0x168] sm:$0xff]  ;;  %v4257_v2 = vld [vmem:[%s7054_s2 + $0x158] sm:$0xff]  ;;  %3237 = vmatprep.subr.mxu1 %v7067_v4  ;;  %227 = vmatprep.mubr.f32.mxu0 %v7067_v4 }
   0x2   :  { %7284 = vst [vmem:[#allocation10_spill] sm:$0xff] %v4247_v0  ;;  %7285 = vst [vmem:[#allocation11_spill] sm:$0xff] %v4257_v2  ;;  %163 = vmatprep.subr.mxu0 %v4247_v0  ;;  %v4263_v3 = vld [vmem:[%s7054_s2 + $0x150] sm:$0xff]  ;;  %v4270_v5 = vld [vmem:[%s7054_s2 + $0x140] sm:$0xff]  ;;  %3269 = vmatprep.mubr.msk.f32.mxu1 %vm4204_vm0, %v7067_v4 }
   0x3   :  { %164 = vmatpush1.msra.mxu0 %v4252_v1  ;;  %v4277_v6 = vld [vmem:[%s7054_s2 + $0x138] sm:$0xff]  ;;  %v4285_v7 = vld [vmem:[%s7054_s2 + $0x128] sm:$0xff]  ;;  %v4291_v8 = vld [vmem:[%s7054_s2 + $0x120] sm:$0xff] }
   0x4   :  { %165 = vmatprep.subr.mxu0 %v4257_v2  ;;  %v4297_v9 = vld [vmem:[%s7054_s2 + $0x110] sm:$0xff]  ;;  %v4303_v10 = vld [vmem:[%s7054_s2 + $0x108] sm:$0xff]  ;;  %v4309_v11 = vld [vmem:[%s7054_s2 + $0xf8] sm:$0xff] }
   0x5   :  { %166 = vmatpush1.msra.mxu0 %v4263_v3  ;;  %v4315_v12 = vld [vmem:[%s7054_s2 + $0xf0] sm:$0xff]  ;;  %v4321_v13 = vld [vmem:[%s7054_s2 + $0xe0] sm:$0xff]  ;;  %v4326_v14 = vld [vmem:[%s7054_s2 + $0x178] sm:$0xff] }
   0x6   :  { %167 = vmatprep.subr.mxu0 %v4270_v5  ;;  %v4332_v15 = vld [vmem:[%s7054_s2 + $0xd8] sm:$0xff]  ;;  %3238 = vmatpush3.msra.mxu1 %v4326_v14  ;;  %v4338_v16 = vld [vmem:[%s7054_s2 + $0x160] sm:$0xff]  ;;  %v4344_v17 = vld [vmem:[%s7054_s2 + $0xc8] sm:$0xff] }
   0x7   :  { %168 = vmatpush1.msra.mxu0 %v4277_v6  ;;  %3239 = vmatprep.subr.mxu1 %v7067_v4  ;;  %v4350_v18 = vld [vmem:[%s7054_s2 + $0x148] sm:$0xff]  ;;  %v4356_v19 = vld [vmem:[%s7054_s2 + $0xc0] sm:$0xff]  ;;  %v4363_v20 = vld [vmem:[%s7054_s2 + $0xb0] sm:$0xff] }
   0x8   :  { %169 = vmatprep.subr.mxu0 %v4285_v7  ;;  %3240 = vmatpush3.msra.mxu1 %v4338_v16  ;;  %v4369_v21 = vld [vmem:[%s7054_s2 + $0x130] sm:$0xff]  ;;  %v4375_v22 = vld [vmem:[%s7054_s2 + $0xa8] sm:$0xff]  ;;  %v4382_v23 = vld [vmem:[%s7054_s2 + $0x98] sm:$0xff] }
   0x9   :  { %170 = vmatpush1.msra.mxu0 %v4291_v8  ;;  %3241 = vmatprep.subr.mxu1 %v7067_v4  ;;  %v4388_v24 = vld [vmem:[%s7054_s2 + $0x118] sm:$0xff]  ;;  %v4394_v25 = vld [vmem:[%s7054_s2 + $0x90] sm:$0xff]  ;;  %v4401_v26 = vld [vmem:[%s7054_s2 + $0x80] sm:$0xff] }
   0xa   :  { %171 = vmatprep.subr.mxu0 %v4297_v9  ;;  %3242 = vmatpush3.msra.mxu1 %v4350_v18  ;;  %v4407_v27 = vld [vmem:[%s7054_s2 + $0x100] sm:$0xff]  ;;  %v4413_v28 = vld [vmem:[%s7054_s2 + $0x78] sm:$0xff]  ;;  %v4420_v29 = vld [vmem:[%s7054_s2 + $0x68] sm:$0xff] }
   0xb   :  { %172 = vmatpush1.msra.mxu0 %v4303_v10  ;;  %3243 = vmatprep.subr.mxu1 %v7067_v4  ;;  %7286 = vst [vmem:[#allocation12_spill] sm:$0xff] %v4413_v28  ;;  %7287 = vst [vmem:[#allocation13_spill] sm:$0xff] %v4420_v29  ;;  %v4426_v30 = vld [vmem:[%s7054_s2 + $0xe8] sm:$0xff]  ;;  %v4432_v31 = vld [vmem:[%s7054_s2 + $0x60] sm:$0xff] }
   0xc   :  { %173 = vmatprep.subr.mxu0 %v4309_v11  ;;  %3244 = vmatpush3.msra.mxu1 %v4369_v21  ;;  %7288 = vst [vmem:[#allocation14_spill] sm:$0xff] %v4432_v31  ;;  %v4439_v32 = vld [vmem:[%s7054_s2 + $0x50] sm:$0xff]  ;;  %v4451_v34 = vld [vmem:[%s7054_s2 + $0x48] sm:$0xff]  ;;  %v4458_v35 = vld [vmem:[%s7054_s2 + $0x38] sm:$0xff] }
   0xd   :  { %174 = vmatpush1.msra.mxu0 %v4315_v12  ;;  %3245 = vmatprep.subr.mxu1 %v7067_v4  ;;  %7289 = vst [vmem:[#allocation15_spill] sm:$0xff] %v4439_v32  ;;  %v4445_v33 = vld [vmem:[%s7054_s2 + $0xd0] sm:$0xff]  ;;  %7290 = vst [vmem:[#allocation16_spill] sm:$0xff] %v4451_v34  ;;  %v4464_v36 = vld [vmem:[%s7054_s2 + $0xb8] sm:$0xff] }
   0xe   :  { %175 = vmatprep.subr.mxu0 %v4321_v13  ;;  %3246 = vmatpush3.msra.mxu1 %v4388_v24  ;;  %7291 = vst [vmem:[#allocation17_spill] sm:$0xff] %v4458_v35  ;;  %v4470_v37 = vld [vmem:[%s7054_s2 + $0x30] sm:$0xff]  ;;  %v4477_v38 = vld [vmem:[%s7054_s2 + $0x20] sm:$0xff]  ;;  %v4489_v40 = vld [vmem:[%s7054_s2 + $0x18] sm:$0xff] }
   0xf   :  { %176 = vmatpush1.msra.mxu0 %v4332_v15  ;;  %3247 = vmatprep.subr.mxu1 %v7067_v4  ;;  %7292 = vst [vmem:[#allocation18_spill] sm:$0xff] %v4470_v37  ;;  %7293 = vst [vmem:[#allocation19_spill] sm:$0xff] %v4477_v38  ;;  %v4483_v39 = vld [vmem:[%s7054_s2 + $0xa0] sm:$0xff]  ;;  %v4496_v41 = vld [vmem:[%s7054_s2 + $0x8] sm:$0xff] }
  0x10   :  { %177 = vmatprep.subr.mxu0 %v4344_v17  ;;  %3248 = vmatpush3.msra.mxu1 %v4407_v27  ;;  %7294 = vst [vmem:[#allocation20_spill] sm:$0xff] %v4489_v40  ;;  %7295 = vst [vmem:[#allocation21_spill] sm:$0xff] %v4496_v41  ;;  %v4502_v42 = vld [vmem:[%s7054_s2 + $0x88] sm:$0xff]  ;;  %v4508_v43 = vld [vmem:[%s7054_s2] sm:$0xff] }
  0x11   :  { %178 = vmatpush1.msra.mxu0 %v4356_v19  ;;  %3249 = vmatprep.subr.mxu1 %v7067_v4  ;;  %7296 = vst [vmem:[#allocation22_spill] sm:$0xff] %v4502_v42  ;;  %7297 = vst [vmem:[#allocation23_spill] sm:$0xff] %v4508_v43  ;;  %v4515_v44 = vld [vmem:[%s7054_s2 + $0x2f0] sm:$0xff]  ;;  %v4522_v45 = vld [vmem:[%s7054_s2 + $0x2e8] sm:$0xff] }
  0x12   :  { %179 = vmatprep.subr.mxu0 %v4363_v20  ;;  %3250 = vmatpush3.msra.mxu1 %v4426_v30  ;;  %7298 = vst [vmem:[#allocation24_spill] sm:$0xff] %v4515_v44  ;;  %v4528_v46 = vld [vmem:[%s7054_s2 + $0x70] sm:$0xff]  ;;  %v4534_v47 = vld [vmem:[%s7054_s2 + $0x2d8] sm:$0xff] }
  0x13   :  { %180 = vmatpush1.msra.mxu0 %v4375_v22  ;;  %3251 = vmatprep.subr.mxu1 %v7067_v4  ;;  %7299 = vst [vmem:[#allocation25_spill] sm:$0xff] %v4528_v46 }
  0x14   :  { %181 = vmatprep.subr.mxu0 %v4382_v23  ;;  %3252 = vmatpush3.msra.mxu1 %v4445_v33 }
  0x15   :  { %182 = vmatpush1.msra.mxu0 %v4394_v25  ;;  %3253 = vmatprep.subr.mxu1 %v7067_v4 }
  0x16   :  { %183 = vmatprep.subr.mxu0 %v4401_v26  ;;  %3254 = vmatpush3.msra.mxu1 %v4464_v36 }
  0x17   :  { %184 = vmatpush1.msra.mxu0 %v4413_v28  ;;  %3255 = vmatprep.subr.mxu1 %v7067_v4 }
  0x18   :  { %185 = vmatprep.subr.mxu0 %v4420_v29  ;;  %3256 = vmatpush3.msra.mxu1 %v4483_v39 }
  0x19   :  { %186 = vmatpush1.msra.mxu0 %v4432_v31  ;;  %3257 = vmatprep.subr.mxu1 %v7067_v4 }
  0x1a   :  { %187 = vmatprep.subr.mxu0 %v4439_v32  ;;  %3258 = vmatpush3.msra.mxu1 %v4502_v42 }
  0x1b   :  { %188 = vmatpush1.msra.mxu0 %v4451_v34  ;;  %3259 = vmatprep.subr.mxu1 %v7067_v4 }
  0x1c   :  { %189 = vmatprep.subr.mxu0 %v4458_v35 }
  0x1d   :  { %190 = vmatpush1.msra.mxu0 %v4470_v37 }
  0x1e   :  { %191 = vmatprep.subr.mxu0 %v4477_v38 }
  0x1f   :  { %192 = vmatpush1.msra.mxu0 %v4489_v40 }
  0x20   :  { %193 = vmatprep.subr.mxu0 %v4496_v41 }
  0x21   :  { %194 = vmatpush1.msra.mxu0 %v4508_v43 }
  0x22   :  { %13 = vsyncpa [#allocation7], 0  ;;  %228 = vmatmul.mubr.f32.vlgmr.msra.gmra.mxu0 %v7067_v4  ;;  %304 = vmatprep.subr.mxu0 %v4515_v44  ;;  %v4542_v48 = vld [vmem:[%s7054_s2 + $0x2d0] sm:$0xff]  ;;  %v4547_v49 = vld [vmem:[%s7054_s2 + $0x58] sm:$0xff] }
  0x23   :  { %7300 = vst [vmem:[#allocation26_spill] sm:$0xff] %v4547_v49  ;;  %305 = vmatpush1.msra.mxu0 %v4522_v45  ;;  %v4553_v50 = vld [vmem:[%s7054_s2 + $0x2c0] sm:$0xff]  ;;  %3260 = vmatpush3.msra.mxu1 %v4528_v46  ;;  %v4560_v51 = vld [vmem:[%s7054_s2 + $0x2b8] sm:$0xff]  ;;  %v4572_v53 = vld [vmem:[%s7054_s2 + $0x2a8] sm:$0xff] }
  0x24   :  { %306 = vmatprep.subr.mxu0 %v4534_v47  ;;  %3261 = vmatprep.subr.mxu1 %v7067_v4  ;;  %v4566_v52 = vld [vmem:[%s7054_s2 + $0x40] sm:$0xff]  ;;  %7302 = vst [vmem:[#allocation28_spill] sm:$0xff] %v4572_v53  ;;  %v4585_v55 = vld [vmem:[%s7054_s2 + $0x28] sm:$0xff]  ;;  %v4591_v56 = vld [vmem:[%s7054_s2 + $0x290] sm:$0xff] }
  0x25   :  { %7301 = vst [vmem:[#allocation27_spill] sm:$0xff] %v4566_v52  ;;  %307 = vmatpush1.msra.mxu0 %v4542_v48  ;;  %3262 = vmatpush3.msra.mxu1 %v4547_v49  ;;  %v4579_v54 = vld [vmem:[%s7054_s2 + $0x2a0] sm:$0xff]  ;;  %7304 = vst [vmem:[#allocation30_spill] sm:$0xff] %v4585_v55  ;;  %v4598_v57 = vld [vmem:[%s7054_s2 + $0x288] sm:$0xff] }
  0x26   :  { %308 = vmatprep.subr.mxu0 %v4553_v50  ;;  %7303 = vst [vmem:[#allocation29_spill] sm:$0xff] %v4579_v54  ;;  %3263 = vmatprep.subr.mxu1 %v7067_v4  ;;  %7305 = vst [vmem:[#allocation31_spill] sm:$0xff] %v4591_v56  ;;  %v4604_v58 = vld [vmem:[%s7054_s2 + $0x10] sm:$0xff]  ;;  %v4610_v59 = vld [vmem:[%s7054_s2 + $0x278] sm:$0xff] }
  0x27   :  { %309 = vmatpush1.msra.mxu0 %v4560_v51  ;;  %3264 = vmatpush3.msra.mxu1 %v4566_v52  ;;  %7306 = vst [vmem:[#allocation32_spill] sm:$0xff] %v4598_v57  ;;  %7307 = vst [vmem:[#allocation33_spill] sm:$0xff] %v4604_v58  ;;  %v4617_v60 = vld [vmem:[%s7054_s2 + $0x270] sm:$0xff]  ;;  %v4624_v61 = vld [vmem:[%s7054_s2 + $0x260] sm:$0xff] }
  0x28   :  { %310 = vmatprep.subr.mxu0 %v4572_v53  ;;  %3265 = vmatprep.subr.mxu1 %v7067_v4  ;;  %7308 = vst [vmem:[#allocation34_spill] sm:$0xff] %v4610_v59  ;;  %7309 = vst [vmem:[#allocation35_spill] sm:$0xff] %v4617_v60  ;;  %v4631_v62 = vld [vmem:[%s7054_s2 + $0x258] sm:$0xff]  ;;  %v4700_v53 = vld [vmem:[%s7054_s2 + $0x200] sm:$0xff] }
  0x29   :  { %311 = vmatpush1.msra.mxu0 %v4579_v54  ;;  %3266 = vmatpush3.msra.mxu1 %v4585_v55  ;;  %7310 = vst [vmem:[#allocation36_spill] sm:$0xff] %v4624_v61  ;;  %7311 = vst [vmem:[#allocation37_spill] sm:$0xff] %v4631_v62  ;;  %v4637_v63 = vld [vmem:[%s7054_s2 + $0x2f8] sm:$0xff] }
  0x2a   :  { %312 = vmatprep.subr.mxu0 %v4591_v56  ;;  %3267 = vmatprep.subr.mxu1 %v7067_v4  ;;  %v4662_v56 = vld [vmem:[%s7054_s2 + $0x230] sm:$0xff]  ;;  %v4681_v54 = vld [vmem:[%s7054_s2 + $0x218] sm:$0xff]  ;;  %7321 = vst [vmem:[#allocation46_spill] sm:$0xff] %v4700_v53 }
  0x2b   :  { %313 = vmatpush1.msra.mxu0 %v4598_v57  ;;  %3268 = vmatpush3.msra.mxu1 %v4604_v58  ;;  %v4643_v57 = vld [vmem:[%s7054_s2 + $0x248] sm:$0xff]  ;;  %7314 = vst [vmem:[#allocation40_spill] sm:$0xff] %v4662_v56  ;;  %7318 = vst [vmem:[#allocation43_spill] sm:$0xff] %v4681_v54 }
  0x2c   :  { %314 = vmatprep.subr.mxu0 %v4610_v59  ;;  %3272 = vmatprep.subr.mxu1 %v7067_v4  ;;  %7312 = vst [vmem:[#allocation38_spill] sm:$0xff] %v4643_v57  ;;  %v4650_v59 = vld [vmem:[%s7054_s2 + $0x240] sm:$0xff] }
  0x2d   :  { %315 = vmatpush1.msra.mxu0 %v4617_v60  ;;  %3270 = vmatmul.mubr.f32.vlgmr.msra.gmra.mxu1 %v7067_v4  ;;  %7313 = vst [vmem:[#allocation39_spill] sm:$0xff] %v4650_v59  ;;  %v4656_v60 = vld [vmem:[%s7054_s2 + $0x2e0] sm:$0xff] }
  0x2e   :  { %316 = vmatprep.subr.mxu0 %v4624_v61  ;;  %368 = vmatprep.mubr.f32.mxu0 %v7067_v4  ;;  %v4669_v4 = vld [vmem:[%s7054_s2 + $0x228] sm:$0xff]  ;;  %v7316_v61 = vmov 0.0  }
  0x2f   :  { %317 = vmatpush1.msra.mxu0 %v4631_v62  ;;  %3273 = vmatpush3.msra.mxu1 %v4637_v63  ;;  %7315 = vst [vmem:[#allocation41_spill] sm:$0xff] %v4669_v4  ;;  %v4675_v62 = vld [vmem:[%s7054_s2 + $0x2c8] sm:$0xff] }
  0x30   :  { %318 = vmatprep.subr.mxu0 %v4643_v57  ;;  %3274 = vmatprep.subr.mxu1 %v7316_v61  ;;  %7317 = vst [vmem:[#allocation42_spill] sm:$0xff] %v4675_v62  ;;  %v4688_v57 = vld [vmem:[%s7054_s2 + $0x210] sm:$0xff] }
  0x31   :  { %319 = vmatpush1.msra.mxu0 %v4650_v59  ;;  %3275 = vmatpush3.msra.mxu1 %v4656_v60  ;;  %7319 = vst [vmem:[#allocation44_spill] sm:$0xff] %v4688_v57  ;;  %v4694_v59 = vld [vmem:[%s7054_s2 + $0x2b0] sm:$0xff] }
  0x32   :  { %320 = vmatprep.subr.mxu0 %v4662_v56  ;;  %3276 = vmatprep.subr.mxu1 %v7316_v61  ;;  %7320 = vst [vmem:[#allocation45_spill] sm:$0xff] %v4694_v59  ;;  %v4707_v56 = vld [vmem:[%s7054_s2 + $0x1f8] sm:$0xff] }
  0x33   :  { %321 = vmatpush1.msra.mxu0 %v4669_v4  ;;  %3277 = vmatpush3.msra.mxu1 %v4675_v62  ;;  %7322 = vst [vmem:[#allocation47_spill] sm:$0xff] %v4707_v56  ;;  %v4713_v4 = vld [vmem:[%s7054_s2 + $0x298] sm:$0xff]  ;;  %v4719_v62 = vld [vmem:[%s7054_s2 + $0x1e8] sm:$0xff] }
  0x34   :  { %322 = vmatprep.subr.mxu0 %v4681_v54  ;;  %3278 = vmatprep.subr.mxu1 %v7316_v61  ;;  %7323 = vst [vmem:[#allocation48_spill] sm:$0xff] %v4713_v4  ;;  %7324 = vst [vmem:[#allocation49_spill] sm:$0xff] %v4719_v62  ;;  %v4726_v54 = vld [vmem:[%s7054_s2 + $0x1e0] sm:$0xff] }
  0x35   :  { %323 = vmatpush1.msra.mxu0 %v4688_v57  ;;  %3279 = vmatpush3.msra.mxu1 %v4694_v59  ;;  %7325 = vst [vmem:[#allocation50_spill] sm:$0xff] %v4726_v54  ;;  %v4732_v57 = vld [vmem:[%s7054_s2 + $0x280] sm:$0xff]  ;;  %v4738_v59 = vld [vmem:[%s7054_s2 + $0x1d0] sm:$0xff] }
  0x36   :  { %324 = vmatprep.subr.mxu0 %v4700_v53  ;;  %3280 = vmatprep.subr.mxu1 %v7316_v61  ;;  %7326 = vst [vmem:[#allocation51_spill] sm:$0xff] %v4732_v57  ;;  %7327 = vst [vmem:[#allocation52_spill] sm:$0xff] %v4738_v59  ;;  %v4745_v53 = vld [vmem:[%s7054_s2 + $0x1c8] sm:$0xff] }
  0x37   :  { %325 = vmatpush1.msra.mxu0 %v4707_v56  ;;  %3281 = vmatpush3.msra.mxu1 %v4713_v4  ;;  %7328 = vst [vmem:[#allocation53_spill] sm:$0xff] %v4745_v53  ;;  %v4751_v56 = vld [vmem:[%s7054_s2 + $0x268] sm:$0xff]  ;;  %v4757_v4 = vld [vmem:[%s7054_s2 + $0x1b8] sm:$0xff] }
  0x38   :  { %326 = vmatprep.subr.mxu0 %v4719_v62  ;;  %3282 = vmatprep.subr.mxu1 %v7316_v61  ;;  %7329 = vst [vmem:[#allocation54_spill] sm:$0xff] %v4751_v56  ;;  %7330 = vst [vmem:[#allocation55_spill] sm:$0xff] %v4757_v4  ;;  %v4764_v62 = vld [vmem:[%s7054_s2 + $0x1b0] sm:$0xff] }
  0x39   :  { %327 = vmatpush1.msra.mxu0 %v4726_v54  ;;  %3283 = vmatpush3.msra.mxu1 %v4732_v57  ;;  %7331 = vst [vmem:[#allocation56_spill] sm:$0xff] %v4764_v62  ;;  %v4770_v54 = vld [vmem:[%s7054_s2 + $0x250] sm:$0xff]  ;;  %v4776_v57 = vld [vmem:[%s7054_s2 + $0x1a0] sm:$0xff] }
  0x3a   :  { %328 = vmatprep.subr.mxu0 %v4738_v59  ;;  %3284 = vmatprep.subr.mxu1 %v7316_v61  ;;  %7332 = vst [vmem:[#allocation57_spill] sm:$0xff] %v4770_v54  ;;  %7333 = vst [vmem:[#allocation58_spill] sm:$0xff] %v4776_v57  ;;  %v4783_v59 = vld [vmem:[%s7054_s2 + $0x198] sm:$0xff] }
  0x3b   :  { %329 = vmatpush1.msra.mxu0 %v4745_v53  ;;  %3285 = vmatpush3.msra.mxu1 %v4751_v56  ;;  %7334 = vst [vmem:[#allocation59_spill] sm:$0xff] %v4783_v59  ;;  %v4789_v53 = vld [vmem:[%s7054_s2 + $0x238] sm:$0xff]  ;;  %v4795_v56 = vld [vmem:[%s7054_s2 + $0x188] sm:$0xff] }
  0x3c   :  { %330 = vmatprep.subr.mxu0 %v4757_v4  ;;  %3286 = vmatprep.subr.mxu1 %v7316_v61  ;;  %7335 = vst [vmem:[#allocation60_spill] sm:$0xff] %v4789_v53  ;;  %7336 = vst [vmem:[#allocation61_spill] sm:$0xff] %v4795_v56  ;;  %v4802_v4 = vld [vmem:[%s7054_s2 + $0x180] sm:$0xff] }
  0x3d   :  { %331 = vmatpush1.msra.mxu0 %v4764_v62  ;;  %3287 = vmatpush3.msra.mxu1 %v4770_v54  ;;  %7337 = vst [vmem:[#allocation62_spill] sm:$0xff] %v4802_v4  ;;  %v4808_v62 = vld [vmem:[%s7054_s2 + $0x220] sm:$0xff] }
  0x3e   :  { %332 = vmatprep.subr.mxu0 %v4776_v57  ;;  %3288 = vmatprep.subr.mxu1 %v7316_v61  ;;  %7338 = vst [vmem:[#allocation63_spill] sm:$0xff] %v4808_v62  ;;  %v4817_v57 = vld [vmem:[%s7054_s2 + $0x208] sm:$0xff] }
  0x3f   :  { %333 = vmatpush1.msra.mxu0 %v4783_v59  ;;  %3289 = vmatpush3.msra.mxu1 %v4789_v53  ;;  %7339 = vst [vmem:[#allocation64_spill] sm:$0xff] %v4817_v57  ;;  %v4826_v59 = vld [vmem:[%s7054_s2 + $0x1f0] sm:$0xff] }
  0x40   :  { %334 = vmatprep.subr.mxu0 %v4795_v56  ;;  %3290 = vmatprep.subr.mxu1 %v7316_v61  ;;  %7340 = vst [vmem:[#allocation65_spill] sm:$0xff] %v4826_v59  ;;  %v4844_v56 = vld [vmem:[%s7054_s2 + $0x1c0] sm:$0xff] }
  0x41   :  { %335 = vmatpush1.msra.mxu0 %v4802_v4  ;;  %3291 = vmatpush3.msra.mxu1 %v4808_v62  ;;  %v4835_v4 = vld [vmem:[%s7054_s2 + $0x1d8] sm:$0xff] }
  0x42   :  { %369 = vmatmul.mubr.f32.vlgmr.msra.gmra.mxu0 %v7316_v61  ;;  %3292 = vmatprep.subr.mxu1 %v7316_v61  ;;  %7341 = vst [vmem:[#allocation66_spill] sm:$0xff] %v4835_v4 }
  0x43   :  { %3293 = vmatpush3.msra.mxu1 %v4817_v57  ;;  %3304 = vmatprep.mubr.msk.f32.mxu1 %vm4204_vm0, %v7316_v61 }
  0x44   :  { %3294 = vmatprep.subr.mxu1 %v7316_v61  ;;  %507 = vmatprep.subr.mxu0 %v4247_v0  ;;  %v4853_v0 = vld [vmem:[%s7054_s2 + $0x1a8] sm:$0xff] }
  0x45   :  { %3295 = vmatpush3.msra.mxu1 %v4826_v59  ;;  %508 = vmatpush1.msra.mxu0 %v4252_v1 }
  0x46   :  { %3296 = vmatprep.subr.mxu1 %v7316_v61  ;;  %509 = vmatprep.subr.mxu0 %v4257_v2  ;;  %v4862_v2 = vld [vmem:[%s7054_s2 + $0x190] sm:$0xff] }
  0x47   :  { %3297 = vmatpush3.msra.mxu1 %v4835_v4  ;;  %510 = vmatpush1.msra.mxu0 %v4263_v3 }
  0x48   :  { %3298 = vmatprep.subr.mxu1 %v7316_v61  ;;  %511 = vmatprep.subr.mxu0 %v4270_v5 }
  0x49   :  { %3299 = vmatpush3.msra.mxu1 %v4844_v56  ;;  %512 = vmatpush1.msra.mxu0 %v4277_v6 }
  0x4a   :  { %3300 = vmatprep.subr.mxu1 %v7316_v61  ;;  %513 = vmatprep.subr.mxu0 %v4285_v7 }
  0x4b   :  { %3301 = vmatpush3.msra.mxu1 %v4853_v0  ;;  %514 = vmatpush1.msra.mxu0 %v4291_v8 }
  0x4c   :  { %3302 = vmatprep.subr.mxu1 %v7316_v61  ;;  %515 = vmatprep.subr.mxu0 %v4297_v9 }
  0x4d   :  { %3303 = vmatpush3.msra.mxu1 %v4862_v2  ;;  %516 = vmatpush1.msra.mxu0 %v4303_v10 }
  0x4e   :  { %3305 = vmatmul.mubr.f32.vlgmr.msra.gmra.mxu1 %v7316_v61  ;;  %3307 = vmatprep.subr.mxu1 %v7316_v61 }
  0x4f   :  { %3308 = vmatpush3.msra.mxu1 %v4326_v14  ;;  %517 = vmatprep.subr.mxu0 %v4309_v11 }
  0x50   :  { %3309 = vmatprep.subr.mxu1 %v7316_v61  ;;  %518 = vmatpush1.msra.mxu0 %v4315_v12 }
  0x51   :  { %3310 = vmatpush3.msra.mxu1 %v4338_v16  ;;  %519 = vmatprep.subr.mxu0 %v4321_v13 }
  0x52   :  { %3311 = vmatprep.subr.mxu1 %v7316_v61  ;;  %520 = vmatpush1.msra.mxu0 %v4332_v15 }
  0x53   :  { %3312 = vmatpush3.msra.mxu1 %v4350_v18  ;;  %521 = vmatprep.subr.mxu0 %v4344_v17 }
  0x54   :  { %3313 = vmatprep.subr.mxu1 %v7316_v61  ;;  %522 = vmatpush1.msra.mxu0 %v4356_v19 }
  0x55   :  { %3314 = vmatpush3.msra.mxu1 %v4369_v21  ;;  %523 = vmatprep.subr.mxu0 %v4363_v20 }
  0x56   :  { %3315 = vmatprep.subr.mxu1 %v7316_v61  ;;  %524 = vmatpush1.msra.mxu0 %v4375_v22 }
  0x57   :  { %3316 = vmatpush3.msra.mxu1 %v4388_v24  ;;  %525 = vmatprep.subr.mxu0 %v4382_v23 }
  0x58   :  { %3317 = vmatprep.subr.mxu1 %v7316_v61  ;;  %526 = vmatpush1.msra.mxu0 %v4394_v25 }
  0x59   :  { %3318 = vmatpush3.msra.mxu1 %v4407_v27  ;;  %527 = vmatprep.subr.mxu0 %v4401_v26 }
  0x5a   :  { %3319 = vmatprep.subr.mxu1 %v7316_v61  ;;  %528 = vmatpush1.msra.mxu0 %v4413_v28 }
  0x5b   :  { %3320 = vmatpush3.msra.mxu1 %v4426_v30  ;;  %529 = vmatprep.subr.mxu0 %v4420_v29 }
  0x5c   :  { %3321 = vmatprep.subr.mxu1 %v7316_v61  ;;  %530 = vmatpush1.msra.mxu0 %v4432_v31 }
  0x5d   :  { %3322 = vmatpush3.msra.mxu1 %v4445_v33  ;;  %531 = vmatprep.subr.mxu0 %v4439_v32  ;;  %v4940_v32 = vld [vmem:[%s7055_s3] ss:$0 sm:$0xff] }
  0x5e   :  { %3323 = vmatprep.subr.mxu1 %v7316_v61  ;;  %532 = vmatpush1.msra.mxu0 %v4451_v34  ;;  %7342 = vst [vmem:[#allocation67_spill] sm:$0xff] %v4940_v32 }
  0x5f   :  { %3324 = vmatpush3.msra.mxu1 %v4464_v36  ;;  %533 = vmatprep.subr.mxu0 %v4458_v35 }
  0x60   :  { %3325 = vmatprep.subr.mxu1 %v7316_v61  ;;  %534 = vmatpush1.msra.mxu0 %v4470_v37 }
  0x61   :  { %3326 = vmatpush3.msra.mxu1 %v4483_v39  ;;  %535 = vmatprep.subr.mxu0 %v4477_v38  ;;  %v158_v38 = vld [vmem:[%s7052_s0 + $0x8] sm:$0xff] }
  0x62   :  { %3327 = vmatprep.subr.mxu1 %v7316_v61  ;;  %536 = vmatpush1.msra.mxu0 %v4489_v40 }
  0x63   :  { %3328 = vmatpush3.msra.mxu1 %v4502_v42  ;;  %537 = vmatprep.subr.mxu0 %v4496_v41 }
  0x64   :  { %3329 = vmatprep.subr.mxu1 %v7316_v61  ;;  %538 = vmatpush1.msra.mxu0 %v4508_v43  ;;  %v157_v43 = vld [vmem:[%s7052_s0] sm:$0xff] }
  0x65   :  { %3330 = vmatpush3.msra.mxu1 %v4528_v46  ;;  %571 = vmatprep.mubr.f32.mxu0 %v7316_v61  ;;  %v161_v46 = vld [vmem:[%s7053_s1 + $0xb0] sm:$0xff] }
  0x66   :  { %3331 = vmatprep.subr.mxu1 %v7316_v61  ;;  %3339 = vmatprep.mubr.msk.f32.mxu1 %vm4204_vm0, %v7316_v61 }
  0x67   :  { %3332 = vmatpush3.msra.mxu1 %v4547_v49  ;;  %648 = vmatprep.subr.mxu0 %v4515_v44 }
  0x68   :  { %3333 = vmatprep.subr.mxu1 %v7316_v61 }
  0x69   :  { %3334 = vmatpush3.msra.mxu1 %v4566_v52 }
  0x6a   :  { %3335 = vmatprep.subr.mxu1 %v7316_v61 }
  0x6b   :  { %3336 = vmatpush3.msra.mxu1 %v4585_v55 }
  0x6c   :  { %3337 = vmatprep.subr.mxu1 %v7316_v61 }
  0x6d   :  { %3338 = vmatpush3.msra.mxu1 %v4604_v58 }
  0x6e   :  { %3342 = vmatprep.subr.mxu1 %v7316_v61 }
  0xe2   :  { %v229_v41 = vpop.f32.mrf.mxu0 }
  0xe3   :  { %v445_v44 = vadd.f32 %v229_v41, %v157_v43 }
  0xe4   :  { %v231_v52 = vpop.f32.mrf.mxu0 }
  0xe5   :  { %v2930_v40 = vmul.f32 -1.442695, %v445_v44  ;;  %v452_v37 = vadd.f32 %v231_v52, %v158_v38 }
  0xe7   :  { %3803 = vpow2.f32 %v2930_v40  ;;  %v2931_v49 = vmul.f32 -1.442695, %v452_v37  ;;  %v160_v40 = vld [vmem:[%s7053_s1 + $0xa8] sm:$0xff]  ;;  %v159_v37 = vld [vmem:[%s7052_s0 + $0x10] sm:$0xff] }
  0xe9   :  { %3805 = vpow2.f32 %v2931_v49 }
  0xed   :  { %v300_v55 = vpop.f32.mrf.mxu1 }
  0xee   :  { %v465_v41 = vadd.f32 %v4940_v32, %v300_v55 }
  0xef   :  { %v3271_v35 = vpop.f32.mrf.mxu1 }
  0xf4   :  { %v3804_v58 = vpop.eup %3803 }
  0xf5   :  { %v449_v34 = vadd.f32 1.0, %v3804_v58 }
  0xf6   :  { %v3806_v44 = vpop.eup %3805 }
  0xf7   :  { %3807 = vrcp.f32 %v449_v34  ;;  %v456_v52 = vadd.f32 1.0, %v3806_v44 }
 0x102   :  { %v370_v43 = vpop.f32.mrf.mxu0 }
 0x103   :  { %v472_v38 = vadd.f32 %v370_v43, %v160_v40 }
 0x104   :  { %v3808_v35 = vpop.eup %3807  ;;  %v372_v55 = vpop.f32.mrf.mxu0 }
 0x105   :  { %v466_v34 = vmul.f32 %v3808_v35, %v465_v41  ;;  %v2933_v49 = vmul.f32 -1.442695, %v472_v38  ;;  %v479_v32 = vadd.f32 %v372_v55, %v161_v46  ;;  %v7344_v46 = vld [vmem:[#allocation28_spill] sm:$0xff] }
 0x106   :  { %v7348_v55 = vld [vmem:[#allocation32_spill] sm:$0xff] }
 0x107   :  { %v467_v58 = vadd.f32 %v466_v34, %v159_v37  ;;  %3809 = vpow2.f32 %v2933_v49  ;;  %v2934_v43 = vmul.f32 -1.442695, %v479_v32  ;;  %v7343_v32 = vld [vmem:[#allocation42_spill] sm:$0xff]  ;;  %v162_v34 = vld [vmem:[%s7053_s1 + $0xb8] sm:$0xff] }
 0x108   :  { %v7345_v49 = vld [vmem:[#allocation29_spill] sm:$0xff] }
 0x109   :  { %3811 = vtanh.f32 %v467_v58  ;;  %v7347_v58 = vld [vmem:[#allocation31_spill] sm:$0xff] }
 0x10a   :  { %3813 = vrcp.f32 %v456_v52 }
 0x10b   :  { %3815 = vpow2.f32 %v2934_v43 }
 0x10e   :  { %v441_v31 = vpop.f32.mrf.mxu1 }
 0x110   :  { %v3306_v40 = vpop.f32.mrf.mxu1 }
 0x111   :  { %v7349_v40 = vld [vmem:[#allocation48_spill] sm:$0xff] }
 0x114   :  { %v3810_v29 = vpop.eup %3809 }
 0x115   :  { %v476_v42 = vadd.f32 1.0, %v3810_v29  ;;  %v4962_v29 = vld [vmem:[%s7055_s3 + $0x1] ss:$0 sm:$0xff] }
 0x116   :  { %v3812_v28 = vpop.eup %3811 }
 0x117   :  { %3817 = vrcp.f32 %v476_v42  ;;  %v469_v41 = vsub.f32 0.0, %v3812_v28  ;;  %v3814_v44 = vpop.eup %3813 }
 0x118   :  { %v3816_v42 = vpop.eup %3815 }
 0x119   :  { %v470_v38 = vmul.f32 %v3814_v44, %v469_v41  ;;  %v483_v43 = vadd.f32 1.0, %v3816_v42  ;;  %v7350_v44 = vld [vmem:[#allocation34_spill] sm:$0xff] }
 0x11a   :  { %v7356_v42 = vld [vmem:[#allocation38_spill] sm:$0xff] }
 0x11b   :  { %v4952_v35 = vadd.f32 %v3812_v28, %v470_v38  ;;  %v492_v28 = vadd.f32 %v4962_v29, %v441_v31  ;;  %v7346_v31 = vld [vmem:[#allocation45_spill] sm:$0xff]  ;;  %v7351_v38 = vld [vmem:[#allocation35_spill] sm:$0xff] }
 0x11d   :  { %499 = vst [vmem:[#allocation4] sm:$0xff] %v4952_v35  ;;  %572 = vmatmul.mubr.f32.vlgmr.msra.gmra.mxu0 %v4952_v35  ;;  %3340 = vmatmul.mubr.f32.vlgmr.msra.gmra.mxu1 %v4952_v35 }
 0x11e   :  { %649 = vmatpush1.msra.mxu0 %v4522_v45  ;;  %3343 = vmatpush3.msra.mxu1 %v4637_v63 }
 0x11f   :  { %650 = vmatprep.subr.mxu0 %v4534_v47  ;;  %3344 = vmatprep.subr.mxu1 %v7316_v61 }
 0x120   :  { %651 = vmatpush1.msra.mxu0 %v4542_v48  ;;  %3345 = vmatpush3.msra.mxu1 %v4656_v60 }
 0x121   :  { %652 = vmatprep.subr.mxu0 %v4553_v50  ;;  %3346 = vmatprep.subr.mxu1 %v7316_v61 }
 0x122   :  { %653 = vmatpush1.msra.mxu0 %v4560_v51  ;;  %3347 = vmatpush3.msra.mxu1 %v7343_v32 }
 0x123   :  { %654 = vmatprep.subr.mxu0 %v7344_v46  ;;  %3348 = vmatprep.subr.mxu1 %v7316_v61 }
 0x124   :  { %v3818_v37 = vpop.eup %3817  ;;  %655 = vmatpush1.msra.mxu0 %v7345_v49  ;;  %3349 = vmatpush3.msra.mxu1 %v7346_v31  ;;  %v7352_v49 = vld [vmem:[#allocation51_spill] sm:$0xff] }
 0x125   :  { %v493_v52 = vmul.f32 %v3818_v37, %v492_v28  ;;  %656 = vmatprep.subr.mxu0 %v7347_v58  ;;  %3350 = vmatprep.subr.mxu1 %v7316_v61  ;;  %v7353_v28 = vld [vmem:[#allocation36_spill] sm:$0xff]  ;;  %v7354_v37 = vld [vmem:[#allocation37_spill] sm:$0xff] }
 0x126   :  { %657 = vmatpush1.msra.mxu0 %v7348_v55  ;;  %3351 = vmatpush3.msra.mxu1 %v7349_v40  ;;  %v7355_v55 = vld [vmem:[#allocation54_spill] sm:$0xff] }
 0x127   :  { %v494_v41 = vadd.f32 %v493_v52, %v162_v34  ;;  %658 = vmatprep.subr.mxu0 %v7350_v44  ;;  %3352 = vmatprep.subr.mxu1 %v7316_v61  ;;  %v7357_v34 = vld [vmem:[#allocation39_spill] sm:$0xff]  ;;  %v7358_v52 = vld [vmem:[#allocation40_spill] sm:$0xff] }
 0x128   :  { %659 = vmatpush1.msra.mxu0 %v7351_v38  ;;  %3353 = vmatpush3.msra.mxu1 %v7352_v49 }
 0x129   :  { %3819 = vtanh.f32 %v494_v41  ;;  %660 = vmatprep.subr.mxu0 %v7353_v28  ;;  %3354 = vmatprep.subr.mxu1 %v7316_v61  ;;  %v7359_v41 = vld [vmem:[#allocation41_spill] sm:$0xff] }
 0x12a   :  { %661 = vmatpush1.msra.mxu0 %v7354_v37  ;;  %3355 = vmatpush3.msra.mxu1 %v7355_v55  ;;  %3821 = vrcp.f32 %v483_v43  ;;  %v7360_v37 = vld [vmem:[#allocation43_spill] sm:$0xff]  ;;  %v7361_v43 = vld [vmem:[#allocation44_spill] sm:$0xff] }
 0x12b   :  { %662 = vmatprep.subr.mxu0 %v7356_v42  ;;  %3356 = vmatprep.subr.mxu1 %v7316_v61  ;;  %v7362_v42 = vld [vmem:[#allocation46_spill] sm:$0xff] }
 0x12c   :  { %663 = vmatpush1.msra.mxu0 %v7357_v34  ;;  %3357 = vmatpush3.msra.mxu1 %v4770_v54  ;;  %v7363_v54 = vld [vmem:[#allocation47_spill] sm:$0xff] }
 0x12d   :  { %664 = vmatprep.subr.mxu0 %v7358_v52  ;;  %3358 = vmatprep.subr.mxu1 %v7316_v61  ;;  %v7364_v52 = vld [vmem:[#allocation49_spill] sm:$0xff] }
 0x12e   :  { %665 = vmatpush1.msra.mxu0 %v7359_v41  ;;  %3359 = vmatpush3.msra.mxu1 %v4789_v53  ;;  %v7365_v53 = vld [vmem:[#allocation50_spill] sm:$0xff] }
 0x12f   :  { %666 = vmatprep.subr.mxu0 %v7360_v37  ;;  %3360 = vmatprep.subr.mxu1 %v7316_v61  ;;  %v7366_v37 = vld [vmem:[#allocation52_spill] sm:$0xff] }
 0x130   :  { %667 = vmatpush1.msra.mxu0 %v7361_v43  ;;  %3361 = vmatpush3.msra.mxu1 %v4808_v62  ;;  %v7369_v43 = vld [vmem:[#allocation56_spill] sm:$0xff] }
 0x131   :  { %668 = vmatprep.subr.mxu0 %v7362_v42  ;;  %3362 = vmatprep.subr.mxu1 %v7316_v61  ;;  %v7367_v42 = vld [vmem:[#allocation53_spill] sm:$0xff] }
 0x132   :  { %669 = vmatpush1.msra.mxu0 %v7363_v54  ;;  %3363 = vmatpush3.msra.mxu1 %v4817_v57  ;;  %v7368_v54 = vld [vmem:[#allocation55_spill] sm:$0xff] }
 0x133   :  { %670 = vmatprep.subr.mxu0 %v7364_v52  ;;  %3364 = vmatprep.subr.mxu1 %v7316_v61 }
 0x134   :  { %671 = vmatpush1.msra.mxu0 %v7365_v53  ;;  %3365 = vmatpush3.msra.mxu1 %v4826_v59  ;;  %v7370_v59 = vld [vmem:[#allocation58_spill] sm:$0xff]  ;;  %v7371_v53 = vld [vmem:[#allocation59_spill] sm:$0xff] }
 0x135   :  { %672 = vmatprep.subr.mxu0 %v7366_v37  ;;  %3366 = vmatprep.subr.mxu1 %v7316_v61 }
 0x136   :  { %v3820_v62 = vpop.eup %3819  ;;  %673 = vmatpush1.msra.mxu0 %v7367_v42  ;;  %3367 = vmatpush3.msra.mxu1 %v4835_v4  ;;  %v7372_v4 = vld [vmem:[#allocation61_spill] sm:$0xff]  ;;  %v7373_v42 = vld [vmem:[#allocation62_spill] sm:$0xff] }
 0x137   :  { %674 = vmatprep.subr.mxu0 %v7368_v54  ;;  %3368 = vmatprep.subr.mxu1 %v7316_v61  ;;  %v496_v52 = vsub.f32 0.0, %v3820_v62  ;;  %v3822_v57 = vpop.eup %3821 }
 0x138   :  { %675 = vmatpush1.msra.mxu0 %v7369_v43  ;;  %3369 = vmatpush3.msra.mxu1 %v4844_v56 }
 0x139   :  { %676 = vmatprep.subr.mxu0 %v7370_v59  ;;  %3370 = vmatprep.subr.mxu1 %v7316_v61  ;;  %v497_v37 = vmul.f32 %v3822_v57, %v496_v52  ;;  %v7374_v57 = vld [vmem:[#allocation10_spill] sm:$0xff]  ;;  %v504_v52 = vld [vmem:[%s7053_s1 + $0x90] sm:$0xff] }
 0x13a   :  { %677 = vmatpush1.msra.mxu0 %v7371_v53  ;;  %3371 = vmatpush3.msra.mxu1 %v4853_v0 }
 0x13b   :  { %678 = vmatprep.subr.mxu0 %v7372_v4  ;;  %3372 = vmatprep.subr.mxu1 %v7316_v61  ;;  %v5026_v54 = vadd.f32 %v3820_v62, %v497_v37  ;;  %v7375_v62 = vld [vmem:[#allocation11_spill] sm:$0xff] }
 0x13c   :  { %679 = vmatpush1.msra.mxu0 %v7373_v42  ;;  %712 = vmatprep.mubr.f32.mxu0 %v7316_v61 }
 0x13d   :  { %3373 = vmatpush3.msra.mxu1 %v4862_v2  ;;  %3374 = vmatprep.mubr.msk.f32.mxu1 %vm4204_vm0, %v7316_v61  ;;  %500 = vst [vmem:[#allocation6 + $0x38] sm:$0xff] %v5026_v54 }
 0x13e   :  { %713 = vmatmul.mubr.f32.vlgmr.msra.gmra.mxu0 %v5026_v54  ;;  %3375 = vmatmul.mubr.f32.vlgmr.msra.gmra.mxu1 %v5026_v54 }
 0x13f   :  { %839 = vmatprep.subr.mxu0 %v7374_v57  ;;  %3377 = vmatprep.subr.mxu1 %v7316_v61 }
 0x140   :  { %840 = vmatpush1.msra.mxu0 %v4252_v1  ;;  %3378 = vmatpush3.msra.mxu1 %v4326_v14  ;;  %v7376_v1 = vld [vmem:[#allocation12_spill] sm:$0xff]  ;;  %v7387_v14 = vld [vmem:[#allocation19_spill] sm:$0xff] }
 0x141   :  { %841 = vmatprep.subr.mxu0 %v7375_v62  ;;  %3379 = vmatprep.subr.mxu1 %v7316_v61  ;;  %v7394_v62 = vld [vmem:[#allocation67_spill] sm:$0xff] }
 0x142   :  { %842 = vmatpush1.msra.mxu0 %v4263_v3  ;;  %3380 = vmatpush3.msra.mxu1 %v4338_v16  ;;  %v7377_v3 = vld [vmem:[#allocation22_spill] sm:$0xff] }
 0x143   :  { %843 = vmatprep.subr.mxu0 %v4270_v5  ;;  %3381 = vmatprep.subr.mxu1 %v7316_v61  ;;  %v7378_v5 = vld [vmem:[#allocation13_spill] sm:$0xff]  ;;  %v7389_v16 = vld [vmem:[#allocation30_spill] sm:$0xff] }
 0x144   :  { %844 = vmatpush1.msra.mxu0 %v4277_v6  ;;  %3382 = vmatpush3.msra.mxu1 %v4350_v18  ;;  %v7379_v6 = vld [vmem:[#allocation14_spill] sm:$0xff]  ;;  %v7391_v18 = vld [vmem:[#allocation23_spill] sm:$0xff] }
 0x145   :  { %845 = vmatprep.subr.mxu0 %v4285_v7  ;;  %3383 = vmatprep.subr.mxu1 %v7316_v61  ;;  %v7380_v7 = vld [vmem:[#allocation25_spill] sm:$0xff] }
 0x146   :  { %846 = vmatpush1.msra.mxu0 %v4291_v8  ;;  %3384 = vmatpush3.msra.mxu1 %v4369_v21  ;;  %v7381_v8 = vld [vmem:[#allocation15_spill] sm:$0xff]  ;;  %v501_v21 = vld [vmem:[%s7052_s0 + $0x18] sm:$0xff] }
 0x147   :  { %847 = vmatprep.subr.mxu0 %v4297_v9  ;;  %3385 = vmatprep.subr.mxu1 %v7316_v61  ;;  %v7382_v9 = vld [vmem:[#allocation16_spill] sm:$0xff] }
 0x148   :  { %848 = vmatpush1.msra.mxu0 %v4303_v10  ;;  %3386 = vmatpush3.msra.mxu1 %v4388_v24  ;;  %v7383_v10 = vld [vmem:[#allocation26_spill] sm:$0xff] }
 0x149   :  { %849 = vmatprep.subr.mxu0 %v4309_v11  ;;  %3387 = vmatprep.subr.mxu1 %v7316_v61  ;;  %v7384_v11 = vld [vmem:[#allocation17_spill] sm:$0xff] }
 0x14a   :  { %850 = vmatpush1.msra.mxu0 %v4315_v12  ;;  %3388 = vmatpush3.msra.mxu1 %v4407_v27  ;;  %v7385_v12 = vld [vmem:[#allocation18_spill] sm:$0xff] }
 0x14b   :  { %851 = vmatprep.subr.mxu0 %v4321_v13  ;;  %3389 = vmatprep.subr.mxu1 %v7316_v61  ;;  %v7386_v13 = vld [vmem:[#allocation27_spill] sm:$0xff]  ;;  %v502_v27 = vld [vmem:[%s7052_s0 + $0x20] sm:$0xff] }
 0x14c   :  { %852 = vmatpush1.msra.mxu0 %v4332_v15  ;;  %3390 = vmatpush3.msra.mxu1 %v4426_v30  ;;  %v7388_v15 = vld [vmem:[#allocation20_spill] sm:$0xff] }
 0x14d   :  { %853 = vmatprep.subr.mxu0 %v4344_v17  ;;  %3391 = vmatprep.subr.mxu1 %v7316_v61  ;;  %v7390_v17 = vld [vmem:[#allocation21_spill] sm:$0xff] }
 0x14e   :  { %854 = vmatpush1.msra.mxu0 %v4356_v19  ;;  %3392 = vmatpush3.msra.mxu1 %v4445_v33  ;;  %v7392_v19 = vld [vmem:[#allocation33_spill] sm:$0xff] }
 0x14f   :  { %855 = vmatprep.subr.mxu0 %v4363_v20  ;;  %3393 = vmatprep.subr.mxu1 %v7316_v61  ;;  %v7393_v20 = vld [vmem:[#allocation24_spill] sm:$0xff] }
 0x150   :  { %856 = vmatpush1.msra.mxu0 %v4375_v22  ;;  %3394 = vmatpush3.msra.mxu1 %v4464_v36 }
 0x151   :  { %857 = vmatprep.subr.mxu0 %v4382_v23  ;;  %3395 = vmatprep.subr.mxu1 %v7316_v61 }
 0x152   :  { %858 = vmatpush1.msra.mxu0 %v4394_v25  ;;  %3396 = vmatpush3.msra.mxu1 %v4483_v39 }
 0x153   :  { %859 = vmatprep.subr.mxu0 %v4401_v26  ;;  %3397 = vmatprep.subr.mxu1 %v7316_v61 }
 0x154   :  { %860 = vmatpush1.msra.mxu0 %v7376_v1  ;;  %3398 = vmatpush3.msra.mxu1 %v7377_v3 }
 0x155   :  { %861 = vmatprep.subr.mxu0 %v7378_v5  ;;  %3399 = vmatprep.subr.mxu1 %v7316_v61 }
 0x156   :  { %862 = vmatpush1.msra.mxu0 %v7379_v6  ;;  %3400 = vmatpush3.msra.mxu1 %v7380_v7  ;;  %v503_v7 = vld [vmem:[%s7052_s0 + $0x28] sm:$0xff] }
 0x157   :  { %863 = vmatprep.subr.mxu0 %v7381_v8  ;;  %3401 = vmatprep.subr.mxu1 %v7316_v61 }
 0x158   :  { %864 = vmatpush1.msra.mxu0 %v7382_v9  ;;  %3402 = vmatpush3.msra.mxu1 %v7383_v10 }
 0x159   :  { %865 = vmatprep.subr.mxu0 %v7384_v11  ;;  %3403 = vmatprep.subr.mxu1 %v7316_v61 }
 0x15a   :  { %866 = vmatpush1.msra.mxu0 %v7385_v12  ;;  %3404 = vmatpush3.msra.mxu1 %v7386_v13 }
 0x15b   :  { %867 = vmatprep.subr.mxu0 %v7387_v14  ;;  %3405 = vmatprep.subr.mxu1 %v7316_v61  ;;  %v505_v14 = vld [vmem:[%s7053_s1 + $0x98] sm:$0xff] }
 0x15c   :  { %868 = vmatpush1.msra.mxu0 %v7388_v15  ;;  %3406 = vmatpush3.msra.mxu1 %v7389_v16 }
 0x15d   :  { %869 = vmatprep.subr.mxu0 %v7390_v17  ;;  %3407 = vmatprep.subr.mxu1 %v7316_v61 }
 0x15e   :  { %870 = vmatpush1.msra.mxu0 %v7391_v18  ;;  %903 = vmatprep.mubr.f32.mxu0 %v7316_v61 }
 0x15f   :  { %3408 = vmatpush3.msra.mxu1 %v7392_v19  ;;  %3409 = vmatprep.mubr.msk.f32.mxu1 %vm4204_vm0, %v7316_v61 }
 0x160   :  { %980 = vmatprep.subr.mxu0 %v7393_v20  ;;  %3412 = vmatprep.subr.mxu1 %v7316_v61 }
 0x1dd   :  { %v573_v22 = vpop.f32.mrf.mxu0  ;;  %v644_v23 = vpop.f32.mrf.mxu1 }
 0x1de   :  { %v789_v24 = vadd.f32 %v573_v22, %v501_v21  ;;  %v803_v1 = vadd.f32 %v7394_v62, %v644_v23 }
 0x1df   :  { %v3341_v25 = vpop.f32.mrf.mxu1  ;;  %v575_v30 = vpop.f32.mrf.mxu0 }
 0x1e0   :  { %v2936_v26 = vmul.f32 -1.442695, %v789_v24  ;;  %v796_v33 = vadd.f32 %v575_v30, %v502_v27  ;;  %v7407_v25 = vld [vmem:[#allocation64_spill] sm:$0xff]  ;;  %v7410_v27 = vld [vmem:[#allocation65_spill] sm:$0xff] }
 0x1e1   :  { %v7411_v30 = vld [vmem:[#allocation52_spill] sm:$0xff] }
 0x1e2   :  { %3823 = vpow2.f32 %v2936_v26  ;;  %v2937_v36 = vmul.f32 -1.442695, %v796_v33  ;;  %v7408_v26 = vld [vmem:[#allocation49_spill] sm:$0xff] }
 0x1e3   :  { %v7412_v33 = vld [vmem:[#allocation53_spill] sm:$0xff] }
 0x1e4   :  { %3825 = vpow2.f32 %v2937_v36  ;;  %v7413_v36 = vld [vmem:[#allocation66_spill] sm:$0xff] }
 0x1ef   :  { %v3824_v39 = vpop.eup %3823 }
 0x1f0   :  { %v793_v37 = vadd.f32 1.0, %v3824_v39 }
 0x1f1   :  { %v3826_v57 = vpop.eup %3825 }
 0x1f2   :  { %3827 = vrcp.f32 %v793_v37  ;;  %v800_v13 = vadd.f32 1.0, %v3826_v57  ;;  %v7414_v37 = vld [vmem:[#allocation55_spill] sm:$0xff] }
 0x1fe   :  { %v714_v3 = vpop.f32.mrf.mxu0  ;;  %v785_v5 = vpop.f32.mrf.mxu1 }
 0x1ff   :  { %v3828_v6 = vpop.eup %3827  ;;  %v810_v8 = vadd.f32 %v714_v3, %v504_v52  ;;  %v5256_v3 = vld [vmem:[%s7054_s2 + $0x148] sm:$0xff] }
 0x200   :  { %v804_v9 = vmul.f32 %v3828_v6, %v803_v1  ;;  %v3376_v10 = vpop.f32.mrf.mxu1  ;;  %v716_v15 = vpop.f32.mrf.mxu0  ;;  %v5269_v6 = vld [vmem:[%s7054_s2 + $0x120] sm:$0xff] }
 0x201   :  { %v2938_v11 = vmul.f32 -1.442695, %v810_v8  ;;  %v817_v16 = vadd.f32 %v716_v15, %v505_v14  ;;  %v5281_v8 = vld [vmem:[%s7054_s2 + $0x110] sm:$0xff]  ;;  %v5294_v10 = vld [vmem:[%s7054_s2 + $0x118] sm:$0xff]  ;;  %v5319_v14 = vld [vmem:[%s7054_s2 + $0xe0] sm:$0xff] }
 0x202   :  { %v805_v12 = vadd.f32 %v804_v9, %v503_v7  ;;  %v5275_v7 = vld [vmem:[%s7054_s2 + $0x130] sm:$0xff]  ;;  %v5288_v9 = vld [vmem:[%s7054_s2 + $0x108] sm:$0xff]  ;;  %v5326_v15 = vld [vmem:[%s7054_s2 + $0xd8] sm:$0xff] }
 0x203   :  { %3829 = vpow2.f32 %v2938_v11  ;;  %v2939_v17 = vmul.f32 -1.442695, %v817_v16  ;;  %v5300_v11 = vld [vmem:[%s7054_s2 + $0xf8] sm:$0xff]  ;;  %v5332_v16 = vld [vmem:[%s7054_s2 + $0xe8] sm:$0xff] }
 0x204   :  { %3831 = vtanh.f32 %v805_v12  ;;  %v5307_v12 = vld [vmem:[%s7054_s2 + $0xf0] sm:$0xff] }
 0x205   :  { %3833 = vrcp.f32 %v800_v13  ;;  %v5313_v13 = vld [vmem:[%s7054_s2 + $0x100] sm:$0xff] }
 0x206   :  { %3835 = vpow2.f32 %v2939_v17  ;;  %v5338_v17 = vld [vmem:[%s7054_s2 + $0xc8] sm:$0xff] }
 0x210   :  { %v3830_v18 = vpop.eup %3829 }
 0x211   :  { %v3832_v19 = vpop.eup %3831  ;;  %v814_v20 = vadd.f32 1.0, %v3830_v18  ;;  %v5345_v18 = vld [vmem:[%s7054_s2 + $0xc0] sm:$0xff] }
 0x212   :  { %v807_v21 = vsub.f32 %v4952_v35, %v3832_v19  ;;  %v3834_v22 = vpop.eup %3833 }
 0x213   :  { %3837 = vrcp.f32 %v814_v20  ;;  %v5357_v20 = vld [vmem:[%s7054_s2 + $0xb0] sm:$0xff] }
 0x214   :  { %v808_v23 = vmul.f32 %v3834_v22, %v807_v21  ;;  %7416 = vst [vmem:[#allocation28_spill] sm:$0xff] %v5357_v20  ;;  %v5364_v21 = vld [vmem:[%s7054_s2 + $0xa8] sm:$0xff]  ;;  %v5370_v22 = vld [vmem:[%s7054_s2 + $0xb8] sm:$0xff] }
 0x215   :  { %7417 = vst [vmem:[#allocation45_spill] sm:$0xff] %v5364_v21  ;;  %7418 = vst [vmem:[#allocation31_spill] sm:$0xff] %v5370_v22 }
 0x216   :  { %v5122_v24 = vadd.f32 %v3832_v19, %v808_v23  ;;  %v5351_v19 = vld [vmem:[%s7054_s2 + $0xd0] sm:$0xff]  ;;  %v5376_v23 = vld [vmem:[%s7054_s2 + $0x98] sm:$0xff] }
 0x217   :  { %7415 = vst [vmem:[#allocation42_spill] sm:$0xff] %v5351_v19  ;;  %7419 = vst [vmem:[#allocation48_spill] sm:$0xff] %v5376_v23 }
 0x218   :  { %831 = vst [vmem:[#allocation4 + $0x8] sm:$0xff] %v5122_v24  ;;  %904 = vmatmul.mubr.f32.vlgmr.msra.gmra.mxu0 %v5122_v24  ;;  %3410 = vmatmul.mubr.f32.vlgmr.msra.gmra.mxu1 %v5122_v24 }
 0x219   :  { %981 = vmatpush1.msra.mxu0 %v4522_v45  ;;  %3413 = vmatpush3.msra.mxu1 %v4637_v63  ;;  %v3836_v45 = vpop.eup %3835  ;;  %v7395_v63 = vld [vmem:[#allocation29_spill] sm:$0xff] }
 0x21a   :  { %982 = vmatprep.subr.mxu0 %v4534_v47  ;;  %3414 = vmatprep.subr.mxu1 %v7316_v61  ;;  %v824_v47 = vadd.f32 %v4962_v29, %v785_v5  ;;  %v5262_v5 = vld [vmem:[%s7054_s2 + $0x128] sm:$0xff] }
 0x21b   :  { %983 = vmatpush1.msra.mxu0 %v4542_v48  ;;  %3415 = vmatpush3.msra.mxu1 %v4656_v60  ;;  %v7396_v60 = vld [vmem:[#allocation32_spill] sm:$0xff] }
 0x21c   :  { %984 = vmatprep.subr.mxu0 %v4553_v50  ;;  %3416 = vmatprep.subr.mxu1 %v7316_v61  ;;  %v506_v50 = vld [vmem:[%s7053_s1 + $0xa0] sm:$0xff] }
 0x21d   :  { %985 = vmatpush1.msra.mxu0 %v4560_v51  ;;  %3417 = vmatpush3.msra.mxu1 %v7343_v32  ;;  %v821_v32 = vadd.f32 1.0, %v3836_v45  ;;  %v5383_v45 = vld [vmem:[%s7054_s2 + $0x90] sm:$0xff] }
 0x21e   :  { %986 = vmatprep.subr.mxu0 %v7344_v46  ;;  %3418 = vmatprep.subr.mxu1 %v7316_v61  ;;  %v7397_v46 = vld [vmem:[#allocation37_spill] sm:$0xff]  ;;  %7420 = vst [vmem:[#allocation34_spill] sm:$0xff] %v5383_v45 }
 0x21f   :  { %987 = vmatpush1.msra.mxu0 %v7395_v63  ;;  %3419 = vmatpush3.msra.mxu1 %v7346_v31  ;;  %v7398_v31 = vld [vmem:[#allocation38_spill] sm:$0xff] }
 0x220   :  { %v3838_v48 = vpop.eup %3837  ;;  %988 = vmatprep.subr.mxu0 %v7347_v58  ;;  %3420 = vmatprep.subr.mxu1 %v7316_v61  ;;  %v7399_v58 = vld [vmem:[#allocation57_spill] sm:$0xff]  ;;  %v5395_v63 = vld [vmem:[%s7054_s2 + $0x80] sm:$0xff] }
 0x221   :  { %v825_v51 = vmul.f32 %v3838_v48, %v824_v47  ;;  %989 = vmatpush1.msra.mxu0 %v7396_v60  ;;  %3421 = vmatpush3.msra.mxu1 %v7349_v40  ;;  %v7400_v40 = vld [vmem:[#allocation40_spill] sm:$0xff]  ;;  %v5389_v47 = vld [vmem:[%s7054_s2 + $0xa0] sm:$0xff]  ;;  %7422 = vst [vmem:[#allocation51_spill] sm:$0xff] %v5395_v63  ;;  %v5402_v48 = vld [vmem:[%s7054_s2 + $0x78] sm:$0xff] }
 0x222   :  { %990 = vmatprep.subr.mxu0 %v7350_v44  ;;  %3422 = vmatprep.subr.mxu1 %v7316_v61  ;;  %v7402_v44 = vld [vmem:[#allocation43_spill] sm:$0xff]  ;;  %7421 = vst [vmem:[#allocation35_spill] sm:$0xff] %v5389_v47  ;;  %7423 = vst [vmem:[#allocation36_spill] sm:$0xff] %v5402_v48  ;;  %v5421_v60 = vld [vmem:[%s7054_s2 + $0x60] sm:$0xff] }
 0x223   :  { %v826_v35 = vadd.f32 %v825_v51, %v506_v50  ;;  %991 = vmatpush1.msra.mxu0 %v7351_v38  ;;  %3423 = vmatpush3.msra.mxu1 %v7352_v49  ;;  %v7401_v49 = vld [vmem:[#allocation60_spill] sm:$0xff]  ;;  %v7404_v38 = vld [vmem:[#allocation63_spill] sm:$0xff]  ;;  %7426 = vst [vmem:[#allocation41_spill] sm:$0xff] %v5421_v60 }
 0x224   :  { %992 = vmatprep.subr.mxu0 %v7353_v28  ;;  %3424 = vmatprep.subr.mxu1 %v7316_v61  ;;  %v7405_v28 = vld [vmem:[#allocation46_spill] sm:$0xff]  ;;  %v5408_v50 = vld [vmem:[%s7054_s2 + $0x88] sm:$0xff] }
 0x225   :  { %3839 = vtanh.f32 %v826_v35  ;;  %993 = vmatpush1.msra.mxu0 %v7397_v46  ;;  %3425 = vmatpush3.msra.mxu1 %v7355_v55  ;;  %v7403_v55 = vld [vmem:[#allocation44_spill] sm:$0xff]  ;;  %7424 = vst [vmem:[#allocation54_spill] sm:$0xff] %v5408_v50  ;;  %v5414_v51 = vld [vmem:[%s7054_s2 + $0x68] sm:$0xff] }
 0x226   :  { %994 = vmatprep.subr.mxu0 %v7398_v31  ;;  %3426 = vmatprep.subr.mxu1 %v7316_v61  ;;  %3841 = vrcp.f32 %v821_v32  ;;  %7425 = vst [vmem:[#allocation39_spill] sm:$0xff] %v5414_v51  ;;  %v5427_v35 = vld [vmem:[%s7054_s2 + $0x70] sm:$0xff]  ;;  %v5440_v46 = vld [vmem:[%s7054_s2 + $0x48] sm:$0xff]  ;;  %v5446_v31 = vld [vmem:[%s7054_s2 + $0x58] sm:$0xff] }
 0x227   :  { %995 = vmatpush1.msra.mxu0 %v7357_v34  ;;  %3427 = vmatpush3.msra.mxu1 %v7399_v58  ;;  %v7406_v34 = vld [vmem:[#allocation47_spill] sm:$0xff]  ;;  %7427 = vst [vmem:[#allocation56_spill] sm:$0xff] %v5427_v35  ;;  %v5433_v32 = vld [vmem:[%s7054_s2 + $0x50] sm:$0xff]  ;;  %7429 = vst [vmem:[#allocation59_spill] sm:$0xff] %v5440_v46 }
 0x228   :  { %996 = vmatprep.subr.mxu0 %v7400_v40  ;;  %3428 = vmatprep.subr.mxu1 %v7316_v61  ;;  %7428 = vst [vmem:[#allocation58_spill] sm:$0xff] %v5433_v32  ;;  %7430 = vst [vmem:[#allocation61_spill] sm:$0xff] %v5446_v31  ;;  %v5452_v58 = vld [vmem:[%s7054_s2 + $0x38] sm:$0xff]  ;;  %v5459_v40 = vld [vmem:[%s7054_s2 + $0x30] sm:$0xff] }
 0x229   :  { %997 = vmatpush1.msra.mxu0 %v7359_v41  ;;  %3429 = vmatpush3.msra.mxu1 %v7401_v49  ;;  %v7409_v41 = vld [vmem:[#allocation50_spill] sm:$0xff]  ;;  %7431 = vst [vmem:[#allocation62_spill] sm:$0xff] %v5452_v58  ;;  %7432 = vst [vmem:[#allocation10_spill] sm:$0xff] %v5459_v40 }
 0x22a   :  { %998 = vmatprep.subr.mxu0 %v7402_v44  ;;  %3430 = vmatprep.subr.mxu1 %v7316_v61  ;;  %v5465_v49 = vld [vmem:[%s7054_s2 + $0x40] sm:$0xff] }
 0x22b   :  { %999 = vmatpush1.msra.mxu0 %v7403_v55  ;;  %3431 = vmatpush3.msra.mxu1 %v7404_v38  ;;  %7433 = vst [vmem:[#allocation11_spill] sm:$0xff] %v5465_v49  ;;  %v5471_v44 = vld [vmem:[%s7054_s2 + $0x20] sm:$0xff]  ;;  %v5478_v55 = vld [vmem:[%s7054_s2 + $0x18] sm:$0xff]  ;;  %v5484_v38 = vld [vmem:[%s7054_s2 + $0x28] sm:$0xff] }
 0x22c   :  { %1000 = vmatprep.subr.mxu0 %v7405_v28  ;;  %3432 = vmatprep.subr.mxu1 %v7316_v61  ;;  %7434 = vst [vmem:[#allocation12_spill] sm:$0xff] %v5471_v44  ;;  %7435 = vst [vmem:[#allocation22_spill] sm:$0xff] %v5478_v55  ;;  %v5490_v28 = vld [vmem:[%s7054_s2 + $0x8] sm:$0xff] }
 0x22d   :  { %1001 = vmatpush1.msra.mxu0 %v7406_v34  ;;  %3433 = vmatpush3.msra.mxu1 %v7407_v25  ;;  %7436 = vst [vmem:[#allocation13_spill] sm:$0xff] %v5484_v38  ;;  %7437 = vst [vmem:[#allocation14_spill] sm:$0xff] %v5490_v28  ;;  %v5497_v34 = vld [vmem:[%s7054_s2] sm:$0xff]  ;;  %v5504_v25 = vld [vmem:[%s7054_s2 + $0x10] sm:$0xff] }
 0x22e   :  { %1002 = vmatprep.subr.mxu0 %v7408_v26  ;;  %3434 = vmatprep.subr.mxu1 %v7316_v61  ;;  %7438 = vst [vmem:[#allocation25_spill] sm:$0xff] %v5497_v34  ;;  %7439 = vst [vmem:[#allocation15_spill] sm:$0xff] %v5504_v25  ;;  %v5512_v26 = vld [vmem:[%s7054_s2 + $0x2f0] sm:$0xff] }
 0x22f   :  { %1003 = vmatpush1.msra.mxu0 %v7409_v41  ;;  %3435 = vmatpush3.msra.mxu1 %v7410_v27  ;;  %7440 = vst [vmem:[#allocation16_spill] sm:$0xff] %v5512_v26  ;;  %v833_v41 = vld [vmem:[%s7052_s0 + $0x30] sm:$0xff] }
 0x230   :  { %1004 = vmatprep.subr.mxu0 %v7411_v30  ;;  %3436 = vmatprep.subr.mxu1 %v7316_v61 }
 0x231   :  { %1005 = vmatpush1.msra.mxu0 %v7412_v33  ;;  %3437 = vmatpush3.msra.mxu1 %v7413_v36 }
 0x232   :  { %v3840_v39 = vpop.eup %3839  ;;  %1006 = vmatprep.subr.mxu0 %v7414_v37  ;;  %3438 = vmatprep.subr.mxu1 %v7316_v61  ;;  %v834_v37 = vld [vmem:[%s7052_s0 + $0x38] sm:$0xff] }
 0x233   :  { %1007 = vmatpush1.msra.mxu0 %v7369_v43  ;;  %3439 = vmatpush3.msra.mxu1 %v4844_v56  ;;  %v828_v52 = vsub.f32 %v5026_v54, %v3840_v39  ;;  %v3842_v57 = vpop.eup %3841  ;;  %v5231_v54 = vld [vmem:[%s7054_s2 + $0x150] sm:$0xff]  ;;  %v5250_v43 = vld [vmem:[%s7054_s2 + $0x138] sm:$0xff] }
 0x234   :  { %1008 = vmatprep.subr.mxu0 %v7370_v59  ;;  %3440 = vmatprep.subr.mxu1 %v7316_v61  ;;  %v5237_v59 = vld [vmem:[%s7054_s2 + $0x160] sm:$0xff] }
 0x235   :  { %1009 = vmatpush1.msra.mxu0 %v7371_v53  ;;  %3441 = vmatpush3.msra.mxu1 %v4853_v0  ;;  %v829_v1 = vmul.f32 %v3842_v57, %v828_v52  ;;  %v5205_v0 = vld [vmem:[%s7054_s2 + $0x170] sm:$0xff]  ;;  %v5224_v53 = vld [vmem:[%s7054_s2 + $0x158] sm:$0xff] }
 0x236   :  { %1010 = vmatprep.subr.mxu0 %v7372_v4  ;;  %3442 = vmatprep.subr.mxu1 %v7316_v61  ;;  %v5218_v4 = vld [vmem:[%s7054_s2 + $0x178] sm:$0xff] }
 0x237   :  { %1011 = vmatpush1.msra.mxu0 %v7373_v42  ;;  %1044 = vmatprep.mubr.f32.mxu0 %v7316_v61  ;;  %v5194_v56 = vadd.f32 %v3840_v39, %v829_v1  ;;  %v5243_v42 = vld [vmem:[%s7054_s2 + $0x140] sm:$0xff] }
 0x238   :  { %3443 = vmatpush3.msra.mxu1 %v4862_v2  ;;  %3444 = vmatprep.mubr.msk.f32.mxu1 %vm4204_vm0, %v7316_v61  ;;  %v5212_v2 = vld [vmem:[%s7054_s2 + $0x168] sm:$0xff] }
 0x239   :  { %832 = vst [vmem:[#allocation6 + $0x30] sm:$0xff] %v5194_v56  ;;  %1045 = vmatmul.mubr.f32.vlgmr.msra.gmra.mxu0 %v5194_v56  ;;  %3445 = vmatmul.mubr.f32.vlgmr.msra.gmra.mxu1 %v5194_v56 }
 0x23a   :  { %1171 = vmatprep.subr.mxu0 %v5205_v0  ;;  %3447 = vmatprep.subr.mxu1 %v7316_v61 }
 0x23b   :  { %1172 = vmatpush1.msra.mxu0 %v5212_v2  ;;  %3448 = vmatpush3.msra.mxu1 %v5218_v4 }
 0x23c   :  { %1173 = vmatprep.subr.mxu0 %v5224_v53  ;;  %3449 = vmatprep.subr.mxu1 %v7316_v61 }
 0x23d   :  { %1174 = vmatpush1.msra.mxu0 %v5231_v54  ;;  %3450 = vmatpush3.msra.mxu1 %v5237_v59 }
 0x23e   :  { %1175 = vmatprep.subr.mxu0 %v5243_v42  ;;  %3451 = vmatprep.subr.mxu1 %v7316_v61 }
 0x23f   :  { %1176 = vmatpush1.msra.mxu0 %v5250_v43  ;;  %3452 = vmatpush3.msra.mxu1 %v5256_v3 }
 0x240   :  { %1177 = vmatprep.subr.mxu0 %v5262_v5  ;;  %3453 = vmatprep.subr.mxu1 %v7316_v61 }
 0x241   :  { %1178 = vmatpush1.msra.mxu0 %v5269_v6  ;;  %3454 = vmatpush3.msra.mxu1 %v5275_v7 }
 0x242   :  { %1179 = vmatprep.subr.mxu0 %v5281_v8  ;;  %3455 = vmatprep.subr.mxu1 %v7316_v61 }
 0x243   :  { %1180 = vmatpush1.msra.mxu0 %v5288_v9  ;;  %3456 = vmatpush3.msra.mxu1 %v5294_v10 }
 0x244   :  { %1181 = vmatprep.subr.mxu0 %v5300_v11  ;;  %3457 = vmatprep.subr.mxu1 %v7316_v61 }
 0x245   :  { %1182 = vmatpush1.msra.mxu0 %v5307_v12  ;;  %3458 = vmatpush3.msra.mxu1 %v5313_v13 }
 0x246   :  { %1183 = vmatprep.subr.mxu0 %v5319_v14  ;;  %3459 = vmatprep.subr.mxu1 %v7316_v61 }
 0x247   :  { %1184 = vmatpush1.msra.mxu0 %v5326_v15  ;;  %3460 = vmatpush3.msra.mxu1 %v5332_v16 }
 0x248   :  { %1185 = vmatprep.subr.mxu0 %v5338_v17  ;;  %3461 = vmatprep.subr.mxu1 %v7316_v61 }
 0x249   :  { %1186 = vmatpush1.msra.mxu0 %v5345_v18  ;;  %3462 = vmatpush3.msra.mxu1 %v5351_v19 }
 0x24a   :  { %1187 = vmatprep.subr.mxu0 %v5357_v20  ;;  %3463 = vmatprep.subr.mxu1 %v7316_v61 }
 0x24b   :  { %1188 = vmatpush1.msra.mxu0 %v5364_v21  ;;  %3464 = vmatpush3.msra.mxu1 %v5370_v22 }
 0x24c   :  { %1189 = vmatprep.subr.mxu0 %v5376_v23  ;;  %3465 = vmatprep.subr.mxu1 %v7316_v61 }
 0x24d   :  { %1190 = vmatpush1.msra.mxu0 %v5383_v45  ;;  %3466 = vmatpush3.msra.mxu1 %v5389_v47 }
 0x24e   :  { %1191 = vmatprep.subr.mxu0 %v5395_v63  ;;  %3467 = vmatprep.subr.mxu1 %v7316_v61 }
 0x24f   :  { %1192 = vmatpush1.msra.mxu0 %v5402_v48  ;;  %3468 = vmatpush3.msra.mxu1 %v5408_v50 }
 0x250   :  { %1193 = vmatprep.subr.mxu0 %v5414_v51  ;;  %3469 = vmatprep.subr.mxu1 %v7316_v61 }
 0x251   :  { %1194 = vmatpush1.msra.mxu0 %v5421_v60  ;;  %3470 = vmatpush3.msra.mxu1 %v5427_v35 }
 0x252   :  { %1195 = vmatprep.subr.mxu0 %v5433_v32  ;;  %3471 = vmatprep.subr.mxu1 %v7316_v61 }
 0x253   :  { %1196 = vmatpush1.msra.mxu0 %v5440_v46  ;;  %3472 = vmatpush3.msra.mxu1 %v5446_v31 }
 0x254   :  { %1197 = vmatprep.subr.mxu0 %v5452_v58  ;;  %3473 = vmatprep.subr.mxu1 %v7316_v61 }
 0x255   :  { %1198 = vmatpush1.msra.mxu0 %v5459_v40  ;;  %3474 = vmatpush3.msra.mxu1 %v5465_v49 }
 0x256   :  { %1199 = vmatprep.subr.mxu0 %v5471_v44  ;;  %3475 = vmatprep.subr.mxu1 %v7316_v61 }
 0x257   :  { %1200 = vmatpush1.msra.mxu0 %v5478_v55  ;;  %3476 = vmatpush3.msra.mxu1 %v5484_v38 }
 0x258   :  { %1201 = vmatprep.subr.mxu0 %v5490_v28  ;;  %3477 = vmatprep.subr.mxu1 %v7316_v61 }
 0x259   :  { %1202 = vmatpush1.msra.mxu0 %v5497_v34  ;;  %1235 = vmatprep.mubr.f32.mxu0 %v7316_v61  ;;  %v836_v34 = vld [vmem:[%s7053_s1 + $0x78] sm:$0xff] }
 0x25a   :  { %3478 = vmatpush3.msra.mxu1 %v5504_v25  ;;  %3479 = vmatprep.mubr.msk.f32.mxu1 %vm4204_vm0, %v7316_v61 }
 0x25b   :  { %1312 = vmatprep.subr.mxu0 %v5512_v26  ;;  %3482 = vmatprep.subr.mxu1 %v7316_v61 }
 0x2d8   :  { %v905_v27 = vpop.f32.mrf.mxu0  ;;  %v976_v30 = vpop.f32.mrf.mxu1 }
 0x2d9   :  { %v1121_v33 = vadd.f32 %v905_v27, %v833_v41  ;;  %v1135_v41 = vadd.f32 %v7394_v62, %v976_v30  ;;  %v837_v62 = vld [vmem:[%s7053_s1 + $0x80] sm:$0xff] }
 0x2da   :  { %v3411_v36 = vpop.f32.mrf.mxu1  ;;  %v907_v52 = vpop.f32.mrf.mxu0 }
 0x2db   :  { %v2940_v39 = vmul.f32 -1.442695, %v1121_v33  ;;  %v1128_v57 = vadd.f32 %v907_v52, %v834_v37 }
 0x2dd   :  { %3843 = vpow2.f32 %v2940_v39  ;;  %v2941_v1 = vmul.f32 -1.442695, %v1128_v57  ;;  %v835_v39 = vld [vmem:[%s7052_s0 + $0x40] sm:$0xff] }
 0x2df   :  { %3845 = vpow2.f32 %v2941_v1 }
 0x2ea   :  { %v3844_v26 = vpop.eup %3843 }
 0x2eb   :  { %v1125_v25 = vadd.f32 1.0, %v3844_v26 }
 0x2ec   :  { %v3846_v28 = vpop.eup %3845 }
 0x2ed   :  { %3847 = vrcp.f32 %v1125_v25  ;;  %v1132_v25 = vadd.f32 1.0, %v3846_v28 }
 0x2f9   :  { %v1046_v27 = vpop.f32.mrf.mxu0  ;;  %v1117_v33 = vpop.f32.mrf.mxu1 }
 0x2fa   :  { %v3848_v36 = vpop.eup %3847  ;;  %v1142_v37 = vadd.f32 %v1046_v27, %v836_v34 }
 0x2fb   :  { %v1136_v52 = vmul.f32 %v3848_v36, %v1135_v41  ;;  %v3446_v57 = vpop.f32.mrf.mxu1  ;;  %v1048_v30 = vpop.f32.mrf.mxu0  ;;  %v5579_v36 = vld [vmem:[%s7054_s2 + $0x2b8] sm:$0xff] }
 0x2fc   :  { %v2942_v26 = vmul.f32 -1.442695, %v1142_v37  ;;  %v1149_v38 = vadd.f32 %v1048_v30, %v837_v62  ;;  %v5591_v37 = vld [vmem:[%s7054_s2 + $0x2a8] sm:$0xff]  ;;  %v1156_v57 = vadd.f32 %v4962_v29, %v1117_v33  ;;  %v5614_v29 = vld [vmem:[%s7054_s2 + $0x290] sm:$0xff] }
 0x2fd   :  { %v1137_v1 = vadd.f32 %v1136_v52, %v835_v39  ;;  %v5585_v39 = vld [vmem:[%s7054_s2 + $0x2c8] sm:$0xff] }
 0x2fe   :  { %3849 = vpow2.f32 %v2942_v26  ;;  %v2943_v55 = vmul.f32 -1.442695, %v1149_v38  ;;  %v5541_v38 = vld [vmem:[%s7054_s2 + $0x2e8] sm:$0xff]  ;;  %v5599_v26 = vld [vmem:[%s7054_s2 + $0x2a0] sm:$0xff] }
 0x2ff   :  { %3851 = vtanh.f32 %v1137_v1  ;;  %v5605_v1 = vld [vmem:[%s7054_s2 + $0x2b0] sm:$0xff]  ;;  %v838_v62 = vld [vmem:[%s7053_s1 + $0x88] sm:$0xff] }
 0x300   :  { %3853 = vrcp.f32 %v1132_v25  ;;  %v5621_v30 = vld [vmem:[%s7054_s2 + $0x288] sm:$0xff] }
 0x301   :  { %3855 = vpow2.f32 %v2943_v55  ;;  %v5572_v55 = vld [vmem:[%s7054_s2 + $0x2c0] sm:$0xff] }
 0x30b   :  { %v3850_v44 = vpop.eup %3849 }
 0x30c   :  { %v3852_v49 = vpop.eup %3851  ;;  %v1146_v40 = vadd.f32 1.0, %v3850_v44  ;;  %v5566_v44 = vld [vmem:[%s7054_s2 + $0x2e0] sm:$0xff] }
 0x30d   :  { %v1139_v34 = vsub.f32 %v5122_v24, %v3852_v49  ;;  %v3854_v41 = vpop.eup %3853  ;;  %v5547_v24 = vld [vmem:[%s7054_s2 + $0x2f8] sm:$0xff] }
 0x30e   :  { %3857 = vrcp.f32 %v1146_v40  ;;  %v5553_v40 = vld [vmem:[%s7054_s2 + $0x2d8] sm:$0xff]  ;;  %v3856_v52 = vpop.eup %3855 }
 0x30f   :  { %v1140_v27 = vmul.f32 %v3854_v41, %v1139_v34  ;;  %v5627_v34 = vld [vmem:[%s7054_s2 + $0x298] sm:$0xff] }
 0x310   :  { %7441 = vst [vmem:[#allocation26_spill] sm:$0xff] %v5627_v34  ;;  %v5633_v41 = vld [vmem:[%s7054_s2 + $0x278] sm:$0xff] }
 0x311   :  { %v5533_v28 = vadd.f32 %v3852_v49, %v1140_v27  ;;  %v5560_v49 = vld [vmem:[%s7054_s2 + $0x2d0] sm:$0xff]  ;;  %7442 = vst [vmem:[#allocation17_spill] sm:$0xff] %v5633_v41 }
 0x313   :  { %1163 = vst [vmem:[#allocation4 + $0x10] sm:$0xff] %v5533_v28  ;;  %1236 = vmatmul.mubr.f32.vlgmr.msra.gmra.mxu0 %v5533_v28  ;;  %3480 = vmatmul.mubr.f32.vlgmr.msra.gmra.mxu1 %v5533_v28 }
 0x314   :  { %1313 = vmatpush1.msra.mxu0 %v5541_v38  ;;  %3483 = vmatpush3.msra.mxu1 %v5547_v24 }
 0x315   :  { %1314 = vmatprep.subr.mxu0 %v5553_v40  ;;  %3484 = vmatprep.subr.mxu1 %v7316_v61 }
 0x316   :  { %1315 = vmatpush1.msra.mxu0 %v5560_v49  ;;  %3485 = vmatpush3.msra.mxu1 %v5566_v44 }
 0x317   :  { %1316 = vmatprep.subr.mxu0 %v5572_v55  ;;  %3486 = vmatprep.subr.mxu1 %v7316_v61 }
 0x318   :  { %1317 = vmatpush1.msra.mxu0 %v5579_v36  ;;  %3487 = vmatpush3.msra.mxu1 %v5585_v39 }
 0x319   :  { %1318 = vmatprep.subr.mxu0 %v5591_v37  ;;  %3488 = vmatprep.subr.mxu1 %v7316_v61 }
 0x31a   :  { %1319 = vmatpush1.msra.mxu0 %v5599_v26  ;;  %3489 = vmatpush3.msra.mxu1 %v5605_v1 }
 0x31b   :  { %v3858_v25 = vpop.eup %3857  ;;  %1320 = vmatprep.subr.mxu0 %v5614_v29  ;;  %3490 = vmatprep.subr.mxu1 %v7316_v61 }
 0x31c   :  { %v1157_v33 = vmul.f32 %v3858_v25, %v1156_v57  ;;  %1321 = vmatpush1.msra.mxu0 %v5621_v30  ;;  %3491 = vmatpush3.msra.mxu1 %v5627_v34  ;;  %v1153_v57 = vadd.f32 1.0, %v3856_v52  ;;  %v5640_v25 = vld [vmem:[%s7054_s2 + $0x270] sm:$0xff]  ;;  %v5646_v34 = vld [vmem:[%s7054_s2 + $0x280] sm:$0xff]  ;;  %v5659_v52 = vld [vmem:[%s7054_s2 + $0x258] sm:$0xff] }
 0x31d   :  { %1322 = vmatprep.subr.mxu0 %v5633_v41  ;;  %3492 = vmatprep.subr.mxu1 %v7316_v61  ;;  %v5652_v41 = vld [vmem:[%s7054_s2 + $0x260] sm:$0xff]  ;;  %7444 = vst [vmem:[#allocation27_spill] sm:$0xff] %v5659_v52 }
 0x31e   :  { %v1158_v27 = vadd.f32 %v1157_v33, %v838_v62  ;;  %1323 = vmatpush1.msra.mxu0 %v5640_v25  ;;  %3493 = vmatpush3.msra.mxu1 %v5646_v34  ;;  %7443 = vst [vmem:[#allocation18_spill] sm:$0xff] %v5652_v41  ;;  %v5665_v62 = vld [vmem:[%s7054_s2 + $0x268] sm:$0xff] }
 0x31f   :  { %1324 = vmatprep.subr.mxu0 %v5652_v41  ;;  %3494 = vmatprep.subr.mxu1 %v7316_v61  ;;  %7445 = vst [vmem:[#allocation19_spill] sm:$0xff] %v5665_v62  ;;  %v5671_v33 = vld [vmem:[%s7054_s2 + $0x248] sm:$0xff] }
 0x320   :  { %3859 = vtanh.f32 %v1158_v27  ;;  %1325 = vmatpush1.msra.mxu0 %v5659_v52  ;;  %3495 = vmatpush3.msra.mxu1 %v5665_v62  ;;  %7446 = vst [vmem:[#allocation20_spill] sm:$0xff] %v5671_v33  ;;  %v5678_v27 = vld [vmem:[%s7054_s2 + $0x240] sm:$0xff]  ;;  %v5684_v62 = vld [vmem:[%s7054_s2 + $0x250] sm:$0xff] }
 0x321   :  { %1326 = vmatprep.subr.mxu0 %v5671_v33  ;;  %3496 = vmatprep.subr.mxu1 %v7316_v61  ;;  %3861 = vrcp.f32 %v1153_v57  ;;  %7447 = vst [vmem:[#allocation30_spill] sm:$0xff] %v5678_v27  ;;  %7448 = vst [vmem:[#allocation21_spill] sm:$0xff] %v5684_v62  ;;  %v5690_v33 = vld [vmem:[%s7054_s2 + $0x230] sm:$0xff]  ;;  %v5697_v57 = vld [vmem:[%s7054_s2 + $0x228] sm:$0xff] }
 0x322   :  { %1327 = vmatpush1.msra.mxu0 %v5678_v27  ;;  %3497 = vmatpush3.msra.mxu1 %v5684_v62  ;;  %7449 = vst [vmem:[#allocation23_spill] sm:$0xff] %v5690_v33  ;;  %7450 = vst [vmem:[#allocation33_spill] sm:$0xff] %v5697_v57  ;;  %v5703_v62 = vld [vmem:[%s7054_s2 + $0x238] sm:$0xff] }
 0x323   :  { %1328 = vmatprep.subr.mxu0 %v5690_v33  ;;  %3498 = vmatprep.subr.mxu1 %v7316_v61  ;;  %7451 = vst [vmem:[#allocation24_spill] sm:$0xff] %v5703_v62  ;;  %v5709_v33 = vld [vmem:[%s7054_s2 + $0x218] sm:$0xff] }
 0x324   :  { %1329 = vmatpush1.msra.mxu0 %v5697_v57  ;;  %3499 = vmatpush3.msra.mxu1 %v5703_v62  ;;  %7452 = vst [vmem:[#allocation67_spill] sm:$0xff] %v5709_v33  ;;  %v5716_v57 = vld [vmem:[%s7054_s2 + $0x210] sm:$0xff]  ;;  %v5722_v62 = vld [vmem:[%s7054_s2 + $0x220] sm:$0xff] }
 0x325   :  { %1330 = vmatprep.subr.mxu0 %v5709_v33  ;;  %3500 = vmatprep.subr.mxu1 %v7316_v61  ;;  %7453 = vst [vmem:[#allocation29_spill] sm:$0xff] %v5716_v57  ;;  %7454 = vst [vmem:[#allocation32_spill] sm:$0xff] %v5722_v62  ;;  %v5728_v33 = vld [vmem:[%s7054_s2 + $0x200] sm:$0xff] }
 0x326   :  { %1331 = vmatpush1.msra.mxu0 %v5716_v57  ;;  %3501 = vmatpush3.msra.mxu1 %v5722_v62  ;;  %7455 = vst [vmem:[#allocation37_spill] sm:$0xff] %v5728_v33  ;;  %v5735_v57 = vld [vmem:[%s7054_s2 + $0x1f8] sm:$0xff]  ;;  %v5741_v62 = vld [vmem:[%s7054_s2 + $0x208] sm:$0xff] }
 0x327   :  { %1332 = vmatprep.subr.mxu0 %v5728_v33  ;;  %3502 = vmatprep.subr.mxu1 %v7316_v61  ;;  %7456 = vst [vmem:[#allocation38_spill] sm:$0xff] %v5735_v57  ;;  %7457 = vst [vmem:[#allocation57_spill] sm:$0xff] %v5741_v62  ;;  %v5747_v33 = vld [vmem:[%s7054_s2 + $0x1e8] sm:$0xff] }
 0x328   :  { %1333 = vmatpush1.msra.mxu0 %v5735_v57  ;;  %3503 = vmatpush3.msra.mxu1 %v5741_v62  ;;  %7458 = vst [vmem:[#allocation40_spill] sm:$0xff] %v5747_v33  ;;  %v5754_v57 = vld [vmem:[%s7054_s2 + $0x1e0] sm:$0xff]  ;;  %v5760_v62 = vld [vmem:[%s7054_s2 + $0x1f0] sm:$0xff] }
 0x329   :  { %1334 = vmatprep.subr.mxu0 %v5747_v33  ;;  %3504 = vmatprep.subr.mxu1 %v7316_v61  ;;  %7459 = vst [vmem:[#allocation60_spill] sm:$0xff] %v5754_v57  ;;  %7460 = vst [vmem:[#allocation43_spill] sm:$0xff] %v5760_v62  ;;  %v5766_v33 = vld [vmem:[%s7054_s2 + $0x1d0] sm:$0xff] }
 0x32a   :  { %1335 = vmatpush1.msra.mxu0 %v5754_v57  ;;  %3505 = vmatpush3.msra.mxu1 %v5760_v62  ;;  %7461 = vst [vmem:[#allocation44_spill] sm:$0xff] %v5766_v33  ;;  %v5773_v57 = vld [vmem:[%s7054_s2 + $0x1c8] sm:$0xff]  ;;  %v5779_v62 = vld [vmem:[%s7054_s2 + $0x1d8] sm:$0xff] }
 0x32b   :  { %1336 = vmatprep.subr.mxu0 %v5766_v33  ;;  %3506 = vmatprep.subr.mxu1 %v7316_v61  ;;  %7462 = vst [vmem:[#allocation63_spill] sm:$0xff] %v5773_v57  ;;  %7463 = vst [vmem:[#allocation46_spill] sm:$0xff] %v5779_v62  ;;  %v5785_v33 = vld [vmem:[%s7054_s2 + $0x1b8] sm:$0xff] }
 0x32c   :  { %1337 = vmatpush1.msra.mxu0 %v5773_v57  ;;  %3507 = vmatpush3.msra.mxu1 %v5779_v62  ;;  %7464 = vst [vmem:[#allocation47_spill] sm:$0xff] %v5785_v33  ;;  %v5792_v57 = vld [vmem:[%s7054_s2 + $0x1b0] sm:$0xff]  ;;  %v5798_v62 = vld [vmem:[%s7054_s2 + $0x1c0] sm:$0xff] }
 0x32d   :  { %v3860_v27 = vpop.eup %3859  ;;  %1338 = vmatprep.subr.mxu0 %v5785_v33  ;;  %3508 = vmatprep.subr.mxu1 %v7316_v61  ;;  %7465 = vst [vmem:[#allocation64_spill] sm:$0xff] %v5792_v57  ;;  %7466 = vst [vmem:[#allocation49_spill] sm:$0xff] %v5798_v62  ;;  %v5805_v33 = vld [vmem:[%s7054_s2 + $0x1a0] sm:$0xff] }
 0x32e   :  { %1339 = vmatpush1.msra.mxu0 %v5792_v57  ;;  %3509 = vmatpush3.msra.mxu1 %v5798_v62  ;;  %v1160_v52 = vsub.f32 %v5194_v56, %v3860_v27  ;;  %v3862_v41 = vpop.eup %3861  ;;  %7467 = vst [vmem:[#allocation50_spill] sm:$0xff] %v5805_v33  ;;  %v5812_v57 = vld [vmem:[%s7054_s2 + $0x198] sm:$0xff]  ;;  %v5818_v56 = vld [vmem:[%s7054_s2 + $0x1a8] sm:$0xff] }
 0x32f   :  { %1340 = vmatprep.subr.mxu0 %v5805_v33  ;;  %3510 = vmatprep.subr.mxu1 %v7316_v61  ;;  %7468 = vst [vmem:[#allocation65_spill] sm:$0xff] %v5812_v57  ;;  %7469 = vst [vmem:[#allocation52_spill] sm:$0xff] %v5818_v56  ;;  %v5824_v33 = vld [vmem:[%s7054_s2 + $0x188] sm:$0xff] }
 0x330   :  { %1341 = vmatpush1.msra.mxu0 %v5812_v57  ;;  %3511 = vmatpush3.msra.mxu1 %v5818_v56  ;;  %v1161_v62 = vmul.f32 %v3862_v41, %v1160_v52  ;;  %v5831_v57 = vld [vmem:[%s7054_s2 + $0x180] sm:$0xff]  ;;  %v5840_v41 = vld [vmem:[%s7054_s2 + $0x190] sm:$0xff] }
 0x331   :  { %1342 = vmatprep.subr.mxu0 %v5824_v33  ;;  %3512 = vmatprep.subr.mxu1 %v7316_v61  ;;  %v7470_v52 = vld [vmem:[#allocation10_spill] sm:$0xff] }
 0x332   :  { %1343 = vmatpush1.msra.mxu0 %v5831_v57  ;;  %1376 = vmatprep.mubr.f32.mxu0 %v7316_v61  ;;  %v5835_v56 = vadd.f32 %v3860_v27, %v1161_v62  ;;  %v7471_v62 = vld [vmem:[#allocation11_spill] sm:$0xff]  ;;  %v7472_v27 = vld [vmem:[#allocation12_spill] sm:$0xff] }
 0x333   :  { %3513 = vmatpush3.msra.mxu1 %v5840_v41  ;;  %3514 = vmatprep.mubr.msk.f32.mxu1 %vm4204_vm0, %v7316_v61 }
 0x334   :  { %1164 = vst [vmem:[#allocation6 + $0x28] sm:$0xff] %v5835_v56  ;;  %1377 = vmatmul.mubr.f32.vlgmr.msra.gmra.mxu0 %v5835_v56  ;;  %3515 = vmatmul.mubr.f32.vlgmr.msra.gmra.mxu1 %v5835_v56 }
 0x335   :  { %1503 = vmatprep.subr.mxu0 %v5205_v0  ;;  %3517 = vmatprep.subr.mxu1 %v7316_v61 }
 0x336   :  { %1504 = vmatpush1.msra.mxu0 %v5212_v2  ;;  %3518 = vmatpush3.msra.mxu1 %v5218_v4 }
 0x337   :  { %1505 = vmatprep.subr.mxu0 %v5224_v53  ;;  %3519 = vmatprep.subr.mxu1 %v7316_v61 }
 0x338   :  { %1506 = vmatpush1.msra.mxu0 %v5231_v54  ;;  %3520 = vmatpush3.msra.mxu1 %v5237_v59 }
 0x339   :  { %1507 = vmatprep.subr.mxu0 %v5243_v42  ;;  %3521 = vmatprep.subr.mxu1 %v7316_v61 }
 0x33a   :  { %1508 = vmatpush1.msra.mxu0 %v5250_v43  ;;  %3522 = vmatpush3.msra.mxu1 %v5256_v3 }
 0x33b   :  { %1509 = vmatprep.subr.mxu0 %v5262_v5  ;;  %3523 = vmatprep.subr.mxu1 %v7316_v61 }
 0x33c   :  { %1510 = vmatpush1.msra.mxu0 %v5269_v6  ;;  %3524 = vmatpush3.msra.mxu1 %v5275_v7 }
 0x33d   :  { %1511 = vmatprep.subr.mxu0 %v5281_v8  ;;  %3525 = vmatprep.subr.mxu1 %v7316_v61 }
 0x33e   :  { %1512 = vmatpush1.msra.mxu0 %v5288_v9  ;;  %3526 = vmatpush3.msra.mxu1 %v5294_v10 }
 0x33f   :  { %1513 = vmatprep.subr.mxu0 %v5300_v11  ;;  %3527 = vmatprep.subr.mxu1 %v7316_v61 }
 0x340   :  { %1514 = vmatpush1.msra.mxu0 %v5307_v12  ;;  %3528 = vmatpush3.msra.mxu1 %v5313_v13 }
 0x341   :  { %1515 = vmatprep.subr.mxu0 %v5319_v14  ;;  %3529 = vmatprep.subr.mxu1 %v7316_v61 }
 0x342   :  { %1516 = vmatpush1.msra.mxu0 %v5326_v15  ;;  %3530 = vmatpush3.msra.mxu1 %v5332_v16 }
 0x343   :  { %1517 = vmatprep.subr.mxu0 %v5338_v17  ;;  %3531 = vmatprep.subr.mxu1 %v7316_v61 }
 0x344   :  { %1518 = vmatpush1.msra.mxu0 %v5345_v18  ;;  %3532 = vmatpush3.msra.mxu1 %v5351_v19 }
 0x345   :  { %1519 = vmatprep.subr.mxu0 %v5357_v20  ;;  %3533 = vmatprep.subr.mxu1 %v7316_v61 }
 0x346   :  { %1520 = vmatpush1.msra.mxu0 %v5364_v21  ;;  %3534 = vmatpush3.msra.mxu1 %v5370_v22 }
 0x347   :  { %1521 = vmatprep.subr.mxu0 %v5376_v23  ;;  %3535 = vmatprep.subr.mxu1 %v7316_v61 }
 0x348   :  { %1522 = vmatpush1.msra.mxu0 %v5383_v45  ;;  %3536 = vmatpush3.msra.mxu1 %v5389_v47 }
 0x349   :  { %1523 = vmatprep.subr.mxu0 %v5395_v63  ;;  %3537 = vmatprep.subr.mxu1 %v7316_v61  ;;  %v1168_v63 = vld [vmem:[%s7053_s1 + $0x60] sm:$0xff] }
 0x34a   :  { %1524 = vmatpush1.msra.mxu0 %v5402_v48  ;;  %3538 = vmatpush3.msra.mxu1 %v5408_v50 }
 0x34b   :  { %1525 = vmatprep.subr.mxu0 %v5414_v51  ;;  %3539 = vmatprep.subr.mxu1 %v7316_v61 }
 0x34c   :  { %1526 = vmatpush1.msra.mxu0 %v5421_v60  ;;  %3540 = vmatpush3.msra.mxu1 %v5427_v35  ;;  %v7473_v35 = vld [vmem:[#allocation22_spill] sm:$0xff] }
 0x34d   :  { %1527 = vmatprep.subr.mxu0 %v5433_v32  ;;  %3541 = vmatprep.subr.mxu1 %v7316_v61  ;;  %v7474_v32 = vld [vmem:[#allocation13_spill] sm:$0xff]  ;;  %v7475_v60 = vld [vmem:[#allocation14_spill] sm:$0xff] }
 0x34e   :  { %1528 = vmatpush1.msra.mxu0 %v5440_v46  ;;  %3542 = vmatpush3.msra.mxu1 %v5446_v31  ;;  %v7476_v31 = vld [vmem:[#allocation25_spill] sm:$0xff] }
 0x34f   :  { %1529 = vmatprep.subr.mxu0 %v5452_v58  ;;  %3543 = vmatprep.subr.mxu1 %v7316_v61  ;;  %v7477_v58 = vld [vmem:[#allocation15_spill] sm:$0xff] }
 0x350   :  { %1530 = vmatpush1.msra.mxu0 %v7470_v52  ;;  %3544 = vmatpush3.msra.mxu1 %v7471_v62 }
 0x351   :  { %1531 = vmatprep.subr.mxu0 %v7472_v27  ;;  %3545 = vmatprep.subr.mxu1 %v7316_v61  ;;  %v7478_v27 = vld [vmem:[#allocation16_spill] sm:$0xff] }
 0x352   :  { %1532 = vmatpush1.msra.mxu0 %v7473_v35  ;;  %3546 = vmatpush3.msra.mxu1 %v7474_v32  ;;  %v1165_v32 = vld [vmem:[%s7052_s0 + $0x48] sm:$0xff] }
 0x353   :  { %1533 = vmatprep.subr.mxu0 %v7475_v60  ;;  %3547 = vmatprep.subr.mxu1 %v7316_v61 }
 0x354   :  { %1534 = vmatpush1.msra.mxu0 %v7476_v31  ;;  %1567 = vmatprep.mubr.f32.mxu0 %v7316_v61 }
 0x355   :  { %3548 = vmatpush3.msra.mxu1 %v7477_v58  ;;  %3549 = vmatprep.mubr.msk.f32.mxu1 %vm4204_vm0, %v7316_v61  ;;  %v1166_v58 = vld [vmem:[%s7052_s0 + $0x50] sm:$0xff] }
 0x356   :  { %1644 = vmatprep.subr.mxu0 %v7478_v27  ;;  %3552 = vmatprep.subr.mxu1 %v7316_v61 }
 0x3d3   :  { %v1237_v60 = vpop.f32.mrf.mxu0  ;;  %v1308_v35 = vpop.f32.mrf.mxu1 }
 0x3d4   :  { %v1453_v62 = vadd.f32 %v1237_v60, %v1165_v32  ;;  %v5929_v60 = vld [vmem:[%s7055_s3] ss:$0 sm:$0xff] }
 0x3d5   :  { %v3481_v52 = vpop.f32.mrf.mxu1  ;;  %v1239_v46 = vpop.f32.mrf.mxu0  ;;  %7479 = vst [vmem:[#allocation53_spill] sm:$0xff] %v5929_v60  ;;  %v1467_v32 = vadd.f32 %v5929_v60, %v1308_v35  ;;  %v1169_v35 = vld [vmem:[%s7053_s1 + $0x68] sm:$0xff] }
 0x3d6   :  { %v2944_v31 = vmul.f32 -1.442695, %v1453_v62  ;;  %v1460_v51 = vadd.f32 %v1239_v46, %v1166_v58 }
 0x3d8   :  { %3863 = vpow2.f32 %v2944_v31  ;;  %v2945_v50 = vmul.f32 -1.442695, %v1460_v51 }
 0x3da   :  { %3865 = vpow2.f32 %v2945_v50  ;;  %v1167_v50 = vld [vmem:[%s7052_s0 + $0x58] sm:$0xff] }
 0x3e5   :  { %v3864_v27 = vpop.eup %3863 }
 0x3e6   :  { %v1457_v48 = vadd.f32 1.0, %v3864_v27 }
 0x3e7   :  { %v3866_v47 = vpop.eup %3865 }
 0x3e8   :  { %3867 = vrcp.f32 %v1457_v48  ;;  %v1464_v45 = vadd.f32 1.0, %v3866_v47 }
 0x3f4   :  { %v1378_v31 = vpop.f32.mrf.mxu0  ;;  %v1449_v52 = vpop.f32.mrf.mxu1 }
 0x3f5   :  { %v3868_v46 = vpop.eup %3867  ;;  %v1474_v48 = vadd.f32 %v1378_v31, %v1168_v63 }
 0x3f6   :  { %v1468_v51 = vmul.f32 %v3868_v46, %v1467_v32  ;;  %v3516_v58 = vpop.f32.mrf.mxu1  ;;  %v1380_v60 = vpop.f32.mrf.mxu0 }
 0x3f7   :  { %v2946_v62 = vmul.f32 -1.442695, %v1474_v48  ;;  %v1481_v23 = vadd.f32 %v1380_v60, %v1169_v35  ;;  %v7481_v60 = vld [vmem:[#allocation17_spill] sm:$0xff]  ;;  %v7483_v48 = vld [vmem:[#allocation27_spill] sm:$0xff]  ;;  %v7485_v58 = vld [vmem:[#allocation20_spill] sm:$0xff] }
 0x3f8   :  { %v1469_v27 = vadd.f32 %v1468_v51, %v1167_v50  ;;  %v7482_v50 = vld [vmem:[#allocation18_spill] sm:$0xff]  ;;  %v7484_v51 = vld [vmem:[#allocation19_spill] sm:$0xff] }
 0x3f9   :  { %3869 = vpow2.f32 %v2946_v62  ;;  %v2947_v22 = vmul.f32 -1.442695, %v1481_v23  ;;  %v1170_v23 = vld [vmem:[%s7053_s1 + $0x70] sm:$0xff]  ;;  %v7486_v62 = vld [vmem:[#allocation30_spill] sm:$0xff]  ;;  %v7488_v35 = vld [vmem:[#allocation23_spill] sm:$0xff] }
 0x3fa   :  { %3871 = vtanh.f32 %v1469_v27  ;;  %v7487_v27 = vld [vmem:[#allocation21_spill] sm:$0xff] }
 0x3fb   :  { %3873 = vrcp.f32 %v1464_v45 }
 0x3fc   :  { %3875 = vpow2.f32 %v2947_v22 }
 0x406   :  { %v3870_v21 = vpop.eup %3869 }
 0x407   :  { %v3872_v20 = vpop.eup %3871  ;;  %v1478_v19 = vadd.f32 1.0, %v3870_v21 }
 0x408   :  { %v1471_v63 = vsub.f32 %v5533_v28, %v3872_v20  ;;  %v3874_v32 = vpop.eup %3873  ;;  %v7480_v28 = vld [vmem:[#allocation26_spill] sm:$0xff] }
 0x409   :  { %3877 = vrcp.f32 %v1478_v19  ;;  %v3876_v19 = vpop.eup %3875 }
 0x40a   :  { %v1472_v31 = vmul.f32 %v3874_v32, %v1471_v63  ;;  %v1485_v46 = vadd.f32 1.0, %v3876_v19  ;;  %v7489_v63 = vld [vmem:[#allocation33_spill] sm:$0xff]  ;;  %v7490_v32 = vld [vmem:[#allocation24_spill] sm:$0xff] }
 0x40b   :  { %v7492_v19 = vld [vmem:[#allocation29_spill] sm:$0xff] }
 0x40c   :  { %v5939_v47 = vadd.f32 %v3872_v20, %v1472_v31  ;;  %v5959_v20 = vld [vmem:[%s7055_s3 + $0x1] ss:$0 sm:$0xff]  ;;  %v7491_v31 = vld [vmem:[#allocation67_spill] sm:$0xff] }
 0x40d   :  { %v1488_v21 = vadd.f32 %v5959_v20, %v1449_v52 }
 0x40e   :  { %1495 = vst [vmem:[#allocation4 + $0x18] sm:$0xff] %v5939_v47  ;;  %1568 = vmatmul.mubr.f32.vlgmr.msra.gmra.mxu0 %v5939_v47  ;;  %3550 = vmatmul.mubr.f32.vlgmr.msra.gmra.mxu1 %v5939_v47 }
 0x40f   :  { %1645 = vmatpush1.msra.mxu0 %v5541_v38  ;;  %3553 = vmatpush3.msra.mxu1 %v5547_v24 }
 0x410   :  { %1646 = vmatprep.subr.mxu0 %v5553_v40  ;;  %3554 = vmatprep.subr.mxu1 %v7316_v61 }
 0x411   :  { %1647 = vmatpush1.msra.mxu0 %v5560_v49  ;;  %3555 = vmatpush3.msra.mxu1 %v5566_v44 }
 0x412   :  { %1648 = vmatprep.subr.mxu0 %v5572_v55  ;;  %3556 = vmatprep.subr.mxu1 %v7316_v61 }
 0x413   :  { %1649 = vmatpush1.msra.mxu0 %v5579_v36  ;;  %3557 = vmatpush3.msra.mxu1 %v5585_v39 }
 0x414   :  { %1650 = vmatprep.subr.mxu0 %v5591_v37  ;;  %3558 = vmatprep.subr.mxu1 %v7316_v61 }
 0x415   :  { %1651 = vmatpush1.msra.mxu0 %v5599_v26  ;;  %3559 = vmatpush3.msra.mxu1 %v5605_v1 }
 0x416   :  { %v3878_v22 = vpop.eup %3877  ;;  %1652 = vmatprep.subr.mxu0 %v5614_v29  ;;  %3560 = vmatprep.subr.mxu1 %v7316_v61 }
 0x417   :  { %v1489_v45 = vmul.f32 %v3878_v22, %v1488_v21  ;;  %1653 = vmatpush1.msra.mxu0 %v5621_v30  ;;  %3561 = vmatpush3.msra.mxu1 %v7480_v28  ;;  %v7493_v21 = vld [vmem:[#allocation32_spill] sm:$0xff]  ;;  %v7494_v22 = vld [vmem:[#allocation37_spill] sm:$0xff] }
 0x418   :  { %1654 = vmatprep.subr.mxu0 %v7481_v60  ;;  %3562 = vmatprep.subr.mxu1 %v7316_v61 }
 0x419   :  { %v1490_v52 = vadd.f32 %v1489_v45, %v1170_v23  ;;  %1655 = vmatpush1.msra.mxu0 %v5640_v25  ;;  %3563 = vmatpush3.msra.mxu1 %v5646_v34  ;;  %v7495_v23 = vld [vmem:[#allocation38_spill] sm:$0xff]  ;;  %v7496_v45 = vld [vmem:[#allocation57_spill] sm:$0xff] }
 0x41a   :  { %1656 = vmatprep.subr.mxu0 %v7482_v50  ;;  %3564 = vmatprep.subr.mxu1 %v7316_v61 }
 0x41b   :  { %3879 = vtanh.f32 %v1490_v52  ;;  %1657 = vmatpush1.msra.mxu0 %v7483_v48  ;;  %3565 = vmatpush3.msra.mxu1 %v7484_v51  ;;  %v7497_v52 = vld [vmem:[#allocation40_spill] sm:$0xff] }
 0x41c   :  { %1658 = vmatprep.subr.mxu0 %v7485_v58  ;;  %3566 = vmatprep.subr.mxu1 %v7316_v61  ;;  %3881 = vrcp.f32 %v1485_v46  ;;  %v7498_v46 = vld [vmem:[#allocation60_spill] sm:$0xff] }
 0x41d   :  { %1659 = vmatpush1.msra.mxu0 %v7486_v62  ;;  %3567 = vmatpush3.msra.mxu1 %v7487_v27 }
 0x41e   :  { %1660 = vmatprep.subr.mxu0 %v7488_v35  ;;  %3568 = vmatprep.subr.mxu1 %v7316_v61 }
 0x41f   :  { %1661 = vmatpush1.msra.mxu0 %v7489_v63  ;;  %3569 = vmatpush3.msra.mxu1 %v7490_v32  ;;  %v7500_v32 = vld [vmem:[#allocation44_spill] sm:$0xff]  ;;  %v7506_v63 = vld [vmem:[#allocation50_spill] sm:$0xff] }
 0x420   :  { %1662 = vmatprep.subr.mxu0 %v7491_v31  ;;  %3570 = vmatprep.subr.mxu1 %v7316_v61  ;;  %v7499_v31 = vld [vmem:[#allocation43_spill] sm:$0xff] }
 0x421   :  { %1663 = vmatpush1.msra.mxu0 %v7492_v19  ;;  %3571 = vmatpush3.msra.mxu1 %v7493_v21  ;;  %v7501_v21 = vld [vmem:[#allocation63_spill] sm:$0xff] }
 0x422   :  { %1664 = vmatprep.subr.mxu0 %v7494_v22  ;;  %3572 = vmatprep.subr.mxu1 %v7316_v61  ;;  %v7502_v22 = vld [vmem:[#allocation46_spill] sm:$0xff] }
 0x423   :  { %1665 = vmatpush1.msra.mxu0 %v7495_v23  ;;  %3573 = vmatpush3.msra.mxu1 %v7496_v45  ;;  %v7503_v23 = vld [vmem:[#allocation47_spill] sm:$0xff]  ;;  %v7505_v45 = vld [vmem:[#allocation49_spill] sm:$0xff] }
 0x424   :  { %1666 = vmatprep.subr.mxu0 %v7497_v52  ;;  %3574 = vmatprep.subr.mxu1 %v7316_v61  ;;  %v7504_v52 = vld [vmem:[#allocation64_spill] sm:$0xff] }
 0x425   :  { %1667 = vmatpush1.msra.mxu0 %v7498_v46  ;;  %3575 = vmatpush3.msra.mxu1 %v7499_v31 }
 0x426   :  { %1668 = vmatprep.subr.mxu0 %v7500_v32  ;;  %3576 = vmatprep.subr.mxu1 %v7316_v61  ;;  %v7507_v32 = vld [vmem:[#allocation65_spill] sm:$0xff] }
 0x427   :  { %1669 = vmatpush1.msra.mxu0 %v7501_v21  ;;  %3577 = vmatpush3.msra.mxu1 %v7502_v22  ;;  %v7508_v21 = vld [vmem:[#allocation52_spill] sm:$0xff] }
 0x428   :  { %v3880_v19 = vpop.eup %3879  ;;  %1670 = vmatprep.subr.mxu0 %v7503_v23  ;;  %3578 = vmatprep.subr.mxu1 %v7316_v61 }
 0x429   :  { %1671 = vmatpush1.msra.mxu0 %v7504_v52  ;;  %3579 = vmatpush3.msra.mxu1 %v7505_v45  ;;  %v1492_v46 = vsub.f32 %v5835_v56, %v3880_v19  ;;  %v3882_v31 = vpop.eup %3881  ;;  %v7532_v56 = vld [vmem:[#allocation25_spill] sm:$0xff] }
 0x42a   :  { %1672 = vmatprep.subr.mxu0 %v7506_v63  ;;  %3580 = vmatprep.subr.mxu1 %v7316_v61 }
 0x42b   :  { %1673 = vmatpush1.msra.mxu0 %v7507_v32  ;;  %3581 = vmatpush3.msra.mxu1 %v7508_v21  ;;  %v1493_v22 = vmul.f32 %v3882_v31, %v1492_v46  ;;  %v7533_v31 = vld [vmem:[#allocation15_spill] sm:$0xff] }
 0x42c   :  { %1674 = vmatprep.subr.mxu0 %v5824_v33  ;;  %3582 = vmatprep.subr.mxu1 %v7316_v61 }
 0x42d   :  { %1675 = vmatpush1.msra.mxu0 %v5831_v57  ;;  %1708 = vmatprep.mubr.f32.mxu0 %v7316_v61  ;;  %v6016_v45 = vadd.f32 %v3880_v19, %v1493_v22  ;;  %v7534_v19 = vld [vmem:[#allocation16_spill] sm:$0xff]  ;;  %v1497_v22 = vld [vmem:[%s7052_s0 + $0x60] sm:$0xff] }
 0x42e   :  { %3583 = vmatpush3.msra.mxu1 %v5840_v41  ;;  %3584 = vmatprep.mubr.msk.f32.mxu1 %vm4204_vm0, %v7316_v61 }
 0x42f   :  { %1496 = vst [vmem:[#allocation6 + $0x20] sm:$0xff] %v6016_v45  ;;  %1709 = vmatmul.mubr.f32.vlgmr.msra.gmra.mxu0 %v6016_v45  ;;  %3585 = vmatmul.mubr.f32.vlgmr.msra.gmra.mxu1 %v6016_v45 }
 0x430   :  { %1835 = vmatprep.subr.mxu0 %v5205_v0  ;;  %3587 = vmatprep.subr.mxu1 %v7316_v61  ;;  %v7509_v0 = vld [vmem:[#allocation42_spill] sm:$0xff] }
 0x431   :  { %1836 = vmatpush1.msra.mxu0 %v5212_v2  ;;  %3588 = vmatpush3.msra.mxu1 %v5218_v4  ;;  %v7510_v2 = vld [vmem:[#allocation28_spill] sm:$0xff]  ;;  %v7511_v4 = vld [vmem:[#allocation45_spill] sm:$0xff] }
 0x432   :  { %1837 = vmatprep.subr.mxu0 %v5224_v53  ;;  %3589 = vmatprep.subr.mxu1 %v7316_v61  ;;  %v7512_v53 = vld [vmem:[#allocation31_spill] sm:$0xff] }
 0x433   :  { %1838 = vmatpush1.msra.mxu0 %v5231_v54  ;;  %3590 = vmatpush3.msra.mxu1 %v5237_v59  ;;  %v7513_v54 = vld [vmem:[#allocation48_spill] sm:$0xff]  ;;  %v7514_v59 = vld [vmem:[#allocation34_spill] sm:$0xff] }
 0x434   :  { %1839 = vmatprep.subr.mxu0 %v5243_v42  ;;  %3591 = vmatprep.subr.mxu1 %v7316_v61  ;;  %v7515_v42 = vld [vmem:[#allocation35_spill] sm:$0xff] }
 0x435   :  { %1840 = vmatpush1.msra.mxu0 %v5250_v43  ;;  %3592 = vmatpush3.msra.mxu1 %v5256_v3  ;;  %v7516_v43 = vld [vmem:[#allocation51_spill] sm:$0xff]  ;;  %v7517_v3 = vld [vmem:[#allocation36_spill] sm:$0xff] }
 0x436   :  { %1841 = vmatprep.subr.mxu0 %v5262_v5  ;;  %3593 = vmatprep.subr.mxu1 %v7316_v61  ;;  %v7518_v5 = vld [vmem:[#allocation54_spill] sm:$0xff] }
 0x437   :  { %1842 = vmatpush1.msra.mxu0 %v5269_v6  ;;  %3594 = vmatpush3.msra.mxu1 %v5275_v7  ;;  %v7519_v6 = vld [vmem:[#allocation39_spill] sm:$0xff]  ;;  %v7520_v7 = vld [vmem:[#allocation41_spill] sm:$0xff] }
 0x438   :  { %1843 = vmatprep.subr.mxu0 %v5281_v8  ;;  %3595 = vmatprep.subr.mxu1 %v7316_v61  ;;  %v7521_v8 = vld [vmem:[#allocation56_spill] sm:$0xff] }
 0x439   :  { %1844 = vmatpush1.msra.mxu0 %v5288_v9  ;;  %3596 = vmatpush3.msra.mxu1 %v5294_v10  ;;  %v7522_v9 = vld [vmem:[#allocation58_spill] sm:$0xff]  ;;  %v7523_v10 = vld [vmem:[#allocation59_spill] sm:$0xff] }
 0x43a   :  { %1845 = vmatprep.subr.mxu0 %v5300_v11  ;;  %3597 = vmatprep.subr.mxu1 %v7316_v61  ;;  %v7524_v11 = vld [vmem:[#allocation61_spill] sm:$0xff] }
 0x43b   :  { %1846 = vmatpush1.msra.mxu0 %v5307_v12  ;;  %3598 = vmatpush3.msra.mxu1 %v5313_v13  ;;  %v7525_v12 = vld [vmem:[#allocation62_spill] sm:$0xff] }
 0x43c   :  { %1847 = vmatprep.subr.mxu0 %v5319_v14  ;;  %3599 = vmatprep.subr.mxu1 %v7316_v61  ;;  %v7526_v13 = vld [vmem:[#allocation10_spill] sm:$0xff]  ;;  %v7527_v14 = vld [vmem:[#allocation11_spill] sm:$0xff] }
 0x43d   :  { %1848 = vmatpush1.msra.mxu0 %v5326_v15  ;;  %3600 = vmatpush3.msra.mxu1 %v5332_v16  ;;  %v7528_v15 = vld [vmem:[#allocation12_spill] sm:$0xff]  ;;  %v7529_v16 = vld [vmem:[#allocation22_spill] sm:$0xff] }
 0x43e   :  { %1849 = vmatprep.subr.mxu0 %v5338_v17  ;;  %3601 = vmatprep.subr.mxu1 %v7316_v61  ;;  %v7530_v17 = vld [vmem:[#allocation13_spill] sm:$0xff] }
 0x43f   :  { %1850 = vmatpush1.msra.mxu0 %v5345_v18  ;;  %3602 = vmatpush3.msra.mxu1 %v7509_v0  ;;  %v7531_v18 = vld [vmem:[#allocation14_spill] sm:$0xff] }
 0x440   :  { %1851 = vmatprep.subr.mxu0 %v7510_v2  ;;  %3603 = vmatprep.subr.mxu1 %v7316_v61 }
 0x441   :  { %1852 = vmatpush1.msra.mxu0 %v7511_v4  ;;  %3604 = vmatpush3.msra.mxu1 %v7512_v53 }
 0x442   :  { %1853 = vmatprep.subr.mxu0 %v7513_v54  ;;  %3605 = vmatprep.subr.mxu1 %v7316_v61  ;;  %v1498_v54 = vld [vmem:[%s7052_s0 + $0x68] sm:$0xff] }
 0x443   :  { %1854 = vmatpush1.msra.mxu0 %v7514_v59  ;;  %3606 = vmatpush3.msra.mxu1 %v7515_v42 }
 0x444   :  { %1855 = vmatprep.subr.mxu0 %v7516_v43  ;;  %3607 = vmatprep.subr.mxu1 %v7316_v61 }
 0x445   :  { %1856 = vmatpush1.msra.mxu0 %v7517_v3  ;;  %3608 = vmatpush3.msra.mxu1 %v7518_v5 }
 0x446   :  { %1857 = vmatprep.subr.mxu0 %v7519_v6  ;;  %3609 = vmatprep.subr.mxu1 %v7316_v61  ;;  %v1500_v6 = vld [vmem:[%s7053_s1 + $0x48] sm:$0xff] }
 0x447   :  { %1858 = vmatpush1.msra.mxu0 %v7520_v7  ;;  %3610 = vmatpush3.msra.mxu1 %v7521_v8  ;;  %v7535_v8 = vld [vmem:[#allocation53_spill] sm:$0xff] }
 0x448   :  { %1859 = vmatprep.subr.mxu0 %v7522_v9  ;;  %3611 = vmatprep.subr.mxu1 %v7316_v61 }
 0x449   :  { %1860 = vmatpush1.msra.mxu0 %v7523_v10  ;;  %3612 = vmatpush3.msra.mxu1 %v7524_v11 }
 0x44a   :  { %1861 = vmatprep.subr.mxu0 %v7525_v12  ;;  %3613 = vmatprep.subr.mxu1 %v7316_v61 }
 0x44b   :  { %1862 = vmatpush1.msra.mxu0 %v7526_v13  ;;  %3614 = vmatpush3.msra.mxu1 %v7527_v14  ;;  %v1499_v13 = vld [vmem:[%s7052_s0 + $0x70] sm:$0xff] }
 0x44c   :  { %1863 = vmatprep.subr.mxu0 %v7528_v15  ;;  %3615 = vmatprep.subr.mxu1 %v7316_v61 }
 0x44d   :  { %1864 = vmatpush1.msra.mxu0 %v7529_v16  ;;  %3616 = vmatpush3.msra.mxu1 %v7530_v17 }
 0x44e   :  { %1865 = vmatprep.subr.mxu0 %v7531_v18  ;;  %3617 = vmatprep.subr.mxu1 %v7316_v61 }
 0x44f   :  { %1866 = vmatpush1.msra.mxu0 %v7532_v56  ;;  %1899 = vmatprep.mubr.f32.mxu0 %v7316_v61 }
 0x450   :  { %3618 = vmatpush3.msra.mxu1 %v7533_v31  ;;  %3619 = vmatprep.mubr.msk.f32.mxu1 %vm4204_vm0, %v7316_v61  ;;  %v1501_v31 = vld [vmem:[%s7053_s1 + $0x50] sm:$0xff] }
 0x451   :  { %1976 = vmatprep.subr.mxu0 %v7534_v19  ;;  %3622 = vmatprep.subr.mxu1 %v7316_v61 }
 0x4ce   :  { %v1569_v46 = vpop.f32.mrf.mxu0  ;;  %v1640_v0 = vpop.f32.mrf.mxu1 }
 0x4cf   :  { %v1785_v2 = vadd.f32 %v1569_v46, %v1497_v22  ;;  %v1799_v9 = vadd.f32 %v7535_v8, %v1640_v0 }
 0x4d0   :  { %v3551_v4 = vpop.f32.mrf.mxu1  ;;  %v1571_v59 = vpop.f32.mrf.mxu0 }
 0x4d1   :  { %v2948_v53 = vmul.f32 -1.442695, %v1785_v2  ;;  %v1792_v42 = vadd.f32 %v1571_v59, %v1498_v54 }
 0x4d3   :  { %3883 = vpow2.f32 %v2948_v53  ;;  %v2949_v43 = vmul.f32 -1.442695, %v1792_v42 }
 0x4d5   :  { %3885 = vpow2.f32 %v2949_v43 }
 0x4e0   :  { %v3884_v3 = vpop.eup %3883 }
 0x4e1   :  { %v1789_v5 = vadd.f32 1.0, %v3884_v3  ;;  %v6244_v3 = vld [vmem:[%s7054_s2 + $0x148] sm:$0xff] }
 0x4e2   :  { %v3886_v7 = vpop.eup %3885 }
 0x4e3   :  { %3887 = vrcp.f32 %v1789_v5  ;;  %v1796_v56 = vadd.f32 1.0, %v3886_v7  ;;  %v6250_v5 = vld [vmem:[%s7054_s2 + $0x128] sm:$0xff]  ;;  %v6263_v7 = vld [vmem:[%s7054_s2 + $0x130] sm:$0xff] }
 0x4ef   :  { %v1710_v10 = vpop.f32.mrf.mxu0  ;;  %v1781_v11 = vpop.f32.mrf.mxu1 }
 0x4f0   :  { %v3888_v12 = vpop.eup %3887  ;;  %v1806_v14 = vadd.f32 %v1710_v10, %v1500_v6  ;;  %v6257_v6 = vld [vmem:[%s7054_s2 + $0x120] sm:$0xff]  ;;  %v6276_v10 = vld [vmem:[%s7054_s2 + $0x108] sm:$0xff] }
 0x4f1   :  { %v1800_v15 = vmul.f32 %v3888_v12, %v1799_v9  ;;  %v3586_v16 = vpop.f32.mrf.mxu1  ;;  %v1712_v19 = vpop.f32.mrf.mxu0  ;;  %v6269_v9 = vld [vmem:[%s7054_s2 + $0x110] sm:$0xff]  ;;  %v6288_v12 = vld [vmem:[%s7054_s2 + $0xf8] sm:$0xff] }
 0x4f2   :  { %v2950_v17 = vmul.f32 -1.442695, %v1806_v14  ;;  %v1813_v22 = vadd.f32 %v1712_v19, %v1501_v31  ;;  %v6301_v14 = vld [vmem:[%s7054_s2 + $0x100] sm:$0xff]  ;;  %v6314_v16 = vld [vmem:[%s7054_s2 + $0xd8] sm:$0xff]  ;;  %v6339_v31 = vld [vmem:[%s7054_s2 + $0xd0] sm:$0xff] }
 0x4f3   :  { %v1801_v18 = vadd.f32 %v1800_v15, %v1499_v13  ;;  %v6295_v13 = vld [vmem:[%s7054_s2 + $0xf0] sm:$0xff]  ;;  %v6307_v15 = vld [vmem:[%s7054_s2 + $0xe0] sm:$0xff] }
 0x4f4   :  { %3889 = vpow2.f32 %v2950_v17  ;;  %v2951_v46 = vmul.f32 -1.442695, %v1813_v22  ;;  %v6320_v17 = vld [vmem:[%s7054_s2 + $0xe8] sm:$0xff]  ;;  %v6345_v19 = vld [vmem:[%s7054_s2 + $0xb0] sm:$0xff] }
 0x4f5   :  { %3891 = vtanh.f32 %v1801_v18  ;;  %v6326_v18 = vld [vmem:[%s7054_s2 + $0xc8] sm:$0xff] }
 0x4f6   :  { %3893 = vrcp.f32 %v1796_v56  ;;  %v6333_v56 = vld [vmem:[%s7054_s2 + $0xc0] sm:$0xff]  ;;  %v6352_v22 = vld [vmem:[%s7054_s2 + $0xa8] sm:$0xff] }
 0x4f7   :  { %3895 = vpow2.f32 %v2951_v46  ;;  %v6358_v46 = vld [vmem:[%s7054_s2 + $0xb8] sm:$0xff] }
 0x501   :  { %v3890_v0 = vpop.eup %3889 }
 0x502   :  { %v3892_v2 = vpop.eup %3891  ;;  %v1810_v4 = vadd.f32 1.0, %v3890_v0  ;;  %v6364_v0 = vld [vmem:[%s7054_s2 + $0x98] sm:$0xff] }
 0x503   :  { %v1803_v53 = vsub.f32 %v5939_v47, %v3892_v2  ;;  %v3894_v54 = vpop.eup %3893  ;;  %v7544_v47 = vld [vmem:[#allocation40_spill] sm:$0xff] }
 0x504   :  { %3897 = vrcp.f32 %v1810_v4  ;;  %v6377_v4 = vld [vmem:[%s7054_s2 + $0xa0] sm:$0xff] }
 0x505   :  { %v1804_v59 = vmul.f32 %v3894_v54, %v1803_v53  ;;  %v6383_v53 = vld [vmem:[%s7054_s2 + $0x80] sm:$0xff]  ;;  %v6390_v54 = vld [vmem:[%s7054_s2 + $0x78] sm:$0xff] }
 0x507   :  { %v6110_v42 = vadd.f32 %v3892_v2, %v1804_v59  ;;  %v6371_v2 = vld [vmem:[%s7054_s2 + $0x90] sm:$0xff]  ;;  %v6396_v59 = vld [vmem:[%s7054_s2 + $0x88] sm:$0xff] }
 0x509   :  { %1827 = vst [vmem:[#allocation4 + $0x20] sm:$0xff] %v6110_v42  ;;  %1900 = vmatmul.mubr.f32.vlgmr.msra.gmra.mxu0 %v6110_v42  ;;  %3620 = vmatmul.mubr.f32.vlgmr.msra.gmra.mxu1 %v6110_v42 }
 0x50a   :  { %1977 = vmatpush1.msra.mxu0 %v5541_v38  ;;  %3623 = vmatpush3.msra.mxu1 %v5547_v24  ;;  %v3896_v38 = vpop.eup %3895  ;;  %v1820_v24 = vadd.f32 %v5959_v20, %v1781_v11  ;;  %v6282_v11 = vld [vmem:[%s7054_s2 + $0x118] sm:$0xff] }
 0x50b   :  { %1978 = vmatprep.subr.mxu0 %v5553_v40  ;;  %3624 = vmatprep.subr.mxu1 %v7316_v61 }
 0x50c   :  { %1979 = vmatpush1.msra.mxu0 %v5560_v49  ;;  %3625 = vmatpush3.msra.mxu1 %v5566_v44  ;;  %v1502_v49 = vld [vmem:[%s7053_s1 + $0x58] sm:$0xff] }
 0x50d   :  { %1980 = vmatprep.subr.mxu0 %v5572_v55  ;;  %3626 = vmatprep.subr.mxu1 %v7316_v61 }
 0x50e   :  { %1981 = vmatpush1.msra.mxu0 %v5579_v36  ;;  %3627 = vmatpush3.msra.mxu1 %v5585_v39  ;;  %v1817_v36 = vadd.f32 1.0, %v3896_v38  ;;  %v7536_v39 = vld [vmem:[#allocation33_spill] sm:$0xff]  ;;  %v6402_v38 = vld [vmem:[%s7054_s2 + $0x68] sm:$0xff] }
 0x50f   :  { %1982 = vmatprep.subr.mxu0 %v5591_v37  ;;  %3628 = vmatprep.subr.mxu1 %v7316_v61  ;;  %v7537_v37 = vld [vmem:[#allocation24_spill] sm:$0xff] }
 0x510   :  { %1983 = vmatpush1.msra.mxu0 %v5599_v26  ;;  %3629 = vmatpush3.msra.mxu1 %v5605_v1  ;;  %v7538_v26 = vld [vmem:[#allocation67_spill] sm:$0xff]  ;;  %v7539_v1 = vld [vmem:[#allocation29_spill] sm:$0xff] }
 0x511   :  { %v3898_v40 = vpop.eup %3897  ;;  %1984 = vmatprep.subr.mxu0 %v5614_v29  ;;  %3630 = vmatprep.subr.mxu1 %v7316_v61  ;;  %v7540_v29 = vld [vmem:[#allocation32_spill] sm:$0xff] }
 0x512   :  { %v1821_v44 = vmul.f32 %v3898_v40, %v1820_v24  ;;  %1985 = vmatpush1.msra.mxu0 %v5621_v30  ;;  %3631 = vmatpush3.msra.mxu1 %v7480_v28  ;;  %v7541_v30 = vld [vmem:[#allocation37_spill] sm:$0xff]  ;;  %v7545_v28 = vld [vmem:[#allocation60_spill] sm:$0xff]  ;;  %v6409_v24 = vld [vmem:[%s7054_s2 + $0x60] sm:$0xff] }
 0x513   :  { %1986 = vmatprep.subr.mxu0 %v7481_v60  ;;  %3632 = vmatprep.subr.mxu1 %v7316_v61  ;;  %v7546_v60 = vld [vmem:[#allocation43_spill] sm:$0xff]  ;;  %v6415_v40 = vld [vmem:[%s7054_s2 + $0x70] sm:$0xff] }
 0x514   :  { %v1822_v55 = vadd.f32 %v1821_v44, %v1502_v49  ;;  %1987 = vmatpush1.msra.mxu0 %v5640_v25  ;;  %3633 = vmatpush3.msra.mxu1 %v5646_v34  ;;  %v7542_v34 = vld [vmem:[#allocation38_spill] sm:$0xff]  ;;  %v7543_v25 = vld [vmem:[#allocation57_spill] sm:$0xff]  ;;  %v6421_v49 = vld [vmem:[%s7054_s2 + $0x50] sm:$0xff] }
 0x515   :  { %1988 = vmatprep.subr.mxu0 %v7482_v50  ;;  %3634 = vmatprep.subr.mxu1 %v7316_v61  ;;  %v7547_v50 = vld [vmem:[#allocation44_spill] sm:$0xff]  ;;  %v6428_v44 = vld [vmem:[%s7054_s2 + $0x48] sm:$0xff] }
 0x516   :  { %3899 = vtanh.f32 %v1822_v55  ;;  %1989 = vmatpush1.msra.mxu0 %v7483_v48  ;;  %3635 = vmatpush3.msra.mxu1 %v7484_v51  ;;  %v7548_v48 = vld [vmem:[#allocation63_spill] sm:$0xff]  ;;  %v7549_v51 = vld [vmem:[#allocation46_spill] sm:$0xff]  ;;  %v6434_v55 = vld [vmem:[%s7054_s2 + $0x58] sm:$0xff] }
 0x517   :  { %1990 = vmatprep.subr.mxu0 %v7485_v58  ;;  %3636 = vmatprep.subr.mxu1 %v7316_v61  ;;  %3901 = vrcp.f32 %v1817_v36  ;;  %v6440_v36 = vld [vmem:[%s7054_s2 + $0x38] sm:$0xff] }
 0x518   :  { %1991 = vmatpush1.msra.mxu0 %v7486_v62  ;;  %3637 = vmatpush3.msra.mxu1 %v7487_v27  ;;  %v7550_v62 = vld [vmem:[#allocation49_spill] sm:$0xff] }
 0x519   :  { %1992 = vmatprep.subr.mxu0 %v7488_v35  ;;  %3638 = vmatprep.subr.mxu1 %v7316_v61 }
 0x51a   :  { %1993 = vmatpush1.msra.mxu0 %v7536_v39  ;;  %3639 = vmatpush3.msra.mxu1 %v7537_v37  ;;  %v6447_v39 = vld [vmem:[%s7054_s2 + $0x30] sm:$0xff]  ;;  %v6453_v37 = vld [vmem:[%s7054_s2 + $0x40] sm:$0xff] }
 0x51b   :  { %1994 = vmatprep.subr.mxu0 %v7538_v26  ;;  %3640 = vmatprep.subr.mxu1 %v7316_v61  ;;  %7551 = vst [vmem:[#allocation66_spill] sm:$0xff] %v6447_v39  ;;  %7552 = vst [vmem:[#allocation55_spill] sm:$0xff] %v6453_v37  ;;  %v6459_v26 = vld [vmem:[%s7054_s2 + $0x20] sm:$0xff] }
 0x51c   :  { %1995 = vmatpush1.msra.mxu0 %v7539_v1  ;;  %3641 = vmatpush3.msra.mxu1 %v7540_v29  ;;  %7553 = vst [vmem:[#allocation26_spill] sm:$0xff] %v6459_v26  ;;  %v6466_v1 = vld [vmem:[%s7054_s2 + $0x18] sm:$0xff]  ;;  %v6472_v29 = vld [vmem:[%s7054_s2 + $0x28] sm:$0xff] }
 0x51d   :  { %1996 = vmatprep.subr.mxu0 %v7541_v30  ;;  %3642 = vmatprep.subr.mxu1 %v7316_v61  ;;  %7554 = vst [vmem:[#allocation17_spill] sm:$0xff] %v6466_v1  ;;  %7555 = vst [vmem:[#allocation18_spill] sm:$0xff] %v6472_v29  ;;  %v6478_v30 = vld [vmem:[%s7054_s2 + $0x8] sm:$0xff] }
 0x51e   :  { %1997 = vmatpush1.msra.mxu0 %v7542_v34  ;;  %3643 = vmatpush3.msra.mxu1 %v7543_v25  ;;  %7556 = vst [vmem:[#allocation27_spill] sm:$0xff] %v6478_v30  ;;  %v6485_v34 = vld [vmem:[%s7054_s2] sm:$0xff]  ;;  %v6492_v25 = vld [vmem:[%s7054_s2 + $0x10] sm:$0xff] }
 0x51f   :  { %1998 = vmatprep.subr.mxu0 %v7544_v47  ;;  %3644 = vmatprep.subr.mxu1 %v7316_v61  ;;  %7557 = vst [vmem:[#allocation19_spill] sm:$0xff] %v6485_v34  ;;  %7558 = vst [vmem:[#allocation20_spill] sm:$0xff] %v6492_v25  ;;  %v6500_v47 = vld [vmem:[%s7054_s2 + $0x2f0] sm:$0xff] }
 0x520   :  { %1999 = vmatpush1.msra.mxu0 %v7545_v28  ;;  %3645 = vmatpush3.msra.mxu1 %v7546_v60  ;;  %7559 = vst [vmem:[#allocation30_spill] sm:$0xff] %v6500_v47  ;;  %v1829_v28 = vld [vmem:[%s7052_s0 + $0x78] sm:$0xff] }
 0x521   :  { %2000 = vmatprep.subr.mxu0 %v7547_v50  ;;  %3646 = vmatprep.subr.mxu1 %v7316_v61 }
 0x522   :  { %2001 = vmatpush1.msra.mxu0 %v7548_v48  ;;  %3647 = vmatpush3.msra.mxu1 %v7549_v51 }
 0x523   :  { %v3900_v58 = vpop.eup %3899  ;;  %2002 = vmatprep.subr.mxu0 %v7503_v23  ;;  %3648 = vmatprep.subr.mxu1 %v7316_v61 }
 0x524   :  { %2003 = vmatpush1.msra.mxu0 %v7504_v52  ;;  %3649 = vmatpush3.msra.mxu1 %v7550_v62  ;;  %v1824_v27 = vsub.f32 %v6016_v45, %v3900_v58  ;;  %v3902_v35 = vpop.eup %3901  ;;  %v6231_v45 = vld [vmem:[%s7054_s2 + $0x140] sm:$0xff]  ;;  %v6238_v52 = vld [vmem:[%s7054_s2 + $0x138] sm:$0xff] }
 0x525   :  { %2004 = vmatprep.subr.mxu0 %v7506_v63  ;;  %3650 = vmatprep.subr.mxu1 %v7316_v61  ;;  %v6212_v63 = vld [vmem:[%s7054_s2 + $0x158] sm:$0xff]  ;;  %v1830_v62 = vld [vmem:[%s7052_s0 + $0x80] sm:$0xff] }
 0x526   :  { %2005 = vmatpush1.msra.mxu0 %v7507_v32  ;;  %3651 = vmatpush3.msra.mxu1 %v7508_v21  ;;  %v1825_v43 = vmul.f32 %v3902_v35, %v1824_v27  ;;  %v6219_v32 = vld [vmem:[%s7054_s2 + $0x150] sm:$0xff]  ;;  %v6225_v21 = vld [vmem:[%s7054_s2 + $0x160] sm:$0xff] }
 0x527   :  { %2006 = vmatprep.subr.mxu0 %v5824_v33  ;;  %3652 = vmatprep.subr.mxu1 %v7316_v61  ;;  %v6193_v33 = vld [vmem:[%s7054_s2 + $0x170] sm:$0xff] }
 0x528   :  { %2007 = vmatpush1.msra.mxu0 %v5831_v57  ;;  %2040 = vmatprep.mubr.f32.mxu0 %v7316_v61  ;;  %v6182_v23 = vadd.f32 %v3900_v58, %v1825_v43  ;;  %v6200_v57 = vld [vmem:[%s7054_s2 + $0x168] sm:$0xff] }
 0x529   :  { %3653 = vmatpush3.msra.mxu1 %v5840_v41  ;;  %3654 = vmatprep.mubr.msk.f32.mxu1 %vm4204_vm0, %v7316_v61  ;;  %v6206_v41 = vld [vmem:[%s7054_s2 + $0x178] sm:$0xff] }
 0x52a   :  { %1828 = vst [vmem:[#allocation6 + $0x18] sm:$0xff] %v6182_v23  ;;  %2041 = vmatmul.mubr.f32.vlgmr.msra.gmra.mxu0 %v6182_v23  ;;  %3655 = vmatmul.mubr.f32.vlgmr.msra.gmra.mxu1 %v6182_v23 }
 0x52b   :  { %2167 = vmatprep.subr.mxu0 %v6193_v33  ;;  %3657 = vmatprep.subr.mxu1 %v7316_v61 }
 0x52c   :  { %2168 = vmatpush1.msra.mxu0 %v6200_v57  ;;  %3658 = vmatpush3.msra.mxu1 %v6206_v41 }
 0x52d   :  { %2169 = vmatprep.subr.mxu0 %v6212_v63  ;;  %3659 = vmatprep.subr.mxu1 %v7316_v61 }
 0x52e   :  { %2170 = vmatpush1.msra.mxu0 %v6219_v32  ;;  %3660 = vmatpush3.msra.mxu1 %v6225_v21 }
 0x52f   :  { %2171 = vmatprep.subr.mxu0 %v6231_v45  ;;  %3661 = vmatprep.subr.mxu1 %v7316_v61 }
 0x530   :  { %2172 = vmatpush1.msra.mxu0 %v6238_v52  ;;  %3662 = vmatpush3.msra.mxu1 %v6244_v3 }
 0x531   :  { %2173 = vmatprep.subr.mxu0 %v6250_v5  ;;  %3663 = vmatprep.subr.mxu1 %v7316_v61 }
 0x532   :  { %2174 = vmatpush1.msra.mxu0 %v6257_v6  ;;  %3664 = vmatpush3.msra.mxu1 %v6263_v7 }
 0x533   :  { %2175 = vmatprep.subr.mxu0 %v6269_v9  ;;  %3665 = vmatprep.subr.mxu1 %v7316_v61 }
 0x534   :  { %2176 = vmatpush1.msra.mxu0 %v6276_v10  ;;  %3666 = vmatpush3.msra.mxu1 %v6282_v11 }
 0x535   :  { %2177 = vmatprep.subr.mxu0 %v6288_v12  ;;  %3667 = vmatprep.subr.mxu1 %v7316_v61 }
 0x536   :  { %2178 = vmatpush1.msra.mxu0 %v6295_v13  ;;  %3668 = vmatpush3.msra.mxu1 %v6301_v14 }
 0x537   :  { %2179 = vmatprep.subr.mxu0 %v6307_v15  ;;  %3669 = vmatprep.subr.mxu1 %v7316_v61 }
 0x538   :  { %2180 = vmatpush1.msra.mxu0 %v6314_v16  ;;  %3670 = vmatpush3.msra.mxu1 %v6320_v17 }
 0x539   :  { %2181 = vmatprep.subr.mxu0 %v6326_v18  ;;  %3671 = vmatprep.subr.mxu1 %v7316_v61 }
 0x53a   :  { %2182 = vmatpush1.msra.mxu0 %v6333_v56  ;;  %3672 = vmatpush3.msra.mxu1 %v6339_v31 }
 0x53b   :  { %2183 = vmatprep.subr.mxu0 %v6345_v19  ;;  %3673 = vmatprep.subr.mxu1 %v7316_v61 }
 0x53c   :  { %2184 = vmatpush1.msra.mxu0 %v6352_v22  ;;  %3674 = vmatpush3.msra.mxu1 %v6358_v46 }
 0x53d   :  { %2185 = vmatprep.subr.mxu0 %v6364_v0  ;;  %3675 = vmatprep.subr.mxu1 %v7316_v61 }
 0x53e   :  { %2186 = vmatpush1.msra.mxu0 %v6371_v2  ;;  %3676 = vmatpush3.msra.mxu1 %v6377_v4 }
 0x53f   :  { %2187 = vmatprep.subr.mxu0 %v6383_v53  ;;  %3677 = vmatprep.subr.mxu1 %v7316_v61 }
 0x540   :  { %2188 = vmatpush1.msra.mxu0 %v6390_v54  ;;  %3678 = vmatpush3.msra.mxu1 %v6396_v59 }
 0x541   :  { %2189 = vmatprep.subr.mxu0 %v6402_v38  ;;  %3679 = vmatprep.subr.mxu1 %v7316_v61 }
 0x542   :  { %2190 = vmatpush1.msra.mxu0 %v6409_v24  ;;  %3680 = vmatpush3.msra.mxu1 %v6415_v40 }
 0x543   :  { %2191 = vmatprep.subr.mxu0 %v6421_v49  ;;  %3681 = vmatprep.subr.mxu1 %v7316_v61 }
 0x544   :  { %2192 = vmatpush1.msra.mxu0 %v6428_v44  ;;  %3682 = vmatpush3.msra.mxu1 %v6434_v55 }
 0x545   :  { %2193 = vmatprep.subr.mxu0 %v6440_v36  ;;  %3683 = vmatprep.subr.mxu1 %v7316_v61 }
 0x546   :  { %2194 = vmatpush1.msra.mxu0 %v6447_v39  ;;  %3684 = vmatpush3.msra.mxu1 %v6453_v37 }
 0x547   :  { %2195 = vmatprep.subr.mxu0 %v6459_v26  ;;  %3685 = vmatprep.subr.mxu1 %v7316_v61 }
 0x548   :  { %2196 = vmatpush1.msra.mxu0 %v6466_v1  ;;  %3686 = vmatpush3.msra.mxu1 %v6472_v29 }
 0x549   :  { %2197 = vmatprep.subr.mxu0 %v6478_v30  ;;  %3687 = vmatprep.subr.mxu1 %v7316_v61 }
 0x54a   :  { %2198 = vmatpush1.msra.mxu0 %v6485_v34  ;;  %2231 = vmatprep.mubr.f32.mxu0 %v7316_v61  ;;  %v1832_v34 = vld [vmem:[%s7053_s1 + $0x30] sm:$0xff] }
 0x54b   :  { %3688 = vmatpush3.msra.mxu1 %v6492_v25  ;;  %3689 = vmatprep.mubr.msk.f32.mxu1 %vm4204_vm0, %v7316_v61 }
 0x54c   :  { %2308 = vmatprep.subr.mxu0 %v6500_v47  ;;  %3692 = vmatprep.subr.mxu1 %v7316_v61 }
 0x5c9   :  { %v1901_v60 = vpop.f32.mrf.mxu0  ;;  %v1972_v50 = vpop.f32.mrf.mxu1 }
 0x5ca   :  { %v2117_v48 = vadd.f32 %v1901_v60, %v1829_v28  ;;  %v2131_v28 = vadd.f32 %v7535_v8, %v1972_v50  ;;  %v1833_v8 = vld [vmem:[%s7053_s1 + $0x38] sm:$0xff] }
 0x5cb   :  { %v3621_v51 = vpop.f32.mrf.mxu1  ;;  %v1903_v27 = vpop.f32.mrf.mxu0 }
 0x5cc   :  { %v2952_v58 = vmul.f32 -1.442695, %v2117_v48  ;;  %v2124_v35 = vadd.f32 %v1903_v27, %v1830_v62 }
 0x5ce   :  { %3903 = vpow2.f32 %v2952_v58  ;;  %v2953_v43 = vmul.f32 -1.442695, %v2124_v35  ;;  %v1831_v58 = vld [vmem:[%s7052_s0 + $0x88] sm:$0xff] }
 0x5d0   :  { %3905 = vpow2.f32 %v2953_v43 }
 0x5db   :  { %v3904_v47 = vpop.eup %3903 }
 0x5dc   :  { %v2121_v25 = vadd.f32 1.0, %v3904_v47 }
 0x5dd   :  { %v3906_v30 = vpop.eup %3905 }
 0x5de   :  { %3907 = vrcp.f32 %v2121_v25  ;;  %v2128_v25 = vadd.f32 1.0, %v3906_v30 }
 0x5ea   :  { %v2042_v60 = vpop.f32.mrf.mxu0  ;;  %v2113_v48 = vpop.f32.mrf.mxu1 }
 0x5eb   :  { %v3908_v51 = vpop.eup %3907  ;;  %v2138_v62 = vadd.f32 %v2042_v60, %v1832_v34 }
 0x5ec   :  { %v2132_v27 = vmul.f32 %v3908_v51, %v2131_v28  ;;  %v3656_v35 = vpop.f32.mrf.mxu1  ;;  %v2044_v50 = vpop.f32.mrf.mxu0  ;;  %v6567_v51 = vld [vmem:[%s7054_s2 + $0x2b8] sm:$0xff] }
 0x5ed   :  { %v2954_v47 = vmul.f32 -1.442695, %v2138_v62  ;;  %v2145_v29 = vadd.f32 %v2044_v50, %v1833_v8  ;;  %v6579_v62 = vld [vmem:[%s7054_s2 + $0x2a8] sm:$0xff]  ;;  %v2152_v35 = vadd.f32 %v5959_v20, %v2113_v48  ;;  %v1834_v8 = vld [vmem:[%s7053_s1 + $0x40] sm:$0xff]  ;;  %v6602_v20 = vld [vmem:[%s7054_s2 + $0x290] sm:$0xff] }
 0x5ee   :  { %v2133_v43 = vadd.f32 %v2132_v27, %v1831_v58  ;;  %v6573_v58 = vld [vmem:[%s7054_s2 + $0x2c8] sm:$0xff] }
 0x5ef   :  { %3909 = vpow2.f32 %v2954_v47  ;;  %v2955_v1 = vmul.f32 -1.442695, %v2145_v29  ;;  %v6529_v29 = vld [vmem:[%s7054_s2 + $0x2e8] sm:$0xff]  ;;  %v6587_v47 = vld [vmem:[%s7054_s2 + $0x2a0] sm:$0xff] }
 0x5f0   :  { %3911 = vtanh.f32 %v2133_v43  ;;  %v6593_v43 = vld [vmem:[%s7054_s2 + $0x2b0] sm:$0xff]  ;;  %v6609_v50 = vld [vmem:[%s7054_s2 + $0x288] sm:$0xff] }
 0x5f1   :  { %3913 = vrcp.f32 %v2128_v25 }
 0x5f2   :  { %3915 = vpow2.f32 %v2955_v1  ;;  %v6560_v1 = vld [vmem:[%s7054_s2 + $0x2c0] sm:$0xff] }
 0x5fc   :  { %v3910_v26 = vpop.eup %3909 }
 0x5fd   :  { %v3912_v37 = vpop.eup %3911  ;;  %v2142_v39 = vadd.f32 1.0, %v3910_v26  ;;  %v6554_v26 = vld [vmem:[%s7054_s2 + $0x2e0] sm:$0xff] }
 0x5fe   :  { %v2135_v34 = vsub.f32 %v6110_v42, %v3912_v37  ;;  %v3914_v28 = vpop.eup %3913  ;;  %v6535_v42 = vld [vmem:[%s7054_s2 + $0x2f8] sm:$0xff] }
 0x5ff   :  { %3917 = vrcp.f32 %v2142_v39  ;;  %v6541_v39 = vld [vmem:[%s7054_s2 + $0x2d8] sm:$0xff]  ;;  %v3916_v27 = vpop.eup %3915 }
 0x600   :  { %v2136_v60 = vmul.f32 %v3914_v28, %v2135_v34  ;;  %v6615_v34 = vld [vmem:[%s7054_s2 + $0x298] sm:$0xff] }
 0x601   :  { %7560 = vst [vmem:[#allocation21_spill] sm:$0xff] %v6615_v34  ;;  %v6621_v28 = vld [vmem:[%s7054_s2 + $0x278] sm:$0xff] }
 0x602   :  { %v6521_v30 = vadd.f32 %v3912_v37, %v2136_v60  ;;  %v6548_v37 = vld [vmem:[%s7054_s2 + $0x2d0] sm:$0xff]  ;;  %7561 = vst [vmem:[#allocation23_spill] sm:$0xff] %v6621_v28 }
 0x604   :  { %2159 = vst [vmem:[#allocation4 + $0x28] sm:$0xff] %v6521_v30  ;;  %2232 = vmatmul.mubr.f32.vlgmr.msra.gmra.mxu0 %v6521_v30  ;;  %3690 = vmatmul.mubr.f32.vlgmr.msra.gmra.mxu1 %v6521_v30 }
 0x605   :  { %2309 = vmatpush1.msra.mxu0 %v6529_v29  ;;  %3693 = vmatpush3.msra.mxu1 %v6535_v42 }
 0x606   :  { %2310 = vmatprep.subr.mxu0 %v6541_v39  ;;  %3694 = vmatprep.subr.mxu1 %v7316_v61 }
 0x607   :  { %2311 = vmatpush1.msra.mxu0 %v6548_v37  ;;  %3695 = vmatpush3.msra.mxu1 %v6554_v26 }
 0x608   :  { %2312 = vmatprep.subr.mxu0 %v6560_v1  ;;  %3696 = vmatprep.subr.mxu1 %v7316_v61 }
 0x609   :  { %2313 = vmatpush1.msra.mxu0 %v6567_v51  ;;  %3697 = vmatpush3.msra.mxu1 %v6573_v58 }
 0x60a   :  { %2314 = vmatprep.subr.mxu0 %v6579_v62  ;;  %3698 = vmatprep.subr.mxu1 %v7316_v61 }
 0x60b   :  { %2315 = vmatpush1.msra.mxu0 %v6587_v47  ;;  %3699 = vmatpush3.msra.mxu1 %v6593_v43 }
 0x60c   :  { %v3918_v25 = vpop.eup %3917  ;;  %2316 = vmatprep.subr.mxu0 %v6602_v20  ;;  %3700 = vmatprep.subr.mxu1 %v7316_v61 }
 0x60d   :  { %v2153_v48 = vmul.f32 %v3918_v25, %v2152_v35  ;;  %2317 = vmatpush1.msra.mxu0 %v6609_v50  ;;  %3701 = vmatpush3.msra.mxu1 %v6615_v34  ;;  %v2149_v35 = vadd.f32 1.0, %v3916_v27  ;;  %v6628_v25 = vld [vmem:[%s7054_s2 + $0x270] sm:$0xff]  ;;  %v6634_v34 = vld [vmem:[%s7054_s2 + $0x280] sm:$0xff]  ;;  %v6647_v27 = vld [vmem:[%s7054_s2 + $0x258] sm:$0xff] }
 0x60e   :  { %2318 = vmatprep.subr.mxu0 %v6621_v28  ;;  %3702 = vmatprep.subr.mxu1 %v7316_v61  ;;  %v6640_v28 = vld [vmem:[%s7054_s2 + $0x260] sm:$0xff]  ;;  %7563 = vst [vmem:[#allocation64_spill] sm:$0xff] %v6647_v27 }
 0x60f   :  { %v2154_v60 = vadd.f32 %v2153_v48, %v1834_v8  ;;  %2319 = vmatpush1.msra.mxu0 %v6628_v25  ;;  %3703 = vmatpush3.msra.mxu1 %v6634_v34  ;;  %7562 = vst [vmem:[#allocation47_spill] sm:$0xff] %v6640_v28  ;;  %v6653_v8 = vld [vmem:[%s7054_s2 + $0x268] sm:$0xff] }
 0x610   :  { %2320 = vmatprep.subr.mxu0 %v6640_v28  ;;  %3704 = vmatprep.subr.mxu1 %v7316_v61  ;;  %7564 = vst [vmem:[#allocation50_spill] sm:$0xff] %v6653_v8  ;;  %v6659_v48 = vld [vmem:[%s7054_s2 + $0x248] sm:$0xff] }
 0x611   :  { %3919 = vtanh.f32 %v2154_v60  ;;  %2321 = vmatpush1.msra.mxu0 %v6647_v27  ;;  %3705 = vmatpush3.msra.mxu1 %v6653_v8  ;;  %7565 = vst [vmem:[#allocation65_spill] sm:$0xff] %v6659_v48  ;;  %v6666_v60 = vld [vmem:[%s7054_s2 + $0x240] sm:$0xff]  ;;  %v6672_v8 = vld [vmem:[%s7054_s2 + $0x250] sm:$0xff] }
 0x612   :  { %2322 = vmatprep.subr.mxu0 %v6659_v48  ;;  %3706 = vmatprep.subr.mxu1 %v7316_v61  ;;  %3921 = vrcp.f32 %v2149_v35  ;;  %7566 = vst [vmem:[#allocation52_spill] sm:$0xff] %v6666_v60  ;;  %7567 = vst [vmem:[#allocation42_spill] sm:$0xff] %v6672_v8  ;;  %v6678_v48 = vld [vmem:[%s7054_s2 + $0x230] sm:$0xff]  ;;  %v6685_v35 = vld [vmem:[%s7054_s2 + $0x228] sm:$0xff] }
 0x613   :  { %2323 = vmatpush1.msra.mxu0 %v6666_v60  ;;  %3707 = vmatpush3.msra.mxu1 %v6672_v8  ;;  %7568 = vst [vmem:[#allocation28_spill] sm:$0xff] %v6678_v48  ;;  %7569 = vst [vmem:[#allocation45_spill] sm:$0xff] %v6685_v35  ;;  %v6691_v8 = vld [vmem:[%s7054_s2 + $0x238] sm:$0xff] }
 0x614   :  { %2324 = vmatprep.subr.mxu0 %v6678_v48  ;;  %3708 = vmatprep.subr.mxu1 %v7316_v61  ;;  %7570 = vst [vmem:[#allocation31_spill] sm:$0xff] %v6691_v8  ;;  %v6697_v48 = vld [vmem:[%s7054_s2 + $0x218] sm:$0xff] }
 0x615   :  { %2325 = vmatpush1.msra.mxu0 %v6685_v35  ;;  %3709 = vmatpush3.msra.mxu1 %v6691_v8  ;;  %7571 = vst [vmem:[#allocation48_spill] sm:$0xff] %v6697_v48  ;;  %v6704_v35 = vld [vmem:[%s7054_s2 + $0x210] sm:$0xff]  ;;  %v6710_v8 = vld [vmem:[%s7054_s2 + $0x220] sm:$0xff] }
 0x616   :  { %2326 = vmatprep.subr.mxu0 %v6697_v48  ;;  %3710 = vmatprep.subr.mxu1 %v7316_v61  ;;  %7572 = vst [vmem:[#allocation34_spill] sm:$0xff] %v6704_v35  ;;  %7573 = vst [vmem:[#allocation35_spill] sm:$0xff] %v6710_v8  ;;  %v6716_v48 = vld [vmem:[%s7054_s2 + $0x200] sm:$0xff] }
 0x617   :  { %2327 = vmatpush1.msra.mxu0 %v6704_v35  ;;  %3711 = vmatpush3.msra.mxu1 %v6710_v8  ;;  %7574 = vst [vmem:[#allocation51_spill] sm:$0xff] %v6716_v48  ;;  %v6723_v35 = vld [vmem:[%s7054_s2 + $0x1f8] sm:$0xff]  ;;  %v6729_v8 = vld [vmem:[%s7054_s2 + $0x208] sm:$0xff] }
 0x618   :  { %2328 = vmatprep.subr.mxu0 %v6716_v48  ;;  %3712 = vmatprep.subr.mxu1 %v7316_v61  ;;  %7575 = vst [vmem:[#allocation36_spill] sm:$0xff] %v6723_v35  ;;  %7576 = vst [vmem:[#allocation54_spill] sm:$0xff] %v6729_v8  ;;  %v6735_v48 = vld [vmem:[%s7054_s2 + $0x1e8] sm:$0xff] }
 0x619   :  { %2329 = vmatpush1.msra.mxu0 %v6723_v35  ;;  %3713 = vmatpush3.msra.mxu1 %v6729_v8  ;;  %7577 = vst [vmem:[#allocation39_spill] sm:$0xff] %v6735_v48  ;;  %v6742_v35 = vld [vmem:[%s7054_s2 + $0x1e0] sm:$0xff]  ;;  %v6748_v8 = vld [vmem:[%s7054_s2 + $0x1f0] sm:$0xff] }
 0x61a   :  { %2330 = vmatprep.subr.mxu0 %v6735_v48  ;;  %3714 = vmatprep.subr.mxu1 %v7316_v61  ;;  %7578 = vst [vmem:[#allocation41_spill] sm:$0xff] %v6742_v35  ;;  %7579 = vst [vmem:[#allocation56_spill] sm:$0xff] %v6748_v8  ;;  %v6754_v48 = vld [vmem:[%s7054_s2 + $0x1d0] sm:$0xff] }
 0x61b   :  { %2331 = vmatpush1.msra.mxu0 %v6742_v35  ;;  %3715 = vmatpush3.msra.mxu1 %v6748_v8  ;;  %7580 = vst [vmem:[#allocation58_spill] sm:$0xff] %v6754_v48  ;;  %v6761_v35 = vld [vmem:[%s7054_s2 + $0x1c8] sm:$0xff]  ;;  %v6767_v8 = vld [vmem:[%s7054_s2 + $0x1d8] sm:$0xff] }
 0x61c   :  { %2332 = vmatprep.subr.mxu0 %v6754_v48  ;;  %3716 = vmatprep.subr.mxu1 %v7316_v61  ;;  %7581 = vst [vmem:[#allocation59_spill] sm:$0xff] %v6761_v35  ;;  %7582 = vst [vmem:[#allocation61_spill] sm:$0xff] %v6767_v8  ;;  %v6773_v48 = vld [vmem:[%s7054_s2 + $0x1b8] sm:$0xff] }
 0x61d   :  { %2333 = vmatpush1.msra.mxu0 %v6761_v35  ;;  %3717 = vmatpush3.msra.mxu1 %v6767_v8  ;;  %7583 = vst [vmem:[#allocation62_spill] sm:$0xff] %v6773_v48  ;;  %v6780_v35 = vld [vmem:[%s7054_s2 + $0x1b0] sm:$0xff]  ;;  %v6786_v8 = vld [vmem:[%s7054_s2 + $0x1c0] sm:$0xff] }
 0x61e   :  { %v3920_v60 = vpop.eup %3919  ;;  %2334 = vmatprep.subr.mxu0 %v6773_v48  ;;  %3718 = vmatprep.subr.mxu1 %v7316_v61  ;;  %7584 = vst [vmem:[#allocation10_spill] sm:$0xff] %v6780_v35  ;;  %7585 = vst [vmem:[#allocation11_spill] sm:$0xff] %v6786_v8  ;;  %v6793_v48 = vld [vmem:[%s7054_s2 + $0x1a0] sm:$0xff] }
 0x61f   :  { %2335 = vmatpush1.msra.mxu0 %v6780_v35  ;;  %3719 = vmatpush3.msra.mxu1 %v6786_v8  ;;  %v2156_v27 = vsub.f32 %v6182_v23, %v3920_v60  ;;  %v3922_v28 = vpop.eup %3921  ;;  %7586 = vst [vmem:[#allocation12_spill] sm:$0xff] %v6793_v48  ;;  %v6800_v35 = vld [vmem:[%s7054_s2 + $0x198] sm:$0xff]  ;;  %v6806_v23 = vld [vmem:[%s7054_s2 + $0x1a8] sm:$0xff] }
 0x620   :  { %2336 = vmatprep.subr.mxu0 %v6793_v48  ;;  %3720 = vmatprep.subr.mxu1 %v7316_v61  ;;  %7587 = vst [vmem:[#allocation22_spill] sm:$0xff] %v6800_v35  ;;  %7588 = vst [vmem:[#allocation13_spill] sm:$0xff] %v6806_v23  ;;  %v6812_v48 = vld [vmem:[%s7054_s2 + $0x188] sm:$0xff] }
 0x621   :  { %2337 = vmatpush1.msra.mxu0 %v6800_v35  ;;  %3721 = vmatpush3.msra.mxu1 %v6806_v23  ;;  %v2157_v8 = vmul.f32 %v3922_v28, %v2156_v27  ;;  %v6819_v35 = vld [vmem:[%s7054_s2 + $0x180] sm:$0xff]  ;;  %v6828_v28 = vld [vmem:[%s7054_s2 + $0x190] sm:$0xff] }
 0x622   :  { %2338 = vmatprep.subr.mxu0 %v6812_v48  ;;  %3722 = vmatprep.subr.mxu1 %v7316_v61 }
 0x623   :  { %2339 = vmatpush1.msra.mxu0 %v6819_v35  ;;  %2372 = vmatprep.mubr.f32.mxu0 %v7316_v61  ;;  %v6823_v23 = vadd.f32 %v3920_v60, %v2157_v8 }
 0x624   :  { %3723 = vmatpush3.msra.mxu1 %v6828_v28  ;;  %3724 = vmatprep.mubr.msk.f32.mxu1 %vm4204_vm0, %v7316_v61 }
 0x625   :  { %2160 = vst [vmem:[#allocation6 + $0x10] sm:$0xff] %v6823_v23  ;;  %2373 = vmatmul.mubr.f32.vlgmr.msra.gmra.mxu0 %v6823_v23  ;;  %3725 = vmatmul.mubr.f32.vlgmr.msra.gmra.mxu1 %v6823_v23 }
 0x626   :  { %2499 = vmatprep.subr.mxu0 %v6193_v33  ;;  %3727 = vmatprep.subr.mxu1 %v7316_v61  ;;  %v7589_v33 = vld [vmem:[#allocation66_spill] sm:$0xff] }
 0x627   :  { %2500 = vmatpush1.msra.mxu0 %v6200_v57  ;;  %3728 = vmatpush3.msra.mxu1 %v6206_v41  ;;  %v7590_v57 = vld [vmem:[#allocation55_spill] sm:$0xff]  ;;  %v7591_v41 = vld [vmem:[#allocation26_spill] sm:$0xff] }
 0x628   :  { %2501 = vmatprep.subr.mxu0 %v6212_v63  ;;  %3729 = vmatprep.subr.mxu1 %v7316_v61  ;;  %v7592_v63 = vld [vmem:[#allocation17_spill] sm:$0xff] }
 0x629   :  { %2502 = vmatpush1.msra.mxu0 %v6219_v32  ;;  %3730 = vmatpush3.msra.mxu1 %v6225_v21  ;;  %v7593_v32 = vld [vmem:[#allocation18_spill] sm:$0xff]  ;;  %v7594_v21 = vld [vmem:[#allocation27_spill] sm:$0xff] }
 0x62a   :  { %2503 = vmatprep.subr.mxu0 %v6231_v45  ;;  %3731 = vmatprep.subr.mxu1 %v7316_v61  ;;  %v7595_v45 = vld [vmem:[#allocation19_spill] sm:$0xff] }
 0x62b   :  { %2504 = vmatpush1.msra.mxu0 %v6238_v52  ;;  %3732 = vmatpush3.msra.mxu1 %v6244_v3  ;;  %v7596_v52 = vld [vmem:[#allocation20_spill] sm:$0xff]  ;;  %v7597_v3 = vld [vmem:[#allocation30_spill] sm:$0xff] }
 0x62c   :  { %2505 = vmatprep.subr.mxu0 %v6250_v5  ;;  %3733 = vmatprep.subr.mxu1 %v7316_v61  ;;  %v2161_v5 = vld [vmem:[%s7052_s0 + $0x90] sm:$0xff] }
 0x62d   :  { %2506 = vmatpush1.msra.mxu0 %v6257_v6  ;;  %3734 = vmatpush3.msra.mxu1 %v6263_v7 }
 0x62e   :  { %2507 = vmatprep.subr.mxu0 %v6269_v9  ;;  %3735 = vmatprep.subr.mxu1 %v7316_v61 }
 0x62f   :  { %2508 = vmatpush1.msra.mxu0 %v6276_v10  ;;  %3736 = vmatpush3.msra.mxu1 %v6282_v11 }
 0x630   :  { %2509 = vmatprep.subr.mxu0 %v6288_v12  ;;  %3737 = vmatprep.subr.mxu1 %v7316_v61  ;;  %v2162_v12 = vld [vmem:[%s7052_s0 + $0x98] sm:$0xff] }
 0x631   :  { %2510 = vmatpush1.msra.mxu0 %v6295_v13  ;;  %3738 = vmatpush3.msra.mxu1 %v6301_v14 }
 0x632   :  { %2511 = vmatprep.subr.mxu0 %v6307_v15  ;;  %3739 = vmatprep.subr.mxu1 %v7316_v61 }
 0x633   :  { %2512 = vmatpush1.msra.mxu0 %v6314_v16  ;;  %3740 = vmatpush3.msra.mxu1 %v6320_v17 }
 0x634   :  { %2513 = vmatprep.subr.mxu0 %v6326_v18  ;;  %3741 = vmatprep.subr.mxu1 %v7316_v61  ;;  %v2164_v18 = vld [vmem:[%s7053_s1 + $0x18] sm:$0xff] }
 0x635   :  { %2514 = vmatpush1.msra.mxu0 %v6333_v56  ;;  %3742 = vmatpush3.msra.mxu1 %v6339_v31  ;;  %v6917_v31 = vld [vmem:[%s7055_s3] ss:$0 sm:$0xff] }
 0x636   :  { %2515 = vmatprep.subr.mxu0 %v6345_v19  ;;  %3743 = vmatprep.subr.mxu1 %v7316_v61 }
 0x637   :  { %2516 = vmatpush1.msra.mxu0 %v6352_v22  ;;  %3744 = vmatpush3.msra.mxu1 %v6358_v46 }
 0x638   :  { %2517 = vmatprep.subr.mxu0 %v6364_v0  ;;  %3745 = vmatprep.subr.mxu1 %v7316_v61 }
 0x639   :  { %2518 = vmatpush1.msra.mxu0 %v6371_v2  ;;  %3746 = vmatpush3.msra.mxu1 %v6377_v4  ;;  %v2163_v2 = vld [vmem:[%s7052_s0 + $0xa0] sm:$0xff] }
 0x63a   :  { %2519 = vmatprep.subr.mxu0 %v6383_v53  ;;  %3747 = vmatprep.subr.mxu1 %v7316_v61 }
 0x63b   :  { %2520 = vmatpush1.msra.mxu0 %v6390_v54  ;;  %3748 = vmatpush3.msra.mxu1 %v6396_v59 }
 0x63c   :  { %2521 = vmatprep.subr.mxu0 %v6402_v38  ;;  %3749 = vmatprep.subr.mxu1 %v7316_v61 }
 0x63d   :  { %2522 = vmatpush1.msra.mxu0 %v6409_v24  ;;  %3750 = vmatpush3.msra.mxu1 %v6415_v40  ;;  %v2165_v40 = vld [vmem:[%s7053_s1 + $0x20] sm:$0xff] }
 0x63e   :  { %2523 = vmatprep.subr.mxu0 %v6421_v49  ;;  %3751 = vmatprep.subr.mxu1 %v7316_v61 }
 0x63f   :  { %2524 = vmatpush1.msra.mxu0 %v6428_v44  ;;  %3752 = vmatpush3.msra.mxu1 %v6434_v55 }
 0x640   :  { %2525 = vmatprep.subr.mxu0 %v6440_v36  ;;  %3753 = vmatprep.subr.mxu1 %v7316_v61 }
 0x641   :  { %2526 = vmatpush1.msra.mxu0 %v7589_v33  ;;  %3754 = vmatpush3.msra.mxu1 %v7590_v57 }
 0x642   :  { %2527 = vmatprep.subr.mxu0 %v7591_v41  ;;  %3755 = vmatprep.subr.mxu1 %v7316_v61 }
 0x643   :  { %2528 = vmatpush1.msra.mxu0 %v7592_v63  ;;  %3756 = vmatpush3.msra.mxu1 %v7593_v32  ;;  %v7604_v63 = vld [vmem:[#allocation52_spill] sm:$0xff]  ;;  %v7605_v32 = vld [vmem:[#allocation42_spill] sm:$0xff] }
 0x644   :  { %2529 = vmatprep.subr.mxu0 %v7594_v21  ;;  %3757 = vmatprep.subr.mxu1 %v7316_v61  ;;  %v7608_v21 = vld [vmem:[#allocation31_spill] sm:$0xff] }
 0x645   :  { %2530 = vmatpush1.msra.mxu0 %v7595_v45  ;;  %2563 = vmatprep.mubr.f32.mxu0 %v7316_v61  ;;  %v7609_v45 = vld [vmem:[#allocation48_spill] sm:$0xff] }
 0x646   :  { %3758 = vmatpush3.msra.mxu1 %v7596_v52  ;;  %3759 = vmatprep.mubr.msk.f32.mxu1 %vm4204_vm0, %v7316_v61  ;;  %v7610_v52 = vld [vmem:[#allocation34_spill] sm:$0xff] }
 0x647   :  { %2640 = vmatprep.subr.mxu0 %v7597_v3  ;;  %3762 = vmatprep.subr.mxu1 %v7316_v61  ;;  %v7611_v3 = vld [vmem:[#allocation35_spill] sm:$0xff] }
 0x6c4   :  { %v2233_v6 = vpop.f32.mrf.mxu0  ;;  %v2304_v7 = vpop.f32.mrf.mxu1 }
 0x6c5   :  { %v2449_v9 = vadd.f32 %v2233_v6, %v2161_v5  ;;  %v2463_v19 = vadd.f32 %v6917_v31, %v2304_v7  ;;  %v7612_v5 = vld [vmem:[#allocation51_spill] sm:$0xff]  ;;  %v7613_v6 = vld [vmem:[#allocation36_spill] sm:$0xff]  ;;  %v7614_v7 = vld [vmem:[#allocation54_spill] sm:$0xff] }
 0x6c6   :  { %v3691_v10 = vpop.f32.mrf.mxu1  ;;  %v2235_v13 = vpop.f32.mrf.mxu0 }
 0x6c7   :  { %v2956_v11 = vmul.f32 -1.442695, %v2449_v9  ;;  %v2456_v14 = vadd.f32 %v2235_v13, %v2162_v12  ;;  %v7615_v9 = vld [vmem:[#allocation39_spill] sm:$0xff]  ;;  %v7616_v10 = vld [vmem:[#allocation41_spill] sm:$0xff]  ;;  %v7618_v12 = vld [vmem:[#allocation58_spill] sm:$0xff] }
 0x6c8   :  { %v7619_v13 = vld [vmem:[#allocation59_spill] sm:$0xff] }
 0x6c9   :  { %3923 = vpow2.f32 %v2956_v11  ;;  %v2957_v15 = vmul.f32 -1.442695, %v2456_v14  ;;  %v7617_v11 = vld [vmem:[#allocation56_spill] sm:$0xff]  ;;  %v7620_v14 = vld [vmem:[#allocation61_spill] sm:$0xff] }
 0x6cb   :  { %3925 = vpow2.f32 %v2957_v15 }
 0x6d6   :  { %v3924_v16 = vpop.eup %3923 }
 0x6d7   :  { %v2453_v17 = vadd.f32 1.0, %v3924_v16  ;;  %v7621_v16 = vld [vmem:[#allocation62_spill] sm:$0xff] }
 0x6d8   :  { %v3926_v56 = vpop.eup %3925 }
 0x6d9   :  { %3927 = vrcp.f32 %v2453_v17  ;;  %v2460_v24 = vadd.f32 1.0, %v3926_v56  ;;  %v7622_v17 = vld [vmem:[#allocation10_spill] sm:$0xff] }
 0x6e5   :  { %v2374_v22 = vpop.f32.mrf.mxu0  ;;  %v2445_v46 = vpop.f32.mrf.mxu1 }
 0x6e6   :  { %v3928_v0 = vpop.eup %3927  ;;  %v2470_v4 = vadd.f32 %v2374_v22, %v2164_v18  ;;  %v7623_v18 = vld [vmem:[#allocation11_spill] sm:$0xff]  ;;  %v7624_v22 = vld [vmem:[#allocation12_spill] sm:$0xff] }
 0x6e7   :  { %v2464_v53 = vmul.f32 %v3928_v0, %v2463_v19  ;;  %v3726_v54 = vpop.f32.mrf.mxu1  ;;  %v2376_v49 = vpop.f32.mrf.mxu0  ;;  %v7626_v0 = vld [vmem:[#allocation13_spill] sm:$0xff] }
 0x6e8   :  { %v2958_v59 = vmul.f32 -1.442695, %v2470_v4  ;;  %v2477_v44 = vadd.f32 %v2376_v49, %v2165_v40 }
 0x6e9   :  { %v2465_v38 = vadd.f32 %v2464_v53, %v2163_v2 }
 0x6ea   :  { %3929 = vpow2.f32 %v2958_v59  ;;  %v2959_v55 = vmul.f32 -1.442695, %v2477_v44  ;;  %v2496_v44 = vld [vmem:[%s7053_s1] sm:$0xff] }
 0x6eb   :  { %3931 = vtanh.f32 %v2465_v38 }
 0x6ec   :  { %3933 = vrcp.f32 %v2460_v24 }
 0x6ed   :  { %3935 = vpow2.f32 %v2959_v55 }
 0x6f7   :  { %v3930_v36 = vpop.eup %3929 }
 0x6f8   :  { %v3932_v27 = vpop.eup %3931  ;;  %v2474_v8 = vadd.f32 1.0, %v3930_v36 }
 0x6f9   :  { %v2467_v60 = vsub.f32 %v6521_v30, %v3932_v27  ;;  %v3934_v33 = vpop.eup %3933 }
 0x6fa   :  { %3937 = vrcp.f32 %v2474_v8  ;;  %v3936_v30 = vpop.eup %3935 }
 0x6fb   :  { %v2468_v57 = vmul.f32 %v3934_v33, %v2467_v60  ;;  %v2495_v33 = vld [vmem:[%s7052_s0 + $0xb8] sm:$0xff] }
 0x6fd   :  { %v6927_v41 = vadd.f32 %v3932_v27, %v2468_v57 }
 0x6ff   :  { %2491 = vst [vmem:[#allocation4 + $0x30] sm:$0xff] %v6927_v41  ;;  %2564 = vmatmul.mubr.f32.vlgmr.msra.gmra.mxu0 %v6927_v41  ;;  %3760 = vmatmul.mubr.f32.vlgmr.msra.gmra.mxu1 %v6927_v41 }
 0x700   :  { %2641 = vmatpush1.msra.mxu0 %v6529_v29  ;;  %3763 = vmatpush3.msra.mxu1 %v6535_v42  ;;  %v6947_v29 = vld [vmem:[%s7055_s3 + $0x1] ss:$0 sm:$0xff] }
 0x701   :  { %2642 = vmatprep.subr.mxu0 %v6541_v39  ;;  %3764 = vmatprep.subr.mxu1 %v7316_v61  ;;  %v2484_v42 = vadd.f32 %v6947_v29, %v2445_v46  ;;  %v7625_v46 = vld [vmem:[#allocation22_spill] sm:$0xff] }
 0x702   :  { %2643 = vmatpush1.msra.mxu0 %v6548_v37  ;;  %3765 = vmatpush3.msra.mxu1 %v6554_v26  ;;  %v2166_v37 = vld [vmem:[%s7053_s1 + $0x28] sm:$0xff] }
 0x703   :  { %2644 = vmatprep.subr.mxu0 %v6560_v1  ;;  %3766 = vmatprep.subr.mxu1 %v7316_v61  ;;  %v7598_v1 = vld [vmem:[#allocation21_spill] sm:$0xff] }
 0x704   :  { %2645 = vmatpush1.msra.mxu0 %v6567_v51  ;;  %3767 = vmatpush3.msra.mxu1 %v6573_v58  ;;  %v7599_v51 = vld [vmem:[#allocation23_spill] sm:$0xff] }
 0x705   :  { %2646 = vmatprep.subr.mxu0 %v6579_v62  ;;  %3768 = vmatprep.subr.mxu1 %v7316_v61  ;;  %v2481_v62 = vadd.f32 1.0, %v3936_v30 }
 0x706   :  { %2647 = vmatpush1.msra.mxu0 %v6587_v47  ;;  %3769 = vmatpush3.msra.mxu1 %v6593_v43  ;;  %v7600_v47 = vld [vmem:[#allocation47_spill] sm:$0xff]  ;;  %v7601_v43 = vld [vmem:[#allocation64_spill] sm:$0xff] }
 0x707   :  { %v3938_v39 = vpop.eup %3937  ;;  %2648 = vmatprep.subr.mxu0 %v6602_v20  ;;  %3770 = vmatprep.subr.mxu1 %v7316_v61  ;;  %v7602_v20 = vld [vmem:[#allocation50_spill] sm:$0xff] }
 0x708   :  { %v2485_v26 = vmul.f32 %v3938_v39, %v2484_v42  ;;  %2649 = vmatpush1.msra.mxu0 %v6609_v50  ;;  %3771 = vmatpush3.msra.mxu1 %v7598_v1  ;;  %v7603_v50 = vld [vmem:[#allocation65_spill] sm:$0xff] }
 0x709   :  { %2650 = vmatprep.subr.mxu0 %v7599_v51  ;;  %3772 = vmatprep.subr.mxu1 %v7316_v61 }
 0x70a   :  { %v2486_v58 = vadd.f32 %v2485_v26, %v2166_v37  ;;  %2651 = vmatpush1.msra.mxu0 %v6628_v25  ;;  %3773 = vmatpush3.msra.mxu1 %v6634_v34  ;;  %v7606_v25 = vld [vmem:[#allocation28_spill] sm:$0xff]  ;;  %v7607_v34 = vld [vmem:[#allocation45_spill] sm:$0xff] }
 0x70b   :  { %2652 = vmatprep.subr.mxu0 %v7600_v47  ;;  %3774 = vmatprep.subr.mxu1 %v7316_v61 }
 0x70c   :  { %3939 = vtanh.f32 %v2486_v58  ;;  %2653 = vmatpush1.msra.mxu0 %v7601_v43  ;;  %3775 = vmatpush3.msra.mxu1 %v7602_v20 }
 0x70d   :  { %2654 = vmatprep.subr.mxu0 %v7603_v50  ;;  %3776 = vmatprep.subr.mxu1 %v7316_v61  ;;  %3941 = vrcp.f32 %v2481_v62 }
 0x70e   :  { %2655 = vmatpush1.msra.mxu0 %v7604_v63  ;;  %3777 = vmatpush3.msra.mxu1 %v7605_v32 }
 0x70f   :  { %2656 = vmatprep.subr.mxu0 %v7606_v25  ;;  %3778 = vmatprep.subr.mxu1 %v7316_v61 }
 0x710   :  { %2657 = vmatpush1.msra.mxu0 %v7607_v34  ;;  %3779 = vmatpush3.msra.mxu1 %v7608_v21 }
 0x711   :  { %2658 = vmatprep.subr.mxu0 %v7609_v45  ;;  %3780 = vmatprep.subr.mxu1 %v7316_v61 }
 0x712   :  { %2659 = vmatpush1.msra.mxu0 %v7610_v52  ;;  %3781 = vmatpush3.msra.mxu1 %v7611_v3 }
 0x713   :  { %2660 = vmatprep.subr.mxu0 %v7612_v5  ;;  %3782 = vmatprep.subr.mxu1 %v7316_v61 }
 0x714   :  { %2661 = vmatpush1.msra.mxu0 %v7613_v6  ;;  %3783 = vmatpush3.msra.mxu1 %v7614_v7 }
 0x715   :  { %2662 = vmatprep.subr.mxu0 %v7615_v9  ;;  %3784 = vmatprep.subr.mxu1 %v7316_v61 }
 0x716   :  { %2663 = vmatpush1.msra.mxu0 %v7616_v10  ;;  %3785 = vmatpush3.msra.mxu1 %v7617_v11 }
 0x717   :  { %2664 = vmatprep.subr.mxu0 %v7618_v12  ;;  %3786 = vmatprep.subr.mxu1 %v7316_v61 }
 0x718   :  { %2665 = vmatpush1.msra.mxu0 %v7619_v13  ;;  %3787 = vmatpush3.msra.mxu1 %v7620_v14 }
 0x719   :  { %v3940_v15 = vpop.eup %3939  ;;  %2666 = vmatprep.subr.mxu0 %v7621_v16  ;;  %3788 = vmatprep.subr.mxu1 %v7316_v61 }
 0x71a   :  { %2667 = vmatpush1.msra.mxu0 %v7622_v17  ;;  %3789 = vmatpush3.msra.mxu1 %v7623_v18  ;;  %v2488_v56 = vsub.f32 %v6823_v23, %v3940_v15  ;;  %v3942_v19 = vpop.eup %3941 }
 0x71b   :  { %2668 = vmatprep.subr.mxu0 %v7624_v22  ;;  %3790 = vmatprep.subr.mxu1 %v7316_v61 }
 0x71c   :  { %2669 = vmatpush1.msra.mxu0 %v7625_v46  ;;  %3791 = vmatpush3.msra.mxu1 %v7626_v0  ;;  %v2489_v2 = vmul.f32 %v3942_v19, %v2488_v56 }
 0x71d   :  { %2670 = vmatprep.subr.mxu0 %v6812_v48  ;;  %3792 = vmatprep.subr.mxu1 %v7316_v61  ;;  %v2493_v48 = vld [vmem:[%s7052_s0 + $0xa8] sm:$0xff] }
 0x71e   :  { %2671 = vmatpush1.msra.mxu0 %v6819_v35  ;;  %2704 = vmatprep.mubr.f32.mxu0 %v7316_v61  ;;  %v7004_v4 = vadd.f32 %v3940_v15, %v2489_v2 }
 0x71f   :  { %3793 = vmatpush3.msra.mxu1 %v6828_v28  ;;  %3794 = vmatprep.mubr.msk.f32.mxu1 %vm4204_vm0, %v7316_v61  ;;  %v2494_v61 = vld [vmem:[%s7052_s0 + $0xb0] sm:$0xff]  ;;  %s4205_s0 = smov [#allocation4]  }
 0x720   :  { %2492 = vst [vmem:[#allocation6 + $0x8] sm:$0xff] %v7004_v4  ;;  %2705 = vmatmul.mubr.f32.vlgmr.msra.gmra.mxu0 %v7004_v4  ;;  %3795 = vmatmul.mubr.f32.vlgmr.msra.gmra.mxu1 %v7004_v4  ;;  %s2838_s2 = sshll.u32 %s4205_s0, 4  ;;  %s2839_s2 = int_to_ptr.vmem [resolvable:$true] %s2838_s2 }
 0x721   :  { %s4159_s7 = scalar_lea.vmem %s2839_s2, 1024  ;;  %p4164_p1 = scmp.lt.s32.totalorder %s2839_s2, %s2839_s2 }
 0x722   :  { %p4160_p0 = scmp.ne.s32.totalorder %s2839_s2, %s4159_s7  ;;  %p4165_p2 = scmp.lt.s32.totalorder %s4159_s7, %s4159_s7 }
 0x724   :  { %p4166_p3 = por %p4165_p2, %p4164_p1 }
 0x726   :  { %p4167_p4 = pnand %p4166_p3, %p4160_p0 }
 0x7bf   :  { %v2565_v35 = vpop.f32.mrf.mxu0  ;;  %v2636_v23 = vpop.f32.mrf.mxu1 }
 0x7c0   :  { %v2781_v53 = vadd.f32 %v2565_v35, %v2493_v48  ;;  %v2795_v36 = vadd.f32 %v6917_v31, %v2636_v23  ;;  %v2497_v31 = vld [vmem:[%s7053_s1 + $0x8] sm:$0xff] }
 0x7c1   :  { %v3761_v54 = vpop.f32.mrf.mxu1  ;;  %v2567_v28 = vpop.f32.mrf.mxu0 }
 0x7c2   :  { %v2960_v59 = vmul.f32 -1.442695, %v2781_v53  ;;  %v2788_v38 = vadd.f32 %v2567_v28, %v2494_v61 }
 0x7c4   :  { %3943 = vpow2.f32 %v2960_v59  ;;  %v2961_v24 = vmul.f32 -1.442695, %v2788_v38 }
 0x7c6   :  { %3945 = vpow2.f32 %v2961_v24 }
 0x7d1   :  { %v3944_v40 = vpop.eup %3943 }
 0x7d2   :  { %v2785_v49 = vadd.f32 1.0, %v3944_v40 }
 0x7d3   :  { %v3946_v55 = vpop.eup %3945 }
 0x7d4   :  { %3947 = vrcp.f32 %v2785_v49  ;;  %v2792_v26 = vadd.f32 1.0, %v3946_v55 }
 0x7e0   :  { %v2706_v27 = vpop.f32.mrf.mxu0  ;;  %v2777_v8 = vpop.f32.mrf.mxu1 }
 0x7e1   :  { %v3948_v60 = vpop.eup %3947  ;;  %v2802_v57 = vadd.f32 %v2706_v27, %v2496_v44 }
 0x7e2   :  { %v2796_v30 = vmul.f32 %v3948_v60, %v2795_v36  ;;  %v3796_v42 = vpop.f32.mrf.mxu1  ;;  %v2708_v1 = vpop.f32.mrf.mxu0 }
 0x7e3   :  { %v2962_v39 = vmul.f32 -1.442695, %v2802_v57  ;;  %v2809_v51 = vadd.f32 %v2708_v1, %v2497_v31 }
 0x7e4   :  { %v2797_v37 = vadd.f32 %v2796_v30, %v2495_v33 }
 0x7e5   :  { %3949 = vpow2.f32 %v2962_v39  ;;  %v2963_v58 = vmul.f32 -1.442695, %v2809_v51 }
 0x7e6   :  { %3951 = vtanh.f32 %v2797_v37 }
 0x7e7   :  { %3953 = vrcp.f32 %v2792_v26 }
 0x7e8   :  { %3955 = vpow2.f32 %v2963_v58 }
 0x7f2   :  { %v3950_v62 = vpop.eup %3949 }
 0x7f3   :  { %v3952_v47 = vpop.eup %3951  ;;  %v2806_v43 = vadd.f32 1.0, %v3950_v62 }
 0x7f4   :  { %v2799_v20 = vsub.f32 %v6927_v41, %v3952_v47  ;;  %v3954_v50 = vpop.eup %3953 }
 0x7f5   :  { %3957 = vrcp.f32 %v2806_v43 }
 0x7f6   :  { %v2800_v63 = vmul.f32 %v3954_v50, %v2799_v20 }
 0x7f8   :  { %v2801_v32 = vadd.f32 %v3952_v47, %v2800_v63 }
 0x7fa   :  { %2823 = vst [vmem:[#allocation4 + $0x38] sm:$0xff] %v2801_v32  ;;  %2830 = vst [vmem:[%s7058_s6] sm:$0xff] %v2801_v32 }
 0x7fb   :  { %4170 = shalt.err (!%p4167_p4)
}
 0x7fc   :  { %s4206_s8 = smov 128   ;;  %s4207_s9 = smov 8   ;;  %v3956_v41 = vpop.eup %3955  ;;  %v2816_v25 = vadd.f32 %v6947_v29, %v2777_v8  ;;  %v2498_v21 = vld [vmem:[%s7053_s1 + $0x10] sm:$0xff] }
 0x7fd   :  { %2844 = dma.vmem_to_hbm [thread:$0]  %s2839_s2, 1024, %s7056_s4, [#allocation5], %s4206_s8, %s4206_s8, %s4207_s9   ;;  %v2813_v3 = vadd.f32 1.0, %v3956_v41 }
 0x7fe   :  { %s4208_s14 = smov [#allocation6]  }
 0x7ff   :  { %s2854_s15 = sshll.u32 %s4208_s14, 4  ;;  %s2855_s15 = int_to_ptr.vmem [resolvable:$true] %s2854_s15 }
 0x800   :  { %s4179_s1 = scalar_lea.vmem %s2855_s15, 1024  ;;  %p4184_p6 = scmp.lt.s32.totalorder %s2855_s15, %s2855_s15 }
 0x801   :  { %p4180_p5 = scmp.ne.s32.totalorder %s2855_s15, %s4179_s1  ;;  %p4185_p7 = scmp.lt.s32.totalorder %s4179_s1, %s4179_s1 }
 0x802   :  { %v3958_v34 = vpop.eup %3957 }
 0x803   :  { %v2817_v45 = vmul.f32 %v3958_v34, %v2816_v25  ;;  %p4186_p8 = por %p4185_p7, %p4184_p6 }
 0x805   :  { %v2818_v52 = vadd.f32 %v2817_v45, %v2498_v21  ;;  %p4187_p9 = pnand %p4186_p8, %p4180_p5 }
 0x807   :  { %3959 = vtanh.f32 %v2818_v52 }
 0x808   :  { %3961 = vrcp.f32 %v2813_v3 }
 0x814   :  { %v3960_v5 = vpop.eup %3959 }
 0x815   :  { %v2820_v6 = vsub.f32 %v7004_v4, %v3960_v5  ;;  %v3962_v7 = vpop.eup %3961 }
 0x817   :  { %v2821_v9 = vmul.f32 %v3962_v7, %v2820_v6 }
 0x819   :  { %v2822_v10 = vadd.f32 %v3960_v5, %v2821_v9 }
 0x81b   :  { %2824 = vst [vmem:[#allocation6] sm:$0xff] %v2822_v10  ;;  %2964 = vst [vmem:[%s7058_s6 + $0x8] sm:$0xff] %v2822_v10 }
 0x81c   :  { %4190 = shalt.err (!%p4187_p9)
}
 0x81d   :  { %2860 = dma.vmem_to_hbm [thread:$0]  %s2855_s15, 1024, %s7057_s5, [#allocation7], %s4206_s8, %s4206_s8, %s4207_s9  }
 0x81e   :  { %4199 = dma.done.wait [#allocation5], 1024  }
 0x81f   :  { %4200 = vsyncadd [#allocation5], 4294966272 }
 0x820   :  { %4201 = dma.done.wait [#allocation7], 1024  }
 0x821   :  { %4202 = vsyncadd [#allocation7], 4294966272 }
 0x822   :  { %2871 = vsyncpa [#allocation5], 1 }
 0x823   :  { %2872 = vsyncpa [#allocation7], 1 }

// kernel: _lambda_.9
= control target key start
LH: loop header
LB: loop body
LE: loop exit
PB: predicated region body
PF: predicated region fallthrough
CT: control target
= control target key end

     0   :  { %v288_v1 = vmov 0.0   ;;  %vm289_vm0 = vmmov 0   ;;  %s369_s0 = inlined_call_operand.vmem [shape: f32[2,64], index: 0, kind: input, shape index: {}]   ;;  %s370_s1 = inlined_call_operand.vmem [shape: f32[64,32], index: 1, kind: input, shape index: {}]   ;;  %s371_s2 = inlined_call_operand.vmem [shape: f32[1,32], index: 2, kind: input, shape index: {}]   ;;  %s372_s3 = inlined_call_operand.vmem [shape: f32[32,4], index: 3, kind: input, shape index: {}]   ;;  %s373_s4 = inlined_call_operand.vmem [shape: f32[1,4], index: 4, kind: input, shape index: {}]   ;;  %s374_s5 = inlined_call_operand.hbm [shape: f32[2,4], index: 5, kind: output, shape index: {}]  }
   0x1   :  { %v29_v0 = vld [vmem:[%s370_s1 + $0x38] sm:$0xff]  ;;  %233 = vmatprep.subr.mxu0 %v288_v1  ;;  %v28_v2 = vld [vmem:[%s370_s1 + $0x30] sm:$0xff]  ;;  %249 = vmatprep.mubr.msk.f32.mxu0 %vm289_vm0, %v288_v1  ;;  %v27_v3 = vld [vmem:[%s370_s1 + $0x28] sm:$0xff] }
   0x2   :  { %234 = vmatpush3.msra.mxu0 %v29_v0  ;;  %252 = vmatprep.subr.mxu1 %v288_v1  ;;  %v117_v4 = vld [vmem:[%s372_s3 + $0x18] sm:$0xff] }
   0x3   :  { %235 = vmatprep.subr.mxu0 %v288_v1  ;;  %260 = vmatprep.mubr.msk.f32.mxu1 %vm289_vm0, %v288_v1 }
   0x4   :  { %10 = vsyncpa [#allocation3], 0  ;;  %236 = vmatpush3.msra.mxu0 %v28_v2  ;;  %253 = vmatpush3.msra.mxu1 %v117_v4  ;;  %v26_v5 = vld [vmem:[%s370_s1 + $0x20] sm:$0xff]  ;;  %v25_v6 = vld [vmem:[%s370_s1 + $0x18] sm:$0xff]  ;;  %vm37_vm1 = vcmask 523264   ;;  %vm125_vm3 = vcmask 261120  }
   0x5   :  { %237 = vmatprep.subr.mxu0 %v288_v1  ;;  %254 = vmatprep.subr.mxu1 %v288_v1  ;;  %v24_v7 = vld [vmem:[%s370_s1 + $0x10] sm:$0xff]  ;;  %v23_v8 = vld [vmem:[%s370_s1 + $0x8] sm:$0xff]  ;;  %v22_v9 = vld [vmem:[%s370_s1] sm:$0xff]  ;;  %s290_s21 = smov [#allocation2]   ;;  %vm199_vm4 = vcmask 25600  }
   0x6   :  { %238 = vmatpush3.msra.mxu0 %v27_v3  ;;  %v21_v10 = vld [vmem:[%s369_s0] sm:$0x3]  ;;  %v116_v11 = vld [vmem:[%s372_s3 + $0x10] sm:$0xff]  ;;  %v115_v12 = vld [vmem:[%s372_s3 + $0x8] sm:$0xff] }
   0x7   :  { %239 = vmatprep.subr.mxu0 %v288_v1  ;;  %255 = vmatpush3.msra.mxu1 %v116_v11  ;;  %v114_v13 = vld [vmem:[%s372_s3] sm:$0xff]  ;;  %s207_s3 = sshll.u32 %s290_s21, 4  ;;  %s208_s3 = int_to_ptr.vmem [resolvable:$true] %s207_s3 }
   0x8   :  { %240 = vmatpush3.msra.mxu0 %v26_v5  ;;  %256 = vmatprep.subr.mxu1 %v288_v1  ;;  %v215_v14 = vld [vmem:[%s371_s2] ss:$0 sm:$0xff]  ;;  %s266_s2 = scalar_lea.vmem %s208_s3, 32  ;;  %p271_p1 = scmp.lt.s32.totalorder %s208_s3, %s208_s3 }
   0x9   :  { %241 = vmatprep.subr.mxu0 %v288_v1  ;;  %257 = vmatpush3.msra.mxu1 %v115_v12  ;;  %v217_v20 = vld [vmem:[%s373_s4] ss:$0 sm:$0xff]  ;;  %p267_p0 = scmp.ne.s32.totalorder %s208_s3, %s266_s2  ;;  %p272_p2 = scmp.lt.s32.totalorder %s266_s2, %s266_s2 }
   0xa   :  { %242 = vmatpush3.msra.mxu0 %v25_v6  ;;  %258 = vmatprep.subr.mxu1 %v288_v1 }
   0xb   :  { %243 = vmatprep.subr.mxu0 %v288_v1  ;;  %259 = vmatpush3.msra.mxu1 %v114_v13  ;;  %p273_p3 = por %p272_p2, %p271_p1 }
   0xc   :  { %244 = vmatpush3.msra.mxu0 %v24_v7 }
   0xd   :  { %245 = vmatprep.subr.mxu0 %v288_v1  ;;  %p274_p4 = pnand %p273_p3, %p267_p0 }
   0xe   :  { %246 = vmatpush3.msra.mxu0 %v23_v8 }
   0xf   :  { %247 = vmatprep.subr.mxu0 %v288_v1 }
  0x10   :  { %248 = vmatpush3.msra.mxu0 %v22_v9 }
  0x11   :  { %250 = vmatmul.mubr.msk.f32.vlgmr.msra.gmra.mxu0 %vm37_vm1, %v21_v10 }
  0xd1   :  { %v107_v15 = vpop.f32.mrf.mxu0 }
  0xd2   :  { %v108_v16 = vadd.f32 %v215_v14, %v107_v15 }
  0xd3   :  { %v251_v17 = vpop.f32.mrf.mxu0 }
  0xd4   :  { %vm111_vm2 = vcmp.gt.f32.partialorder %v108_v16, 0.0  ;;  %v112_v18 = vmul.f32 0.01, %v108_v16 }
  0xd6   :  { %v113_v19 = vsel %vm111_vm2, %v108_v16, %v112_v18 }
  0xd7   :  { %261 = vmatmul.mubr.msk.f32.vlgmr.msra.gmra.mxu1 %vm125_vm3, %v113_v19 }
 0x197   :  { %v195_v21 = vpop.f32.mrf.mxu1 }
 0x198   :  { %v196_v22 = vadd.f32 %v217_v20, %v195_v21 }
 0x199   :  { %v262_v23 = vpop.f32.mrf.mxu1 }
 0x19a   :  { %200 = vst.msk [vmem:[#allocation2] sm:$0x3] %vm199_vm4, %v196_v22 }
 0x19b   :  { %277 = shalt.err (!%p274_p4)
}
 0x19c   :  { %210 = dma.vmem_to_hbm [thread:$0]  %s208_s3, 32, %s374_s5, [#allocation3]  }
 0x19d   :  { %286 = dma.done.wait [#allocation3], 32  }
 0x19e   :  { %287 = vsyncadd [#allocation3], 4294967264 }
 0x19f   :  { %214 = vsyncpa [#allocation3], 1 }

</bundles_post_ra>
